<compile_context>
chip_gen: v7x
topology: tpu7x:2x2x1
jax: 0.10.0
libtpu: 0.0.40
codegen_flags: <defaults>
</compile_context>

<pallas_src>
import jax
import jax.numpy as jnp
from jax.experimental import pallas as pl
from jax.experimental.pallas import tpu as pltpu

PE_POS_L = 10                       # -> 3 * 10 * 2 = 60 features
PE_DIR_L = 4                        # -> 3 * 4  * 2 = 24 features
PE_POS_DIM = 3 * PE_POS_L * 2       # 60
PE_DIR_DIM = 3 * PE_DIR_L * 2       # 24
FEAT_DIM = 128                      # lane-dense padded feature width
OUT_PAD = 128                       # lane-dense padded output width


# ----------------------------- wrapper-side feature prep ------------------------------

def positional_encoding(x, length):
    """Matches torch PositionalEncoding: [sin(2^0 x), cos(2^0 x), sin(2^1 x), ...]."""
    pieces = []
    for i in range(length):
        s = (2.0 ** i) * x
        pieces.append(jnp.sin(s))
        pieces.append(jnp.cos(s))
    return jnp.concatenate(pieces, axis=-1)


def encode_features(x):
    """x: [N, 6] -> lane-dense [N, 128] bf16 = [pe_pos(60) | pe_dir(24) | zeros(44)]."""
    pe_pos = positional_encoding(x[:, 0:3], PE_POS_L)
    pe_dir = positional_encoding(x[:, 3:6], PE_DIR_L)
    pad = jnp.zeros((x.shape[0], FEAT_DIM - PE_POS_DIM - PE_DIR_DIM), jnp.float32)
    return jnp.concatenate([pe_pos, pe_dir, pad], axis=-1).astype(jnp.bfloat16)


# -------------------------------------- kernel ----------------------------------------

def nerf_kernel(feats_ref,
                w_in_ref, w_skip_ref, w_hid_ref, b_hid_ref,
                w_d_ref, b_d_ref,
                w_dir_a_ref, w_dir_b_ref, b_dir_ref,
                w_rgb_ref, b_rgb_ref,
                out_ref):
    feats = feats_ref[...]                                       # [TM, 128] bf16

    def mm(a, w):
        # bf16 x bf16 MXU matmul, f32 accumulation.
        return jnp.dot(a.astype(jnp.bfloat16), w,
                       preferred_element_type=jnp.float32)

    def relu(z):
        return jnp.maximum(z, 0.0)

    # layer 0: pe_pos @ w0  (w0 zero-padded to 128 input rows -> use full slab)
    h = relu(mm(feats, w_in_ref[...]) + b_hid_ref[0])            # [TM, 256] f32
    # layers 1..4
    for i in range(4):
        h = relu(mm(h, w_hid_ref[i]) + b_hid_ref[i + 1])
    # layer 5 (skip): cat([pe_pos, h]) @ w5 == feats @ w5a_pad + h @ w5b
    h = relu(mm(feats, w_skip_ref[...]) + mm(h, w_hid_ref[4]) + b_hid_ref[5])
    # layers 6, 7
    h = relu(mm(h, w_hid_ref[5]) + b_hid_ref[6])
    h = relu(mm(h, w_hid_ref[6]) + b_hid_ref[7])

    # fused dir-0 (linear) + sigma head: w_d = [wd0 | wsig padded] -> [256, 384]
    zd = mm(h, w_d_ref[...]) + b_d_ref[...]                      # [TM, 384]
    hd = zd[:, 0:256]                                            # linear branch
    sig = relu(zd[:, 256:384])                                   # sigma at lane 3, 0 elsewhere

    # dir layer 1: cat([hd, pe_dir]) @ wd1 == hd @ wd1a + feats @ wd1b_pad
    hd2 = relu(mm(hd, w_dir_a_ref[...]) + mm(feats, w_dir_b_ref[...]) + b_dir_ref[...])

    # rgb head padded to 128 output lanes; sigmoid via EUP exp + approx reciprocal
    z_rgb = mm(hd2, w_rgb_ref[...]) + b_rgb_ref[...]             # [TM, 128]
    rgb = pl.reciprocal(1.0 + jnp.exp(-z_rgb), approx=True)

    lane = jax.lax.broadcasted_iota(jnp.int32, z_rgb.shape, 1)
    out_ref[...] = jnp.where(lane < 3, rgb, sig).astype(out_ref.dtype)


# ----------------------- parameter construction (deterministic) -----------------------

_GAINS = {"relu": 2.0 ** 0.5, "linear": 1.0, "sigmoid": 1.0}


def _dense_params(key, in_dim, out_dim, activation):
    gain = float(_GAINS[activation])
    lim = gain * (6.0 / (in_dim + out_dim)) ** 0.5
    w = jax.random.uniform(key, (in_dim, out_dim), jnp.float32, -lim, lim)
    b = jnp.zeros((out_dim,), jnp.float32)    # torch init: bias = 0
    return w, b


def init_nerf_params(key):
    """Torch-layout f32 params ([in, out] weights). Used by the reference."""
    ks = jax.random.split(key, 12)
    p = {}
    p["w0"], p["b0"] = _dense_params(ks[0], 60, 256, "relu")
    p["w1"], p["b1"] = _dense_params(ks[1], 256, 256, "relu")
    p["w2"], p["b2"] = _dense_params(ks[2], 256, 256, "relu")
    p["w3"], p["b3"] = _dense_params(ks[3], 256, 256, "relu")
    p["w4"], p["b4"] = _dense_params(ks[4], 256, 256, "relu")
    p["w5"], p["b5"] = _dense_params(ks[5], 60 + 256, 256, "relu")
    p["w6"], p["b6"] = _dense_params(ks[6], 256, 256, "relu")
    p["w7"], p["b7"] = _dense_params(ks[7], 256, 256, "relu")
    p["wsig"], p["bsig"] = _dense_params(ks[8], 256, 1, "relu")
    p["wd0"], p["bd0"] = _dense_params(ks[9], 256, 256, "linear")
    p["wd1"], p["bd1"] = _dense_params(ks[10], 256 + 24, 128, "relu")
    p["wrgb"], p["brgb"] = _dense_params(ks[11], 128, 3, "sigmoid")
    return p


def pack_kernel_params(p, dtype=jnp.bfloat16):
    """Pack / pad / stack torch-layout params into the kernel layout (weights -> bf16)."""
    z = jnp.zeros

    # pe_pos lives in feats[:, 0:60], pe_dir in feats[:, 60:84], feats[:, 84:] == 0.
    w_in = jnp.concatenate([p["w0"], z((FEAT_DIM - 60, 256))], axis=0)               # [128,256]
    w_skip = jnp.concatenate([p["w5"][:60], z((FEAT_DIM - 60, 256))], axis=0)        # [128,256]
    w_dir_b = jnp.concatenate([z((60, 128)), p["wd1"][256:],
                               z((FEAT_DIM - 84, 128))], axis=0)                     # [128,128]

    w_hid = jnp.stack([p["w1"], p["w2"], p["w3"], p["w4"],
                       p["w5"][60:], p["w6"], p["w7"]], axis=0)                      # [7,256,256]
    b_hid = jnp.stack([p["b0"], p["b1"], p["b2"], p["b3"], p["b4"],
                       p["b5"], p["b6"], p["b7"]], axis=0)[:, None, :]               # [8,1,256]

    # fused dir-0 (linear) + sigma head: cols 0:256 = wd0, col 259 (local lane 3) = wsig
    wsig_pad = jnp.concatenate([z((256, 3)), p["wsig"], z((256, 124))], axis=1)      # [256,128]
    w_d = jnp.concatenate([p["wd0"], wsig_pad], axis=1)                              # [256,384]
    bsig_pad = jnp.concatenate([z((3,)), p["bsig"], z((124,))], axis=0)              # [128]
    b_d = jnp.concatenate([p["bd0"], bsig_pad], axis=0)[None, :]                     # [1,384]

    w_dir_a = p["wd1"][:256]                                                         # [256,128]
    b_dir = p["bd1"][None, :]                                                        # [1,128]

    w_rgb = jnp.concatenate([p["wrgb"], z((128, OUT_PAD - 3))], axis=1)              # [128,128]
    b_rgb = jnp.concatenate([p["brgb"], z((OUT_PAD - 3,))], axis=0)[None, :]         # [1,128]

    c = lambda w: w.astype(dtype)
    return [c(w_in), c(w_skip), c(w_hid), b_hid,
            c(w_d), b_d,
            c(w_dir_a), c(w_dir_b), b_dir,
            c(w_rgb), b_rgb]


# ----------------------------------- pallas wrapper -----------------------------------

def nerf_pallas(x, kparams, *, tm=512):
    assert tm % 8 == 0
    n = x.shape[0]
    feats = encode_features(x)                                  # [N, 128] bf16

    n_pad = ((n + tm - 1) // tm) * tm
    if n_pad != n:
        feats = jnp.pad(feats, ((0, n_pad - n), (0, 0)))

    # Grid-invariant weights: full-array blocks, constant index maps.
    weight_specs = [
        pl.BlockSpec(p.shape, (lambda i, _nd=p.ndim: (0,) * _nd)) for p in kparams
    ]
    in_specs = [pl.BlockSpec((tm, FEAT_DIM), lambda i: (i, 0))] + weight_specs
    out_specs = pl.BlockSpec((tm, OUT_PAD), lambda i: (i, 0))

    out = pl.pallas_call(
        nerf_kernel,
        out_shape=jax.ShapeDtypeStruct((n_pad, OUT_PAD), jnp.float32),
        grid_spec=pltpu.PrefetchScalarGridSpec(
            num_scalar_prefetch=0,
            grid=(n_pad // tm,),
            in_specs=in_specs,
            out_specs=out_specs,
        ),
        compiler_params=pltpu.CompilerParams(
            dimension_semantics=("parallel",),
            vmem_limit_bytes=32 * 1024 * 1024,
        ),
    )(feats, *kparams)
    return out[:n, :4]


# -------------------------------- pure-JAX reference ----------------------------------

def nerf_reference(x, p, *, matmul_dtype=jnp.float32):
    pe_pos = positional_encoding(x[:, 0:3], PE_POS_L)
    pe_dir = positional_encoding(x[:, 3:6], PE_DIR_L)
    relu = lambda z: jnp.maximum(z, 0.0)
    dot = lambda a, w: jnp.dot(a.astype(matmul_dtype), w.astype(matmul_dtype),
                               preferred_element_type=jnp.float32)
    h = relu(dot(pe_pos, p["w0"]) + p["b0"])
    h = relu(dot(h, p["w1"]) + p["b1"])
    h = relu(dot(h, p["w2"]) + p["b2"])
    h = relu(dot(h, p["w3"]) + p["b3"])
    h = relu(dot(h, p["w4"]) + p["b4"])
    h = relu(dot(jnp.concatenate([pe_pos, h], -1), p["w5"]) + p["b5"])
    h = relu(dot(h, p["w6"]) + p["b6"])
    h = relu(dot(h, p["w7"]) + p["b7"])
    sigma = relu(dot(h, p["wsig"]) + p["bsig"])
    hd = dot(h, p["wd0"]) + p["bd0"]
    hd = relu(dot(jnp.concatenate([hd, pe_dir], -1), p["wd1"]) + p["bd1"])
    z = dot(hd, p["wrgb"]) + p["brgb"]
    rgb = 1.0 / (1.0 + jnp.exp(-z))
    return jnp.concatenate([rgb, sigma], axis=-1)


if __name__ == "__main__":
    key = jax.random.PRNGKey(0)
    k_x, k_p = jax.random.split(key)

    N, TM = 1024, 512                       # grid = 2 -> both TCs busy on v7x
    x = jax.random.uniform(k_x, (N, 6), jnp.float32, minval=-1.0, maxval=1.0)
    params = init_nerf_params(k_p)
    kparams = pack_kernel_params(params)

    nerf_fn = jax.jit(lambda xx: nerf_pallas(xx, kparams, tm=TM))
    out = jax.block_until_ready(nerf_fn(x))
    assert out.shape == (N, 4)

    # Apples-to-apples check (bf16 matmuls, f32 accum) — validates packing/fusion math.
    ref_bf16 = nerf_reference(x, params, matmul_dtype=jnp.bfloat16)
    err_b = float(jnp.max(jnp.abs(out - ref_bf16)))
    assert jnp.allclose(out, ref_bf16, atol=1e-2, rtol=1e-2), f"bf16 ref mismatch {err_b}"

    # Sanity against the full-precision reference (bf16 matmul error budget).
    ref_f32 = nerf_reference(x, params, matmul_dtype=jnp.float32)
    err_f = float(jnp.max(jnp.abs(out - ref_f32)))
    assert jnp.allclose(out, ref_f32, atol=1e-1, rtol=1e-1), f"f32 ref mismatch {err_f}"

    print("KERNEL_OK")
</pallas_src>

<mosaic_0001>
module attributes {stable_mosaic.version = 11 : i64} {
  func.func @nerf_kernel(%arg0: i32, %arg1: memref<512x128xbf16, #tpu.memory_space<vmem>>, %arg2: memref<128x256xbf16, #tpu.memory_space<vmem>>, %arg3: memref<128x256xbf16, #tpu.memory_space<vmem>>, %arg4: memref<7x256x256xbf16, #tpu.memory_space<vmem>>, %arg5: memref<8x1x256xf32, #tpu.memory_space<vmem>>, %arg6: memref<256x384xbf16, #tpu.memory_space<vmem>>, %arg7: memref<1x384xf32, #tpu.memory_space<vmem>>, %arg8: memref<256x128xbf16, #tpu.memory_space<vmem>>, %arg9: memref<128x128xbf16, #tpu.memory_space<vmem>>, %arg10: memref<1x128xf32, #tpu.memory_space<vmem>>, %arg11: memref<128x128xbf16, #tpu.memory_space<vmem>>, %arg12: memref<1x128xf32, #tpu.memory_space<vmem>>, %arg13: memref<512x128xf32, #tpu.memory_space<vmem>>) attributes {dimension_semantics = [#tpu.dimension_semantics<parallel>], iteration_bounds = array<i64: 2>, scalar_prefetch = 0 : i64, scratch_operands = 0 : i64, tpu.core_type = #tpu.core_type<tc>, window_params = [{transform_indices = @transform_0, window_bounds = array<i64: 512, 128>}, {pipeline_mode = #tpu.pipeline_mode<synchronous>, transform_indices = @transform_1, window_bounds = array<i64: 128, 256>}, {pipeline_mode = #tpu.pipeline_mode<synchronous>, transform_indices = @transform_2, window_bounds = array<i64: 128, 256>}, {pipeline_mode = #tpu.pipeline_mode<synchronous>, transform_indices = @transform_3, window_bounds = array<i64: 7, 256, 256>}, {pipeline_mode = #tpu.pipeline_mode<synchronous>, transform_indices = @transform_4, window_bounds = array<i64: 8, 1, 256>}, {pipeline_mode = #tpu.pipeline_mode<synchronous>, transform_indices = @transform_5, window_bounds = array<i64: 256, 384>}, {pipeline_mode = #tpu.pipeline_mode<synchronous>, transform_indices = @transform_6, window_bounds = array<i64: 1, 384>}, {pipeline_mode = #tpu.pipeline_mode<synchronous>, transform_indices = @transform_7, window_bounds = array<i64: 256, 128>}, {pipeline_mode = #tpu.pipeline_mode<synchronous>, transform_indices = @transform_8, window_bounds = array<i64: 128, 128>}, {pipeline_mode = #tpu.pipeline_mode<synchronous>, transform_indices = @transform_9, window_bounds = array<i64: 1, 128>}, {pipeline_mode = #tpu.pipeline_mode<synchronous>, transform_indices = @transform_10, window_bounds = array<i64: 128, 128>}, {pipeline_mode = #tpu.pipeline_mode<synchronous>, transform_indices = @transform_11, window_bounds = array<i64: 1, 128>}, {transform_indices = @transform_12, window_bounds = array<i64: 512, 128>}]} {
    %c0 = arith.constant 0 : index
    %c0_0 = arith.constant 0 : index
    %0 = vector.load %arg1[%c0, %c0_0] : memref<512x128xbf16, #tpu.memory_space<vmem>>, vector<512x128xbf16>
    %c0_1 = arith.constant 0 : index
    %c0_2 = arith.constant 0 : index
    %1 = vector.load %arg2[%c0_1, %c0_2] : memref<128x256xbf16, #tpu.memory_space<vmem>>, vector<128x256xbf16>
    %cst = arith.constant dense<0.000000e+00> : vector<512x256xf32>
    %2 = tpu.matmul %0, %1, %cst {dimension_numbers = #tpu.dot_dimension_numbers<[1], [0], [0], [1], [0, 0, 1, 1], [], []>} : vector<512x128xbf16>, vector<128x256xbf16>, vector<512x256xf32> -> vector<512x256xf32>
    %c0_3 = arith.constant 0 : index
    %c0_4 = arith.constant 0 : index
    %c0_5 = arith.constant 0 : index
    %3 = vector.load %arg5[%c0_3, %c0_4, %c0_5] : memref<8x1x256xf32, #tpu.memory_space<vmem>>, vector<1x1x256xf32>
    %4 = vector.shape_cast %3 : vector<1x1x256xf32> to vector<1x256xf32>
    %5 = vector.broadcast %4 : vector<1x256xf32> to vector<512x256xf32>
    %6 = arith.addf %2, %5 : vector<512x256xf32>
    %cst_6 = arith.constant 0.000000e+00 : f32
    %7 = vector.broadcast %cst_6 : f32 to vector<512x256xf32>
    %8 = arith.maximumf %6, %7 : vector<512x256xf32>
    %c0_7 = arith.constant 0 : index
    %c0_8 = arith.constant 0 : index
    %c0_9 = arith.constant 0 : index
    %9 = vector.load %arg4[%c0_7, %c0_8, %c0_9] : memref<7x256x256xbf16, #tpu.memory_space<vmem>>, vector<1x256x256xbf16>
    %10 = vector.shape_cast %9 : vector<1x256x256xbf16> to vector<256x256xbf16>
    %11 = arith.truncf %8 : vector<512x256xf32> to vector<512x256xbf16>
    %cst_10 = arith.constant dense<0.000000e+00> : vector<512x256xf32>
    %12 = tpu.matmul %11, %10, %cst_10 {dimension_numbers = #tpu.dot_dimension_numbers<[1], [0], [0], [1], [0, 0, 1, 1], [], []>} : vector<512x256xbf16>, vector<256x256xbf16>, vector<512x256xf32> -> vector<512x256xf32>
    %c1 = arith.constant 1 : index
    %c0_11 = arith.constant 0 : index
    %c0_12 = arith.constant 0 : index
    %13 = vector.load %arg5[%c1, %c0_11, %c0_12] : memref<8x1x256xf32, #tpu.memory_space<vmem>>, vector<1x1x256xf32>
    %14 = vector.shape_cast %13 : vector<1x1x256xf32> to vector<1x256xf32>
    %15 = vector.broadcast %14 : vector<1x256xf32> to vector<512x256xf32>
    %16 = arith.addf %12, %15 : vector<512x256xf32>
    %cst_13 = arith.constant 0.000000e+00 : f32
    %17 = vector.broadcast %cst_13 : f32 to vector<512x256xf32>
    %18 = arith.maximumf %16, %17 : vector<512x256xf32>
    %c1_14 = arith.constant 1 : index
    %c0_15 = arith.constant 0 : index
    %c0_16 = arith.constant 0 : index
    %19 = vector.load %arg4[%c1_14, %c0_15, %c0_16] : memref<7x256x256xbf16, #tpu.memory_space<vmem>>, vector<1x256x256xbf16>
    %20 = vector.shape_cast %19 : vector<1x256x256xbf16> to vector<256x256xbf16>
    %21 = arith.truncf %18 : vector<512x256xf32> to vector<512x256xbf16>
    %cst_17 = arith.constant dense<0.000000e+00> : vector<512x256xf32>
    %22 = tpu.matmul %21, %20, %cst_17 {dimension_numbers = #tpu.dot_dimension_numbers<[1], [0], [0], [1], [0, 0, 1, 1], [], []>} : vector<512x256xbf16>, vector<256x256xbf16>, vector<512x256xf32> -> vector<512x256xf32>
    %c2 = arith.constant 2 : index
    %c0_18 = arith.constant 0 : index
    %c0_19 = arith.constant 0 : index
    %23 = vector.load %arg5[%c2, %c0_18, %c0_19] : memref<8x1x256xf32, #tpu.memory_space<vmem>>, vector<1x1x256xf32>
    %24 = vector.shape_cast %23 : vector<1x1x256xf32> to vector<1x256xf32>
    %25 = vector.broadcast %24 : vector<1x256xf32> to vector<512x256xf32>
    %26 = arith.addf %22, %25 : vector<512x256xf32>
    %cst_20 = arith.constant 0.000000e+00 : f32
    %27 = vector.broadcast %cst_20 : f32 to vector<512x256xf32>
    %28 = arith.maximumf %26, %27 : vector<512x256xf32>
    %c2_21 = arith.constant 2 : index
    %c0_22 = arith.constant 0 : index
    %c0_23 = arith.constant 0 : index
    %29 = vector.load %arg4[%c2_21, %c0_22, %c0_23] : memref<7x256x256xbf16, #tpu.memory_space<vmem>>, vector<1x256x256xbf16>
    %30 = vector.shape_cast %29 : vector<1x256x256xbf16> to vector<256x256xbf16>
    %31 = arith.truncf %28 : vector<512x256xf32> to vector<512x256xbf16>
    %cst_24 = arith.constant dense<0.000000e+00> : vector<512x256xf32>
    %32 = tpu.matmul %31, %30, %cst_24 {dimension_numbers = #tpu.dot_dimension_numbers<[1], [0], [0], [1], [0, 0, 1, 1], [], []>} : vector<512x256xbf16>, vector<256x256xbf16>, vector<512x256xf32> -> vector<512x256xf32>
    %c3 = arith.constant 3 : index
    %c0_25 = arith.constant 0 : index
    %c0_26 = arith.constant 0 : index
    %33 = vector.load %arg5[%c3, %c0_25, %c0_26] : memref<8x1x256xf32, #tpu.memory_space<vmem>>, vector<1x1x256xf32>
    %34 = vector.shape_cast %33 : vector<1x1x256xf32> to vector<1x256xf32>
    %35 = vector.broadcast %34 : vector<1x256xf32> to vector<512x256xf32>
    %36 = arith.addf %32, %35 : vector<512x256xf32>
    %cst_27 = arith.constant 0.000000e+00 : f32
    %37 = vector.broadcast %cst_27 : f32 to vector<512x256xf32>
    %38 = arith.maximumf %36, %37 : vector<512x256xf32>
    %c3_28 = arith.constant 3 : index
    %c0_29 = arith.constant 0 : index
    %c0_30 = arith.constant 0 : index
    %39 = vector.load %arg4[%c3_28, %c0_29, %c0_30] : memref<7x256x256xbf16, #tpu.memory_space<vmem>>, vector<1x256x256xbf16>
    %40 = vector.shape_cast %39 : vector<1x256x256xbf16> to vector<256x256xbf16>
    %41 = arith.truncf %38 : vector<512x256xf32> to vector<512x256xbf16>
    %cst_31 = arith.constant dense<0.000000e+00> : vector<512x256xf32>
    %42 = tpu.matmul %41, %40, %cst_31 {dimension_numbers = #tpu.dot_dimension_numbers<[1], [0], [0], [1], [0, 0, 1, 1], [], []>} : vector<512x256xbf16>, vector<256x256xbf16>, vector<512x256xf32> -> vector<512x256xf32>
    %c4 = arith.constant 4 : index
    %c0_32 = arith.constant 0 : index
    %c0_33 = arith.constant 0 : index
    %43 = vector.load %arg5[%c4, %c0_32, %c0_33] : memref<8x1x256xf32, #tpu.memory_space<vmem>>, vector<1x1x256xf32>
    %44 = vector.shape_cast %43 : vector<1x1x256xf32> to vector<1x256xf32>
    %45 = vector.broadcast %44 : vector<1x256xf32> to vector<512x256xf32>
    %46 = arith.addf %42, %45 : vector<512x256xf32>
    %cst_34 = arith.constant 0.000000e+00 : f32
    %47 = vector.broadcast %cst_34 : f32 to vector<512x256xf32>
    %48 = arith.maximumf %46, %47 : vector<512x256xf32>
    %c0_35 = arith.constant 0 : index
    %c0_36 = arith.constant 0 : index
    %49 = vector.load %arg3[%c0_35, %c0_36] : memref<128x256xbf16, #tpu.memory_space<vmem>>, vector<128x256xbf16>
    %cst_37 = arith.constant dense<0.000000e+00> : vector<512x256xf32>
    %50 = tpu.matmul %0, %49, %cst_37 {dimension_numbers = #tpu.dot_dimension_numbers<[1], [0], [0], [1], [0, 0, 1, 1], [], []>} : vector<512x128xbf16>, vector<128x256xbf16>, vector<512x256xf32> -> vector<512x256xf32>
    %c4_38 = arith.constant 4 : index
    %c0_39 = arith.constant 0 : index
    %c0_40 = arith.constant 0 : index
    %51 = vector.load %arg4[%c4_38, %c0_39, %c0_40] : memref<7x256x256xbf16, #tpu.memory_space<vmem>>, vector<1x256x256xbf16>
    %52 = vector.shape_cast %51 : vector<1x256x256xbf16> to vector<256x256xbf16>
    %53 = arith.truncf %48 : vector<512x256xf32> to vector<512x256xbf16>
    %cst_41 = arith.constant dense<0.000000e+00> : vector<512x256xf32>
    %54 = tpu.matmul %53, %52, %cst_41 {dimension_numbers = #tpu.dot_dimension_numbers<[1], [0], [0], [1], [0, 0, 1, 1], [], []>} : vector<512x256xbf16>, vector<256x256xbf16>, vector<512x256xf32> -> vector<512x256xf32>
    %55 = arith.addf %50, %54 : vector<512x256xf32>
    %c5 = arith.constant 5 : index
    %c0_42 = arith.constant 0 : index
    %c0_43 = arith.constant 0 : index
    %56 = vector.load %arg5[%c5, %c0_42, %c0_43] : memref<8x1x256xf32, #tpu.memory_space<vmem>>, vector<1x1x256xf32>
    %57 = vector.shape_cast %56 : vector<1x1x256xf32> to vector<1x256xf32>
    %58 = vector.broadcast %57 : vector<1x256xf32> to vector<512x256xf32>
    %59 = arith.addf %55, %58 : vector<512x256xf32>
    %cst_44 = arith.constant 0.000000e+00 : f32
    %60 = vector.broadcast %cst_44 : f32 to vector<512x256xf32>
    %61 = arith.maximumf %59, %60 : vector<512x256xf32>
    %c5_45 = arith.constant 5 : index
    %c0_46 = arith.constant 0 : index
    %c0_47 = arith.constant 0 : index
    %62 = vector.load %arg4[%c5_45, %c0_46, %c0_47] : memref<7x256x256xbf16, #tpu.memory_space<vmem>>, vector<1x256x256xbf16>
    %63 = vector.shape_cast %62 : vector<1x256x256xbf16> to vector<256x256xbf16>
    %64 = arith.truncf %61 : vector<512x256xf32> to vector<512x256xbf16>
    %cst_48 = arith.constant dense<0.000000e+00> : vector<512x256xf32>
    %65 = tpu.matmul %64, %63, %cst_48 {dimension_numbers = #tpu.dot_dimension_numbers<[1], [0], [0], [1], [0, 0, 1, 1], [], []>} : vector<512x256xbf16>, vector<256x256xbf16>, vector<512x256xf32> -> vector<512x256xf32>
    %c6 = arith.constant 6 : index
    %c0_49 = arith.constant 0 : index
    %c0_50 = arith.constant 0 : index
    %66 = vector.load %arg5[%c6, %c0_49, %c0_50] : memref<8x1x256xf32, #tpu.memory_space<vmem>>, vector<1x1x256xf32>
    %67 = vector.shape_cast %66 : vector<1x1x256xf32> to vector<1x256xf32>
    %68 = vector.broadcast %67 : vector<1x256xf32> to vector<512x256xf32>
    %69 = arith.addf %65, %68 : vector<512x256xf32>
    %cst_51 = arith.constant 0.000000e+00 : f32
    %70 = vector.broadcast %cst_51 : f32 to vector<512x256xf32>
    %71 = arith.maximumf %69, %70 : vector<512x256xf32>
    %c6_52 = arith.constant 6 : index
    %c0_53 = arith.constant 0 : index
    %c0_54 = arith.constant 0 : index
    %72 = vector.load %arg4[%c6_52, %c0_53, %c0_54] : memref<7x256x256xbf16, #tpu.memory_space<vmem>>, vector<1x256x256xbf16>
    %73 = vector.shape_cast %72 : vector<1x256x256xbf16> to vector<256x256xbf16>
    %74 = arith.truncf %71 : vector<512x256xf32> to vector<512x256xbf16>
    %cst_55 = arith.constant dense<0.000000e+00> : vector<512x256xf32>
    %75 = tpu.matmul %74, %73, %cst_55 {dimension_numbers = #tpu.dot_dimension_numbers<[1], [0], [0], [1], [0, 0, 1, 1], [], []>} : vector<512x256xbf16>, vector<256x256xbf16>, vector<512x256xf32> -> vector<512x256xf32>
    %c7 = arith.constant 7 : index
    %c0_56 = arith.constant 0 : index
    %c0_57 = arith.constant 0 : index
    %76 = vector.load %arg5[%c7, %c0_56, %c0_57] : memref<8x1x256xf32, #tpu.memory_space<vmem>>, vector<1x1x256xf32>
    %77 = vector.shape_cast %76 : vector<1x1x256xf32> to vector<1x256xf32>
    %78 = vector.broadcast %77 : vector<1x256xf32> to vector<512x256xf32>
    %79 = arith.addf %75, %78 : vector<512x256xf32>
    %cst_58 = arith.constant 0.000000e+00 : f32
    %80 = vector.broadcast %cst_58 : f32 to vector<512x256xf32>
    %81 = arith.maximumf %79, %80 : vector<512x256xf32>
    %c0_59 = arith.constant 0 : index
    %c0_60 = arith.constant 0 : index
    %82 = vector.load %arg6[%c0_59, %c0_60] : memref<256x384xbf16, #tpu.memory_space<vmem>>, vector<256x384xbf16>
    %83 = arith.truncf %81 : vector<512x256xf32> to vector<512x256xbf16>
    %cst_61 = arith.constant dense<0.000000e+00> : vector<512x384xf32>
    %84 = tpu.matmul %83, %82, %cst_61 {dimension_numbers = #tpu.dot_dimension_numbers<[1], [0], [0], [1], [0, 0, 1, 1], [], []>} : vector<512x256xbf16>, vector<256x384xbf16>, vector<512x384xf32> -> vector<512x384xf32>
    %c0_62 = arith.constant 0 : index
    %c0_63 = arith.constant 0 : index
    %85 = vector.load %arg7[%c0_62, %c0_63] : memref<1x384xf32, #tpu.memory_space<vmem>>, vector<1x384xf32>
    %86 = vector.broadcast %85 : vector<1x384xf32> to vector<512x384xf32>
    %87 = arith.addf %84, %86 : vector<512x384xf32>
    %88 = vector.extract_strided_slice %87 {offsets = [0, 0], sizes = [512, 256], strides = [1, 1]} : vector<512x384xf32> to vector<512x256xf32>
    %89 = vector.extract_strided_slice %87 {offsets = [0, 256], sizes = [512, 128], strides = [1, 1]} : vector<512x384xf32> to vector<512x128xf32>
    %cst_64 = arith.constant 0.000000e+00 : f32
    %90 = vector.broadcast %cst_64 : f32 to vector<512x128xf32>
    %91 = arith.maximumf %89, %90 : vector<512x128xf32>
    %c0_65 = arith.constant 0 : index
    %c0_66 = arith.constant 0 : index
    %92 = vector.load %arg8[%c0_65, %c0_66] : memref<256x128xbf16, #tpu.memory_space<vmem>>, vector<256x128xbf16>
    %93 = arith.truncf %88 : vector<512x256xf32> to vector<512x256xbf16>
    %cst_67 = arith.constant dense<0.000000e+00> : vector<512x128xf32>
    %94 = tpu.matmul %93, %92, %cst_67 {dimension_numbers = #tpu.dot_dimension_numbers<[1], [0], [0], [1], [0, 0, 1, 1], [], []>} : vector<512x256xbf16>, vector<256x128xbf16>, vector<512x128xf32> -> vector<512x128xf32>
    %c0_68 = arith.constant 0 : index
    %c0_69 = arith.constant 0 : index
    %95 = vector.load %arg9[%c0_68, %c0_69] : memref<128x128xbf16, #tpu.memory_space<vmem>>, vector<128x128xbf16>
    %cst_70 = arith.constant dense<0.000000e+00> : vector<512x128xf32>
    %96 = tpu.matmul %0, %95, %cst_70 {dimension_numbers = #tpu.dot_dimension_numbers<[1], [0], [0], [1], [0, 0, 1, 1], [], []>} : vector<512x128xbf16>, vector<128x128xbf16>, vector<512x128xf32> -> vector<512x128xf32>
    %97 = arith.addf %94, %96 : vector<512x128xf32>
    %c0_71 = arith.constant 0 : index
    %c0_72 = arith.constant 0 : index
    %98 = vector.load %arg10[%c0_71, %c0_72] : memref<1x128xf32, #tpu.memory_space<vmem>>, vector<1x128xf32>
    %99 = vector.broadcast %98 : vector<1x128xf32> to vector<512x128xf32>
    %100 = arith.addf %97, %99 : vector<512x128xf32>
    %cst_73 = arith.constant 0.000000e+00 : f32
    %101 = vector.broadcast %cst_73 : f32 to vector<512x128xf32>
    %102 = arith.maximumf %100, %101 : vector<512x128xf32>
    %c0_74 = arith.constant 0 : index
    %c0_75 = arith.constant 0 : index
    %103 = vector.load %arg11[%c0_74, %c0_75] : memref<128x128xbf16, #tpu.memory_space<vmem>>, vector<128x128xbf16>
    %104 = arith.truncf %102 : vector<512x128xf32> to vector<512x128xbf16>
    %cst_76 = arith.constant dense<0.000000e+00> : vector<512x128xf32>
    %105 = tpu.matmul %104, %103, %cst_76 {dimension_numbers = #tpu.dot_dimension_numbers<[1], [0], [0], [1], [0, 0, 1, 1], [], []>} : vector<512x128xbf16>, vector<128x128xbf16>, vector<512x128xf32> -> vector<512x128xf32>
    %c0_77 = arith.constant 0 : index
    %c0_78 = arith.constant 0 : index
    %106 = vector.load %arg12[%c0_77, %c0_78] : memref<1x128xf32, #tpu.memory_space<vmem>>, vector<1x128xf32>
    %107 = vector.broadcast %106 : vector<1x128xf32> to vector<512x128xf32>
    %108 = arith.addf %105, %107 : vector<512x128xf32>
    %cst_79 = arith.constant 0.000000e+00 : f32
    %109 = vector.broadcast %cst_79 : f32 to vector<512x128xf32>
    %110 = arith.subf %109, %108 : vector<512x128xf32>
    %111 = math.exp %110 : vector<512x128xf32>
    %cst_80 = arith.constant 1.000000e+00 : f32
    %112 = vector.broadcast %cst_80 : f32 to vector<512x128xf32>
    %113 = arith.addf %112, %111 : vector<512x128xf32>
    %114 = tpu.reciprocal %113 {approx = true} : vector<512x128xf32> -> vector<512x128xf32>
    %115 = tpu.iota {dimensions = array<i32: 1>} : vector<512x128xi32>
    %c3_i32 = arith.constant 3 : i32
    %116 = vector.broadcast %c3_i32 : i32 to vector<512x128xi32>
    %117 = arith.cmpi slt, %115, %116 : vector<512x128xi32>
    %118 = arith.select %117, %114, %91 : vector<512x128xi1>, vector<512x128xf32>
    %c0_81 = arith.constant 0 : index
    %c0_82 = arith.constant 0 : index
    %119 = vector.load %arg13[%c0_81, %c0_82] : memref<512x128xf32, #tpu.memory_space<vmem>>, vector<512x128xf32>
    tpu.vector_store %arg13[%c0_81, %c0_82], %118 {strides = array<i32>} : memref<512x128xf32, #tpu.memory_space<vmem>>, vector<512x128xf32>,
    return
  }
  func.func @transform_0(%arg0: i32) -> (i32, i32) {
    %c0_i32 = arith.constant 0 : i32
    %c0_i32_0 = arith.constant 0 : i32
    return %arg0, %c0_i32 : i32, i32
  }
  func.func @transform_1(%arg0: i32) -> (i32, i32) {
    %c0_i32 = arith.constant 0 : i32
    %c0_i32_0 = arith.constant 0 : i32
    %c0_i32_1 = arith.constant 0 : i32
    return %c0_i32, %c0_i32_0 : i32, i32
  }
  func.func @transform_2(%arg0: i32) -> (i32, i32) {
    %c0_i32 = arith.constant 0 : i32
    %c0_i32_0 = arith.constant 0 : i32
    %c0_i32_1 = arith.constant 0 : i32
    return %c0_i32, %c0_i32_0 : i32, i32
  }
  func.func @transform_3(%arg0: i32) -> (i32, i32, i32) {
    %c0_i32 = arith.constant 0 : i32
    %c0_i32_0 = arith.constant 0 : i32
    %c0_i32_1 = arith.constant 0 : i32
    %c0_i32_2 = arith.constant 0 : i32
    return %c0_i32, %c0_i32_0, %c0_i32_1 : i32, i32, i32
  }
  func.func @transform_4(%arg0: i32) -> (i32, i32, i32) {
    %c0_i32 = arith.constant 0 : i32
    %c0_i32_0 = arith.constant 0 : i32
    %c0_i32_1 = arith.constant 0 : i32
    %c0_i32_2 = arith.constant 0 : i32
    return %c0_i32, %c0_i32_0, %c0_i32_1 : i32, i32, i32
  }
  func.func @transform_5(%arg0: i32) -> (i32, i32) {
    %c0_i32 = arith.constant 0 : i32
    %c0_i32_0 = arith.constant 0 : i32
    %c0_i32_1 = arith.constant 0 : i32
    return %c0_i32, %c0_i32_0 : i32, i32
  }
  func.func @transform_6(%arg0: i32) -> (i32, i32) {
    %c0_i32 = arith.constant 0 : i32
    %c0_i32_0 = arith.constant 0 : i32
    %c0_i32_1 = arith.constant 0 : i32
    return %c0_i32, %c0_i32_0 : i32, i32
  }
  func.func @transform_7(%arg0: i32) -> (i32, i32) {
    %c0_i32 = arith.constant 0 : i32
    %c0_i32_0 = arith.constant 0 : i32
    %c0_i32_1 = arith.constant 0 : i32
    return %c0_i32, %c0_i32_0 : i32, i32
  }
  func.func @transform_8(%arg0: i32) -> (i32, i32) {
    %c0_i32 = arith.constant 0 : i32
    %c0_i32_0 = arith.constant 0 : i32
    %c0_i32_1 = arith.constant 0 : i32
    return %c0_i32, %c0_i32_0 : i32, i32
  }
  func.func @transform_9(%arg0: i32) -> (i32, i32) {
    %c0_i32 = arith.constant 0 : i32
    %c0_i32_0 = arith.constant 0 : i32
    %c0_i32_1 = arith.constant 0 : i32
    return %c0_i32, %c0_i32_0 : i32, i32
  }
  func.func @transform_10(%arg0: i32) -> (i32, i32) {
    %c0_i32 = arith.constant 0 : i32
    %c0_i32_0 = arith.constant 0 : i32
    %c0_i32_1 = arith.constant 0 : i32
    return %c0_i32, %c0_i32_0 : i32, i32
  }
  func.func @transform_11(%arg0: i32) -> (i32, i32) {
    %c0_i32 = arith.constant 0 : i32
    %c0_i32_0 = arith.constant 0 : i32
    %c0_i32_1 = arith.constant 0 : i32
    return %c0_i32, %c0_i32_0 : i32, i32
  }
  func.func @transform_12(%arg0: i32) -> (i32, i32) {
    %c0_i32 = arith.constant 0 : i32
    %c0_i32_0 = arith.constant 0 : i32
    return %arg0, %c0_i32 : i32, i32
  }
}

</mosaic_0001>

<bundles_post_ra>
// kernel: _lambda_.1
= control target key start
LH: loop header
LB: loop body
LE: loop exit
PB: predicated region body
PF: predicated region fallthrough
CT: control target
= control target key end

     0   :  { %s11936_s21 = smov 0   ;;  %s16200_s0 = inlined_call_operand.vmem [shape: bf16[1024,128], index: 0, kind: input, shape index: {}]   ;;  %s16201_s1 = inlined_call_operand.vmem [shape: bf16[128,256], index: 1, kind: input, shape index: {}]   ;;  %s16202_s2 = inlined_call_operand.vmem [shape: bf16[128,256], index: 2, kind: input, shape index: {}]   ;;  %s16203_s3 = inlined_call_operand.vmem [shape: bf16[7,256,256], index: 3, kind: input, shape index: {}]   ;;  %s16204_s4 = inlined_call_operand.vmem [shape: f32[8,1,256], index: 4, kind: input, shape index: {}]   ;;  %s16205_s5 = inlined_call_operand.vmem [shape: bf16[256,384], index: 5, kind: input, shape index: {}]   ;;  %s16206_s6 = inlined_call_operand.vmem [shape: f32[1,384], index: 6, kind: input, shape index: {}]   ;;  %s16207_s7 = inlined_call_operand.vmem [shape: bf16[256,128], index: 7, kind: input, shape index: {}]   ;;  %s16208_s8 = inlined_call_operand.vmem [shape: bf16[128,128], index: 8, kind: input, shape index: {}]   ;;  %s16209_s9 = inlined_call_operand.vmem [shape: f32[1,128], index: 9, kind: input, shape index: {}, may-alias: {9,11}]   ;;  %s16210_s10 = inlined_call_operand.vmem [shape: bf16[128,128], index: 10, kind: input, shape index: {}]   ;;  %s16211_s11 = inlined_call_operand.vmem [shape: f32[1,128], index: 11, kind: input, shape index: {}, may-alias: {9,11}]   ;;  %s16212_s12 = inlined_call_operand.vmem [shape: f32[1024,128], index: 12, kind: output, shape index: {}]  }
   0x1 LB: > { %s10071_s22 = sadd.s32 4294967295, %s11868_s21   ;;  %p10075_p0 = scmp.ge.s32.totalorder %s11868_s21, 1  ;;  %s11868_s21 = sphi %s11936_s21, %s22_s21  }
   0x2   : > { %p363_p1 = scmp.lt.s32.totalorder %s11868_s21, 3 }
   0x4   : > { %p364_p2 = pnand %p10075_p0, %p363_p1 }
   0x6   : > { %367 = sbr.rel (%p364_p2) target bundleno = 3217 (0xc91), region = 68 }
   0xd   : > { %v11028_v0 = vld [vmem:[%s16201_s1 + $0x4] ss:$8 sps:$4 sm:$0xff]   ;;  %s10076_s25 = sshll.u32 %s10071_s22, 6  ;;  %v11030_v1 = vld [vmem:[%s16201_s1] ss:$8 sps:$4 sm:$0xff]   ;;  %v11870_v2 = vmov 0  }
   0xe   : > { %814 = vmatprep.mubr.bf16.mxu0 %v11870_v2  ;;  %p406_p3 = scmp.lt.s32.totalorder %s10076_s25, 127  ;;  %782 = vmatprep.subr.bf16.mxu0 %v11028_v0  ;;  %v11031_v3 = vld [vmem:[%s16201_s1 + $0x14] ss:$8 sps:$4 sm:$0xff]   ;;  %v11033_v4 = vld [vmem:[%s16201_s1 + $0x10] ss:$8 sps:$4 sm:$0xff]  }
   0xf   : > { %783 = vmatpush1.bf16.msra.mxu0 %v11030_v1  ;;  %v11034_v5 = vld [vmem:[%s16201_s1 + $0x24] ss:$8 sps:$4 sm:$0xff]   ;;  %v11036_v6 = vld [vmem:[%s16201_s1 + $0x20] ss:$8 sps:$4 sm:$0xff]   ;;  %v11037_v7 = vld [vmem:[%s16201_s1 + $0x34] ss:$8 sps:$4 sm:$0xff]  }
  0x10   : > { %s16583_s25 = smov (!%p406_p3, %s10076_s25), 127  ;;  %784 = vmatprep.subr.bf16.mxu0 %v11031_v3  ;;  %v11039_v8 = vld [vmem:[%s16201_s1 + $0x30] ss:$8 sps:$4 sm:$0xff]   ;;  %v11040_v9 = vld [vmem:[%s16201_s1 + $0x44] ss:$8 sps:$4 sm:$0xff]  }
  0x11   : > { %s10077_s16 = sshll.u32 %s16583_s25, 2  ;;  %v11042_v10 = vld [vmem:[%s16201_s1 + $0x40] ss:$8 sps:$4 sm:$0xff]   ;;  %v11043_v11 = vld [vmem:[%s16201_s1 + $0x54] ss:$8 sps:$4 sm:$0xff]   ;;  %s10079_s13 = sshll.u32 %s16583_s25, 3 }
  0x12   : > { %s11972_s24 = scalar_lea.vmem %s16200_s0, %s10077_s16  ;;  %v11045_v12 = vld [vmem:[%s16201_s1 + $0x50] ss:$8 sps:$4 sm:$0xff]   ;;  %v11046_v13 = vld [vmem:[%s16201_s1 + $0x64] ss:$8 sps:$4 sm:$0xff]   ;;  %v11048_v14 = vld [vmem:[%s16201_s1 + $0x60] ss:$8 sps:$4 sm:$0xff]   ;;  %s15822_s16 = scalar_lea.vmem %s16212_s12, %s10079_s13 }
  0x13   : > { %785 = vmatpush1.bf16.msra.mxu0 %v11033_v4  ;;  %v11049_v15 = vld [vmem:[%s16201_s1 + $0x74] ss:$8 sps:$4 sm:$0xff]   ;;  %v11051_v16 = vld [vmem:[%s16201_s1 + $0x70] ss:$8 sps:$4 sm:$0xff]   ;;  %v11052_v17 = vld [vmem:[%s11972_s24] sm:$0xff]  }
  0x14   : > { %786 = vmatprep.subr.bf16.mxu0 %v11034_v5  ;;  %v11053_v18 = vld [vmem:[%s11972_s24 + $0x8] sm:$0xff]   ;;  %v11054_v19 = vld [vmem:[%s11972_s24 + $0x10] sm:$0xff]   ;;  %v11055_v20 = vld [vmem:[%s11972_s24 + $0x18] sm:$0xff]  }
  0x15   : > { %v11072_v21 = vld [vmem:[%s16203_s3 + $0x4] ss:$8 sps:$4 sm:$0xff]   ;;  %v11074_v22 = vld [vmem:[%s16203_s3] ss:$8 sps:$4 sm:$0xff]   ;;  %v11076_v24 = vld [vmem:[%s16203_s3 + $0x14] ss:$8 sps:$4 sm:$0xff]  }
  0x16   : > { %v11056_v23 = vld [vmem:[%s11972_s24 + $0x20] sm:$0xff]   ;;  %1532 = vmatprep.subr.bf16.mxu1 %v11072_v21  ;;  %v11078_v25 = vld [vmem:[%s16203_s3 + $0x10] ss:$8 sps:$4 sm:$0xff]   ;;  %v11057_v28 = vld [vmem:[%s11972_s24 + $0x28] sm:$0xff]  }
  0x17   : > { %787 = vmatpush1.bf16.msra.mxu0 %v11036_v6  ;;  %1533 = vmatpush1.bf16.msra.mxu1 %v11074_v22  ;;  %v11079_v26 = vld [vmem:[%s16203_s3 + $0x24] ss:$8 sps:$4 sm:$0xff]   ;;  %v11081_v27 = vld [vmem:[%s16203_s3 + $0x20] ss:$8 sps:$4 sm:$0xff]   ;;  %v11083_v29 = vld [vmem:[%s16203_s3 + $0x34] ss:$8 sps:$4 sm:$0xff]  }
  0x18   : > { %788 = vmatprep.subr.bf16.mxu0 %v11037_v7  ;;  %1534 = vmatprep.subr.bf16.mxu1 %v11076_v24  ;;  %v11085_v30 = vld [vmem:[%s16203_s3 + $0x30] ss:$8 sps:$4 sm:$0xff]   ;;  %v11086_v31 = vld [vmem:[%s16203_s3 + $0x44] ss:$8 sps:$4 sm:$0xff]   ;;  %v11088_v32 = vld [vmem:[%s16203_s3 + $0x40] ss:$8 sps:$4 sm:$0xff]  }
  0x19   : > { %v11058_v33 = vld [vmem:[%s11972_s24 + $0x30] sm:$0xff]   ;;  %v11093_v36 = vld [vmem:[%s16203_s3 + $0x64] ss:$8 sps:$4 sm:$0xff]   ;;  %v11095_v37 = vld [vmem:[%s16203_s3 + $0x60] ss:$8 sps:$4 sm:$0xff]  }
  0x1a   : > { %v11090_v34 = vld [vmem:[%s16203_s3 + $0x54] ss:$8 sps:$4 sm:$0xff]   ;;  %v11092_v35 = vld [vmem:[%s16203_s3 + $0x50] ss:$8 sps:$4 sm:$0xff]   ;;  %v11100_v41 = vld [vmem:[%s16203_s3 + $0x100] ss:$8 sps:$4 sm:$0xff]  }
  0x1b   : > { %789 = vmatpush1.bf16.msra.mxu0 %v11039_v8  ;;  %1535 = vmatpush1.bf16.msra.mxu1 %v11078_v25  ;;  %v11059_v38 = vld [vmem:[%s11972_s24 + $0x38] sm:$0xff]   ;;  %v11102_v42 = vld [vmem:[%s16203_s3 + $0x104] ss:$8 sps:$4 sm:$0xff]   ;;  %v11105_v45 = vld [vmem:[%s16203_s3 + $0x80] ss:$8 sps:$4 sm:$0xff]  }
  0x1c   : > { %790 = vmatprep.subr.bf16.mxu0 %v11040_v9  ;;  %1536 = vmatprep.subr.bf16.mxu1 %v11079_v26  ;;  %v11097_v39 = vld [vmem:[%s16203_s3 + $0x74] ss:$8 sps:$4 sm:$0xff]   ;;  %v11099_v40 = vld [vmem:[%s16203_s3 + $0x70] ss:$8 sps:$4 sm:$0xff]   ;;  %v11103_v43 = vld [vmem:[%s16203_s3 + $0x84] ss:$8 sps:$4 sm:$0xff]  }
  0x1d   : > { %v11060_v44 = vld [vmem:[%s11972_s24 + $0x40] sm:$0xff]   ;;  %v11107_v46 = vld [vmem:[%s16203_s3 + $0x94] ss:$8 sps:$4 sm:$0xff]   ;;  %v11109_v47 = vld [vmem:[%s16203_s3 + $0x90] ss:$8 sps:$4 sm:$0xff]  }
  0x1e   : > { %v11110_v48 = vld [vmem:[%s16203_s3 + $0xa4] ss:$8 sps:$4 sm:$0xff]   ;;  %v11112_v49 = vld [vmem:[%s16203_s3 + $0xa0] ss:$8 sps:$4 sm:$0xff]   ;;  %v11114_v51 = vld [vmem:[%s16203_s3 + $0xb4] ss:$8 sps:$4 sm:$0xff]  }
  0x1f   : > { %791 = vmatpush1.bf16.msra.mxu0 %v11042_v10  ;;  %1537 = vmatpush1.bf16.msra.mxu1 %v11081_v27  ;;  %v11061_v50 = vld [vmem:[%s11972_s24 + $0x48] sm:$0xff]   ;;  %v11116_v52 = vld [vmem:[%s16203_s3 + $0xb0] ss:$8 sps:$4 sm:$0xff]   ;;  %v11119_v54 = vld [vmem:[%s16203_s3 + $0x114] ss:$8 sps:$4 sm:$0xff]  }
  0x20   : > { %792 = vmatprep.subr.bf16.mxu0 %v11043_v11  ;;  %1538 = vmatprep.subr.bf16.mxu1 %v11083_v29  ;;  %v11117_v53 = vld [vmem:[%s16203_s3 + $0x110] ss:$8 sps:$4 sm:$0xff]   ;;  %v11120_v55 = vld [vmem:[%s16203_s3 + $0xc4] ss:$8 sps:$4 sm:$0xff]   ;;  %v11122_v57 = vld [vmem:[%s16203_s3 + $0xc0] ss:$8 sps:$4 sm:$0xff]  }
  0x21   : > { %v11062_v56 = vld [vmem:[%s11972_s24 + $0x50] sm:$0xff]   ;;  %v11063_v60 = vld [vmem:[%s11972_s24 + $0x58] sm:$0xff]   ;;  %v11127_v61 = vld [vmem:[%s16203_s3 + $0xe4] ss:$8 sps:$4 sm:$0xff]  }
  0x22   : > { %v11124_v58 = vld [vmem:[%s16203_s3 + $0xd4] ss:$8 sps:$4 sm:$0xff]   ;;  %v11126_v59 = vld [vmem:[%s16203_s3 + $0xd0] ss:$8 sps:$4 sm:$0xff]   ;;  %v11129_v62 = vld [vmem:[%s16203_s3 + $0xe0] ss:$8 sps:$4 sm:$0xff]  }
  0x23   : > { %793 = vmatpush1.bf16.msra.mxu0 %v11045_v12  ;;  %1539 = vmatpush1.bf16.msra.mxu1 %v11085_v30  ;;  %v11131_v63 = vld [vmem:[%s16203_s3 + $0xf4] ss:$8 sps:$4 sm:$0xff]   ;;  %v11133_v0 = vld [vmem:[%s16203_s3 + $0xf0] ss:$8 sps:$4 sm:$0xff]   ;;  %v11064_v1 = vld [vmem:[%s11972_s24 + $0x60] sm:$0xff]   ;;  %v16213_v30 = vlaneseq }
  0x24   : > { %794 = vmatprep.subr.bf16.mxu0 %v11046_v13  ;;  %1540 = vmatprep.subr.bf16.mxu1 %v11086_v31  ;;  %v11134_v3 = vld [vmem:[%s16203_s3 + $0x120] ss:$8 sps:$4 sm:$0xff]   ;;  %v11136_v4 = vld [vmem:[%s16203_s3 + $0x124] ss:$8 sps:$4 sm:$0xff]   ;;  %v11066_v6 = vld [vmem:[%s11972_s24 + $0x70] sm:$0xff]  }
  0x25   : > { %v11065_v5 = vld [vmem:[%s11972_s24 + $0x68] sm:$0xff]   ;;  %v11139_v7 = vld [vmem:[%s16203_s3 + $0x130] ss:$8 sps:$4 sm:$0xff]   ;;  %v11141_v8 = vld [vmem:[%s16203_s3 + $0x134] ss:$8 sps:$4 sm:$0xff]   ;;  %v12203_v31 = vshrl.u32 %v16213_v30, 7 }
  0x26   : > { %v11067_v9 = vld [vmem:[%s11972_s24 + $0x78] sm:$0xff]   ;;  %v11068_v10 = vld [vmem:[%s11972_s24 + $0x80] sm:$0xff]   ;;  %v11069_v13 = vld [vmem:[%s11972_s24 + $0x88] sm:$0xff]  }
  0x27   : > { %795 = vmatpush1.bf16.msra.mxu0 %v11048_v14  ;;  %1541 = vmatpush1.bf16.msra.mxu1 %v11088_v32  ;;  %v11144_v11 = vld [vmem:[%s16203_s3 + $0x140] ss:$8 sps:$4 sm:$0xff]   ;;  %v11146_v12 = vld [vmem:[%s16203_s3 + $0x144] ss:$8 sps:$4 sm:$0xff]   ;;  %v11070_v14 = vld [vmem:[%s11972_s24 + $0x90] sm:$0xff]   ;;  %16255 = vst [vmem:[#allocation2_spill] sm:$0xff] %v12203_v31 }
  0x28   : > { %796 = vmatprep.subr.bf16.mxu0 %v11049_v15  ;;  %1542 = vmatprep.subr.bf16.mxu1 %v11090_v34  ;;  %v11147_v15 = vld [vmem:[%s16203_s3 + $0x150] ss:$8 sps:$4 sm:$0xff]   ;;  %v11082_v21 = vld [vmem:[%s11972_s24 + $0xa8] sm:$0xff]   ;;  %v11155_v24 = vld [vmem:[%s16203_s3 + $0x174] ss:$8 sps:$4 sm:$0xff]  }
  0x29   : > { %v11089_v22 = vld [vmem:[%s11972_s24 + $0xb0] sm:$0xff]   ;;  %v11096_v25 = vld [vmem:[%s11972_s24 + $0xb8] sm:$0xff]   ;;  %v11106_v26 = vld [vmem:[%s11972_s24 + $0xc0] sm:$0xff]  }
  0x2a   : > { %v11156_v27 = vld [vmem:[%s16203_s3 + $0x180] ss:$8 sps:$4 sm:$0xff]   ;;  %v11123_v32 = vld [vmem:[%s11972_s24 + $0xd0] sm:$0xff]  }
  0x2b   : > { %797 = vmatpush1.bf16.msra.mxu0 %v11051_v16  ;;  %1543 = vmatpush1.bf16.msra.mxu1 %v11092_v35  ;;  %v11149_v16 = vld [vmem:[%s16203_s3 + $0x154] ss:$8 sps:$4 sm:$0xff]   ;;  %v11113_v29 = vld [vmem:[%s11972_s24 + $0xc8] sm:$0xff]   ;;  %v498_v34 = vld [vmem:[%s16204_s4] sm:$0x3]  ;;  %v12214_v35 = vsub.s32 1, %v12203_v31 }
  0x2c   : > { %1544 = vmatprep.subr.bf16.mxu1 %v11093_v36  ;;  %2283 = vmatprep.subr.bf16.mxu0 %v11102_v42  ;;  %v11159_v36 = vld [vmem:[%s16203_s3 + $0x190] ss:$8 sps:$4 sm:$0xff]  }
  0x2e   : > { %815 = vmatmul.mubr.bf16.vlgmr.msra.gmra.mrb[0].mxu0 %v11052_v17  ;;  %v11071_v17 = vld [vmem:[%s11972_s24 + $0x98] sm:$0xff]  }
  0x2f   : > { %824 = vmatprep.mubr.bf16.mxu0 %v11870_v2  ;;  %1545 = vmatpush1.bf16.msra.mxu1 %v11095_v37  ;;  %v11161_v37 = vld [vmem:[%s16203_s3 + $0x194] ss:$8 sps:$4 sm:$0xff]  }
  0x30   : > { %1546 = vmatprep.subr.bf16.mxu1 %v11097_v39  ;;  %2284 = vmatpush1.bf16.msra.mxu0 %v11100_v41  ;;  %v12227_v39 = vrot.slane %v498_v34, %v12214_v35 }
  0x31   : > { %2285 = vmatprep.subr.bf16.mxu0 %v11119_v54 }
  0x33   : > { %1547 = vmatpush1.bf16.msra.mxu1 %v11099_v40 }
  0x34   : > { %1548 = vmatprep.subr.bf16.mxu1 %v11103_v43  ;;  %2286 = vmatpush1.bf16.msra.mxu0 %v11117_v53  ;;  %v11130_v43 = vld [vmem:[%s11972_s24 + $0xd8] sm:$0xff]  }
  0x35   : > { %2287 = vmatprep.subr.bf16.mxu0 %v11136_v4 }
  0x36   : > { %825 = vmatmul.mubr.bf16.gmra.mrb[4].mxu0 %v11053_v18  ;;  %v11075_v18 = vld [vmem:[%s11972_s24 + $0xa0] sm:$0xff]  }
  0x37   : > { %834 = vmatprep.mubr.bf16.mxu0 %v11870_v2  ;;  %1549 = vmatpush1.bf16.msra.mxu1 %v11105_v45 }
  0x38   : > { %1550 = vmatprep.subr.bf16.mxu1 %v11107_v46  ;;  %2288 = vmatpush1.bf16.msra.mxu0 %v11134_v3 }
  0x39   : > { %2289 = vmatprep.subr.bf16.mxu0 %v11141_v8 }
  0x3b   : > { %1551 = vmatpush1.bf16.msra.mxu1 %v11109_v47 }
  0x3c   : > { %1552 = vmatprep.subr.bf16.mxu1 %v11110_v48  ;;  %2290 = vmatpush1.bf16.msra.mxu0 %v11139_v7 }
  0x3d   : > { %2291 = vmatprep.subr.bf16.mxu0 %v11146_v12  ;;  %v11138_v12 = vld [vmem:[%s11972_s24 + $0xe8] sm:$0xff]  }
  0x3e   : > { %835 = vmatmul.mubr.bf16.gmra.mrb[8].mxu0 %v11054_v19  ;;  %v11150_v19 = vld [vmem:[%s16203_s3 + $0x160] ss:$8 sps:$4 sm:$0xff]  }
  0x3f   : > { %844 = vmatprep.mubr.bf16.mxu0 %v11870_v2  ;;  %1553 = vmatpush1.bf16.msra.mxu1 %v11112_v49 }
  0x40   : > { %1554 = vmatprep.subr.bf16.mxu1 %v11114_v51  ;;  %2292 = vmatpush1.bf16.msra.mxu0 %v11144_v11 }
  0x41   : > { %2293 = vmatprep.subr.bf16.mxu0 %v11149_v16 }
  0x43   : > { %1555 = vmatpush1.bf16.msra.mxu1 %v11116_v52 }
  0x44   : > { %1556 = vmatprep.subr.bf16.mxu1 %v11120_v55  ;;  %2294 = vmatpush1.bf16.msra.mxu0 %v11147_v15 }
  0x46   : > { %845 = vmatmul.mubr.bf16.gmra.mrb[12].mxu0 %v11055_v20  ;;  %v11152_v20 = vld [vmem:[%s16203_s3 + $0x164] ss:$8 sps:$4 sm:$0xff]  }
  0x47   : > { %854 = vmatprep.mubr.bf16.mxu0 %v11870_v2  ;;  %1557 = vmatpush1.bf16.msra.mxu1 %v11122_v57 }
  0x48   : > { %1558 = vmatprep.subr.bf16.mxu1 %v11124_v58  ;;  %2295 = vmatprep.subr.bf16.mxu0 %v11152_v20  ;;  %v11137_v58 = vld [vmem:[%s11972_s24 + $0xe0] sm:$0xff]  }
  0x49   : > { %2296 = vmatpush1.bf16.msra.mxu0 %v11150_v19 }
  0x4a   : > { %2297 = vmatprep.subr.bf16.mxu0 %v11155_v24 }
  0x4b   : > { %1559 = vmatpush1.bf16.msra.mxu1 %v11126_v59 }
  0x4c   : > { %1560 = vmatprep.subr.bf16.mxu1 %v11127_v61 }
  0x4e   : > { %855 = vmatmul.mubr.bf16.gmra.mrb[16].mxu0 %v11056_v23  ;;  %v11153_v23 = vld [vmem:[%s16203_s3 + $0x170] ss:$8 sps:$4 sm:$0xff]  }
  0x4f   : > { %864 = vmatprep.mubr.bf16.mxu0 %v11870_v2  ;;  %1561 = vmatpush1.bf16.msra.mxu1 %v11129_v62 }
  0x50   : > { %1562 = vmatprep.subr.bf16.mxu1 %v11131_v63  ;;  %2298 = vmatpush1.bf16.msra.mxu0 %v11153_v23  ;;  %v11162_v63 = vld [vmem:[%s16203_s3 + $0x1a0] ss:$8 sps:$4 sm:$0xff]  }
  0x53   : > { %1563 = vmatpush1.bf16.msra.mxu1 %v11133_v0  ;;  %v11164_v0 = vld [vmem:[%s16203_s3 + $0x1a4] ss:$8 sps:$4 sm:$0xff]  }
  0x56   : > { %865 = vmatmul.mubr.bf16.gmra.mrb[20].mxu0 %v11057_v28  ;;  %v11158_v28 = vld [vmem:[%s16203_s3 + $0x184] ss:$8 sps:$4 sm:$0xff]  }
  0x57   : > { %874 = vmatprep.mubr.bf16.mxu0 %v11870_v2  ;;  %2299 = vmatprep.subr.bf16.mxu0 %v11158_v28 }
  0x58   : > { %2300 = vmatpush1.bf16.msra.mxu0 %v11156_v27  ;;  %v11142_v27 = vld [vmem:[%s11972_s24 + $0xf0] sm:$0xff]  }
  0x59   : > { %2301 = vmatprep.subr.bf16.mxu0 %v11161_v37  ;;  %v11167_v37 = vld [vmem:[%s16203_s3 + $0x1b4] ss:$8 sps:$4 sm:$0xff]  }
  0x5c   : > { %2302 = vmatpush1.bf16.msra.mxu0 %v11159_v36  ;;  %v11165_v36 = vld [vmem:[%s16203_s3 + $0x1b0] ss:$8 sps:$4 sm:$0xff]  }
  0x5d   : > { %2303 = vmatprep.subr.bf16.mxu0 %v11164_v0 }
  0x5e   : > { %875 = vmatmul.mubr.bf16.gmra.mrb[24].mxu0 %v11058_v33  ;;  %v12208_v33 = vsub.s32 0, %v12203_v31  ;;  %v11843_v31 = vld [vmem:[%s11972_s24 + $0x78] sm:$0xff]  }
  0x5f   : > { %884 = vmatprep.mubr.bf16.mxu0 %v11870_v2 }
  0x60   : > { %2304 = vmatpush1.bf16.msra.mxu0 %v11162_v63 }
  0x61   : > { %2305 = vmatprep.subr.bf16.mxu0 %v11167_v37 }
  0x64   : > { %2306 = vmatpush1.bf16.msra.mxu0 %v11165_v36 }
  0x66   : > { %885 = vmatmul.mubr.bf16.gmra.mrb[28].mxu0 %v11059_v38  ;;  %v12223_v38 = vrot.slane %v498_v34, %v12208_v33 }
  0x67   : > { %894 = vmatprep.mubr.bf16.mxu0 %v11870_v2 }
  0x6e   : > { %895 = vmatmul.mubr.bf16.gmra.mrb[32].mxu0 %v11060_v44 }
  0x6f   : > { %904 = vmatprep.mubr.bf16.mxu0 %v11870_v2 }
  0x76   : > { %905 = vmatmul.mubr.bf16.gmra.mrb[36].mxu0 %v11061_v50 }
  0x77   : > { %914 = vmatprep.mubr.bf16.mxu0 %v11870_v2 }
  0x7e   : > { %915 = vmatmul.mubr.bf16.gmra.mrb[40].mxu0 %v11062_v56 }
  0x7f   : > { %924 = vmatprep.mubr.bf16.mxu0 %v11870_v2 }
  0x86   : > { %925 = vmatmul.mubr.bf16.gmra.mrb[44].mxu0 %v11063_v60 }
  0x87   : > { %934 = vmatprep.mubr.bf16.mxu0 %v11870_v2 }
  0x8e   : > { %935 = vmatmul.mubr.bf16.gmra.mrb[48].mxu0 %v11064_v1 }
  0x8f   : > { %944 = vmatprep.mubr.bf16.mxu0 %v11870_v2 }
  0x96   : > { %945 = vmatmul.mubr.bf16.gmra.mrb[52].mxu0 %v11065_v5 }
  0x97   : > { %954 = vmatprep.mubr.bf16.mxu0 %v11870_v2 }
  0x9e   : > { %955 = vmatmul.mubr.bf16.gmra.mrb[56].mxu0 %v11066_v6 }
  0x9f   : > { %964 = vmatprep.mubr.bf16.mxu0 %v11870_v2 }
  0xa6   : > { %965 = vmatmul.mubr.bf16.gmra.mrb[60].mxu0 %v11067_v9 }
  0xa7   : > { %974 = vmatprep.mubr.bf16.mxu0 %v11870_v2 }
  0xae   : > { %975 = vmatmul.mubr.bf16.gmra.mrb[64].mxu0 %v11068_v10 }
  0xaf   : > { %984 = vmatprep.mubr.bf16.mxu0 %v11870_v2 }
  0xb6   : > { %985 = vmatmul.mubr.bf16.gmra.mrb[68].mxu0 %v11069_v13 }
  0xb7   : > { %994 = vmatprep.mubr.bf16.mxu0 %v11870_v2 }
  0xbe   : > { %995 = vmatmul.mubr.bf16.gmra.mrb[72].mxu0 %v11070_v14 }
  0xbf   : > { %1004 = vmatprep.mubr.bf16.mxu0 %v11870_v2 }
  0xc6   : > { %1005 = vmatmul.mubr.bf16.gmra.mrb[76].mxu0 %v11071_v17 }
  0xc7   : > { %1014 = vmatprep.mubr.bf16.mxu0 %v11870_v2 }
  0xce   : > { %1015 = vmatmul.mubr.bf16.gmra.mrb[80].mxu0 %v11075_v18 }
  0xcf   : > { %1024 = vmatprep.mubr.bf16.mxu0 %v11870_v2 }
  0xd6   : > { %1025 = vmatmul.mubr.bf16.gmra.mrb[84].mxu0 %v11082_v21 }
  0xd7   : > { %1034 = vmatprep.mubr.bf16.mxu0 %v11870_v2 }
  0xde   : > { %1035 = vmatmul.mubr.bf16.gmra.mrb[88].mxu0 %v11089_v22 }
  0xdf   : > { %1044 = vmatprep.mubr.bf16.mxu0 %v11870_v2 }
  0xe6   : > { %1045 = vmatmul.mubr.bf16.gmra.mrb[92].mxu0 %v11096_v25 }
  0xe7   : > { %1054 = vmatprep.mubr.bf16.mxu0 %v11870_v2 }
  0xee   : > { %1055 = vmatmul.mubr.bf16.gmra.mrb[96].mxu0 %v11106_v26 }
  0xef   : > { %1064 = vmatprep.mubr.bf16.mxu0 %v11870_v2 }
  0xf6   : > { %1065 = vmatmul.mubr.bf16.gmra.mrb[100].mxu0 %v11113_v29 }
  0xf7   : > { %1074 = vmatprep.mubr.bf16.mxu0 %v11870_v2 }
  0xfe   : > { %1075 = vmatmul.mubr.bf16.gmra.mrb[104].mxu0 %v11123_v32 }
  0xff   : > { %1084 = vmatprep.mubr.bf16.mxu0 %v11870_v2 }
 0x101   : > { %v816_v40 = vpop.f32.mrb[0].mxu0 }
 0x102   : > { %v817_v41 = vadd.f32 %v816_v40, %v12223_v38  ;;  %v818_v42 = vpop.f32.mrb[1].mxu0 }
 0x103   : > { %v820_v44 = vpop.f32.mrb[2].mxu0  ;;  %v819_v45 = vadd.f32 %v818_v42, %v12227_v39 }
 0x104   : > { %v821_v46 = vadd.f32 %v820_v44, %v12223_v38  ;;  %v822_v47 = vpop.f32.mrb[3].mxu0  ;;  %v1135_v49 = vmax.f32 %v817_v41, 0.0 }
 0x105   : > { %v823_v48 = vadd.f32 %v822_v47, %v12227_v39  ;;  %v1136_v51 = vmax.f32 %v819_v45, 0.0 }
 0x106   : > { %v1137_v50 = vmax.f32 %v821_v46, 0.0  ;;  %1085 = vmatmul.mubr.bf16.gmra.mrb[108].mxu0 %v11130_v43 }
 0x107   : > { %v1138_v52 = vmax.f32 %v823_v48, 0.0  ;;  %1094 = vmatprep.mubr.bf16.mxu0 %v11870_v2 }
 0x108   : > { %v1295_v53 = vpack.c.bf16 %v1137_v50, %v1135_v49  ;;  %v11143_v50 = vld [vmem:[%s11972_s24 + $0xf8] sm:$0xff]  }
 0x109   : > { %v826_v54 = vpop.f32.mrb[4].mxu0  ;;  %v1296_v55 = vpack.c.bf16 %v1138_v52, %v1136_v51 }
 0x10a   : > { %v827_v56 = vadd.f32 %v826_v54, %v12223_v38  ;;  %v828_v57 = vpop.f32.mrb[5].mxu0 }
 0x10b   : > { %v829_v59 = vadd.f32 %v828_v57, %v12227_v39  ;;  %v830_v60 = vpop.f32.mrb[6].mxu0  ;;  %1564 = vmatprep.mubr.bf16.mxu1 %v1296_v55 }
 0x10c   : > { %v831_v61 = vadd.f32 %v830_v60, %v12223_v38  ;;  %v832_v62 = vpop.f32.mrb[7].mxu0  ;;  %1565 = vmatmul.mubr.bf16.vlgmr.msra.gmra.mrb[0].mxu1 %v1295_v53  ;;  %v1139_v3 = vmax.f32 %v827_v56, 0.0 }
 0x10d   : > { %v833_v1 = vadd.f32 %v832_v62, %v12227_v39  ;;  %v1140_v5 = vmax.f32 %v829_v59, 0.0 }
 0x10e   : > { %v1141_v4 = vmax.f32 %v831_v61, 0.0  ;;  %1095 = vmatmul.mubr.bf16.gmra.mrb[112].mxu0 %v11137_v58 }
 0x10f   : > { %v1142_v6 = vmax.f32 %v833_v1, 0.0  ;;  %1104 = vmatprep.mubr.bf16.mxu0 %v11870_v2 }
 0x110   : > { %v1297_v7 = vpack.c.bf16 %v1141_v4, %v1139_v3 }
 0x111   : > { %v836_v8 = vpop.f32.mrb[8].mxu0  ;;  %v1298_v9 = vpack.c.bf16 %v1142_v6, %v1140_v5  ;;  %v11168_v6 = vld [vmem:[%s16203_s3 + $0x1c0] ss:$8 sps:$4 sm:$0xff]  }
 0x112   : > { %v837_v10 = vadd.f32 %v836_v8, %v12223_v38  ;;  %v838_v11 = vpop.f32.mrb[9].mxu0 }
 0x113   : > { %v839_v13 = vadd.f32 %v838_v11, %v12227_v39  ;;  %v840_v14 = vpop.f32.mrb[10].mxu0  ;;  %1574 = vmatprep.mubr.bf16.mxu1 %v1298_v9 }
 0x114   : > { %v841_v15 = vadd.f32 %v840_v14, %v12223_v38  ;;  %v842_v16 = vpop.f32.mrb[11].mxu0  ;;  %1575 = vmatmul.mubr.bf16.gmra.mrb[4].mxu1 %v1297_v7  ;;  %v1143_v18 = vmax.f32 %v837_v10, 0.0  ;;  %v11170_v7 = vld [vmem:[%s16203_s3 + $0x1c4] ss:$8 sps:$4 sm:$0xff]  }
 0x115   : > { %v843_v17 = vadd.f32 %v842_v16, %v12227_v39  ;;  %v1144_v20 = vmax.f32 %v839_v13, 0.0  ;;  %2307 = vmatprep.subr.bf16.mxu0 %v11170_v7 }
 0x116   : > { %v1145_v19 = vmax.f32 %v841_v15, 0.0  ;;  %1105 = vmatmul.mubr.bf16.gmra.mrb[116].mxu0 %v11138_v12 }
 0x117   : > { %v1146_v21 = vmax.f32 %v843_v17, 0.0  ;;  %1114 = vmatprep.mubr.bf16.mxu0 %v11870_v2  ;;  %2308 = vmatpush1.bf16.msra.mxu0 %v11168_v6 }
 0x118   : > { %v1299_v22 = vpack.c.bf16 %v1145_v19, %v1143_v18 }
 0x119   : > { %v846_v23 = vpop.f32.mrb[12].mxu0  ;;  %v1300_v24 = vpack.c.bf16 %v1146_v21, %v1144_v20 }
 0x11a   : > { %v847_v25 = vadd.f32 %v846_v23, %v12223_v38  ;;  %v848_v26 = vpop.f32.mrb[13].mxu0 }
 0x11b   : > { %v849_v28 = vadd.f32 %v848_v26, %v12227_v39  ;;  %v850_v29 = vpop.f32.mrb[14].mxu0  ;;  %1584 = vmatprep.mubr.bf16.mxu1 %v1300_v24 }
 0x11c   : > { %v851_v32 = vadd.f32 %v850_v29, %v12223_v38  ;;  %v852_v34 = vpop.f32.mrb[15].mxu0  ;;  %1585 = vmatmul.mubr.bf16.gmra.mrb[8].mxu1 %v1299_v22  ;;  %v1147_v41 = vmax.f32 %v847_v25, 0.0 }
 0x11d   : > { %v853_v40 = vadd.f32 %v852_v34, %v12227_v39  ;;  %v1148_v43 = vmax.f32 %v849_v28, 0.0 }
 0x11e   : > { %v1149_v42 = vmax.f32 %v851_v32, 0.0  ;;  %1115 = vmatmul.mubr.bf16.gmra.mrb[120].mxu0 %v11142_v27 }
 0x11f   : > { %v1150_v44 = vmax.f32 %v853_v40, 0.0  ;;  %1124 = vmatprep.mubr.bf16.mxu0 %v11870_v2 }
 0x120   : > { %v1301_v45 = vpack.c.bf16 %v1149_v42, %v1147_v41  ;;  %v11171_v42 = vld [vmem:[%s16203_s3 + $0x1d0] ss:$8 sps:$4 sm:$0xff]  }
 0x121   : > { %v856_v46 = vpop.f32.mrb[16].mxu0  ;;  %v1302_v47 = vpack.c.bf16 %v1150_v44, %v1148_v43  ;;  %v11173_v43 = vld [vmem:[%s16203_s3 + $0x1d4] ss:$8 sps:$4 sm:$0xff]  }
 0x122   : > { %v857_v48 = vadd.f32 %v856_v46, %v12223_v38  ;;  %v858_v49 = vpop.f32.mrb[17].mxu0  ;;  %2309 = vmatprep.subr.bf16.mxu0 %v11173_v43 }
 0x123   : > { %v859_v51 = vadd.f32 %v858_v49, %v12227_v39  ;;  %v860_v52 = vpop.f32.mrb[18].mxu0  ;;  %1594 = vmatprep.mubr.bf16.mxu1 %v1302_v47  ;;  %2310 = vmatpush1.bf16.msra.mxu0 %v11171_v42 }
 0x124   : > { %v861_v53 = vadd.f32 %v860_v52, %v12223_v38  ;;  %v862_v54 = vpop.f32.mrb[19].mxu0  ;;  %1595 = vmatmul.mubr.bf16.gmra.mrb[12].mxu1 %v1301_v45  ;;  %v1151_v56 = vmax.f32 %v857_v48, 0.0 }
 0x125   : > { %v863_v55 = vadd.f32 %v862_v54, %v12227_v39  ;;  %v1152_v58 = vmax.f32 %v859_v51, 0.0 }
 0x126   : > { %v1153_v57 = vmax.f32 %v861_v53, 0.0  ;;  %1125 = vmatmul.mubr.bf16.gmra.mrb[124].mxu0 %v11143_v50 }
 0x127   : > { %v1154_v59 = vmax.f32 %v863_v55, 0.0 }
 0x128   : > { %v1303_v60 = vpack.c.bf16 %v1153_v57, %v1151_v56 }
 0x129   : > { %v866_v61 = vpop.f32.mrb[20].mxu0  ;;  %v1304_v62 = vpack.c.bf16 %v1154_v59, %v1152_v58 }
 0x12a   : > { %v867_v63 = vadd.f32 %v866_v61, %v12223_v38  ;;  %v868_v0 = vpop.f32.mrb[21].mxu0 }
 0x12b   : > { %v869_v1 = vadd.f32 %v868_v0, %v12227_v39  ;;  %v870_v3 = vpop.f32.mrb[22].mxu0  ;;  %1604 = vmatprep.mubr.bf16.mxu1 %v1304_v62  ;;  %v11176_v0 = vld [vmem:[%s16203_s3 + $0x204] ss:$8 sps:$4 sm:$0xff]  }
 0x12c   : > { %v871_v4 = vadd.f32 %v870_v3, %v12223_v38  ;;  %v872_v5 = vpop.f32.mrb[23].mxu0  ;;  %1605 = vmatmul.mubr.bf16.gmra.mrb[16].mxu1 %v1303_v60  ;;  %v1155_v9 = vmax.f32 %v867_v63, 0.0  ;;  %v11174_v63 = vld [vmem:[%s16203_s3 + $0x200] ss:$8 sps:$4 sm:$0xff]   ;;  %3034 = vmatprep.subr.bf16.mxu1 %v11176_v0 }
 0x12d   : > { %v873_v8 = vadd.f32 %v872_v5, %v12227_v39  ;;  %v1156_v11 = vmax.f32 %v869_v1, 0.0  ;;  %3035 = vmatpush1.bf16.msra.mxu1 %v11174_v63 }
 0x12e   : > { %v1157_v10 = vmax.f32 %v871_v4, 0.0 }
 0x12f   : > { %v1158_v12 = vmax.f32 %v873_v8, 0.0 }
 0x130   : > { %v1305_v13 = vpack.c.bf16 %v1157_v10, %v1155_v9 }
 0x131   : > { %v876_v14 = vpop.f32.mrb[24].mxu0  ;;  %v1306_v15 = vpack.c.bf16 %v1158_v12, %v1156_v11  ;;  %v11177_v11 = vld [vmem:[%s16203_s3 + $0x1e0] ss:$8 sps:$4 sm:$0xff]   ;;  %v11179_v12 = vld [vmem:[%s16203_s3 + $0x1e4] ss:$8 sps:$4 sm:$0xff]  }
 0x132   : > { %v877_v16 = vadd.f32 %v876_v14, %v12223_v38  ;;  %v878_v17 = vpop.f32.mrb[25].mxu0  ;;  %2311 = vmatprep.subr.bf16.mxu0 %v11179_v12 }
 0x133   : > { %v879_v18 = vadd.f32 %v878_v17, %v12227_v39  ;;  %v880_v19 = vpop.f32.mrb[26].mxu0  ;;  %1614 = vmatprep.mubr.bf16.mxu1 %v1306_v15  ;;  %2312 = vmatpush1.bf16.msra.mxu0 %v11177_v11 }
 0x134   : > { %v881_v20 = vadd.f32 %v880_v19, %v12223_v38  ;;  %v882_v21 = vpop.f32.mrb[27].mxu0  ;;  %1615 = vmatmul.mubr.bf16.gmra.mrb[20].mxu1 %v1305_v13  ;;  %v1159_v23 = vmax.f32 %v877_v16, 0.0 }
 0x135   : > { %v883_v22 = vadd.f32 %v882_v21, %v12227_v39  ;;  %v1160_v25 = vmax.f32 %v879_v18, 0.0 }
 0x136   : > { %v1161_v24 = vmax.f32 %v881_v20, 0.0 }
 0x137   : > { %v1162_v26 = vmax.f32 %v883_v22, 0.0 }
 0x138   : > { %v1307_v27 = vpack.c.bf16 %v1161_v24, %v1159_v23 }
 0x139   : > { %v886_v28 = vpop.f32.mrb[28].mxu0  ;;  %v1308_v29 = vpack.c.bf16 %v1162_v26, %v1160_v25 }
 0x13a   : > { %v887_v32 = vadd.f32 %v886_v28, %v12223_v38  ;;  %v888_v34 = vpop.f32.mrb[29].mxu0 }
 0x13b   : > { %v889_v36 = vadd.f32 %v888_v34, %v12227_v39  ;;  %v890_v37 = vpop.f32.mrb[30].mxu0  ;;  %1624 = vmatprep.mubr.bf16.mxu1 %v1308_v29 }
 0x13c   : > { %v891_v40 = vadd.f32 %v890_v37, %v12223_v38  ;;  %v892_v41 = vpop.f32.mrb[31].mxu0  ;;  %1625 = vmatmul.mubr.bf16.gmra.mrb[24].mxu1 %v1307_v27  ;;  %v1163_v45 = vmax.f32 %v887_v32, 0.0  ;;  %v11182_v37 = vld [vmem:[%s16203_s3 + $0x214] ss:$8 sps:$4 sm:$0xff]  }
 0x13d   : > { %v893_v44 = vadd.f32 %v892_v41, %v12227_v39  ;;  %v1164_v47 = vmax.f32 %v889_v36, 0.0  ;;  %v11180_v36 = vld [vmem:[%s16203_s3 + $0x210] ss:$8 sps:$4 sm:$0xff]   ;;  %3036 = vmatprep.subr.bf16.mxu1 %v11182_v37 }
 0x13e   : > { %v1165_v46 = vmax.f32 %v891_v40, 0.0  ;;  %3037 = vmatpush1.bf16.msra.mxu1 %v11180_v36 }
 0x13f   : > { %v1166_v48 = vmax.f32 %v893_v44, 0.0 }
 0x140   : > { %v1309_v49 = vpack.c.bf16 %v1165_v46, %v1163_v45 }
 0x141   : > { %v896_v50 = vpop.f32.mrb[32].mxu0  ;;  %v1310_v51 = vpack.c.bf16 %v1166_v48, %v1164_v47 }
 0x142   : > { %v897_v52 = vadd.f32 %v896_v50, %v12223_v38  ;;  %v898_v53 = vpop.f32.mrb[33].mxu0  ;;  %v11185_v50 = vld [vmem:[%s16203_s3 + $0x1f4] ss:$8 sps:$4 sm:$0xff]  }
 0x143   : > { %v899_v54 = vadd.f32 %v898_v53, %v12227_v39  ;;  %v900_v55 = vpop.f32.mrb[34].mxu0  ;;  %1634 = vmatprep.mubr.bf16.mxu1 %v1310_v51  ;;  %2313 = vmatprep.subr.bf16.mxu0 %v11185_v50 }
 0x144   : > { %v901_v56 = vadd.f32 %v900_v55, %v12223_v38  ;;  %v902_v57 = vpop.f32.mrb[35].mxu0  ;;  %1635 = vmatmul.mubr.bf16.gmra.mrb[28].mxu1 %v1309_v49  ;;  %v1167_v59 = vmax.f32 %v897_v52, 0.0  ;;  %v11183_v49 = vld [vmem:[%s16203_s3 + $0x1f0] ss:$8 sps:$4 sm:$0xff]  }
 0x145   : > { %v903_v58 = vadd.f32 %v902_v57, %v12227_v39  ;;  %v1168_v61 = vmax.f32 %v899_v54, 0.0  ;;  %2314 = vmatpush1.bf16.msra.mxu0 %v11183_v49 }
 0x146   : > { %v1169_v60 = vmax.f32 %v901_v56, 0.0 }
 0x147   : > { %v1170_v62 = vmax.f32 %v903_v58, 0.0 }
 0x148   : > { %v1311_v1 = vpack.c.bf16 %v1169_v60, %v1167_v59 }
 0x149   : > { %v906_v3 = vpop.f32.mrb[36].mxu0  ;;  %v1312_v4 = vpack.c.bf16 %v1170_v62, %v1168_v61 }
 0x14a   : > { %v907_v5 = vadd.f32 %v906_v3, %v12223_v38  ;;  %v908_v6 = vpop.f32.mrb[37].mxu0 }
 0x14b   : > { %v909_v7 = vadd.f32 %v908_v6, %v12227_v39  ;;  %v910_v8 = vpop.f32.mrb[38].mxu0  ;;  %1644 = vmatprep.mubr.bf16.mxu1 %v1312_v4 }
 0x14c   : > { %v911_v9 = vadd.f32 %v910_v8, %v12223_v38  ;;  %v912_v10 = vpop.f32.mrb[39].mxu0  ;;  %1645 = vmatmul.mubr.bf16.gmra.mrb[32].mxu1 %v1311_v1  ;;  %v1171_v14 = vmax.f32 %v907_v5, 0.0  ;;  %v11186_v8 = vld [vmem:[%s16203_s3 + $0x220] ss:$8 sps:$4 sm:$0xff]  }
 0x14d   : > { %v913_v13 = vadd.f32 %v912_v10, %v12227_v39  ;;  %v1172_v16 = vmax.f32 %v909_v7, 0.0 }
 0x14e   : > { %v1173_v15 = vmax.f32 %v911_v9, 0.0  ;;  %v11188_v9 = vld [vmem:[%s16203_s3 + $0x224] ss:$8 sps:$4 sm:$0xff]  }
 0x14f   : > { %v1174_v17 = vmax.f32 %v913_v13, 0.0  ;;  %3038 = vmatprep.subr.bf16.mxu1 %v11188_v9 }
 0x150   : > { %v1313_v18 = vpack.c.bf16 %v1173_v15, %v1171_v14  ;;  %3039 = vmatpush1.bf16.msra.mxu1 %v11186_v8 }
 0x151   : > { %v916_v19 = vpop.f32.mrb[40].mxu0  ;;  %v1314_v20 = vpack.c.bf16 %v1174_v17, %v1172_v16 }
 0x152   : > { %v917_v21 = vadd.f32 %v916_v19, %v12223_v38  ;;  %v918_v22 = vpop.f32.mrb[41].mxu0 }
 0x153   : > { %v919_v23 = vadd.f32 %v918_v22, %v12227_v39  ;;  %v920_v24 = vpop.f32.mrb[42].mxu0  ;;  %1654 = vmatprep.mubr.bf16.mxu1 %v1314_v20 }
 0x154   : > { %v921_v25 = vadd.f32 %v920_v24, %v12223_v38  ;;  %v922_v26 = vpop.f32.mrb[43].mxu0  ;;  %1655 = vmatmul.mubr.bf16.gmra.mrb[36].mxu1 %v1313_v18  ;;  %v1175_v28 = vmax.f32 %v917_v21, 0.0 }
 0x155   : > { %v923_v27 = vadd.f32 %v922_v26, %v12227_v39  ;;  %v1176_v32 = vmax.f32 %v919_v23, 0.0 }
 0x156   : > { %v1177_v29 = vmax.f32 %v921_v25, 0.0 }
 0x157   : > { %v1178_v34 = vmax.f32 %v923_v27, 0.0 }
 0x158   : > { %v1315_v40 = vpack.c.bf16 %v1177_v29, %v1175_v28 }
 0x159   : > { %v926_v41 = vpop.f32.mrb[44].mxu0  ;;  %v1316_v42 = vpack.c.bf16 %v1178_v34, %v1176_v32 }
 0x15a   : > { %v927_v43 = vadd.f32 %v926_v41, %v12223_v38  ;;  %v928_v44 = vpop.f32.mrb[45].mxu0 }
 0x15b   : > { %v929_v45 = vadd.f32 %v928_v44, %v12227_v39  ;;  %v930_v46 = vpop.f32.mrb[46].mxu0  ;;  %1664 = vmatprep.mubr.bf16.mxu1 %v1316_v42  ;;  %v11189_v44 = vld [vmem:[%s16203_s3 + $0x230] ss:$8 sps:$4 sm:$0xff]  }
 0x15c   : > { %v931_v47 = vadd.f32 %v930_v46, %v12223_v38  ;;  %v932_v48 = vpop.f32.mrb[47].mxu0  ;;  %1665 = vmatmul.mubr.bf16.gmra.mrb[40].mxu1 %v1315_v40  ;;  %v1179_v52 = vmax.f32 %v927_v43, 0.0 }
 0x15d   : > { %v933_v51 = vadd.f32 %v932_v48, %v12227_v39  ;;  %v1180_v54 = vmax.f32 %v929_v45, 0.0  ;;  %v11191_v45 = vld [vmem:[%s16203_s3 + $0x234] ss:$8 sps:$4 sm:$0xff]  }
 0x15e   : > { %v1181_v53 = vmax.f32 %v931_v47, 0.0  ;;  %3040 = vmatprep.subr.bf16.mxu1 %v11191_v45 }
 0x15f   : > { %v1182_v55 = vmax.f32 %v933_v51, 0.0  ;;  %3041 = vmatpush1.bf16.msra.mxu1 %v11189_v44 }
 0x160   : > { %v1317_v56 = vpack.c.bf16 %v1181_v53, %v1179_v52 }
 0x161   : > { %v936_v57 = vpop.f32.mrb[48].mxu0  ;;  %v1318_v58 = vpack.c.bf16 %v1182_v55, %v1180_v54 }
 0x162   : > { %v937_v59 = vadd.f32 %v936_v57, %v12223_v38  ;;  %v938_v60 = vpop.f32.mrb[49].mxu0 }
 0x163   : > { %v939_v61 = vadd.f32 %v938_v60, %v12227_v39  ;;  %v940_v62 = vpop.f32.mrb[50].mxu0  ;;  %1674 = vmatprep.mubr.bf16.mxu1 %v1318_v58 }
 0x164   : > { %v941_v63 = vadd.f32 %v940_v62, %v12223_v38  ;;  %v942_v0 = vpop.f32.mrb[51].mxu0  ;;  %1675 = vmatmul.mubr.bf16.gmra.mrb[44].mxu1 %v1317_v56  ;;  %v1183_v3 = vmax.f32 %v937_v59, 0.0 }
 0x165   : > { %v943_v1 = vadd.f32 %v942_v0, %v12227_v39  ;;  %v1184_v5 = vmax.f32 %v939_v61, 0.0 }
 0x166   : > { %v1185_v4 = vmax.f32 %v941_v63, 0.0 }
 0x167   : > { %v1186_v6 = vmax.f32 %v943_v1, 0.0 }
 0x168   : > { %v1319_v7 = vpack.c.bf16 %v1185_v4, %v1183_v3 }
 0x169   : > { %v946_v10 = vpop.f32.mrb[52].mxu0  ;;  %v1320_v11 = vpack.c.bf16 %v1186_v6, %v1184_v5 }
 0x16a   : > { %v947_v12 = vadd.f32 %v946_v10, %v12223_v38  ;;  %v948_v13 = vpop.f32.mrb[53].mxu0 }
 0x16b   : > { %v949_v14 = vadd.f32 %v948_v13, %v12227_v39  ;;  %v950_v15 = vpop.f32.mrb[54].mxu0  ;;  %1684 = vmatprep.mubr.bf16.mxu1 %v1320_v11  ;;  %v11192_v11 = vld [vmem:[%s16203_s3 + $0x240] ss:$8 sps:$4 sm:$0xff]  }
 0x16c   : > { %v951_v16 = vadd.f32 %v950_v15, %v12223_v38  ;;  %v952_v17 = vpop.f32.mrb[55].mxu0  ;;  %1685 = vmatmul.mubr.bf16.gmra.mrb[48].mxu1 %v1319_v7  ;;  %v1187_v19 = vmax.f32 %v947_v12, 0.0  ;;  %v11194_v12 = vld [vmem:[%s16203_s3 + $0x244] ss:$8 sps:$4 sm:$0xff]  }
 0x16d   : > { %v953_v18 = vadd.f32 %v952_v17, %v12227_v39  ;;  %v1188_v21 = vmax.f32 %v949_v14, 0.0  ;;  %3042 = vmatprep.subr.bf16.mxu1 %v11194_v12 }
 0x16e   : > { %v1189_v20 = vmax.f32 %v951_v16, 0.0  ;;  %3043 = vmatpush1.bf16.msra.mxu1 %v11192_v11 }
 0x16f   : > { %v1190_v22 = vmax.f32 %v953_v18, 0.0 }
 0x170   : > { %v1321_v23 = vpack.c.bf16 %v1189_v20, %v1187_v19 }
 0x171   : > { %v956_v24 = vpop.f32.mrb[56].mxu0  ;;  %v1322_v25 = vpack.c.bf16 %v1190_v22, %v1188_v21 }
 0x172   : > { %v957_v26 = vadd.f32 %v956_v24, %v12223_v38  ;;  %v958_v27 = vpop.f32.mrb[57].mxu0 }
 0x173   : > { %v959_v28 = vadd.f32 %v958_v27, %v12227_v39  ;;  %v960_v29 = vpop.f32.mrb[58].mxu0  ;;  %1694 = vmatprep.mubr.bf16.mxu1 %v1322_v25 }
 0x174   : > { %v961_v32 = vadd.f32 %v960_v29, %v12223_v38  ;;  %v962_v34 = vpop.f32.mrb[59].mxu0  ;;  %1695 = vmatmul.mubr.bf16.gmra.mrb[52].mxu1 %v1321_v23  ;;  %v1191_v37 = vmax.f32 %v957_v26, 0.0 }
 0x175   : > { %v963_v36 = vadd.f32 %v962_v34, %v12227_v39  ;;  %v1192_v41 = vmax.f32 %v959_v28, 0.0 }
 0x176   : > { %v1193_v40 = vmax.f32 %v961_v32, 0.0 }
 0x177   : > { %v1194_v42 = vmax.f32 %v963_v36, 0.0 }
 0x178   : > { %v1323_v43 = vpack.c.bf16 %v1193_v40, %v1191_v37 }
 0x179   : > { %v966_v46 = vpop.f32.mrb[60].mxu0  ;;  %v1324_v47 = vpack.c.bf16 %v1194_v42, %v1192_v41 }
 0x17a   : > { %v967_v48 = vadd.f32 %v966_v46, %v12223_v38  ;;  %v968_v49 = vpop.f32.mrb[61].mxu0 }
 0x17b   : > { %v969_v50 = vadd.f32 %v968_v49, %v12227_v39  ;;  %v970_v51 = vpop.f32.mrb[62].mxu0  ;;  %1704 = vmatprep.mubr.bf16.mxu1 %v1324_v47  ;;  %v11195_v47 = vld [vmem:[%s16203_s3 + $0x250] ss:$8 sps:$4 sm:$0xff]  }
 0x17c   : > { %v971_v52 = vadd.f32 %v970_v51, %v12223_v38  ;;  %v972_v53 = vpop.f32.mrb[63].mxu0  ;;  %1705 = vmatmul.mubr.bf16.gmra.mrb[56].mxu1 %v1323_v43  ;;  %v1195_v55 = vmax.f32 %v967_v48, 0.0  ;;  %v11197_v48 = vld [vmem:[%s16203_s3 + $0x254] ss:$8 sps:$4 sm:$0xff]  }
 0x17d   : > { %v973_v54 = vadd.f32 %v972_v53, %v12227_v39  ;;  %v1196_v57 = vmax.f32 %v969_v50, 0.0  ;;  %3044 = vmatprep.subr.bf16.mxu1 %v11197_v48 }
 0x17e   : > { %v1197_v56 = vmax.f32 %v971_v52, 0.0  ;;  %3045 = vmatpush1.bf16.msra.mxu1 %v11195_v47 }
 0x17f   : > { %v1198_v58 = vmax.f32 %v973_v54, 0.0 }
 0x180   : > { %v1325_v59 = vpack.c.bf16 %v1197_v56, %v1195_v55 }
 0x181   : > { %v976_v60 = vpop.f32.mrb[64].mxu0  ;;  %v1326_v61 = vpack.c.bf16 %v1198_v58, %v1196_v57 }
 0x182   : > { %v977_v62 = vadd.f32 %v976_v60, %v12223_v38  ;;  %v978_v63 = vpop.f32.mrb[65].mxu0 }
 0x183   : > { %v979_v0 = vadd.f32 %v978_v63, %v12227_v39  ;;  %v980_v1 = vpop.f32.mrb[66].mxu0  ;;  %1714 = vmatprep.mubr.bf16.mxu1 %v1326_v61 }
 0x184   : > { %v981_v3 = vadd.f32 %v980_v1, %v12223_v38  ;;  %v982_v4 = vpop.f32.mrb[67].mxu0  ;;  %1715 = vmatmul.mubr.bf16.gmra.mrb[60].mxu1 %v1325_v59  ;;  %v1199_v6 = vmax.f32 %v977_v62, 0.0 }
 0x185   : > { %v983_v5 = vadd.f32 %v982_v4, %v12227_v39  ;;  %v1200_v8 = vmax.f32 %v979_v0, 0.0 }
 0x186   : > { %v1201_v7 = vmax.f32 %v981_v3, 0.0 }
 0x187   : > { %v1202_v9 = vmax.f32 %v983_v5, 0.0 }
 0x188   : > { %v1327_v10 = vpack.c.bf16 %v1201_v7, %v1199_v6 }
 0x189   : > { %v986_v13 = vpop.f32.mrb[68].mxu0  ;;  %v1328_v14 = vpack.c.bf16 %v1202_v9, %v1200_v8 }
 0x18a   : > { %v987_v15 = vadd.f32 %v986_v13, %v12223_v38  ;;  %v988_v16 = vpop.f32.mrb[69].mxu0 }
 0x18b   : > { %v989_v17 = vadd.f32 %v988_v16, %v12227_v39  ;;  %v990_v18 = vpop.f32.mrb[70].mxu0  ;;  %1724 = vmatprep.mubr.bf16.mxu1 %v1328_v14  ;;  %v11198_v14 = vld [vmem:[%s16203_s3 + $0x260] ss:$8 sps:$4 sm:$0xff]  }
 0x18c   : > { %v991_v19 = vadd.f32 %v990_v18, %v12223_v38  ;;  %v992_v20 = vpop.f32.mrb[71].mxu0  ;;  %1725 = vmatmul.mubr.bf16.gmra.mrb[64].mxu1 %v1327_v10  ;;  %v1203_v22 = vmax.f32 %v987_v15, 0.0  ;;  %v11200_v15 = vld [vmem:[%s16203_s3 + $0x264] ss:$8 sps:$4 sm:$0xff]  }
 0x18d   : > { %v993_v21 = vadd.f32 %v992_v20, %v12227_v39  ;;  %v1204_v24 = vmax.f32 %v989_v17, 0.0  ;;  %3046 = vmatprep.subr.bf16.mxu1 %v11200_v15 }
 0x18e   : > { %v1205_v23 = vmax.f32 %v991_v19, 0.0  ;;  %3047 = vmatpush1.bf16.msra.mxu1 %v11198_v14 }
 0x18f   : > { %v1206_v25 = vmax.f32 %v993_v21, 0.0 }
 0x190   : > { %v1329_v26 = vpack.c.bf16 %v1205_v23, %v1203_v22 }
 0x191   : > { %v996_v27 = vpop.f32.mrb[72].mxu0  ;;  %v1330_v28 = vpack.c.bf16 %v1206_v25, %v1204_v24 }
 0x192   : > { %v997_v29 = vadd.f32 %v996_v27, %v12223_v38  ;;  %v998_v32 = vpop.f32.mrb[73].mxu0 }
 0x193   : > { %v999_v34 = vadd.f32 %v998_v32, %v12227_v39  ;;  %v1000_v36 = vpop.f32.mrb[74].mxu0  ;;  %1734 = vmatprep.mubr.bf16.mxu1 %v1330_v28 }
 0x194   : > { %v1001_v37 = vadd.f32 %v1000_v36, %v12223_v38  ;;  %v1002_v40 = vpop.f32.mrb[75].mxu0  ;;  %1735 = vmatmul.mubr.bf16.gmra.mrb[68].mxu1 %v1329_v26  ;;  %v1207_v42 = vmax.f32 %v997_v29, 0.0 }
 0x195   : > { %v1003_v41 = vadd.f32 %v1002_v40, %v12227_v39  ;;  %v1208_v44 = vmax.f32 %v999_v34, 0.0 }
 0x196   : > { %v1209_v43 = vmax.f32 %v1001_v37, 0.0 }
 0x197   : > { %v1210_v45 = vmax.f32 %v1003_v41, 0.0 }
 0x198   : > { %v1331_v46 = vpack.c.bf16 %v1209_v43, %v1207_v42 }
 0x199   : > { %v1006_v49 = vpop.f32.mrb[76].mxu0  ;;  %v1332_v50 = vpack.c.bf16 %v1210_v45, %v1208_v44 }
 0x19a   : > { %v1007_v51 = vadd.f32 %v1006_v49, %v12223_v38  ;;  %v1008_v52 = vpop.f32.mrb[77].mxu0 }
 0x19b   : > { %v1009_v53 = vadd.f32 %v1008_v52, %v12227_v39  ;;  %v1010_v54 = vpop.f32.mrb[78].mxu0  ;;  %1744 = vmatprep.mubr.bf16.mxu1 %v1332_v50  ;;  %v11201_v50 = vld [vmem:[%s16203_s3 + $0x270] ss:$8 sps:$4 sm:$0xff]  }
 0x19c   : > { %v1011_v55 = vadd.f32 %v1010_v54, %v12223_v38  ;;  %v1012_v56 = vpop.f32.mrb[79].mxu0  ;;  %1745 = vmatmul.mubr.bf16.gmra.mrb[72].mxu1 %v1331_v46  ;;  %v1211_v58 = vmax.f32 %v1007_v51, 0.0  ;;  %v11203_v51 = vld [vmem:[%s16203_s3 + $0x274] ss:$8 sps:$4 sm:$0xff]  }
 0x19d   : > { %v1013_v57 = vadd.f32 %v1012_v56, %v12227_v39  ;;  %v1212_v60 = vmax.f32 %v1009_v53, 0.0  ;;  %3048 = vmatprep.subr.bf16.mxu1 %v11203_v51 }
 0x19e   : > { %v1213_v59 = vmax.f32 %v1011_v55, 0.0  ;;  %3049 = vmatpush1.bf16.msra.mxu1 %v11201_v50 }
 0x19f   : > { %v1214_v61 = vmax.f32 %v1013_v57, 0.0 }
 0x1a0   : > { %v1333_v62 = vpack.c.bf16 %v1213_v59, %v1211_v58 }
 0x1a1   : > { %v1016_v63 = vpop.f32.mrb[80].mxu0  ;;  %v1334_v0 = vpack.c.bf16 %v1214_v61, %v1212_v60 }
 0x1a2   : > { %v1017_v1 = vadd.f32 %v1016_v63, %v12223_v38  ;;  %v1018_v3 = vpop.f32.mrb[81].mxu0 }
 0x1a3   : > { %v1019_v4 = vadd.f32 %v1018_v3, %v12227_v39  ;;  %v1020_v5 = vpop.f32.mrb[82].mxu0  ;;  %1754 = vmatprep.mubr.bf16.mxu1 %v1334_v0 }
 0x1a4   : > { %v1021_v6 = vadd.f32 %v1020_v5, %v12223_v38  ;;  %v1022_v7 = vpop.f32.mrb[83].mxu0  ;;  %1755 = vmatmul.mubr.bf16.gmra.mrb[76].mxu1 %v1333_v62  ;;  %v1215_v9 = vmax.f32 %v1017_v1, 0.0 }
 0x1a5   : > { %v1023_v8 = vadd.f32 %v1022_v7, %v12227_v39  ;;  %v1216_v11 = vmax.f32 %v1019_v4, 0.0 }
 0x1a6   : > { %v1217_v10 = vmax.f32 %v1021_v6, 0.0 }
 0x1a7   : > { %v1218_v12 = vmax.f32 %v1023_v8, 0.0 }
 0x1a8   : > { %v1335_v13 = vpack.c.bf16 %v1217_v10, %v1215_v9 }
 0x1a9   : > { %v1026_v16 = vpop.f32.mrb[84].mxu0  ;;  %v1336_v17 = vpack.c.bf16 %v1218_v12, %v1216_v11 }
 0x1aa   : > { %v1027_v18 = vadd.f32 %v1026_v16, %v12223_v38  ;;  %v1028_v19 = vpop.f32.mrb[85].mxu0 }
 0x1ab   : > { %v1029_v20 = vadd.f32 %v1028_v19, %v12227_v39  ;;  %v1030_v21 = vpop.f32.mrb[86].mxu0  ;;  %1764 = vmatprep.mubr.bf16.mxu1 %v1336_v17  ;;  %v11204_v17 = vld [vmem:[%s16203_s3 + $0x280] ss:$8 sps:$4 sm:$0xff]  }
 0x1ac   : > { %v1031_v22 = vadd.f32 %v1030_v21, %v12223_v38  ;;  %v1032_v23 = vpop.f32.mrb[87].mxu0  ;;  %1765 = vmatmul.mubr.bf16.gmra.mrb[80].mxu1 %v1335_v13  ;;  %v1219_v25 = vmax.f32 %v1027_v18, 0.0  ;;  %v11206_v18 = vld [vmem:[%s16203_s3 + $0x284] ss:$8 sps:$4 sm:$0xff]  }
 0x1ad   : > { %v1033_v24 = vadd.f32 %v1032_v23, %v12227_v39  ;;  %v1220_v27 = vmax.f32 %v1029_v20, 0.0  ;;  %3050 = vmatprep.subr.bf16.mxu1 %v11206_v18 }
 0x1ae   : > { %v1221_v26 = vmax.f32 %v1031_v22, 0.0  ;;  %3051 = vmatpush1.bf16.msra.mxu1 %v11204_v17 }
 0x1af   : > { %v1222_v28 = vmax.f32 %v1033_v24, 0.0 }
 0x1b0   : > { %v1337_v29 = vpack.c.bf16 %v1221_v26, %v1219_v25 }
 0x1b1   : > { %v1036_v32 = vpop.f32.mrb[88].mxu0  ;;  %v1338_v34 = vpack.c.bf16 %v1222_v28, %v1220_v27 }
 0x1b2   : > { %v1037_v36 = vadd.f32 %v1036_v32, %v12223_v38  ;;  %v1038_v37 = vpop.f32.mrb[89].mxu0 }
 0x1b3   : > { %v1039_v40 = vadd.f32 %v1038_v37, %v12227_v39  ;;  %v1040_v41 = vpop.f32.mrb[90].mxu0  ;;  %1774 = vmatprep.mubr.bf16.mxu1 %v1338_v34 }
 0x1b4   : > { %v1041_v42 = vadd.f32 %v1040_v41, %v12223_v38  ;;  %v1042_v43 = vpop.f32.mrb[91].mxu0  ;;  %1775 = vmatmul.mubr.bf16.gmra.mrb[84].mxu1 %v1337_v29  ;;  %v1223_v45 = vmax.f32 %v1037_v36, 0.0 }
 0x1b5   : > { %v1043_v44 = vadd.f32 %v1042_v43, %v12227_v39  ;;  %v1224_v47 = vmax.f32 %v1039_v40, 0.0 }
 0x1b6   : > { %v1225_v46 = vmax.f32 %v1041_v42, 0.0 }
 0x1b7   : > { %v1226_v48 = vmax.f32 %v1043_v44, 0.0 }
 0x1b8   : > { %v1339_v49 = vpack.c.bf16 %v1225_v46, %v1223_v45 }
 0x1b9   : > { %v1046_v52 = vpop.f32.mrb[92].mxu0  ;;  %v1340_v53 = vpack.c.bf16 %v1226_v48, %v1224_v47 }
 0x1ba   : > { %v1047_v54 = vadd.f32 %v1046_v52, %v12223_v38  ;;  %v1048_v55 = vpop.f32.mrb[93].mxu0 }
 0x1bb   : > { %v1049_v56 = vadd.f32 %v1048_v55, %v12227_v39  ;;  %v1050_v57 = vpop.f32.mrb[94].mxu0  ;;  %1784 = vmatprep.mubr.bf16.mxu1 %v1340_v53  ;;  %v11207_v53 = vld [vmem:[%s16203_s3 + $0x290] ss:$8 sps:$4 sm:$0xff]  }
 0x1bc   : > { %v1051_v58 = vadd.f32 %v1050_v57, %v12223_v38  ;;  %v1052_v59 = vpop.f32.mrb[95].mxu0  ;;  %1785 = vmatmul.mubr.bf16.gmra.mrb[88].mxu1 %v1339_v49  ;;  %v1227_v61 = vmax.f32 %v1047_v54, 0.0  ;;  %v11209_v54 = vld [vmem:[%s16203_s3 + $0x294] ss:$8 sps:$4 sm:$0xff]   ;;  %v10128_v57 = vld [vmem:[%s16204_s4 + $0x2] sm:$0x3] }
 0x1bd   : > { %v1053_v60 = vadd.f32 %v1052_v59, %v12227_v39  ;;  %v1228_v63 = vmax.f32 %v1049_v56, 0.0  ;;  %3052 = vmatprep.subr.bf16.mxu1 %v11209_v54 }
 0x1be   : > { %v1229_v62 = vmax.f32 %v1051_v58, 0.0  ;;  %3053 = vmatpush1.bf16.msra.mxu1 %v11207_v53 }
 0x1bf   : > { %v1230_v0 = vmax.f32 %v1053_v60, 0.0 }
 0x1c0   : > { %v1341_v1 = vpack.c.bf16 %v1229_v62, %v1227_v61 }
 0x1c1   : > { %v1056_v3 = vpop.f32.mrb[96].mxu0  ;;  %v1342_v4 = vpack.c.bf16 %v1230_v0, %v1228_v63  ;;  %v12449_v0 = vrot.slane %v10128_v57, %v12208_v33 }
 0x1c2   : > { %v1057_v5 = vadd.f32 %v1056_v3, %v12223_v38  ;;  %v1058_v6 = vpop.f32.mrb[97].mxu0  ;;  %v12453_v3 = vrot.slane %v10128_v57, %v12214_v35 }
 0x1c3   : > { %v1059_v7 = vadd.f32 %v1058_v6, %v12227_v39  ;;  %v1060_v8 = vpop.f32.mrb[98].mxu0  ;;  %1794 = vmatprep.mubr.bf16.mxu1 %v1342_v4 }
 0x1c4   : > { %v1061_v9 = vadd.f32 %v1060_v8, %v12223_v38  ;;  %v1062_v10 = vpop.f32.mrb[99].mxu0  ;;  %1795 = vmatmul.mubr.bf16.gmra.mrb[92].mxu1 %v1341_v1  ;;  %v1231_v12 = vmax.f32 %v1057_v5, 0.0 }
 0x1c5   : > { %v1063_v11 = vadd.f32 %v1062_v10, %v12227_v39  ;;  %v1232_v14 = vmax.f32 %v1059_v7, 0.0 }
 0x1c6   : > { %v1233_v13 = vmax.f32 %v1061_v9, 0.0 }
 0x1c7   : > { %v1234_v15 = vmax.f32 %v1063_v11, 0.0 }
 0x1c8   : > { %v1343_v16 = vpack.c.bf16 %v1233_v13, %v1231_v12 }
 0x1c9   : > { %v1066_v19 = vpop.f32.mrb[100].mxu0  ;;  %v1344_v20 = vpack.c.bf16 %v1234_v15, %v1232_v14 }
 0x1ca   : > { %v1067_v21 = vadd.f32 %v1066_v19, %v12223_v38  ;;  %v1068_v22 = vpop.f32.mrb[101].mxu0 }
 0x1cb   : > { %v1069_v23 = vadd.f32 %v1068_v22, %v12227_v39  ;;  %v1070_v24 = vpop.f32.mrb[102].mxu0  ;;  %1804 = vmatprep.mubr.bf16.mxu1 %v1344_v20 }
 0x1cc   : > { %v1071_v25 = vadd.f32 %v1070_v24, %v12223_v38  ;;  %v1072_v26 = vpop.f32.mrb[103].mxu0  ;;  %1805 = vmatmul.mubr.bf16.gmra.mrb[96].mxu1 %v1343_v16  ;;  %v1235_v28 = vmax.f32 %v1067_v21, 0.0 }
 0x1cd   : > { %v1073_v27 = vadd.f32 %v1072_v26, %v12227_v39  ;;  %v1236_v32 = vmax.f32 %v1069_v23, 0.0 }
 0x1ce   : > { %v1237_v29 = vmax.f32 %v1071_v25, 0.0 }
 0x1cf   : > { %v1238_v34 = vmax.f32 %v1073_v27, 0.0 }
 0x1d0   : > { %v1345_v36 = vpack.c.bf16 %v1237_v29, %v1235_v28 }
 0x1d1   : > { %v1076_v37 = vpop.f32.mrb[104].mxu0  ;;  %v1346_v40 = vpack.c.bf16 %v1238_v34, %v1236_v32 }
 0x1d2   : > { %v1077_v41 = vadd.f32 %v1076_v37, %v12223_v38  ;;  %v1078_v42 = vpop.f32.mrb[105].mxu0 }
 0x1d3   : > { %v1079_v43 = vadd.f32 %v1078_v42, %v12227_v39  ;;  %v1080_v44 = vpop.f32.mrb[106].mxu0  ;;  %1814 = vmatprep.mubr.bf16.mxu1 %v1346_v40 }
 0x1d4   : > { %v1081_v45 = vadd.f32 %v1080_v44, %v12223_v38  ;;  %v1082_v46 = vpop.f32.mrb[107].mxu0  ;;  %1815 = vmatmul.mubr.bf16.gmra.mrb[100].mxu1 %v1345_v36  ;;  %v1239_v48 = vmax.f32 %v1077_v41, 0.0 }
 0x1d5   : > { %v1083_v47 = vadd.f32 %v1082_v46, %v12227_v39  ;;  %v1240_v50 = vmax.f32 %v1079_v43, 0.0  ;;  %v11210_v46 = vld [vmem:[%s16203_s3 + $0x2a0] ss:$8 sps:$4 sm:$0xff]  }
 0x1d6   : > { %v1241_v49 = vmax.f32 %v1081_v45, 0.0 }
 0x1d7   : > { %v1242_v51 = vmax.f32 %v1083_v47, 0.0  ;;  %v11212_v47 = vld [vmem:[%s16203_s3 + $0x2a4] ss:$8 sps:$4 sm:$0xff]  }
 0x1d8   : > { %v1347_v52 = vpack.c.bf16 %v1241_v49, %v1239_v48  ;;  %3054 = vmatprep.subr.bf16.mxu1 %v11212_v47 }
 0x1d9   : > { %v1086_v55 = vpop.f32.mrb[108].mxu0  ;;  %v1348_v56 = vpack.c.bf16 %v1242_v51, %v1240_v50  ;;  %3055 = vmatpush1.bf16.msra.mxu1 %v11210_v46 }
 0x1da   : > { %v1087_v58 = vadd.f32 %v1086_v55, %v12223_v38  ;;  %v1088_v59 = vpop.f32.mrb[109].mxu0 }
 0x1db   : > { %v1089_v60 = vadd.f32 %v1088_v59, %v12227_v39  ;;  %v1090_v61 = vpop.f32.mrb[110].mxu0  ;;  %1824 = vmatprep.mubr.bf16.mxu1 %v1348_v56 }
 0x1dc   : > { %v1091_v62 = vadd.f32 %v1090_v61, %v12223_v38  ;;  %v1092_v63 = vpop.f32.mrb[111].mxu0  ;;  %1825 = vmatmul.mubr.bf16.gmra.mrb[104].mxu1 %v1347_v52  ;;  %v1243_v4 = vmax.f32 %v1087_v58, 0.0 }
 0x1dd   : > { %v1093_v1 = vadd.f32 %v1092_v63, %v12227_v39  ;;  %v1244_v6 = vmax.f32 %v1089_v60, 0.0 }
 0x1de   : > { %v1245_v5 = vmax.f32 %v1091_v62, 0.0 }
 0x1df   : > { %v1246_v7 = vmax.f32 %v1093_v1, 0.0  ;;  %v1566_v8 = vpop.f32.mrb[0].mxu1 }
 0x1e0   : > { %v1567_v9 = vadd.f32 %v1566_v8, %v12449_v0  ;;  %v1568_v10 = vpop.f32.mrb[1].mxu1  ;;  %v1349_v11 = vpack.c.bf16 %v1245_v5, %v1243_v4 }
 0x1e1   : > { %v1569_v12 = vadd.f32 %v1568_v10, %v12453_v3  ;;  %v1096_v13 = vpop.f32.mrb[112].mxu0  ;;  %v1570_v14 = vpop.f32.mrb[2].mxu1  ;;  %v1350_v15 = vpack.c.bf16 %v1246_v7, %v1244_v6 }
 0x1e2   : > { %v1097_v16 = vadd.f32 %v1096_v13, %v12223_v38  ;;  %v1571_v17 = vadd.f32 %v1570_v14, %v12449_v0  ;;  %v1098_v18 = vpop.f32.mrb[113].mxu0  ;;  %v1572_v19 = vpop.f32.mrb[3].mxu1  ;;  %v1885_v23 = vmax.f32 %v1567_v9, 0.0 }
 0x1e3   : > { %v1099_v20 = vadd.f32 %v1098_v18, %v12227_v39  ;;  %v1573_v21 = vadd.f32 %v1572_v19, %v12453_v3  ;;  %v1100_v22 = vpop.f32.mrb[114].mxu0  ;;  %1834 = vmatprep.mubr.bf16.mxu1 %v1350_v15  ;;  %v1886_v28 = vmax.f32 %v1569_v12, 0.0 }
 0x1e4   : > { %v1887_v24 = vmax.f32 %v1571_v17, 0.0  ;;  %v1101_v25 = vadd.f32 %v1100_v22, %v12223_v38  ;;  %v1102_v26 = vpop.f32.mrb[115].mxu0  ;;  %1835 = vmatmul.mubr.bf16.gmra.mrb[108].mxu1 %v1349_v11  ;;  %v1247_v32 = vmax.f32 %v1097_v16, 0.0 }
 0x1e5   : > { %v1103_v27 = vadd.f32 %v1102_v26, %v12227_v39  ;;  %v1888_v29 = vmax.f32 %v1573_v21, 0.0  ;;  %v1248_v37 = vmax.f32 %v1099_v20, 0.0 }
 0x1e6   : > { %v2046_v34 = vpack.c.bf16 %v1887_v24, %v1885_v23  ;;  %v1249_v36 = vmax.f32 %v1101_v25, 0.0 }
 0x1e7   : > { %v1250_v40 = vmax.f32 %v1103_v27, 0.0  ;;  %v1576_v41 = vpop.f32.mrb[4].mxu1  ;;  %v2047_v42 = vpack.c.bf16 %v1888_v29, %v1886_v28 }
 0x1e8   : > { %v1577_v43 = vadd.f32 %v1576_v41, %v12449_v0  ;;  %v1578_v44 = vpop.f32.mrb[5].mxu1  ;;  %v1351_v45 = vpack.c.bf16 %v1249_v36, %v1247_v32 }
 0x1e9   : > { %v1579_v48 = vadd.f32 %v1578_v44, %v12453_v3  ;;  %v1106_v49 = vpop.f32.mrb[116].mxu0  ;;  %v1580_v50 = vpop.f32.mrb[6].mxu1  ;;  %2315 = vmatprep.mubr.bf16.mxu0 %v2047_v42  ;;  %v1352_v51 = vpack.c.bf16 %v1250_v40, %v1248_v37 }
 0x1ea   : > { %v1107_v52 = vadd.f32 %v1106_v49, %v12223_v38  ;;  %v1581_v53 = vadd.f32 %v1580_v50, %v12449_v0  ;;  %v1108_v54 = vpop.f32.mrb[117].mxu0  ;;  %v1582_v55 = vpop.f32.mrb[7].mxu1  ;;  %2316 = vmatmul.mubr.bf16.vlgmr.msra.gmra.mrb[128].mxu0 %v2046_v34  ;;  %v1889_v61 = vmax.f32 %v1577_v43, 0.0  ;;  %v11213_v49 = vld [vmem:[%s16203_s3 + $0x2b0] ss:$8 sps:$4 sm:$0xff]  }
 0x1eb   : > { %v1109_v56 = vadd.f32 %v1108_v54, %v12227_v39  ;;  %v1583_v57 = vadd.f32 %v1582_v55, %v12453_v3  ;;  %v1110_v58 = vpop.f32.mrb[118].mxu0  ;;  %1844 = vmatprep.mubr.bf16.mxu1 %v1352_v51  ;;  %v1890_v1 = vmax.f32 %v1579_v48, 0.0  ;;  %v11215_v50 = vld [vmem:[%s16203_s3 + $0x2b4] ss:$8 sps:$4 sm:$0xff]  }
 0x1ec   : > { %v1111_v59 = vadd.f32 %v1110_v58, %v12223_v38  ;;  %v1112_v60 = vpop.f32.mrb[119].mxu0  ;;  %1845 = vmatmul.mubr.bf16.gmra.mrb[112].mxu1 %v1351_v45  ;;  %v1891_v62 = vmax.f32 %v1581_v53, 0.0  ;;  %v1251_v5 = vmax.f32 %v1107_v52, 0.0  ;;  %3056 = vmatprep.subr.bf16.mxu1 %v11215_v50 }
 0x1ed   : > { %v1113_v63 = vadd.f32 %v1112_v60, %v12227_v39  ;;  %v1892_v4 = vmax.f32 %v1583_v57, 0.0  ;;  %v1252_v8 = vmax.f32 %v1109_v56, 0.0  ;;  %3057 = vmatpush1.bf16.msra.mxu1 %v11213_v49 }
 0x1ee   : > { %v1253_v6 = vmax.f32 %v1111_v59, 0.0  ;;  %v2048_v7 = vpack.c.bf16 %v1891_v62, %v1889_v61 }
 0x1ef   : > { %v1254_v9 = vmax.f32 %v1113_v63, 0.0  ;;  %v1586_v10 = vpop.f32.mrb[8].mxu1  ;;  %v2049_v11 = vpack.c.bf16 %v1892_v4, %v1890_v1 }
 0x1f0   : > { %v1587_v12 = vadd.f32 %v1586_v10, %v12449_v0  ;;  %v1588_v13 = vpop.f32.mrb[9].mxu1  ;;  %v1353_v14 = vpack.c.bf16 %v1253_v6, %v1251_v5 }
 0x1f1   : > { %v1589_v15 = vadd.f32 %v1588_v13, %v12453_v3  ;;  %v1116_v16 = vpop.f32.mrb[120].mxu0  ;;  %v1590_v17 = vpop.f32.mrb[10].mxu1  ;;  %2325 = vmatprep.mubr.bf16.mxu0 %v2049_v11  ;;  %v1354_v18 = vpack.c.bf16 %v1254_v9, %v1252_v8 }
 0x1f2   : > { %v1117_v19 = vadd.f32 %v1116_v16, %v12223_v38  ;;  %v1591_v20 = vadd.f32 %v1590_v17, %v12449_v0  ;;  %v1118_v21 = vpop.f32.mrb[121].mxu0  ;;  %v1592_v22 = vpop.f32.mrb[11].mxu1  ;;  %2326 = vmatmul.mubr.bf16.gmra.mrb[132].mxu0 %v2048_v7  ;;  %v1893_v28 = vmax.f32 %v1587_v12, 0.0 }
 0x1f3   : > { %v1119_v23 = vadd.f32 %v1118_v21, %v12227_v39  ;;  %v1593_v24 = vadd.f32 %v1592_v22, %v12453_v3  ;;  %v1120_v25 = vpop.f32.mrb[122].mxu0  ;;  %1854 = vmatprep.mubr.bf16.mxu1 %v1354_v18  ;;  %v1894_v34 = vmax.f32 %v1589_v15, 0.0 }
 0x1f4   : > { %v1121_v26 = vadd.f32 %v1120_v25, %v12223_v38  ;;  %v1122_v27 = vpop.f32.mrb[123].mxu0  ;;  %1855 = vmatmul.mubr.bf16.gmra.mrb[116].mxu1 %v1353_v14  ;;  %v1895_v29 = vmax.f32 %v1591_v20, 0.0  ;;  %v1255_v37 = vmax.f32 %v1117_v19, 0.0 }
 0x1f5   : > { %v1123_v32 = vadd.f32 %v1122_v27, %v12227_v39  ;;  %v1896_v36 = vmax.f32 %v1593_v24, 0.0  ;;  %v1256_v42 = vmax.f32 %v1119_v23, 0.0 }
 0x1f6   : > { %v1257_v40 = vmax.f32 %v1121_v26, 0.0  ;;  %v2050_v41 = vpack.c.bf16 %v1895_v29, %v1893_v28 }
 0x1f7   : > { %v1258_v43 = vmax.f32 %v1123_v32, 0.0  ;;  %v1596_v44 = vpop.f32.mrb[12].mxu1  ;;  %v2051_v45 = vpack.c.bf16 %v1896_v36, %v1894_v34  ;;  %v11216_v34 = vld [vmem:[%s16203_s3 + $0x2c0] ss:$8 sps:$4 sm:$0xff]   ;;  %v11218_v36 = vld [vmem:[%s16203_s3 + $0x2c4] ss:$8 sps:$4 sm:$0xff]  }
 0x1f8   : > { %v1597_v46 = vadd.f32 %v1596_v44, %v12449_v0  ;;  %v1598_v47 = vpop.f32.mrb[13].mxu1  ;;  %v1355_v48 = vpack.c.bf16 %v1257_v40, %v1255_v37  ;;  %3058 = vmatprep.subr.bf16.mxu1 %v11218_v36 }
 0x1f9   : > { %v1599_v51 = vadd.f32 %v1598_v47, %v12453_v3  ;;  %v1126_v52 = vpop.f32.mrb[124].mxu0  ;;  %v1600_v53 = vpop.f32.mrb[14].mxu1  ;;  %2335 = vmatprep.mubr.bf16.mxu0 %v2051_v45  ;;  %v1356_v54 = vpack.c.bf16 %v1258_v43, %v1256_v42  ;;  %3059 = vmatpush1.bf16.msra.mxu1 %v11216_v34 }
 0x1fa   : > { %v1127_v55 = vadd.f32 %v1126_v52, %v12223_v38  ;;  %v1601_v56 = vadd.f32 %v1600_v53, %v12449_v0  ;;  %v1128_v57 = vpop.f32.mrb[125].mxu0  ;;  %v1602_v58 = vpop.f32.mrb[15].mxu1  ;;  %2336 = vmatmul.mubr.bf16.gmra.mrb[136].mxu0 %v2050_v41  ;;  %v1897_v1 = vmax.f32 %v1597_v46, 0.0 }
 0x1fb   : > { %v1129_v59 = vadd.f32 %v1128_v57, %v12227_v39  ;;  %v1603_v60 = vadd.f32 %v1602_v58, %v12453_v3  ;;  %v1130_v61 = vpop.f32.mrb[126].mxu0  ;;  %1864 = vmatprep.mubr.bf16.mxu1 %v1356_v54  ;;  %v1898_v6 = vmax.f32 %v1599_v51, 0.0 }
 0x1fc   : > { %v1131_v62 = vadd.f32 %v1130_v61, %v12223_v38  ;;  %v1132_v63 = vpop.f32.mrb[127].mxu0  ;;  %1865 = vmatmul.mubr.bf16.gmra.mrb[120].mxu1 %v1355_v48  ;;  %v1899_v4 = vmax.f32 %v1601_v56, 0.0  ;;  %v1259_v8 = vmax.f32 %v1127_v55, 0.0 }
 0x1fd   : > { %v1133_v5 = vadd.f32 %v1132_v63, %v12227_v39  ;;  %v1900_v7 = vmax.f32 %v1603_v60, 0.0  ;;  %v1260_v11 = vmax.f32 %v1129_v59, 0.0 }
 0x1fe   : > { %v1261_v9 = vmax.f32 %v1131_v62, 0.0  ;;  %v2052_v10 = vpack.c.bf16 %v1899_v4, %v1897_v1 }
 0x1ff   : > { %v1262_v12 = vmax.f32 %v1133_v5, 0.0  ;;  %v1606_v13 = vpop.f32.mrb[16].mxu1  ;;  %v2053_v14 = vpack.c.bf16 %v1900_v7, %v1898_v6  ;;  %v11219_v6 = vld [vmem:[%s16203_s3 + $0x2d0] ss:$8 sps:$4 sm:$0xff]   ;;  %v11221_v7 = vld [vmem:[%s16203_s3 + $0x2d4] ss:$8 sps:$4 sm:$0xff]  }
 0x200   : > { %v1607_v15 = vadd.f32 %v1606_v13, %v12449_v0  ;;  %v1608_v16 = vpop.f32.mrb[17].mxu1  ;;  %v1357_v17 = vpack.c.bf16 %v1261_v9, %v1259_v8  ;;  %3060 = vmatprep.subr.bf16.mxu1 %v11221_v7 }
 0x201   : > { %v1609_v38 = vadd.f32 %v1608_v16, %v12453_v3  ;;  %v1610_v18 = vpop.f32.mrb[18].mxu1  ;;  %2345 = vmatprep.mubr.bf16.mxu0 %v2053_v14  ;;  %v1358_v19 = vpack.c.bf16 %v1262_v12, %v1260_v11  ;;  %3061 = vmatpush1.bf16.msra.mxu1 %v11219_v6 }
 0x202   : > { %v1611_v39 = vadd.f32 %v1610_v18, %v12449_v0  ;;  %v1612_v20 = vpop.f32.mrb[19].mxu1  ;;  %2346 = vmatmul.mubr.bf16.gmra.mrb[140].mxu0 %v2052_v10  ;;  %v1901_v22 = vmax.f32 %v1607_v15, 0.0 }
 0x203   : > { %v1613_v21 = vadd.f32 %v1612_v20, %v12453_v3  ;;  %1874 = vmatprep.mubr.bf16.mxu1 %v1358_v19  ;;  %v1902_v24 = vmax.f32 %v1609_v38, 0.0 }
 0x204   : > { %1875 = vmatmul.mubr.bf16.gmra.mrb[124].mxu1 %v1357_v17  ;;  %v1903_v23 = vmax.f32 %v1611_v39, 0.0 }
 0x205   : > { %v1904_v25 = vmax.f32 %v1613_v21, 0.0 }
 0x206   : > { %v2054_v26 = vpack.c.bf16 %v1903_v23, %v1901_v22 }
 0x207   : > { %v1616_v27 = vpop.f32.mrb[20].mxu1  ;;  %v2055_v28 = vpack.c.bf16 %v1904_v25, %v1902_v24  ;;  %v11222_v25 = vld [vmem:[%s16203_s3 + $0x300] ss:$8 sps:$4 sm:$0xff]  }
 0x208   : > { %v1617_v29 = vadd.f32 %v1616_v27, %v12449_v0  ;;  %v1618_v32 = vpop.f32.mrb[21].mxu1 }
 0x209   : > { %v1619_v37 = vadd.f32 %v1618_v32, %v12453_v3  ;;  %v1620_v40 = vpop.f32.mrb[22].mxu1  ;;  %2355 = vmatprep.mubr.bf16.mxu0 %v2055_v28 }
 0x20a   : > { %v1621_v41 = vadd.f32 %v1620_v40, %v12449_v0  ;;  %v1622_v42 = vpop.f32.mrb[23].mxu1  ;;  %2356 = vmatmul.mubr.bf16.gmra.mrb[144].mxu0 %v2054_v26  ;;  %v1905_v44 = vmax.f32 %v1617_v29, 0.0  ;;  %v11224_v26 = vld [vmem:[%s16203_s3 + $0x304] ss:$8 sps:$4 sm:$0xff]  }
 0x20b   : > { %v1623_v43 = vadd.f32 %v1622_v42, %v12453_v3  ;;  %v1906_v46 = vmax.f32 %v1619_v37, 0.0  ;;  %3785 = vmatprep.subr.bf16.mxu0 %v11224_v26  ;;  %v11225_v42 = vld [vmem:[%s16203_s3 + $0x2e0] ss:$8 sps:$4 sm:$0xff]  }
 0x20c   : > { %v1907_v45 = vmax.f32 %v1621_v41, 0.0  ;;  %3786 = vmatpush1.bf16.msra.mxu0 %v11222_v25 }
 0x20d   : > { %v1908_v47 = vmax.f32 %v1623_v43, 0.0  ;;  %v11227_v43 = vld [vmem:[%s16203_s3 + $0x2e4] ss:$8 sps:$4 sm:$0xff]  }
 0x20e   : > { %v2056_v48 = vpack.c.bf16 %v1907_v45, %v1905_v44  ;;  %3062 = vmatprep.subr.bf16.mxu1 %v11227_v43 }
 0x20f   : > { %v1626_v49 = vpop.f32.mrb[24].mxu1  ;;  %v2057_v50 = vpack.c.bf16 %v1908_v47, %v1906_v46  ;;  %3063 = vmatpush1.bf16.msra.mxu1 %v11225_v42 }
 0x210   : > { %v1627_v51 = vadd.f32 %v1626_v49, %v12449_v0  ;;  %v1628_v52 = vpop.f32.mrb[25].mxu1 }
 0x211   : > { %v1629_v53 = vadd.f32 %v1628_v52, %v12453_v3  ;;  %v1630_v54 = vpop.f32.mrb[26].mxu1  ;;  %2365 = vmatprep.mubr.bf16.mxu0 %v2057_v50 }
 0x212   : > { %v1631_v55 = vadd.f32 %v1630_v54, %v12449_v0  ;;  %v1632_v56 = vpop.f32.mrb[27].mxu1  ;;  %2366 = vmatmul.mubr.bf16.gmra.mrb[148].mxu0 %v2056_v48  ;;  %v1909_v58 = vmax.f32 %v1627_v51, 0.0 }
 0x213   : > { %v1633_v57 = vadd.f32 %v1632_v56, %v12453_v3  ;;  %v1910_v60 = vmax.f32 %v1629_v53, 0.0 }
 0x214   : > { %v1911_v59 = vmax.f32 %v1631_v55, 0.0 }
 0x215   : > { %v1912_v61 = vmax.f32 %v1633_v57, 0.0 }
 0x216   : > { %v2058_v62 = vpack.c.bf16 %v1911_v59, %v1909_v58 }
 0x217   : > { %v1636_v63 = vpop.f32.mrb[28].mxu1  ;;  %v2059_v1 = vpack.c.bf16 %v1912_v61, %v1910_v60 }
 0x218   : > { %v1637_v4 = vadd.f32 %v1636_v63, %v12449_v0  ;;  %v1638_v5 = vpop.f32.mrb[29].mxu1  ;;  %v11228_v63 = vld [vmem:[%s16203_s3 + $0x310] ss:$8 sps:$4 sm:$0xff]  }
 0x219   : > { %v1639_v8 = vadd.f32 %v1638_v5, %v12453_v3  ;;  %v1640_v9 = vpop.f32.mrb[30].mxu1  ;;  %2375 = vmatprep.mubr.bf16.mxu0 %v2059_v1  ;;  %v11230_v1 = vld [vmem:[%s16203_s3 + $0x314] ss:$8 sps:$4 sm:$0xff]  }
 0x21a   : > { %v1641_v10 = vadd.f32 %v1640_v9, %v12449_v0  ;;  %v1642_v11 = vpop.f32.mrb[31].mxu1  ;;  %2376 = vmatmul.mubr.bf16.gmra.mrb[152].mxu0 %v2058_v62  ;;  %v1913_v13 = vmax.f32 %v1637_v4, 0.0  ;;  %3787 = vmatprep.subr.bf16.mxu0 %v11230_v1 }
 0x21b   : > { %v1643_v12 = vadd.f32 %v1642_v11, %v12453_v3  ;;  %v1914_v15 = vmax.f32 %v1639_v8, 0.0  ;;  %3788 = vmatpush1.bf16.msra.mxu0 %v11228_v63 }
 0x21c   : > { %v1915_v14 = vmax.f32 %v1641_v10, 0.0 }
 0x21d   : > { %v1916_v16 = vmax.f32 %v1643_v12, 0.0 }
 0x21e   : > { %v2060_v17 = vpack.c.bf16 %v1915_v14, %v1913_v13  ;;  %v11231_v13 = vld [vmem:[%s16203_s3 + $0x2f0] ss:$8 sps:$4 sm:$0xff]   ;;  %v11233_v14 = vld [vmem:[%s16203_s3 + $0x2f4] ss:$8 sps:$4 sm:$0xff]  }
 0x21f   : > { %v1646_v38 = vpop.f32.mrb[32].mxu1  ;;  %v2061_v18 = vpack.c.bf16 %v1916_v16, %v1914_v15  ;;  %3064 = vmatprep.subr.bf16.mxu1 %v11233_v14 }
 0x220   : > { %v1647_v19 = vadd.f32 %v1646_v38, %v12449_v0  ;;  %v1648_v39 = vpop.f32.mrb[33].mxu1  ;;  %3065 = vmatpush1.bf16.msra.mxu1 %v11231_v13 }
 0x221   : > { %v1649_v20 = vadd.f32 %v1648_v39, %v12453_v3  ;;  %v1650_v21 = vpop.f32.mrb[34].mxu1  ;;  %2385 = vmatprep.mubr.bf16.mxu0 %v2061_v18 }
 0x222   : > { %v1651_v22 = vadd.f32 %v1650_v21, %v12449_v0  ;;  %v1652_v23 = vpop.f32.mrb[35].mxu1  ;;  %2386 = vmatmul.mubr.bf16.gmra.mrb[156].mxu0 %v2060_v17  ;;  %v1917_v27 = vmax.f32 %v1647_v19, 0.0 }
 0x223   : > { %v1653_v24 = vadd.f32 %v1652_v23, %v12453_v3  ;;  %v1918_v29 = vmax.f32 %v1649_v20, 0.0 }
 0x224   : > { %v1919_v28 = vmax.f32 %v1651_v22, 0.0 }
 0x225   : > { %v1920_v32 = vmax.f32 %v1653_v24, 0.0 }
 0x226   : > { %v2062_v34 = vpack.c.bf16 %v1919_v28, %v1917_v27 }
 0x227   : > { %v1656_v36 = vpop.f32.mrb[36].mxu1  ;;  %v2063_v37 = vpack.c.bf16 %v1920_v32, %v1918_v29 }
 0x228   : > { %v1657_v40 = vadd.f32 %v1656_v36, %v12449_v0  ;;  %v1658_v41 = vpop.f32.mrb[37].mxu1 }
 0x229   : > { %v1659_v44 = vadd.f32 %v1658_v41, %v12453_v3  ;;  %v1660_v45 = vpop.f32.mrb[38].mxu1  ;;  %2395 = vmatprep.mubr.bf16.mxu0 %v2063_v37 }
 0x22a   : > { %v1661_v46 = vadd.f32 %v1660_v45, %v12449_v0  ;;  %v1662_v47 = vpop.f32.mrb[39].mxu1  ;;  %2396 = vmatmul.mubr.bf16.gmra.mrb[160].mxu0 %v2062_v34  ;;  %v1921_v49 = vmax.f32 %v1657_v40, 0.0 }
 0x22b   : > { %v1663_v48 = vadd.f32 %v1662_v47, %v12453_v3  ;;  %v1922_v51 = vmax.f32 %v1659_v44, 0.0  ;;  %v11234_v47 = vld [vmem:[%s16203_s3 + $0x320] ss:$8 sps:$4 sm:$0xff]  }
 0x22c   : > { %v1923_v50 = vmax.f32 %v1661_v46, 0.0 }
 0x22d   : > { %v1924_v52 = vmax.f32 %v1663_v48, 0.0  ;;  %v11236_v48 = vld [vmem:[%s16203_s3 + $0x324] ss:$8 sps:$4 sm:$0xff]  }
 0x22e   : > { %v2064_v53 = vpack.c.bf16 %v1923_v50, %v1921_v49  ;;  %3789 = vmatprep.subr.bf16.mxu0 %v11236_v48 }
 0x22f   : > { %v1666_v54 = vpop.f32.mrb[40].mxu1  ;;  %v2065_v55 = vpack.c.bf16 %v1924_v52, %v1922_v51  ;;  %3790 = vmatpush1.bf16.msra.mxu0 %v11234_v47 }
 0x230   : > { %v1667_v56 = vadd.f32 %v1666_v54, %v12449_v0  ;;  %v1668_v57 = vpop.f32.mrb[41].mxu1 }
 0x231   : > { %v1669_v58 = vadd.f32 %v1668_v57, %v12453_v3  ;;  %v1670_v59 = vpop.f32.mrb[42].mxu1  ;;  %2405 = vmatprep.mubr.bf16.mxu0 %v2065_v55 }
 0x232   : > { %v1671_v60 = vadd.f32 %v1670_v59, %v12449_v0  ;;  %v1672_v61 = vpop.f32.mrb[43].mxu1  ;;  %2406 = vmatmul.mubr.bf16.gmra.mrb[164].mxu0 %v2064_v53  ;;  %v1925_v4 = vmax.f32 %v1667_v56, 0.0 }
 0x233   : > { %v1673_v62 = vadd.f32 %v1672_v61, %v12453_v3  ;;  %v1926_v6 = vmax.f32 %v1669_v58, 0.0 }
 0x234   : > { %v1927_v5 = vmax.f32 %v1671_v60, 0.0 }
 0x235   : > { %v1928_v7 = vmax.f32 %v1673_v62, 0.0 }
 0x236   : > { %v2066_v8 = vpack.c.bf16 %v1927_v5, %v1925_v4 }
 0x237   : > { %v1676_v9 = vpop.f32.mrb[44].mxu1  ;;  %v2067_v10 = vpack.c.bf16 %v1928_v7, %v1926_v6 }
 0x238   : > { %v1677_v11 = vadd.f32 %v1676_v9, %v12449_v0  ;;  %v1678_v12 = vpop.f32.mrb[45].mxu1 }
 0x239   : > { %v1679_v15 = vadd.f32 %v1678_v12, %v12453_v3  ;;  %v1680_v16 = vpop.f32.mrb[46].mxu1  ;;  %2415 = vmatprep.mubr.bf16.mxu0 %v2067_v10 }
 0x23a   : > { %v1681_v17 = vadd.f32 %v1680_v16, %v12449_v0  ;;  %v1682_v38 = vpop.f32.mrb[47].mxu1  ;;  %2416 = vmatmul.mubr.bf16.gmra.mrb[168].mxu0 %v2066_v8  ;;  %v1929_v19 = vmax.f32 %v1677_v11, 0.0  ;;  %v11237_v16 = vld [vmem:[%s16203_s3 + $0x330] ss:$8 sps:$4 sm:$0xff]  }
 0x23b   : > { %v1683_v18 = vadd.f32 %v1682_v38, %v12453_v3  ;;  %v1930_v20 = vmax.f32 %v1679_v15, 0.0 }
 0x23c   : > { %v1931_v39 = vmax.f32 %v1681_v17, 0.0  ;;  %v11239_v17 = vld [vmem:[%s16203_s3 + $0x334] ss:$8 sps:$4 sm:$0xff]  }
 0x23d   : > { %v1932_v21 = vmax.f32 %v1683_v18, 0.0  ;;  %3791 = vmatprep.subr.bf16.mxu0 %v11239_v17 }
 0x23e   : > { %v2068_v22 = vpack.c.bf16 %v1931_v39, %v1929_v19  ;;  %3792 = vmatpush1.bf16.msra.mxu0 %v11237_v16 }
 0x23f   : > { %v1686_v23 = vpop.f32.mrb[48].mxu1  ;;  %v2069_v24 = vpack.c.bf16 %v1932_v21, %v1930_v20 }
 0x240   : > { %v1687_v25 = vadd.f32 %v1686_v23, %v12449_v0  ;;  %v1688_v26 = vpop.f32.mrb[49].mxu1 }
 0x241   : > { %v1689_v27 = vadd.f32 %v1688_v26, %v12453_v3  ;;  %v1690_v28 = vpop.f32.mrb[50].mxu1  ;;  %2425 = vmatprep.mubr.bf16.mxu0 %v2069_v24 }
 0x242   : > { %v1691_v29 = vadd.f32 %v1690_v28, %v12449_v0  ;;  %v1692_v32 = vpop.f32.mrb[51].mxu1  ;;  %2426 = vmatmul.mubr.bf16.gmra.mrb[172].mxu0 %v2068_v22  ;;  %v1933_v36 = vmax.f32 %v1687_v25, 0.0 }
 0x243   : > { %v1693_v34 = vadd.f32 %v1692_v32, %v12453_v3  ;;  %v1934_v40 = vmax.f32 %v1689_v27, 0.0 }
 0x244   : > { %v1935_v37 = vmax.f32 %v1691_v29, 0.0 }
 0x245   : > { %v1936_v41 = vmax.f32 %v1693_v34, 0.0 }
 0x246   : > { %v2070_v42 = vpack.c.bf16 %v1935_v37, %v1933_v36 }
 0x247   : > { %v1696_v43 = vpop.f32.mrb[52].mxu1  ;;  %v2071_v44 = vpack.c.bf16 %v1936_v41, %v1934_v40 }
 0x248   : > { %v1697_v45 = vadd.f32 %v1696_v43, %v12449_v0  ;;  %v1698_v46 = vpop.f32.mrb[53].mxu1 }
 0x249   : > { %v1699_v49 = vadd.f32 %v1698_v46, %v12453_v3  ;;  %v1700_v50 = vpop.f32.mrb[54].mxu1  ;;  %2435 = vmatprep.mubr.bf16.mxu0 %v2071_v44 }
 0x24a   : > { %v1701_v51 = vadd.f32 %v1700_v50, %v12449_v0  ;;  %v1702_v52 = vpop.f32.mrb[55].mxu1  ;;  %2436 = vmatmul.mubr.bf16.gmra.mrb[176].mxu0 %v2070_v42  ;;  %v1937_v54 = vmax.f32 %v1697_v45, 0.0  ;;  %v11240_v50 = vld [vmem:[%s16203_s3 + $0x340] ss:$8 sps:$4 sm:$0xff]  }
 0x24b   : > { %v1703_v53 = vadd.f32 %v1702_v52, %v12453_v3  ;;  %v1938_v56 = vmax.f32 %v1699_v49, 0.0 }
 0x24c   : > { %v1939_v55 = vmax.f32 %v1701_v51, 0.0  ;;  %v11242_v51 = vld [vmem:[%s16203_s3 + $0x344] ss:$8 sps:$4 sm:$0xff]  }
 0x24d   : > { %v1940_v57 = vmax.f32 %v1703_v53, 0.0  ;;  %3793 = vmatprep.subr.bf16.mxu0 %v11242_v51 }
 0x24e   : > { %v2072_v58 = vpack.c.bf16 %v1939_v55, %v1937_v54  ;;  %3794 = vmatpush1.bf16.msra.mxu0 %v11240_v50 }
 0x24f   : > { %v1706_v59 = vpop.f32.mrb[56].mxu1  ;;  %v2073_v60 = vpack.c.bf16 %v1940_v57, %v1938_v56 }
 0x250   : > { %v1707_v61 = vadd.f32 %v1706_v59, %v12449_v0  ;;  %v1708_v62 = vpop.f32.mrb[57].mxu1 }
 0x251   : > { %v1709_v63 = vadd.f32 %v1708_v62, %v12453_v3  ;;  %v1710_v1 = vpop.f32.mrb[58].mxu1  ;;  %2445 = vmatprep.mubr.bf16.mxu0 %v2073_v60 }
 0x252   : > { %v1711_v4 = vadd.f32 %v1710_v1, %v12449_v0  ;;  %v1712_v5 = vpop.f32.mrb[59].mxu1  ;;  %2446 = vmatmul.mubr.bf16.gmra.mrb[180].mxu0 %v2072_v58  ;;  %v1941_v7 = vmax.f32 %v1707_v61, 0.0 }
 0x253   : > { %v1713_v6 = vadd.f32 %v1712_v5, %v12453_v3  ;;  %v1942_v9 = vmax.f32 %v1709_v63, 0.0 }
 0x254   : > { %v1943_v8 = vmax.f32 %v1711_v4, 0.0 }
 0x255   : > { %v1944_v10 = vmax.f32 %v1713_v6, 0.0 }
 0x256   : > { %v2074_v11 = vpack.c.bf16 %v1943_v8, %v1941_v7 }
 0x257   : > { %v1716_v12 = vpop.f32.mrb[60].mxu1  ;;  %v2075_v13 = vpack.c.bf16 %v1944_v10, %v1942_v9 }
 0x258   : > { %v1717_v14 = vadd.f32 %v1716_v12, %v12449_v0  ;;  %v1718_v15 = vpop.f32.mrb[61].mxu1 }
 0x259   : > { %v1719_v38 = vadd.f32 %v1718_v15, %v12453_v3  ;;  %v1720_v18 = vpop.f32.mrb[62].mxu1  ;;  %2455 = vmatprep.mubr.bf16.mxu0 %v2075_v13 }
 0x25a   : > { %v1721_v19 = vadd.f32 %v1720_v18, %v12449_v0  ;;  %v1722_v39 = vpop.f32.mrb[63].mxu1  ;;  %2456 = vmatmul.mubr.bf16.gmra.mrb[184].mxu0 %v2074_v11  ;;  %v1945_v21 = vmax.f32 %v1717_v14, 0.0  ;;  %v11243_v18 = vld [vmem:[%s16203_s3 + $0x350] ss:$8 sps:$4 sm:$0xff]  }
 0x25b   : > { %v1723_v20 = vadd.f32 %v1722_v39, %v12453_v3  ;;  %v1946_v23 = vmax.f32 %v1719_v38, 0.0 }
 0x25c   : > { %v1947_v22 = vmax.f32 %v1721_v19, 0.0  ;;  %v11245_v19 = vld [vmem:[%s16203_s3 + $0x354] ss:$8 sps:$4 sm:$0xff]  }
 0x25d   : > { %v1948_v24 = vmax.f32 %v1723_v20, 0.0  ;;  %3795 = vmatprep.subr.bf16.mxu0 %v11245_v19 }
 0x25e   : > { %v2076_v25 = vpack.c.bf16 %v1947_v22, %v1945_v21  ;;  %3796 = vmatpush1.bf16.msra.mxu0 %v11243_v18 }
 0x25f   : > { %v1726_v26 = vpop.f32.mrb[64].mxu1  ;;  %v2077_v27 = vpack.c.bf16 %v1948_v24, %v1946_v23 }
 0x260   : > { %v1727_v28 = vadd.f32 %v1726_v26, %v12449_v0  ;;  %v1728_v29 = vpop.f32.mrb[65].mxu1 }
 0x261   : > { %v1729_v32 = vadd.f32 %v1728_v29, %v12453_v3  ;;  %v1730_v34 = vpop.f32.mrb[66].mxu1  ;;  %2465 = vmatprep.mubr.bf16.mxu0 %v2077_v27 }
 0x262   : > { %v1731_v36 = vadd.f32 %v1730_v34, %v12449_v0  ;;  %v1732_v37 = vpop.f32.mrb[67].mxu1  ;;  %2466 = vmatmul.mubr.bf16.gmra.mrb[188].mxu0 %v2076_v25  ;;  %v1949_v41 = vmax.f32 %v1727_v28, 0.0 }
 0x263   : > { %v1733_v40 = vadd.f32 %v1732_v37, %v12453_v3  ;;  %v1950_v43 = vmax.f32 %v1729_v32, 0.0 }
 0x264   : > { %v1951_v42 = vmax.f32 %v1731_v36, 0.0 }
 0x265   : > { %v1952_v44 = vmax.f32 %v1733_v40, 0.0 }
 0x266   : > { %v2078_v45 = vpack.c.bf16 %v1951_v42, %v1949_v41 }
 0x267   : > { %v1736_v46 = vpop.f32.mrb[68].mxu1  ;;  %v2079_v47 = vpack.c.bf16 %v1952_v44, %v1950_v43 }
 0x268   : > { %v1737_v48 = vadd.f32 %v1736_v46, %v12449_v0  ;;  %v1738_v49 = vpop.f32.mrb[69].mxu1 }
 0x269   : > { %v1739_v52 = vadd.f32 %v1738_v49, %v12453_v3  ;;  %v1740_v53 = vpop.f32.mrb[70].mxu1  ;;  %2475 = vmatprep.mubr.bf16.mxu0 %v2079_v47 }
 0x26a   : > { %v1741_v54 = vadd.f32 %v1740_v53, %v12449_v0  ;;  %v1742_v55 = vpop.f32.mrb[71].mxu1  ;;  %2476 = vmatmul.mubr.bf16.gmra.mrb[192].mxu0 %v2078_v45  ;;  %v1953_v57 = vmax.f32 %v1737_v48, 0.0  ;;  %v11246_v53 = vld [vmem:[%s16203_s3 + $0x360] ss:$8 sps:$4 sm:$0xff]  }
 0x26b   : > { %v1743_v56 = vadd.f32 %v1742_v55, %v12453_v3  ;;  %v1954_v59 = vmax.f32 %v1739_v52, 0.0 }
 0x26c   : > { %v1955_v58 = vmax.f32 %v1741_v54, 0.0  ;;  %v11248_v54 = vld [vmem:[%s16203_s3 + $0x364] ss:$8 sps:$4 sm:$0xff]  }
 0x26d   : > { %v1956_v60 = vmax.f32 %v1743_v56, 0.0  ;;  %3797 = vmatprep.subr.bf16.mxu0 %v11248_v54 }
 0x26e   : > { %v2080_v61 = vpack.c.bf16 %v1955_v58, %v1953_v57  ;;  %3798 = vmatpush1.bf16.msra.mxu0 %v11246_v53 }
 0x26f   : > { %v1746_v62 = vpop.f32.mrb[72].mxu1  ;;  %v2081_v63 = vpack.c.bf16 %v1956_v60, %v1954_v59 }
 0x270   : > { %v1747_v1 = vadd.f32 %v1746_v62, %v12449_v0  ;;  %v1748_v4 = vpop.f32.mrb[73].mxu1 }
 0x271   : > { %v1749_v5 = vadd.f32 %v1748_v4, %v12453_v3  ;;  %v1750_v6 = vpop.f32.mrb[74].mxu1  ;;  %2485 = vmatprep.mubr.bf16.mxu0 %v2081_v63 }
 0x272   : > { %v1751_v7 = vadd.f32 %v1750_v6, %v12449_v0  ;;  %v1752_v8 = vpop.f32.mrb[75].mxu1  ;;  %2486 = vmatmul.mubr.bf16.gmra.mrb[196].mxu0 %v2080_v61  ;;  %v1957_v10 = vmax.f32 %v1747_v1, 0.0 }
 0x273   : > { %v1753_v9 = vadd.f32 %v1752_v8, %v12453_v3  ;;  %v1958_v12 = vmax.f32 %v1749_v5, 0.0 }
 0x274   : > { %v1959_v11 = vmax.f32 %v1751_v7, 0.0 }
 0x275   : > { %v1960_v13 = vmax.f32 %v1753_v9, 0.0 }
 0x276   : > { %v2082_v14 = vpack.c.bf16 %v1959_v11, %v1957_v10 }
 0x277   : > { %v1756_v15 = vpop.f32.mrb[76].mxu1  ;;  %v2083_v16 = vpack.c.bf16 %v1960_v13, %v1958_v12 }
 0x278   : > { %v1757_v17 = vadd.f32 %v1756_v15, %v12449_v0  ;;  %v1758_v38 = vpop.f32.mrb[77].mxu1 }
 0x279   : > { %v1759_v39 = vadd.f32 %v1758_v38, %v12453_v3  ;;  %v1760_v20 = vpop.f32.mrb[78].mxu1  ;;  %2495 = vmatprep.mubr.bf16.mxu0 %v2083_v16 }
 0x27a   : > { %v1761_v21 = vadd.f32 %v1760_v20, %v12449_v0  ;;  %v1762_v22 = vpop.f32.mrb[79].mxu1  ;;  %2496 = vmatmul.mubr.bf16.gmra.mrb[200].mxu0 %v2082_v14  ;;  %v1961_v24 = vmax.f32 %v1757_v17, 0.0  ;;  %v11249_v20 = vld [vmem:[%s16203_s3 + $0x370] ss:$8 sps:$4 sm:$0xff]  }
 0x27b   : > { %v1763_v23 = vadd.f32 %v1762_v22, %v12453_v3  ;;  %v1962_v26 = vmax.f32 %v1759_v39, 0.0 }
 0x27c   : > { %v1963_v25 = vmax.f32 %v1761_v21, 0.0  ;;  %v11251_v21 = vld [vmem:[%s16203_s3 + $0x374] ss:$8 sps:$4 sm:$0xff]  }
 0x27d   : > { %v1964_v27 = vmax.f32 %v1763_v23, 0.0  ;;  %3799 = vmatprep.subr.bf16.mxu0 %v11251_v21  ;;  %v10193_v21 = vld [vmem:[%s16204_s4 + $0x4] sm:$0x3] }
 0x27e   : > { %v2084_v28 = vpack.c.bf16 %v1963_v25, %v1961_v24  ;;  %3800 = vmatpush1.bf16.msra.mxu0 %v11249_v20 }
 0x27f   : > { %v1766_v29 = vpop.f32.mrb[80].mxu1  ;;  %v2085_v32 = vpack.c.bf16 %v1964_v27, %v1962_v26 }
 0x280   : > { %v1767_v34 = vadd.f32 %v1766_v29, %v12449_v0  ;;  %v1768_v36 = vpop.f32.mrb[81].mxu1 }
 0x281   : > { %v1769_v37 = vadd.f32 %v1768_v36, %v12453_v3  ;;  %v1770_v40 = vpop.f32.mrb[82].mxu1  ;;  %2505 = vmatprep.mubr.bf16.mxu0 %v2085_v32 }
 0x282   : > { %v1771_v41 = vadd.f32 %v1770_v40, %v12449_v0  ;;  %v1772_v42 = vpop.f32.mrb[83].mxu1  ;;  %2506 = vmatmul.mubr.bf16.gmra.mrb[204].mxu0 %v2084_v28  ;;  %v1965_v44 = vmax.f32 %v1767_v34, 0.0 }
 0x283   : > { %v1773_v43 = vadd.f32 %v1772_v42, %v12453_v3  ;;  %v1966_v46 = vmax.f32 %v1769_v37, 0.0 }
 0x284   : > { %v1967_v45 = vmax.f32 %v1771_v41, 0.0 }
 0x285   : > { %v1968_v47 = vmax.f32 %v1773_v43, 0.0 }
 0x286   : > { %v2086_v48 = vpack.c.bf16 %v1967_v45, %v1965_v44 }
 0x287   : > { %v1776_v49 = vpop.f32.mrb[84].mxu1  ;;  %v2087_v50 = vpack.c.bf16 %v1968_v47, %v1966_v46 }
 0x288   : > { %v1777_v51 = vadd.f32 %v1776_v49, %v12449_v0  ;;  %v1778_v52 = vpop.f32.mrb[85].mxu1 }
 0x289   : > { %v1779_v55 = vadd.f32 %v1778_v52, %v12453_v3  ;;  %v1780_v56 = vpop.f32.mrb[86].mxu1  ;;  %2515 = vmatprep.mubr.bf16.mxu0 %v2087_v50 }
 0x28a   : > { %v1781_v57 = vadd.f32 %v1780_v56, %v12449_v0  ;;  %v1782_v58 = vpop.f32.mrb[87].mxu1  ;;  %2516 = vmatmul.mubr.bf16.gmra.mrb[208].mxu0 %v2086_v48  ;;  %v1969_v60 = vmax.f32 %v1777_v51, 0.0  ;;  %v11252_v56 = vld [vmem:[%s16203_s3 + $0x380] ss:$8 sps:$4 sm:$0xff]  }
 0x28b   : > { %v1783_v59 = vadd.f32 %v1782_v58, %v12453_v3  ;;  %v1970_v62 = vmax.f32 %v1779_v55, 0.0 }
 0x28c   : > { %v1971_v61 = vmax.f32 %v1781_v57, 0.0  ;;  %v11254_v57 = vld [vmem:[%s16203_s3 + $0x384] ss:$8 sps:$4 sm:$0xff]  }
 0x28d   : > { %v1972_v63 = vmax.f32 %v1783_v59, 0.0  ;;  %3801 = vmatprep.subr.bf16.mxu0 %v11254_v57 }
 0x28e   : > { %v2088_v1 = vpack.c.bf16 %v1971_v61, %v1969_v60  ;;  %3802 = vmatpush1.bf16.msra.mxu0 %v11252_v56 }
 0x28f   : > { %v1786_v4 = vpop.f32.mrb[88].mxu1  ;;  %v2089_v5 = vpack.c.bf16 %v1972_v63, %v1970_v62 }
 0x290   : > { %v1787_v6 = vadd.f32 %v1786_v4, %v12449_v0  ;;  %v1788_v7 = vpop.f32.mrb[89].mxu1 }
 0x291   : > { %v1789_v8 = vadd.f32 %v1788_v7, %v12453_v3  ;;  %v1790_v9 = vpop.f32.mrb[90].mxu1  ;;  %2525 = vmatprep.mubr.bf16.mxu0 %v2089_v5 }
 0x292   : > { %v1791_v10 = vadd.f32 %v1790_v9, %v12449_v0  ;;  %v1792_v11 = vpop.f32.mrb[91].mxu1  ;;  %2526 = vmatmul.mubr.bf16.gmra.mrb[212].mxu0 %v2088_v1  ;;  %v1973_v13 = vmax.f32 %v1787_v6, 0.0 }
 0x293   : > { %v1793_v12 = vadd.f32 %v1792_v11, %v12453_v3  ;;  %v1974_v15 = vmax.f32 %v1789_v8, 0.0 }
 0x294   : > { %v1975_v14 = vmax.f32 %v1791_v10, 0.0 }
 0x295   : > { %v1976_v16 = vmax.f32 %v1793_v12, 0.0 }
 0x296   : > { %v2090_v17 = vpack.c.bf16 %v1975_v14, %v1973_v13 }
 0x297   : > { %v1796_v38 = vpop.f32.mrb[92].mxu1  ;;  %v2091_v18 = vpack.c.bf16 %v1976_v16, %v1974_v15 }
 0x298   : > { %v1797_v19 = vadd.f32 %v1796_v38, %v12449_v0  ;;  %v1798_v39 = vpop.f32.mrb[93].mxu1 }
 0x299   : > { %v1799_v22 = vadd.f32 %v1798_v39, %v12453_v3  ;;  %v1800_v23 = vpop.f32.mrb[94].mxu1  ;;  %2535 = vmatprep.mubr.bf16.mxu0 %v2091_v18 }
 0x29a   : > { %v1801_v24 = vadd.f32 %v1800_v23, %v12449_v0  ;;  %v1802_v25 = vpop.f32.mrb[95].mxu1  ;;  %2536 = vmatmul.mubr.bf16.gmra.mrb[216].mxu0 %v2090_v17  ;;  %v1977_v27 = vmax.f32 %v1797_v19, 0.0 }
 0x29b   : > { %v1803_v26 = vadd.f32 %v1802_v25, %v12453_v3  ;;  %v1978_v29 = vmax.f32 %v1799_v22, 0.0  ;;  %v11257_v25 = vld [vmem:[%s16203_s3 + $0x394] ss:$8 sps:$4 sm:$0xff]  }
 0x29c   : > { %v1979_v28 = vmax.f32 %v1801_v24, 0.0  ;;  %v11255_v24 = vld [vmem:[%s16203_s3 + $0x390] ss:$8 sps:$4 sm:$0xff]   ;;  %3803 = vmatprep.subr.bf16.mxu0 %v11257_v25 }
 0x29d   : > { %v1980_v32 = vmax.f32 %v1803_v26, 0.0  ;;  %3804 = vmatpush1.bf16.msra.mxu0 %v11255_v24  ;;  %v11260_v24 = vld [vmem:[%s16203_s3 + $0x3a4] ss:$8 sps:$4 sm:$0xff]  }
 0x29e   : > { %v2092_v34 = vpack.c.bf16 %v1979_v28, %v1977_v27  ;;  %3805 = vmatprep.subr.bf16.mxu0 %v11260_v24 }
 0x29f   : > { %v1806_v36 = vpop.f32.mrb[96].mxu1  ;;  %v2093_v37 = vpack.c.bf16 %v1980_v32, %v1978_v29  ;;  %v12682_v32 = vrot.slane %v10193_v21, %v12208_v33 }
 0x2a0   : > { %v1807_v40 = vadd.f32 %v1806_v36, %v12449_v0  ;;  %v1808_v41 = vpop.f32.mrb[97].mxu1  ;;  %v12686_v36 = vrot.slane %v10193_v21, %v12214_v35 }
 0x2a1   : > { %v1809_v42 = vadd.f32 %v1808_v41, %v12453_v3  ;;  %v1810_v43 = vpop.f32.mrb[98].mxu1  ;;  %2545 = vmatprep.mubr.bf16.mxu0 %v2093_v37 }
 0x2a2   : > { %v1811_v44 = vadd.f32 %v1810_v43, %v12449_v0  ;;  %v1812_v45 = vpop.f32.mrb[99].mxu1  ;;  %2546 = vmatmul.mubr.bf16.gmra.mrb[220].mxu0 %v2092_v34  ;;  %v1981_v47 = vmax.f32 %v1807_v40, 0.0 }
 0x2a3   : > { %v1813_v46 = vadd.f32 %v1812_v45, %v12453_v3  ;;  %v1982_v49 = vmax.f32 %v1809_v42, 0.0 }
 0x2a4   : > { %v1983_v48 = vmax.f32 %v1811_v44, 0.0 }
 0x2a5   : > { %v1984_v50 = vmax.f32 %v1813_v46, 0.0 }
 0x2a6   : > { %v2094_v51 = vpack.c.bf16 %v1983_v48, %v1981_v47 }
 0x2a7   : > { %v1816_v52 = vpop.f32.mrb[100].mxu1  ;;  %v2095_v53 = vpack.c.bf16 %v1984_v50, %v1982_v49 }
 0x2a8   : > { %v1817_v54 = vadd.f32 %v1816_v52, %v12449_v0  ;;  %v1818_v55 = vpop.f32.mrb[101].mxu1 }
 0x2a9   : > { %v1819_v58 = vadd.f32 %v1818_v55, %v12453_v3  ;;  %v1820_v59 = vpop.f32.mrb[102].mxu1  ;;  %2555 = vmatprep.mubr.bf16.mxu0 %v2095_v53 }
 0x2aa   : > { %v1821_v60 = vadd.f32 %v1820_v59, %v12449_v0  ;;  %v1822_v61 = vpop.f32.mrb[103].mxu1  ;;  %2556 = vmatmul.mubr.bf16.gmra.mrb[224].mxu0 %v2094_v51  ;;  %v1985_v63 = vmax.f32 %v1817_v54, 0.0 }
 0x2ab   : > { %v1823_v62 = vadd.f32 %v1822_v61, %v12453_v3  ;;  %v1986_v4 = vmax.f32 %v1819_v58, 0.0 }
 0x2ac   : > { %v1987_v1 = vmax.f32 %v1821_v60, 0.0 }
 0x2ad   : > { %v1988_v5 = vmax.f32 %v1823_v62, 0.0 }
 0x2ae   : > { %v2096_v6 = vpack.c.bf16 %v1987_v1, %v1985_v63 }
 0x2af   : > { %v1826_v7 = vpop.f32.mrb[104].mxu1  ;;  %v2097_v8 = vpack.c.bf16 %v1988_v5, %v1986_v4 }
 0x2b0   : > { %v1827_v9 = vadd.f32 %v1826_v7, %v12449_v0  ;;  %v1828_v10 = vpop.f32.mrb[105].mxu1 }
 0x2b1   : > { %v1829_v11 = vadd.f32 %v1828_v10, %v12453_v3  ;;  %v1830_v12 = vpop.f32.mrb[106].mxu1  ;;  %2565 = vmatprep.mubr.bf16.mxu0 %v2097_v8 }
 0x2b2   : > { %v1831_v13 = vadd.f32 %v1830_v12, %v12449_v0  ;;  %v1832_v14 = vpop.f32.mrb[107].mxu1  ;;  %2566 = vmatmul.mubr.bf16.gmra.mrb[228].mxu0 %v2096_v6  ;;  %v1989_v16 = vmax.f32 %v1827_v9, 0.0 }
 0x2b3   : > { %v1833_v15 = vadd.f32 %v1832_v14, %v12453_v3  ;;  %v1990_v38 = vmax.f32 %v1829_v11, 0.0 }
 0x2b4   : > { %v1991_v17 = vmax.f32 %v1831_v13, 0.0 }
 0x2b5   : > { %v1992_v18 = vmax.f32 %v1833_v15, 0.0 }
 0x2b6   : > { %v2098_v19 = vpack.c.bf16 %v1991_v17, %v1989_v16 }
 0x2b7   : > { %v1836_v39 = vpop.f32.mrb[108].mxu1  ;;  %v2099_v20 = vpack.c.bf16 %v1992_v18, %v1990_v38 }
 0x2b8   : > { %v1837_v22 = vadd.f32 %v1836_v39, %v12449_v0  ;;  %v1838_v23 = vpop.f32.mrb[109].mxu1 }
 0x2b9   : > { %v1839_v26 = vadd.f32 %v1838_v23, %v12453_v3  ;;  %v1840_v27 = vpop.f32.mrb[110].mxu1  ;;  %2575 = vmatprep.mubr.bf16.mxu0 %v2099_v20  ;;  %v11258_v20 = vld [vmem:[%s16203_s3 + $0x3a0] ss:$8 sps:$4 sm:$0xff]  }
 0x2ba   : > { %v1841_v28 = vadd.f32 %v1840_v27, %v12449_v0  ;;  %v1842_v29 = vpop.f32.mrb[111].mxu1  ;;  %2576 = vmatmul.mubr.bf16.gmra.mrb[232].mxu0 %v2098_v19  ;;  %v1993_v37 = vmax.f32 %v1837_v22, 0.0 }
 0x2bb   : > { %v1843_v34 = vadd.f32 %v1842_v29, %v12453_v3  ;;  %v1994_v42 = vmax.f32 %v1839_v26, 0.0  ;;  %3806 = vmatpush1.bf16.msra.mxu0 %v11258_v20 }
 0x2bc   : > { %v1995_v40 = vmax.f32 %v1841_v28, 0.0 }
 0x2bd   : > { %v2317_v41 = vpop.f32.mrb[128].mxu0  ;;  %v1996_v43 = vmax.f32 %v1843_v34, 0.0 }
 0x2be   : > { %v2318_v44 = vadd.f32 %v2317_v41, %v12682_v32  ;;  %v2319_v45 = vpop.f32.mrb[129].mxu0  ;;  %v2100_v46 = vpack.c.bf16 %v1995_v40, %v1993_v37 }
 0x2bf   : > { %v2320_v47 = vadd.f32 %v2319_v45, %v12686_v36  ;;  %v1846_v48 = vpop.f32.mrb[112].mxu1  ;;  %v2321_v49 = vpop.f32.mrb[130].mxu0  ;;  %v2101_v50 = vpack.c.bf16 %v1996_v43, %v1994_v42 }
 0x2c0   : > { %v1847_v51 = vadd.f32 %v1846_v48, %v12449_v0  ;;  %v2322_v52 = vadd.f32 %v2321_v49, %v12682_v32  ;;  %v1848_v53 = vpop.f32.mrb[113].mxu1  ;;  %v2323_v54 = vpop.f32.mrb[131].mxu0  ;;  %v2636_v58 = vmax.f32 %v2318_v44, 0.0 }
 0x2c1   : > { %v1849_v55 = vadd.f32 %v1848_v53, %v12453_v3  ;;  %v2324_v56 = vadd.f32 %v2323_v54, %v12686_v36  ;;  %v1850_v57 = vpop.f32.mrb[114].mxu1  ;;  %2585 = vmatprep.mubr.bf16.mxu0 %v2101_v50  ;;  %v2637_v62 = vmax.f32 %v2320_v47, 0.0 }
 0x2c2   : > { %v2638_v59 = vmax.f32 %v2322_v52, 0.0  ;;  %v1851_v60 = vadd.f32 %v1850_v57, %v12449_v0  ;;  %v1852_v61 = vpop.f32.mrb[115].mxu1  ;;  %2586 = vmatmul.mubr.bf16.gmra.mrb[236].mxu0 %v2100_v46  ;;  %v1997_v5 = vmax.f32 %v1847_v51, 0.0 }
 0x2c3   : > { %v2639_v63 = vmax.f32 %v2324_v56, 0.0  ;;  %v1853_v1 = vadd.f32 %v1852_v61, %v12453_v3  ;;  %v1998_v9 = vmax.f32 %v1849_v55, 0.0 }
 0x2c4   : > { %v2797_v4 = vpack.c.bf16 %v2638_v59, %v2636_v58  ;;  %v1999_v6 = vmax.f32 %v1851_v60, 0.0 }
 0x2c5   : > { %v2327_v7 = vpop.f32.mrb[132].mxu0  ;;  %v2798_v8 = vpack.c.bf16 %v2639_v63, %v2637_v62  ;;  %v2000_v10 = vmax.f32 %v1853_v1, 0.0 }
 0x2c6   : > { %v2328_v11 = vadd.f32 %v2327_v7, %v12682_v32  ;;  %v2329_v12 = vpop.f32.mrb[133].mxu0  ;;  %v2102_v13 = vpack.c.bf16 %v1999_v6, %v1997_v5 }
 0x2c7   : > { %v2330_v14 = vadd.f32 %v2329_v12, %v12686_v36  ;;  %v1856_v15 = vpop.f32.mrb[116].mxu1  ;;  %v2331_v16 = vpop.f32.mrb[134].mxu0  ;;  %3066 = vmatprep.mubr.bf16.mxu1 %v2798_v8  ;;  %v2103_v17 = vpack.c.bf16 %v2000_v10, %v1998_v9 }
 0x2c8   : > { %v1857_v38 = vadd.f32 %v1856_v15, %v12449_v0  ;;  %v2332_v18 = vadd.f32 %v2331_v16, %v12682_v32  ;;  %v1858_v19 = vpop.f32.mrb[117].mxu1  ;;  %v2333_v39 = vpop.f32.mrb[135].mxu0  ;;  %3067 = vmatmul.mubr.bf16.vlgmr.msra.gmra.mrb[128].mxu1 %v2797_v4  ;;  %v2640_v25 = vmax.f32 %v2328_v11, 0.0 }
 0x2c9   : > { %v1859_v21 = vadd.f32 %v1858_v19, %v12453_v3  ;;  %v2334_v22 = vadd.f32 %v2333_v39, %v12686_v36  ;;  %v1860_v23 = vpop.f32.mrb[118].mxu1  ;;  %2595 = vmatprep.mubr.bf16.mxu0 %v2103_v17  ;;  %v2641_v29 = vmax.f32 %v2330_v14, 0.0 }
 0x2ca   : > { %v2642_v26 = vmax.f32 %v2332_v18, 0.0  ;;  %v1861_v27 = vadd.f32 %v1860_v23, %v12449_v0  ;;  %v1862_v28 = vpop.f32.mrb[119].mxu1  ;;  %2596 = vmatmul.mubr.bf16.gmra.mrb[240].mxu0 %v2102_v13  ;;  %v2001_v41 = vmax.f32 %v1857_v38, 0.0  ;;  %v11261_v23 = vld [vmem:[%s16203_s3 + $0x3b0] ss:$8 sps:$4 sm:$0xff]  }
 0x2cb   : > { %v2643_v34 = vmax.f32 %v2334_v22, 0.0  ;;  %v1863_v37 = vadd.f32 %v1862_v28, %v12453_v3  ;;  %v2002_v45 = vmax.f32 %v1859_v21, 0.0 }
 0x2cc   : > { %v2799_v40 = vpack.c.bf16 %v2642_v26, %v2640_v25  ;;  %v2003_v42 = vmax.f32 %v1861_v27, 0.0  ;;  %v11263_v27 = vld [vmem:[%s16203_s3 + $0x3b4] ss:$8 sps:$4 sm:$0xff]  }
 0x2cd   : > { %v2337_v43 = vpop.f32.mrb[136].mxu0  ;;  %v2800_v44 = vpack.c.bf16 %v2643_v34, %v2641_v29  ;;  %v2004_v46 = vmax.f32 %v1863_v37, 0.0  ;;  %3807 = vmatprep.subr.bf16.mxu0 %v11263_v27 }
 0x2ce   : > { %v2338_v47 = vadd.f32 %v2337_v43, %v12682_v32  ;;  %v2339_v48 = vpop.f32.mrb[137].mxu0  ;;  %v2104_v49 = vpack.c.bf16 %v2003_v42, %v2001_v41  ;;  %3808 = vmatpush1.bf16.msra.mxu0 %v11261_v23 }
 0x2cf   : > { %v2340_v50 = vadd.f32 %v2339_v48, %v12686_v36  ;;  %v1866_v51 = vpop.f32.mrb[120].mxu1  ;;  %v2341_v52 = vpop.f32.mrb[138].mxu0  ;;  %3076 = vmatprep.mubr.bf16.mxu1 %v2800_v44  ;;  %v2105_v53 = vpack.c.bf16 %v2004_v46, %v2002_v45 }
 0x2d0   : > { %v1867_v54 = vadd.f32 %v1866_v51, %v12449_v0  ;;  %v2342_v55 = vadd.f32 %v2341_v52, %v12682_v32  ;;  %v1868_v56 = vpop.f32.mrb[121].mxu1  ;;  %v2343_v57 = vpop.f32.mrb[139].mxu0  ;;  %3077 = vmatmul.mubr.bf16.gmra.mrb[132].mxu1 %v2799_v40  ;;  %v2644_v61 = vmax.f32 %v2338_v47, 0.0 }
 0x2d1   : > { %v1869_v58 = vadd.f32 %v1868_v56, %v12453_v3  ;;  %v2344_v59 = vadd.f32 %v2343_v57, %v12686_v36  ;;  %v1870_v60 = vpop.f32.mrb[122].mxu1  ;;  %2605 = vmatprep.mubr.bf16.mxu0 %v2105_v53  ;;  %v2645_v4 = vmax.f32 %v2340_v50, 0.0 }
 0x2d2   : > { %v2646_v62 = vmax.f32 %v2342_v55, 0.0  ;;  %v1871_v63 = vadd.f32 %v1870_v60, %v12449_v0  ;;  %v1872_v1 = vpop.f32.mrb[123].mxu1  ;;  %2606 = vmatmul.mubr.bf16.gmra.mrb[244].mxu0 %v2104_v49  ;;  %v2005_v8 = vmax.f32 %v1867_v54, 0.0 }
 0x2d3   : > { %v2647_v5 = vmax.f32 %v2344_v59, 0.0  ;;  %v1873_v6 = vadd.f32 %v1872_v1, %v12453_v3  ;;  %v2006_v12 = vmax.f32 %v1869_v58, 0.0 }
 0x2d4   : > { %v2801_v7 = vpack.c.bf16 %v2646_v62, %v2644_v61  ;;  %v2007_v9 = vmax.f32 %v1871_v63, 0.0 }
 0x2d5   : > { %v2347_v10 = vpop.f32.mrb[140].mxu0  ;;  %v2802_v11 = vpack.c.bf16 %v2647_v5, %v2645_v4  ;;  %v2008_v13 = vmax.f32 %v1873_v6, 0.0 }
 0x2d6   : > { %v2348_v14 = vadd.f32 %v2347_v10, %v12682_v32  ;;  %v2349_v15 = vpop.f32.mrb[141].mxu0  ;;  %v2106_v16 = vpack.c.bf16 %v2007_v9, %v2005_v8  ;;  %v11264_v9 = vld [vmem:[%s16203_s3 + $0x3c0] ss:$8 sps:$4 sm:$0xff]   ;;  %v11266_v10 = vld [vmem:[%s16203_s3 + $0x3c4] ss:$8 sps:$4 sm:$0xff]  }
 0x2d7   : > { %v2350_v17 = vadd.f32 %v2349_v15, %v12686_v36  ;;  %v1876_v38 = vpop.f32.mrb[124].mxu1  ;;  %v2351_v18 = vpop.f32.mrb[142].mxu0  ;;  %3086 = vmatprep.mubr.bf16.mxu1 %v2802_v11  ;;  %v2107_v19 = vpack.c.bf16 %v2008_v13, %v2006_v12  ;;  %3809 = vmatprep.subr.bf16.mxu0 %v11266_v10 }
 0x2d8   : > { %v1877_v39 = vadd.f32 %v1876_v38, %v12449_v0  ;;  %v2352_v20 = vadd.f32 %v2351_v18, %v12682_v32  ;;  %v1878_v21 = vpop.f32.mrb[125].mxu1  ;;  %v2353_v22 = vpop.f32.mrb[143].mxu0  ;;  %3087 = vmatmul.mubr.bf16.gmra.mrb[136].mxu1 %v2801_v7  ;;  %v2648_v28 = vmax.f32 %v2348_v14, 0.0  ;;  %3810 = vmatpush1.bf16.msra.mxu0 %v11264_v9 }
 0x2d9   : > { %v1879_v24 = vadd.f32 %v1878_v21, %v12453_v3  ;;  %v2354_v25 = vadd.f32 %v2353_v22, %v12686_v36  ;;  %v1880_v26 = vpop.f32.mrb[126].mxu1  ;;  %2615 = vmatprep.mubr.bf16.mxu0 %v2107_v19  ;;  %v2649_v40 = vmax.f32 %v2350_v17, 0.0 }
 0x2da   : > { %v2650_v29 = vmax.f32 %v2352_v20, 0.0  ;;  %v1881_v34 = vadd.f32 %v1880_v26, %v12449_v0  ;;  %v1882_v37 = vpop.f32.mrb[127].mxu1  ;;  %2616 = vmatmul.mubr.bf16.gmra.mrb[248].mxu0 %v2106_v16  ;;  %v2009_v44 = vmax.f32 %v1877_v39, 0.0 }
 0x2db   : > { %v2651_v41 = vmax.f32 %v2354_v25, 0.0  ;;  %v1883_v42 = vadd.f32 %v1882_v37, %v12453_v3  ;;  %v2010_v48 = vmax.f32 %v1879_v24, 0.0 }
 0x2dc   : > { %v2803_v43 = vpack.c.bf16 %v2650_v29, %v2648_v28  ;;  %v2011_v45 = vmax.f32 %v1881_v34, 0.0 }
 0x2dd   : > { %v2357_v46 = vpop.f32.mrb[144].mxu0  ;;  %v2804_v47 = vpack.c.bf16 %v2651_v41, %v2649_v40  ;;  %v2012_v49 = vmax.f32 %v1883_v42, 0.0 }
 0x2de   : > { %v2358_v50 = vadd.f32 %v2357_v46, %v12682_v32  ;;  %v2359_v51 = vpop.f32.mrb[145].mxu0  ;;  %v2108_v52 = vpack.c.bf16 %v2011_v45, %v2009_v44  ;;  %v11267_v45 = vld [vmem:[%s16203_s3 + $0x3d0] ss:$8 sps:$4 sm:$0xff]   ;;  %v11269_v46 = vld [vmem:[%s16203_s3 + $0x3d4] ss:$8 sps:$4 sm:$0xff]  }
 0x2df   : > { %v2360_v0 = vadd.f32 %v2359_v51, %v12686_v36  ;;  %v2361_v53 = vpop.f32.mrb[146].mxu0  ;;  %3096 = vmatprep.mubr.bf16.mxu1 %v2804_v47  ;;  %v2109_v54 = vpack.c.bf16 %v2012_v49, %v2010_v48  ;;  %3811 = vmatprep.subr.bf16.mxu0 %v11269_v46 }
 0x2e0   : > { %v2362_v3 = vadd.f32 %v2361_v53, %v12682_v32  ;;  %v2363_v55 = vpop.f32.mrb[147].mxu0  ;;  %3097 = vmatmul.mubr.bf16.gmra.mrb[140].mxu1 %v2803_v43  ;;  %v2652_v57 = vmax.f32 %v2358_v50, 0.0  ;;  %3812 = vmatpush1.bf16.msra.mxu0 %v11267_v45 }
 0x2e1   : > { %v2364_v56 = vadd.f32 %v2363_v55, %v12686_v36  ;;  %2625 = vmatprep.mubr.bf16.mxu0 %v2109_v54  ;;  %v2653_v59 = vmax.f32 %v2360_v0, 0.0 }
 0x2e2   : > { %v2654_v58 = vmax.f32 %v2362_v3, 0.0  ;;  %2626 = vmatmul.mubr.bf16.gmra.mrb[252].mxu0 %v2108_v52 }
 0x2e3   : > { %v2655_v60 = vmax.f32 %v2364_v56, 0.0 }
 0x2e4   : > { %v2805_v61 = vpack.c.bf16 %v2654_v58, %v2652_v57 }
 0x2e5   : > { %v2367_v62 = vpop.f32.mrb[148].mxu0  ;;  %v2806_v63 = vpack.c.bf16 %v2655_v60, %v2653_v59 }
 0x2e6   : > { %v2368_v1 = vadd.f32 %v2367_v62, %v12682_v32  ;;  %v2369_v4 = vpop.f32.mrb[149].mxu0 }
 0x2e7   : > { %v2370_v5 = vadd.f32 %v2369_v4, %v12686_v36  ;;  %v2371_v6 = vpop.f32.mrb[150].mxu0  ;;  %3106 = vmatprep.mubr.bf16.mxu1 %v2806_v63  ;;  %v11272_v4 = vld [vmem:[%s16203_s3 + $0x404] ss:$8 sps:$4 sm:$0xff]  }
 0x2e8   : > { %v2372_v7 = vadd.f32 %v2371_v6, %v12682_v32  ;;  %v2373_v8 = vpop.f32.mrb[151].mxu0  ;;  %3107 = vmatmul.mubr.bf16.gmra.mrb[144].mxu1 %v2805_v61  ;;  %v2656_v12 = vmax.f32 %v2368_v1, 0.0  ;;  %v11270_v1 = vld [vmem:[%s16203_s3 + $0x400] ss:$8 sps:$4 sm:$0xff]   ;;  %4539 = vmatprep.subr.bf16.mxu1 %v11272_v4 }
 0x2e9   : > { %v2374_v11 = vadd.f32 %v2373_v8, %v12686_v36  ;;  %v2657_v14 = vmax.f32 %v2370_v5, 0.0  ;;  %4540 = vmatpush1.bf16.msra.mxu1 %v11270_v1 }
 0x2ea   : > { %v2658_v13 = vmax.f32 %v2372_v7, 0.0 }
 0x2eb   : > { %v2659_v15 = vmax.f32 %v2374_v11, 0.0 }
 0x2ec   : > { %v2807_v16 = vpack.c.bf16 %v2658_v13, %v2656_v12 }
 0x2ed   : > { %v2377_v17 = vpop.f32.mrb[152].mxu0  ;;  %v2808_v38 = vpack.c.bf16 %v2659_v15, %v2657_v14  ;;  %v11273_v14 = vld [vmem:[%s16203_s3 + $0x3e0] ss:$8 sps:$4 sm:$0xff]   ;;  %v11275_v15 = vld [vmem:[%s16203_s3 + $0x3e4] ss:$8 sps:$4 sm:$0xff]  }
 0x2ee   : > { %v2378_v18 = vadd.f32 %v2377_v17, %v12682_v32  ;;  %v2379_v19 = vpop.f32.mrb[153].mxu0  ;;  %3813 = vmatprep.subr.bf16.mxu0 %v11275_v15  ;;  %v11282_v15 = vld [vmem:[%s16203_s3 + $0x420] ss:$8 sps:$4 sm:$0xff]  }
 0x2ef   : > { %v2380_v39 = vadd.f32 %v2379_v19, %v12686_v36  ;;  %v2381_v20 = vpop.f32.mrb[154].mxu0  ;;  %3116 = vmatprep.mubr.bf16.mxu1 %v2808_v38  ;;  %3814 = vmatpush1.bf16.msra.mxu0 %v11273_v14 }
 0x2f0   : > { %v2382_v21 = vadd.f32 %v2381_v20, %v12682_v32  ;;  %v2383_v22 = vpop.f32.mrb[155].mxu0  ;;  %3117 = vmatmul.mubr.bf16.gmra.mrb[148].mxu1 %v2807_v16  ;;  %v2660_v24 = vmax.f32 %v2378_v18, 0.0 }
 0x2f1   : > { %v2384_v23 = vadd.f32 %v2383_v22, %v12686_v36  ;;  %v2661_v26 = vmax.f32 %v2380_v39, 0.0 }
 0x2f2   : > { %v2662_v25 = vmax.f32 %v2382_v21, 0.0 }
 0x2f3   : > { %v2663_v27 = vmax.f32 %v2384_v23, 0.0 }
 0x2f4   : > { %v2809_v28 = vpack.c.bf16 %v2662_v25, %v2660_v24 }
 0x2f5   : > { %v2387_v29 = vpop.f32.mrb[156].mxu0  ;;  %v2810_v34 = vpack.c.bf16 %v2663_v27, %v2661_v26 }
 0x2f6   : > { %v2388_v37 = vadd.f32 %v2387_v29, %v12682_v32  ;;  %v2389_v40 = vpop.f32.mrb[157].mxu0 }
 0x2f7   : > { %v2390_v41 = vadd.f32 %v2389_v40, %v12686_v36  ;;  %v2391_v42 = vpop.f32.mrb[158].mxu0  ;;  %3126 = vmatprep.mubr.bf16.mxu1 %v2810_v34 }
 0x2f8   : > { %v2392_v43 = vadd.f32 %v2391_v42, %v12682_v32  ;;  %v2393_v44 = vpop.f32.mrb[159].mxu0  ;;  %3127 = vmatmul.mubr.bf16.gmra.mrb[152].mxu1 %v2809_v28  ;;  %v2664_v48 = vmax.f32 %v2388_v37, 0.0  ;;  %v11278_v42 = vld [vmem:[%s16203_s3 + $0x414] ss:$8 sps:$4 sm:$0xff]  }
 0x2f9   : > { %v2394_v47 = vadd.f32 %v2393_v44, %v12686_v36  ;;  %v2665_v50 = vmax.f32 %v2390_v41, 0.0  ;;  %v11276_v41 = vld [vmem:[%s16203_s3 + $0x410] ss:$8 sps:$4 sm:$0xff]   ;;  %4541 = vmatprep.subr.bf16.mxu1 %v11278_v42 }
 0x2fa   : > { %v2666_v49 = vmax.f32 %v2392_v43, 0.0  ;;  %4542 = vmatpush1.bf16.msra.mxu1 %v11276_v41 }
 0x2fb   : > { %v2667_v51 = vmax.f32 %v2394_v47, 0.0 }
 0x2fc   : > { %v2811_v52 = vpack.c.bf16 %v2666_v49, %v2664_v48 }
 0x2fd   : > { %v2397_v0 = vpop.f32.mrb[160].mxu0  ;;  %v2812_v53 = vpack.c.bf16 %v2667_v51, %v2665_v50 }
 0x2fe   : > { %v2398_v54 = vadd.f32 %v2397_v0, %v12682_v32  ;;  %v2399_v3 = vpop.f32.mrb[161].mxu0  ;;  %v11281_v0 = vld [vmem:[%s16203_s3 + $0x3f4] ss:$8 sps:$4 sm:$0xff]  }
 0x2ff   : > { %v2400_v55 = vadd.f32 %v2399_v3, %v12686_v36  ;;  %v2401_v56 = vpop.f32.mrb[162].mxu0  ;;  %3136 = vmatprep.mubr.bf16.mxu1 %v2812_v53  ;;  %3815 = vmatprep.subr.bf16.mxu0 %v11281_v0 }
 0x300   : > { %v2402_v57 = vadd.f32 %v2401_v56, %v12682_v32  ;;  %v2403_v58 = vpop.f32.mrb[163].mxu0  ;;  %3137 = vmatmul.mubr.bf16.gmra.mrb[156].mxu1 %v2811_v52  ;;  %v2668_v60 = vmax.f32 %v2398_v54, 0.0  ;;  %v11279_v52 = vld [vmem:[%s16203_s3 + $0x3f0] ss:$8 sps:$4 sm:$0xff]  }
 0x301   : > { %v2404_v59 = vadd.f32 %v2403_v58, %v12686_v36  ;;  %v2669_v62 = vmax.f32 %v2400_v55, 0.0  ;;  %3816 = vmatpush1.bf16.msra.mxu0 %v11279_v52  ;;  %v11287_v52 = vld [vmem:[%s16203_s3 + $0x434] ss:$8 sps:$4 sm:$0xff]  }
 0x302   : > { %v2670_v61 = vmax.f32 %v2402_v57, 0.0 }
 0x303   : > { %v2671_v63 = vmax.f32 %v2404_v59, 0.0 }
 0x304   : > { %v2813_v5 = vpack.c.bf16 %v2670_v61, %v2668_v60 }
 0x305   : > { %v2407_v6 = vpop.f32.mrb[164].mxu0  ;;  %v2814_v7 = vpack.c.bf16 %v2671_v63, %v2669_v62 }
 0x306   : > { %v2408_v8 = vadd.f32 %v2407_v6, %v12682_v32  ;;  %v2409_v9 = vpop.f32.mrb[165].mxu0 }
 0x307   : > { %v2410_v10 = vadd.f32 %v2409_v9, %v12686_v36  ;;  %v2411_v11 = vpop.f32.mrb[166].mxu0  ;;  %3146 = vmatprep.mubr.bf16.mxu1 %v2814_v7 }
 0x308   : > { %v2412_v12 = vadd.f32 %v2411_v11, %v12682_v32  ;;  %v2413_v13 = vpop.f32.mrb[167].mxu0  ;;  %3147 = vmatmul.mubr.bf16.gmra.mrb[160].mxu1 %v2813_v5  ;;  %v2672_v17 = vmax.f32 %v2408_v8, 0.0 }
 0x309   : > { %v2414_v16 = vadd.f32 %v2413_v13, %v12686_v36  ;;  %v2673_v18 = vmax.f32 %v2410_v10, 0.0 }
 0x30a   : > { %v2674_v38 = vmax.f32 %v2412_v12, 0.0 }
 0x30b   : > { %v2675_v19 = vmax.f32 %v2414_v16, 0.0  ;;  %v11284_v16 = vld [vmem:[%s16203_s3 + $0x424] ss:$8 sps:$4 sm:$0xff]  }
 0x30c   : > { %v2815_v39 = vpack.c.bf16 %v2674_v38, %v2672_v17  ;;  %4543 = vmatprep.subr.bf16.mxu1 %v11284_v16 }
 0x30d   : > { %v2417_v20 = vpop.f32.mrb[168].mxu0  ;;  %v2816_v21 = vpack.c.bf16 %v2675_v19, %v2673_v18  ;;  %4544 = vmatpush1.bf16.msra.mxu1 %v11282_v15 }
 0x30e   : > { %v2418_v22 = vadd.f32 %v2417_v20, %v12682_v32  ;;  %v2419_v23 = vpop.f32.mrb[169].mxu0  ;;  %4545 = vmatprep.subr.bf16.mxu1 %v11287_v52 }
 0x30f   : > { %v2420_v24 = vadd.f32 %v2419_v23, %v12686_v36  ;;  %v2421_v25 = vpop.f32.mrb[170].mxu0  ;;  %3156 = vmatprep.mubr.bf16.mxu1 %v2816_v21 }
 0x310   : > { %v2422_v26 = vadd.f32 %v2421_v25, %v12682_v32  ;;  %v2423_v27 = vpop.f32.mrb[171].mxu0  ;;  %3157 = vmatmul.mubr.bf16.gmra.mrb[164].mxu1 %v2815_v39  ;;  %v2676_v29 = vmax.f32 %v2418_v22, 0.0 }
 0x311   : > { %v2424_v28 = vadd.f32 %v2423_v27, %v12686_v36  ;;  %v2677_v37 = vmax.f32 %v2420_v24, 0.0 }
 0x312   : > { %v2678_v34 = vmax.f32 %v2422_v26, 0.0 }
 0x313   : > { %v2679_v40 = vmax.f32 %v2424_v28, 0.0 }
 0x314   : > { %v2817_v43 = vpack.c.bf16 %v2678_v34, %v2676_v29 }
 0x315   : > { %v2427_v44 = vpop.f32.mrb[172].mxu0  ;;  %v2818_v45 = vpack.c.bf16 %v2679_v40, %v2677_v37 }
 0x316   : > { %v2428_v46 = vadd.f32 %v2427_v44, %v12682_v32  ;;  %v2429_v47 = vpop.f32.mrb[173].mxu0 }
 0x317   : > { %v2430_v48 = vadd.f32 %v2429_v47, %v12686_v36  ;;  %v2431_v49 = vpop.f32.mrb[174].mxu0  ;;  %3166 = vmatprep.mubr.bf16.mxu1 %v2818_v45 }
 0x318   : > { %v2432_v50 = vadd.f32 %v2431_v49, %v12682_v32  ;;  %v2433_v51 = vpop.f32.mrb[175].mxu0  ;;  %3167 = vmatmul.mubr.bf16.gmra.mrb[168].mxu1 %v2817_v43  ;;  %v2680_v54 = vmax.f32 %v2428_v46, 0.0 }
 0x319   : > { %v2434_v53 = vadd.f32 %v2433_v51, %v12686_v36  ;;  %v2681_v55 = vmax.f32 %v2430_v48, 0.0  ;;  %v11285_v51 = vld [vmem:[%s16203_s3 + $0x430] ss:$8 sps:$4 sm:$0xff]  }
 0x31a   : > { %v2682_v3 = vmax.f32 %v2432_v50, 0.0  ;;  %4546 = vmatpush1.bf16.msra.mxu1 %v11285_v51 }
 0x31b   : > { %v2683_v56 = vmax.f32 %v2434_v53, 0.0 }
 0x31c   : > { %v2819_v57 = vpack.c.bf16 %v2682_v3, %v2680_v54 }
 0x31d   : > { %v2437_v58 = vpop.f32.mrb[176].mxu0  ;;  %v2820_v59 = vpack.c.bf16 %v2683_v56, %v2681_v55 }
 0x31e   : > { %v2438_v60 = vadd.f32 %v2437_v58, %v12682_v32  ;;  %v2439_v61 = vpop.f32.mrb[177].mxu0 }
 0x31f   : > { %v2440_v62 = vadd.f32 %v2439_v61, %v12686_v36  ;;  %v2441_v63 = vpop.f32.mrb[178].mxu0  ;;  %3176 = vmatprep.mubr.bf16.mxu1 %v2820_v59 }
 0x320   : > { %v2442_v1 = vadd.f32 %v2441_v63, %v12682_v32  ;;  %v2443_v4 = vpop.f32.mrb[179].mxu0  ;;  %3177 = vmatmul.mubr.bf16.gmra.mrb[172].mxu1 %v2819_v57  ;;  %v2684_v6 = vmax.f32 %v2438_v60, 0.0 }
 0x321   : > { %v2444_v5 = vadd.f32 %v2443_v4, %v12686_v36  ;;  %v2685_v8 = vmax.f32 %v2440_v62, 0.0 }
 0x322   : > { %v2686_v7 = vmax.f32 %v2442_v1, 0.0 }
 0x323   : > { %v2687_v9 = vmax.f32 %v2444_v5, 0.0 }
 0x324   : > { %v2821_v10 = vpack.c.bf16 %v2686_v7, %v2684_v6 }
 0x325   : > { %v2447_v11 = vpop.f32.mrb[180].mxu0  ;;  %v2822_v12 = vpack.c.bf16 %v2687_v9, %v2685_v8 }
 0x326   : > { %v2448_v13 = vadd.f32 %v2447_v11, %v12682_v32  ;;  %v2449_v14 = vpop.f32.mrb[181].mxu0 }
 0x327   : > { %v2450_v17 = vadd.f32 %v2449_v14, %v12686_v36  ;;  %v2451_v38 = vpop.f32.mrb[182].mxu0  ;;  %3186 = vmatprep.mubr.bf16.mxu1 %v2822_v12 }
 0x328   : > { %v2452_v18 = vadd.f32 %v2451_v38, %v12682_v32  ;;  %v2453_v19 = vpop.f32.mrb[183].mxu0  ;;  %3187 = vmatmul.mubr.bf16.gmra.mrb[176].mxu1 %v2821_v10  ;;  %v2688_v20 = vmax.f32 %v2448_v13, 0.0  ;;  %v11288_v38 = vld [vmem:[%s16203_s3 + $0x440] ss:$8 sps:$4 sm:$0xff]  }
 0x329   : > { %v2454_v39 = vadd.f32 %v2453_v19, %v12686_v36  ;;  %v2689_v22 = vmax.f32 %v2450_v17, 0.0 }
 0x32a   : > { %v2690_v21 = vmax.f32 %v2452_v18, 0.0  ;;  %v11290_v18 = vld [vmem:[%s16203_s3 + $0x444] ss:$8 sps:$4 sm:$0xff]  }
 0x32b   : > { %v2691_v23 = vmax.f32 %v2454_v39, 0.0  ;;  %4547 = vmatprep.subr.bf16.mxu1 %v11290_v18 }
 0x32c   : > { %v2823_v24 = vpack.c.bf16 %v2690_v21, %v2688_v20  ;;  %4548 = vmatpush1.bf16.msra.mxu1 %v11288_v38 }
 0x32d   : > { %v2457_v25 = vpop.f32.mrb[184].mxu0  ;;  %v2824_v26 = vpack.c.bf16 %v2691_v23, %v2689_v22 }
 0x32e   : > { %v2458_v27 = vadd.f32 %v2457_v25, %v12682_v32  ;;  %v2459_v28 = vpop.f32.mrb[185].mxu0 }
 0x32f   : > { %v2460_v29 = vadd.f32 %v2459_v28, %v12686_v36  ;;  %v2461_v34 = vpop.f32.mrb[186].mxu0  ;;  %3196 = vmatprep.mubr.bf16.mxu1 %v2824_v26 }
 0x330   : > { %v2462_v37 = vadd.f32 %v2461_v34, %v12682_v32  ;;  %v2463_v40 = vpop.f32.mrb[187].mxu0  ;;  %3197 = vmatmul.mubr.bf16.gmra.mrb[180].mxu1 %v2823_v24  ;;  %v2692_v42 = vmax.f32 %v2458_v27, 0.0 }
 0x331   : > { %v2464_v41 = vadd.f32 %v2463_v40, %v12686_v36  ;;  %v2693_v44 = vmax.f32 %v2460_v29, 0.0 }
 0x332   : > { %v2694_v43 = vmax.f32 %v2462_v37, 0.0 }
 0x333   : > { %v2695_v45 = vmax.f32 %v2464_v41, 0.0 }
 0x334   : > { %v2825_v46 = vpack.c.bf16 %v2694_v43, %v2692_v42 }
 0x335   : > { %v2467_v47 = vpop.f32.mrb[188].mxu0  ;;  %v2826_v48 = vpack.c.bf16 %v2695_v45, %v2693_v44 }
 0x336   : > { %v2468_v49 = vadd.f32 %v2467_v47, %v12682_v32  ;;  %v2469_v50 = vpop.f32.mrb[189].mxu0 }
 0x337   : > { %v2470_v0 = vadd.f32 %v2469_v50, %v12686_v36  ;;  %v2471_v53 = vpop.f32.mrb[190].mxu0  ;;  %3206 = vmatprep.mubr.bf16.mxu1 %v2826_v48 }
 0x338   : > { %v2472_v54 = vadd.f32 %v2471_v53, %v12682_v32  ;;  %v2473_v3 = vpop.f32.mrb[191].mxu0  ;;  %3207 = vmatmul.mubr.bf16.gmra.mrb[184].mxu1 %v2825_v46  ;;  %v2696_v56 = vmax.f32 %v2468_v49, 0.0  ;;  %v11291_v53 = vld [vmem:[%s16203_s3 + $0x450] ss:$8 sps:$4 sm:$0xff]  }
 0x339   : > { %v2474_v55 = vadd.f32 %v2473_v3, %v12686_v36  ;;  %v2697_v58 = vmax.f32 %v2470_v0, 0.0 }
 0x33a   : > { %v2698_v57 = vmax.f32 %v2472_v54, 0.0  ;;  %v11293_v54 = vld [vmem:[%s16203_s3 + $0x454] ss:$8 sps:$4 sm:$0xff]  }
 0x33b   : > { %v2699_v59 = vmax.f32 %v2474_v55, 0.0  ;;  %4549 = vmatprep.subr.bf16.mxu1 %v11293_v54 }
 0x33c   : > { %v2827_v60 = vpack.c.bf16 %v2698_v57, %v2696_v56  ;;  %4550 = vmatpush1.bf16.msra.mxu1 %v11291_v53 }
 0x33d   : > { %v2477_v61 = vpop.f32.mrb[192].mxu0  ;;  %v2828_v62 = vpack.c.bf16 %v2699_v59, %v2697_v58 }
 0x33e   : > { %v2478_v63 = vadd.f32 %v2477_v61, %v12682_v32  ;;  %v2479_v1 = vpop.f32.mrb[193].mxu0 }
 0x33f   : > { %v2480_v4 = vadd.f32 %v2479_v1, %v12686_v36  ;;  %v2481_v5 = vpop.f32.mrb[194].mxu0  ;;  %3216 = vmatprep.mubr.bf16.mxu1 %v2828_v62 }
 0x340   : > { %v2482_v6 = vadd.f32 %v2481_v5, %v12682_v32  ;;  %v2483_v7 = vpop.f32.mrb[195].mxu0  ;;  %3217 = vmatmul.mubr.bf16.gmra.mrb[188].mxu1 %v2827_v60  ;;  %v2700_v9 = vmax.f32 %v2478_v63, 0.0 }
 0x341   : > { %v2484_v8 = vadd.f32 %v2483_v7, %v12686_v36  ;;  %v2701_v11 = vmax.f32 %v2480_v4, 0.0 }
 0x342   : > { %v2702_v10 = vmax.f32 %v2482_v6, 0.0 }
 0x343   : > { %v2703_v12 = vmax.f32 %v2484_v8, 0.0 }
 0x344   : > { %v2829_v13 = vpack.c.bf16 %v2702_v10, %v2700_v9 }
 0x345   : > { %v2487_v14 = vpop.f32.mrb[196].mxu0  ;;  %v2830_v15 = vpack.c.bf16 %v2703_v12, %v2701_v11 }
 0x346   : > { %v2488_v16 = vadd.f32 %v2487_v14, %v12682_v32  ;;  %v2489_v17 = vpop.f32.mrb[197].mxu0 }
 0x347   : > { %v2490_v19 = vadd.f32 %v2489_v17, %v12686_v36  ;;  %v2491_v39 = vpop.f32.mrb[198].mxu0  ;;  %3226 = vmatprep.mubr.bf16.mxu1 %v2830_v15 }
 0x348   : > { %v2492_v20 = vadd.f32 %v2491_v39, %v12682_v32  ;;  %v2493_v21 = vpop.f32.mrb[199].mxu0  ;;  %3227 = vmatmul.mubr.bf16.gmra.mrb[192].mxu1 %v2829_v13  ;;  %v2704_v23 = vmax.f32 %v2488_v16, 0.0  ;;  %v11294_v39 = vld [vmem:[%s16203_s3 + $0x460] ss:$8 sps:$4 sm:$0xff]  }
 0x349   : > { %v2494_v22 = vadd.f32 %v2493_v21, %v12686_v36  ;;  %v2705_v25 = vmax.f32 %v2490_v19, 0.0 }
 0x34a   : > { %v2706_v24 = vmax.f32 %v2492_v20, 0.0  ;;  %v11296_v20 = vld [vmem:[%s16203_s3 + $0x464] ss:$8 sps:$4 sm:$0xff]  }
 0x34b   : > { %v2707_v26 = vmax.f32 %v2494_v22, 0.0  ;;  %4551 = vmatprep.subr.bf16.mxu1 %v11296_v20 }
 0x34c   : > { %v2831_v27 = vpack.c.bf16 %v2706_v24, %v2704_v23  ;;  %4552 = vmatpush1.bf16.msra.mxu1 %v11294_v39 }
 0x34d   : > { %v2497_v28 = vpop.f32.mrb[200].mxu0  ;;  %v2832_v29 = vpack.c.bf16 %v2707_v26, %v2705_v25 }
 0x34e   : > { %v2498_v34 = vadd.f32 %v2497_v28, %v12682_v32  ;;  %v2499_v37 = vpop.f32.mrb[201].mxu0 }
 0x34f   : > { %v2500_v40 = vadd.f32 %v2499_v37, %v12686_v36  ;;  %v2501_v41 = vpop.f32.mrb[202].mxu0  ;;  %3236 = vmatprep.mubr.bf16.mxu1 %v2832_v29 }
 0x350   : > { %v2502_v42 = vadd.f32 %v2501_v41, %v12682_v32  ;;  %v2503_v43 = vpop.f32.mrb[203].mxu0  ;;  %3237 = vmatmul.mubr.bf16.gmra.mrb[196].mxu1 %v2831_v27  ;;  %v2708_v45 = vmax.f32 %v2498_v34, 0.0 }
 0x351   : > { %v2504_v44 = vadd.f32 %v2503_v43, %v12686_v36  ;;  %v2709_v47 = vmax.f32 %v2500_v40, 0.0 }
 0x352   : > { %v2710_v46 = vmax.f32 %v2502_v42, 0.0 }
 0x353   : > { %v2711_v48 = vmax.f32 %v2504_v44, 0.0 }
 0x354   : > { %v2833_v49 = vpack.c.bf16 %v2710_v46, %v2708_v45 }
 0x355   : > { %v2507_v50 = vpop.f32.mrb[204].mxu0  ;;  %v2834_v51 = vpack.c.bf16 %v2711_v48, %v2709_v47 }
 0x356   : > { %v2508_v52 = vadd.f32 %v2507_v50, %v12682_v32  ;;  %v2509_v0 = vpop.f32.mrb[205].mxu0 }
 0x357   : > { %v2510_v3 = vadd.f32 %v2509_v0, %v12686_v36  ;;  %v2511_v55 = vpop.f32.mrb[206].mxu0  ;;  %3246 = vmatprep.mubr.bf16.mxu1 %v2834_v51 }
 0x358   : > { %v2512_v56 = vadd.f32 %v2511_v55, %v12682_v32  ;;  %v2513_v57 = vpop.f32.mrb[207].mxu0  ;;  %3247 = vmatmul.mubr.bf16.gmra.mrb[200].mxu1 %v2833_v49  ;;  %v2712_v59 = vmax.f32 %v2508_v52, 0.0  ;;  %v11297_v55 = vld [vmem:[%s16203_s3 + $0x470] ss:$8 sps:$4 sm:$0xff]  }
 0x359   : > { %v2514_v58 = vadd.f32 %v2513_v57, %v12686_v36  ;;  %v2713_v61 = vmax.f32 %v2510_v3, 0.0 }
 0x35a   : > { %v2714_v60 = vmax.f32 %v2512_v56, 0.0  ;;  %v11299_v56 = vld [vmem:[%s16203_s3 + $0x474] ss:$8 sps:$4 sm:$0xff]  }
 0x35b   : > { %v2715_v62 = vmax.f32 %v2514_v58, 0.0  ;;  %4553 = vmatprep.subr.bf16.mxu1 %v11299_v56  ;;  %v10258_v56 = vld [vmem:[%s16204_s4 + $0x6] sm:$0x3] }
 0x35c   : > { %v2835_v63 = vpack.c.bf16 %v2714_v60, %v2712_v59  ;;  %4554 = vmatpush1.bf16.msra.mxu1 %v11297_v55 }
 0x35d   : > { %v2517_v1 = vpop.f32.mrb[208].mxu0  ;;  %v2836_v4 = vpack.c.bf16 %v2715_v62, %v2713_v61 }
 0x35e   : > { %v2518_v5 = vadd.f32 %v2517_v1, %v12682_v32  ;;  %v2519_v6 = vpop.f32.mrb[209].mxu0 }
 0x35f   : > { %v2520_v7 = vadd.f32 %v2519_v6, %v12686_v36  ;;  %v2521_v8 = vpop.f32.mrb[210].mxu0  ;;  %3256 = vmatprep.mubr.bf16.mxu1 %v2836_v4 }
 0x360   : > { %v2522_v9 = vadd.f32 %v2521_v8, %v12682_v32  ;;  %v2523_v10 = vpop.f32.mrb[211].mxu0  ;;  %3257 = vmatmul.mubr.bf16.gmra.mrb[204].mxu1 %v2835_v63  ;;  %v2716_v12 = vmax.f32 %v2518_v5, 0.0 }
 0x361   : > { %v2524_v11 = vadd.f32 %v2523_v10, %v12686_v36  ;;  %v2717_v14 = vmax.f32 %v2520_v7, 0.0 }
 0x362   : > { %v2718_v13 = vmax.f32 %v2522_v9, 0.0 }
 0x363   : > { %v2719_v15 = vmax.f32 %v2524_v11, 0.0 }
 0x364   : > { %v2837_v16 = vpack.c.bf16 %v2718_v13, %v2716_v12 }
 0x365   : > { %v2527_v17 = vpop.f32.mrb[212].mxu0  ;;  %v2838_v38 = vpack.c.bf16 %v2719_v15, %v2717_v14 }
 0x366   : > { %v2528_v18 = vadd.f32 %v2527_v17, %v12682_v32  ;;  %v2529_v19 = vpop.f32.mrb[213].mxu0 }
 0x367   : > { %v2530_v21 = vadd.f32 %v2529_v19, %v12686_v36  ;;  %v2531_v22 = vpop.f32.mrb[214].mxu0  ;;  %3266 = vmatprep.mubr.bf16.mxu1 %v2838_v38 }
 0x368   : > { %v2532_v23 = vadd.f32 %v2531_v22, %v12682_v32  ;;  %v2533_v24 = vpop.f32.mrb[215].mxu0  ;;  %3267 = vmatmul.mubr.bf16.gmra.mrb[208].mxu1 %v2837_v16  ;;  %v2720_v26 = vmax.f32 %v2528_v18, 0.0  ;;  %v11300_v22 = vld [vmem:[%s16203_s3 + $0x480] ss:$8 sps:$4 sm:$0xff]  }
 0x369   : > { %v2534_v25 = vadd.f32 %v2533_v24, %v12686_v36  ;;  %v2721_v28 = vmax.f32 %v2530_v21, 0.0 }
 0x36a   : > { %v2722_v27 = vmax.f32 %v2532_v23, 0.0  ;;  %v11302_v23 = vld [vmem:[%s16203_s3 + $0x484] ss:$8 sps:$4 sm:$0xff]  }
 0x36b   : > { %v2723_v29 = vmax.f32 %v2534_v25, 0.0  ;;  %4555 = vmatprep.subr.bf16.mxu1 %v11302_v23 }
 0x36c   : > { %v2839_v34 = vpack.c.bf16 %v2722_v27, %v2720_v26  ;;  %4556 = vmatpush1.bf16.msra.mxu1 %v11300_v22 }
 0x36d   : > { %v2537_v37 = vpop.f32.mrb[216].mxu0  ;;  %v2840_v40 = vpack.c.bf16 %v2723_v29, %v2721_v28 }
 0x36e   : > { %v2538_v41 = vadd.f32 %v2537_v37, %v12682_v32  ;;  %v2539_v42 = vpop.f32.mrb[217].mxu0 }
 0x36f   : > { %v2540_v43 = vadd.f32 %v2539_v42, %v12686_v36  ;;  %v2541_v44 = vpop.f32.mrb[218].mxu0  ;;  %3276 = vmatprep.mubr.bf16.mxu1 %v2840_v40 }
 0x370   : > { %v2542_v45 = vadd.f32 %v2541_v44, %v12682_v32  ;;  %v2543_v46 = vpop.f32.mrb[219].mxu0  ;;  %3277 = vmatmul.mubr.bf16.gmra.mrb[212].mxu1 %v2839_v34  ;;  %v2724_v48 = vmax.f32 %v2538_v41, 0.0 }
 0x371   : > { %v2544_v47 = vadd.f32 %v2543_v46, %v12686_v36  ;;  %v2725_v50 = vmax.f32 %v2540_v43, 0.0 }
 0x372   : > { %v2726_v49 = vmax.f32 %v2542_v45, 0.0 }
 0x373   : > { %v2727_v51 = vmax.f32 %v2544_v47, 0.0 }
 0x374   : > { %v2841_v52 = vpack.c.bf16 %v2726_v49, %v2724_v48 }
 0x375   : > { %v2547_v0 = vpop.f32.mrb[220].mxu0  ;;  %v2842_v53 = vpack.c.bf16 %v2727_v51, %v2725_v50 }
 0x376   : > { %v2548_v54 = vadd.f32 %v2547_v0, %v12682_v32  ;;  %v2549_v3 = vpop.f32.mrb[221].mxu0 }
 0x377   : > { %v2550_v57 = vadd.f32 %v2549_v3, %v12686_v36  ;;  %v2551_v58 = vpop.f32.mrb[222].mxu0  ;;  %3286 = vmatprep.mubr.bf16.mxu1 %v2842_v53 }
 0x378   : > { %v2552_v59 = vadd.f32 %v2551_v58, %v12682_v32  ;;  %v2553_v60 = vpop.f32.mrb[223].mxu0  ;;  %3287 = vmatmul.mubr.bf16.gmra.mrb[216].mxu1 %v2841_v52  ;;  %v2728_v62 = vmax.f32 %v2548_v54, 0.0 }
 0x379   : > { %v2554_v61 = vadd.f32 %v2553_v60, %v12686_v36  ;;  %v2729_v1 = vmax.f32 %v2550_v57, 0.0  ;;  %v11305_v60 = vld [vmem:[%s16203_s3 + $0x494] ss:$8 sps:$4 sm:$0xff]  }
 0x37a   : > { %v2730_v63 = vmax.f32 %v2552_v59, 0.0  ;;  %v11303_v59 = vld [vmem:[%s16203_s3 + $0x490] ss:$8 sps:$4 sm:$0xff]   ;;  %4557 = vmatprep.subr.bf16.mxu1 %v11305_v60 }
 0x37b   : > { %v2731_v4 = vmax.f32 %v2554_v61, 0.0  ;;  %4558 = vmatpush1.bf16.msra.mxu1 %v11303_v59  ;;  %v11308_v59 = vld [vmem:[%s16203_s3 + $0x4a4] ss:$8 sps:$4 sm:$0xff]  }
 0x37c   : > { %v2843_v5 = vpack.c.bf16 %v2730_v63, %v2728_v62  ;;  %4559 = vmatprep.subr.bf16.mxu1 %v11308_v59 }
 0x37d   : > { %v2557_v6 = vpop.f32.mrb[224].mxu0  ;;  %v2844_v7 = vpack.c.bf16 %v2731_v4, %v2729_v1  ;;  %v12915_v4 = vrot.slane %v10258_v56, %v12208_v33 }
 0x37e   : > { %v2558_v8 = vadd.f32 %v2557_v6, %v12682_v32  ;;  %v2559_v9 = vpop.f32.mrb[225].mxu0  ;;  %v12919_v6 = vrot.slane %v10258_v56, %v12214_v35 }
 0x37f   : > { %v2560_v10 = vadd.f32 %v2559_v9, %v12686_v36  ;;  %v2561_v11 = vpop.f32.mrb[226].mxu0  ;;  %3296 = vmatprep.mubr.bf16.mxu1 %v2844_v7 }
 0x380   : > { %v2562_v12 = vadd.f32 %v2561_v11, %v12682_v32  ;;  %v2563_v13 = vpop.f32.mrb[227].mxu0  ;;  %3297 = vmatmul.mubr.bf16.gmra.mrb[220].mxu1 %v2843_v5  ;;  %v2732_v15 = vmax.f32 %v2558_v8, 0.0 }
 0x381   : > { %v2564_v14 = vadd.f32 %v2563_v13, %v12686_v36  ;;  %v2733_v17 = vmax.f32 %v2560_v10, 0.0 }
 0x382   : > { %v2734_v16 = vmax.f32 %v2562_v12, 0.0 }
 0x383   : > { %v2735_v38 = vmax.f32 %v2564_v14, 0.0 }
 0x384   : > { %v2845_v18 = vpack.c.bf16 %v2734_v16, %v2732_v15 }
 0x385   : > { %v2567_v19 = vpop.f32.mrb[228].mxu0  ;;  %v2846_v39 = vpack.c.bf16 %v2735_v38, %v2733_v17 }
 0x386   : > { %v2568_v20 = vadd.f32 %v2567_v19, %v12682_v32  ;;  %v2569_v21 = vpop.f32.mrb[229].mxu0 }
 0x387   : > { %v2570_v24 = vadd.f32 %v2569_v21, %v12686_v36  ;;  %v2571_v25 = vpop.f32.mrb[230].mxu0  ;;  %3306 = vmatprep.mubr.bf16.mxu1 %v2846_v39 }
 0x388   : > { %v2572_v26 = vadd.f32 %v2571_v25, %v12682_v32  ;;  %v2573_v27 = vpop.f32.mrb[231].mxu0  ;;  %3307 = vmatmul.mubr.bf16.gmra.mrb[224].mxu1 %v2845_v18  ;;  %v2736_v29 = vmax.f32 %v2568_v20, 0.0 }
 0x389   : > { %v2574_v28 = vadd.f32 %v2573_v27, %v12686_v36  ;;  %v2737_v37 = vmax.f32 %v2570_v24, 0.0 }
 0x38a   : > { %v2738_v34 = vmax.f32 %v2572_v26, 0.0 }
 0x38b   : > { %v2739_v40 = vmax.f32 %v2574_v28, 0.0 }
 0x38c   : > { %v2847_v41 = vpack.c.bf16 %v2738_v34, %v2736_v29 }
 0x38d   : > { %v2577_v42 = vpop.f32.mrb[232].mxu0  ;;  %v2848_v43 = vpack.c.bf16 %v2739_v40, %v2737_v37 }
 0x38e   : > { %v2578_v44 = vadd.f32 %v2577_v42, %v12682_v32  ;;  %v2579_v45 = vpop.f32.mrb[233].mxu0 }
 0x38f   : > { %v2580_v46 = vadd.f32 %v2579_v45, %v12686_v36  ;;  %v2581_v47 = vpop.f32.mrb[234].mxu0  ;;  %3316 = vmatprep.mubr.bf16.mxu1 %v2848_v43 }
 0x390   : > { %v2582_v48 = vadd.f32 %v2581_v47, %v12682_v32  ;;  %v2583_v49 = vpop.f32.mrb[235].mxu0  ;;  %3317 = vmatmul.mubr.bf16.gmra.mrb[228].mxu1 %v2847_v41  ;;  %v2740_v51 = vmax.f32 %v2578_v44, 0.0 }
 0x391   : > { %v2584_v50 = vadd.f32 %v2583_v49, %v12686_v36  ;;  %v2741_v0 = vmax.f32 %v2580_v46, 0.0 }
 0x392   : > { %v2742_v52 = vmax.f32 %v2582_v48, 0.0 }
 0x393   : > { %v2743_v53 = vmax.f32 %v2584_v50, 0.0 }
 0x394   : > { %v2849_v54 = vpack.c.bf16 %v2742_v52, %v2740_v51 }
 0x395   : > { %v2587_v3 = vpop.f32.mrb[236].mxu0  ;;  %v2850_v55 = vpack.c.bf16 %v2743_v53, %v2741_v0 }
 0x396   : > { %v2588_v57 = vadd.f32 %v2587_v3, %v12682_v32  ;;  %v2589_v58 = vpop.f32.mrb[237].mxu0 }
 0x397   : > { %v2590_v61 = vadd.f32 %v2589_v58, %v12686_v36  ;;  %v2591_v62 = vpop.f32.mrb[238].mxu0  ;;  %3326 = vmatprep.mubr.bf16.mxu1 %v2850_v55  ;;  %v11306_v55 = vld [vmem:[%s16203_s3 + $0x4a0] ss:$8 sps:$4 sm:$0xff]  }
 0x398   : > { %v2592_v63 = vadd.f32 %v2591_v62, %v12682_v32  ;;  %v2593_v1 = vpop.f32.mrb[239].mxu0  ;;  %3327 = vmatmul.mubr.bf16.gmra.mrb[232].mxu1 %v2849_v54  ;;  %v2744_v7 = vmax.f32 %v2588_v57, 0.0 }
 0x399   : > { %v2594_v5 = vadd.f32 %v2593_v1, %v12686_v36  ;;  %v2745_v9 = vmax.f32 %v2590_v61, 0.0  ;;  %4560 = vmatpush1.bf16.msra.mxu1 %v11306_v55 }
 0x39a   : > { %v2746_v8 = vmax.f32 %v2592_v63, 0.0 }
 0x39b   : > { %v2747_v10 = vmax.f32 %v2594_v5, 0.0  ;;  %v3068_v11 = vpop.f32.mrb[128].mxu1 }
 0x39c   : > { %v3069_v12 = vadd.f32 %v3068_v11, %v12915_v4  ;;  %v3070_v13 = vpop.f32.mrb[129].mxu1  ;;  %v2851_v14 = vpack.c.bf16 %v2746_v8, %v2744_v7 }
 0x39d   : > { %v3071_v15 = vadd.f32 %v3070_v13, %v12919_v6  ;;  %v2597_v16 = vpop.f32.mrb[240].mxu0  ;;  %v3072_v17 = vpop.f32.mrb[130].mxu1  ;;  %v2852_v38 = vpack.c.bf16 %v2747_v10, %v2745_v9 }
 0x39e   : > { %v2598_v18 = vadd.f32 %v2597_v16, %v12682_v32  ;;  %v3073_v19 = vadd.f32 %v3072_v17, %v12915_v4  ;;  %v2599_v39 = vpop.f32.mrb[241].mxu0  ;;  %v3074_v20 = vpop.f32.mrb[131].mxu1  ;;  %v3387_v24 = vmax.f32 %v3069_v12, 0.0 }
 0x39f   : > { %v2600_v21 = vadd.f32 %v2599_v39, %v12686_v36  ;;  %v3075_v22 = vadd.f32 %v3074_v20, %v12919_v6  ;;  %v2601_v23 = vpop.f32.mrb[242].mxu0  ;;  %3336 = vmatprep.mubr.bf16.mxu1 %v2852_v38  ;;  %v3388_v28 = vmax.f32 %v3071_v15, 0.0 }
 0x3a0   : > { %v3389_v25 = vmax.f32 %v3073_v19, 0.0  ;;  %v2602_v26 = vadd.f32 %v2601_v23, %v12682_v32  ;;  %v2603_v27 = vpop.f32.mrb[243].mxu0  ;;  %3337 = vmatmul.mubr.bf16.gmra.mrb[236].mxu1 %v2851_v14  ;;  %v2748_v37 = vmax.f32 %v2598_v18, 0.0 }
 0x3a1   : > { %v3390_v29 = vmax.f32 %v3075_v22, 0.0  ;;  %v2604_v34 = vadd.f32 %v2603_v27, %v12686_v36  ;;  %v2749_v42 = vmax.f32 %v2600_v21, 0.0 }
 0x3a2   : > { %v3548_v40 = vpack.c.bf16 %v3389_v25, %v3387_v24  ;;  %v2750_v41 = vmax.f32 %v2602_v26, 0.0 }
 0x3a3   : > { %v2751_v43 = vmax.f32 %v2604_v34, 0.0  ;;  %v3078_v44 = vpop.f32.mrb[132].mxu1  ;;  %v3549_v45 = vpack.c.bf16 %v3390_v29, %v3388_v28 }
 0x3a4   : > { %v3079_v46 = vadd.f32 %v3078_v44, %v12915_v4  ;;  %v3080_v47 = vpop.f32.mrb[133].mxu1  ;;  %v2853_v48 = vpack.c.bf16 %v2750_v41, %v2748_v37 }
 0x3a5   : > { %v3081_v49 = vadd.f32 %v3080_v47, %v12919_v6  ;;  %v2607_v50 = vpop.f32.mrb[244].mxu0  ;;  %v3082_v51 = vpop.f32.mrb[134].mxu1  ;;  %3817 = vmatprep.mubr.bf16.mxu0 %v3549_v45  ;;  %v2854_v52 = vpack.c.bf16 %v2751_v43, %v2749_v42 }
 0x3a6   : > { %v2608_v0 = vadd.f32 %v2607_v50, %v12682_v32  ;;  %v3083_v53 = vadd.f32 %v3082_v51, %v12915_v4  ;;  %v2609_v54 = vpop.f32.mrb[245].mxu0  ;;  %v3084_v3 = vpop.f32.mrb[135].mxu1  ;;  %3818 = vmatmul.mubr.bf16.vlgmr.msra.gmra.mrb[0].mxu0 %v3548_v40  ;;  %v3391_v60 = vmax.f32 %v3079_v46, 0.0 }
 0x3a7   : > { %v2610_v56 = vadd.f32 %v2609_v54, %v12686_v36  ;;  %v3085_v57 = vadd.f32 %v3084_v3, %v12919_v6  ;;  %v2611_v58 = vpop.f32.mrb[246].mxu0  ;;  %3346 = vmatprep.mubr.bf16.mxu1 %v2854_v52  ;;  %v3392_v1 = vmax.f32 %v3081_v49, 0.0 }
 0x3a8   : > { %v3393_v61 = vmax.f32 %v3083_v53, 0.0  ;;  %v2612_v62 = vadd.f32 %v2611_v58, %v12682_v32  ;;  %v2613_v63 = vpop.f32.mrb[247].mxu0  ;;  %3347 = vmatmul.mubr.bf16.gmra.mrb[240].mxu1 %v2853_v48  ;;  %v2752_v8 = vmax.f32 %v2608_v0, 0.0  ;;  %v11309_v58 = vld [vmem:[%s16203_s3 + $0x4b0] ss:$8 sps:$4 sm:$0xff]  }
 0x3a9   : > { %v3394_v5 = vmax.f32 %v3085_v57, 0.0  ;;  %v2614_v7 = vadd.f32 %v2613_v63, %v12686_v36  ;;  %v2753_v11 = vmax.f32 %v2610_v56, 0.0 }
 0x3aa   : > { %v3550_v9 = vpack.c.bf16 %v3393_v61, %v3391_v60  ;;  %v2754_v10 = vmax.f32 %v2612_v62, 0.0  ;;  %v11311_v62 = vld [vmem:[%s16203_s3 + $0x4b4] ss:$8 sps:$4 sm:$0xff]  }
 0x3ab   : > { %v2755_v12 = vmax.f32 %v2614_v7, 0.0  ;;  %v3088_v13 = vpop.f32.mrb[136].mxu1  ;;  %v3551_v14 = vpack.c.bf16 %v3394_v5, %v3392_v1  ;;  %4561 = vmatprep.subr.bf16.mxu1 %v11311_v62 }
 0x3ac   : > { %v3089_v15 = vadd.f32 %v3088_v13, %v12915_v4  ;;  %v3090_v16 = vpop.f32.mrb[137].mxu1  ;;  %v2855_v17 = vpack.c.bf16 %v2754_v10, %v2752_v8  ;;  %4562 = vmatpush1.bf16.msra.mxu1 %v11309_v58 }
 0x3ad   : > { %v3091_v38 = vadd.f32 %v3090_v16, %v12919_v6  ;;  %v2617_v18 = vpop.f32.mrb[248].mxu0  ;;  %v3092_v19 = vpop.f32.mrb[138].mxu1  ;;  %3827 = vmatprep.mubr.bf16.mxu0 %v3551_v14  ;;  %v2856_v39 = vpack.c.bf16 %v2755_v12, %v2753_v11 }
 0x3ae   : > { %v2618_v20 = vadd.f32 %v2617_v18, %v12682_v32  ;;  %v3093_v21 = vadd.f32 %v3092_v19, %v12915_v4  ;;  %v2619_v22 = vpop.f32.mrb[249].mxu0  ;;  %v3094_v23 = vpop.f32.mrb[139].mxu1  ;;  %3828 = vmatmul.mubr.bf16.gmra.mrb[4].mxu0 %v3550_v9  ;;  %v3395_v27 = vmax.f32 %v3089_v15, 0.0 }
 0x3af   : > { %v2620_v24 = vadd.f32 %v2619_v22, %v12686_v36  ;;  %v3095_v25 = vadd.f32 %v3094_v23, %v12919_v6  ;;  %v2621_v26 = vpop.f32.mrb[250].mxu0  ;;  %3356 = vmatprep.mubr.bf16.mxu1 %v2856_v39  ;;  %v3396_v37 = vmax.f32 %v3091_v38, 0.0 }
 0x3b0   : > { %v3397_v28 = vmax.f32 %v3093_v21, 0.0  ;;  %v2622_v29 = vadd.f32 %v2621_v26, %v12682_v32  ;;  %v2623_v34 = vpop.f32.mrb[251].mxu0  ;;  %3357 = vmatmul.mubr.bf16.gmra.mrb[244].mxu1 %v2855_v17  ;;  %v2756_v42 = vmax.f32 %v2618_v20, 0.0 }
 0x3b1   : > { %v3398_v40 = vmax.f32 %v3095_v25, 0.0  ;;  %v2624_v41 = vadd.f32 %v2623_v34, %v12686_v36  ;;  %v2757_v45 = vmax.f32 %v2620_v24, 0.0 }
 0x3b2   : > { %v3552_v43 = vpack.c.bf16 %v3397_v28, %v3395_v27  ;;  %v2758_v44 = vmax.f32 %v2622_v29, 0.0 }
 0x3b3   : > { %v2759_v46 = vmax.f32 %v2624_v41, 0.0  ;;  %v3098_v47 = vpop.f32.mrb[140].mxu1  ;;  %v3553_v48 = vpack.c.bf16 %v3398_v40, %v3396_v37 }
 0x3b4   : > { %v3099_v49 = vadd.f32 %v3098_v47, %v12915_v4  ;;  %v3100_v50 = vpop.f32.mrb[141].mxu1  ;;  %v2857_v51 = vpack.c.bf16 %v2758_v44, %v2756_v42  ;;  %v11312_v44 = vld [vmem:[%s16203_s3 + $0x4c0] ss:$8 sps:$4 sm:$0xff]  }
 0x3b5   : > { %v3101_v52 = vadd.f32 %v3100_v50, %v12919_v6  ;;  %v2627_v0 = vpop.f32.mrb[252].mxu0  ;;  %v3102_v53 = vpop.f32.mrb[142].mxu1  ;;  %3837 = vmatprep.mubr.bf16.mxu0 %v3553_v48  ;;  %v2858_v54 = vpack.c.bf16 %v2759_v46, %v2757_v45  ;;  %v11314_v45 = vld [vmem:[%s16203_s3 + $0x4c4] ss:$8 sps:$4 sm:$0xff]  }
 0x3b6   : > { %v2628_v3 = vadd.f32 %v2627_v0, %v12682_v32  ;;  %v3103_v55 = vadd.f32 %v3102_v53, %v12915_v4  ;;  %v2629_v56 = vpop.f32.mrb[253].mxu0  ;;  %v3104_v57 = vpop.f32.mrb[143].mxu1  ;;  %3838 = vmatmul.mubr.bf16.gmra.mrb[8].mxu0 %v3552_v43  ;;  %v3399_v63 = vmax.f32 %v3099_v49, 0.0  ;;  %4563 = vmatprep.subr.bf16.mxu1 %v11314_v45 }
 0x3b7   : > { %v2630_v59 = vadd.f32 %v2629_v56, %v12686_v36  ;;  %v3105_v60 = vadd.f32 %v3104_v57, %v12919_v6  ;;  %v2631_v61 = vpop.f32.mrb[254].mxu0  ;;  %3366 = vmatprep.mubr.bf16.mxu1 %v2858_v54  ;;  %v3400_v8 = vmax.f32 %v3101_v52, 0.0  ;;  %4564 = vmatpush1.bf16.msra.mxu1 %v11312_v44 }
 0x3b8   : > { %v3401_v1 = vmax.f32 %v3103_v55, 0.0  ;;  %v2632_v5 = vadd.f32 %v2631_v61, %v12682_v32  ;;  %v2633_v7 = vpop.f32.mrb[255].mxu0  ;;  %3367 = vmatmul.mubr.bf16.gmra.mrb[248].mxu1 %v2857_v51  ;;  %v2760_v11 = vmax.f32 %v2628_v3, 0.0 }
 0x3b9   : > { %v3402_v9 = vmax.f32 %v3105_v60, 0.0  ;;  %v2634_v10 = vadd.f32 %v2633_v7, %v12686_v36  ;;  %v2761_v14 = vmax.f32 %v2630_v59, 0.0 }
 0x3ba   : > { %v3554_v12 = vpack.c.bf16 %v3401_v1, %v3399_v63  ;;  %v2762_v13 = vmax.f32 %v2632_v5, 0.0 }
 0x3bb   : > { %v2763_v15 = vmax.f32 %v2634_v10, 0.0  ;;  %v3108_v16 = vpop.f32.mrb[144].mxu1  ;;  %v3555_v17 = vpack.c.bf16 %v3402_v9, %v3400_v8 }
 0x3bc   : > { %v3109_v38 = vadd.f32 %v3108_v16, %v12915_v4  ;;  %v3110_v18 = vpop.f32.mrb[145].mxu1  ;;  %v2859_v19 = vpack.c.bf16 %v2762_v13, %v2760_v11  ;;  %v11315_v13 = vld [vmem:[%s16203_s3 + $0x4d0] ss:$8 sps:$4 sm:$0xff]  }
 0x3bd   : > { %v3111_v32 = vadd.f32 %v3110_v18, %v12919_v6  ;;  %v3112_v39 = vpop.f32.mrb[146].mxu1  ;;  %3847 = vmatprep.mubr.bf16.mxu0 %v3555_v17  ;;  %v2860_v20 = vpack.c.bf16 %v2763_v15, %v2761_v14  ;;  %v11317_v14 = vld [vmem:[%s16203_s3 + $0x4d4] ss:$8 sps:$4 sm:$0xff]  }
 0x3be   : > { %v3113_v36 = vadd.f32 %v3112_v39, %v12915_v4  ;;  %v3114_v21 = vpop.f32.mrb[147].mxu1  ;;  %3848 = vmatmul.mubr.bf16.gmra.mrb[12].mxu0 %v3554_v12  ;;  %v3403_v23 = vmax.f32 %v3109_v38, 0.0  ;;  %4565 = vmatprep.subr.bf16.mxu1 %v11317_v14 }
 0x3bf   : > { %v3115_v22 = vadd.f32 %v3114_v21, %v12919_v6  ;;  %3376 = vmatprep.mubr.bf16.mxu1 %v2860_v20  ;;  %v3404_v25 = vmax.f32 %v3111_v32, 0.0  ;;  %4566 = vmatpush1.bf16.msra.mxu1 %v11315_v13 }
 0x3c0   : > { %v3405_v24 = vmax.f32 %v3113_v36, 0.0  ;;  %3377 = vmatmul.mubr.bf16.gmra.mrb[252].mxu1 %v2859_v19 }
 0x3c1   : > { %v3406_v26 = vmax.f32 %v3115_v22, 0.0 }
 0x3c2   : > { %v3556_v27 = vpack.c.bf16 %v3405_v24, %v3403_v23 }
 0x3c3   : > { %v3118_v28 = vpop.f32.mrb[148].mxu1  ;;  %v3557_v29 = vpack.c.bf16 %v3406_v26, %v3404_v25 }
 0x3c4   : > { %v3119_v34 = vadd.f32 %v3118_v28, %v12915_v4  ;;  %v3120_v37 = vpop.f32.mrb[149].mxu1 }
 0x3c5   : > { %v3121_v40 = vadd.f32 %v3120_v37, %v12919_v6  ;;  %v3122_v41 = vpop.f32.mrb[150].mxu1  ;;  %3857 = vmatprep.mubr.bf16.mxu0 %v3557_v29 }
 0x3c6   : > { %v3123_v42 = vadd.f32 %v3122_v41, %v12915_v4  ;;  %v3124_v43 = vpop.f32.mrb[151].mxu1  ;;  %3858 = vmatmul.mubr.bf16.gmra.mrb[16].mxu0 %v3556_v27  ;;  %v3407_v47 = vmax.f32 %v3119_v34, 0.0 }
 0x3c7   : > { %v3125_v46 = vadd.f32 %v3124_v43, %v12919_v6  ;;  %v3408_v49 = vmax.f32 %v3121_v40, 0.0 }
 0x3c8   : > { %v3409_v48 = vmax.f32 %v3123_v42, 0.0 }
 0x3c9   : > { %v3410_v50 = vmax.f32 %v3125_v46, 0.0 }
 0x3ca   : > { %v3558_v51 = vpack.c.bf16 %v3409_v48, %v3407_v47  ;;  %v11318_v47 = vld [vmem:[%s16203_s3 + $0x4e0] ss:$8 sps:$4 sm:$0xff]   ;;  %v11320_v48 = vld [vmem:[%s16203_s3 + $0x4e4] ss:$8 sps:$4 sm:$0xff]  }
 0x3cb   : > { %v3128_v52 = vpop.f32.mrb[152].mxu1  ;;  %v3559_v0 = vpack.c.bf16 %v3410_v50, %v3408_v49  ;;  %4567 = vmatprep.subr.bf16.mxu1 %v11320_v48 }
 0x3cc   : > { %v3129_v53 = vadd.f32 %v3128_v52, %v12915_v4  ;;  %v3130_v54 = vpop.f32.mrb[153].mxu1  ;;  %4568 = vmatpush1.bf16.msra.mxu1 %v11318_v47 }
 0x3cd   : > { %v3131_v3 = vadd.f32 %v3130_v54, %v12919_v6  ;;  %v3132_v55 = vpop.f32.mrb[154].mxu1  ;;  %3867 = vmatprep.mubr.bf16.mxu0 %v3559_v0 }
 0x3ce   : > { %v3133_v56 = vadd.f32 %v3132_v55, %v12915_v4  ;;  %v3134_v57 = vpop.f32.mrb[155].mxu1  ;;  %3868 = vmatmul.mubr.bf16.gmra.mrb[20].mxu0 %v3558_v51  ;;  %v3411_v59 = vmax.f32 %v3129_v53, 0.0 }
 0x3cf   : > { %v3135_v58 = vadd.f32 %v3134_v57, %v12919_v6  ;;  %v3412_v61 = vmax.f32 %v3131_v3, 0.0 }
 0x3d0   : > { %v3413_v60 = vmax.f32 %v3133_v56, 0.0 }
 0x3d1   : > { %v3414_v62 = vmax.f32 %v3135_v58, 0.0 }
 0x3d2   : > { %v3560_v63 = vpack.c.bf16 %v3413_v60, %v3411_v59 }
 0x3d3   : > { %v3138_v1 = vpop.f32.mrb[156].mxu1  ;;  %v3561_v5 = vpack.c.bf16 %v3414_v62, %v3412_v61 }
 0x3d4   : > { %v3139_v7 = vadd.f32 %v3138_v1, %v12915_v4  ;;  %v3140_v8 = vpop.f32.mrb[157].mxu1 }
 0x3d5   : > { %v3141_v9 = vadd.f32 %v3140_v8, %v12919_v6  ;;  %v3142_v10 = vpop.f32.mrb[158].mxu1  ;;  %3877 = vmatprep.mubr.bf16.mxu0 %v3561_v5 }
 0x3d6   : > { %v3143_v11 = vadd.f32 %v3142_v10, %v12915_v4  ;;  %v3144_v12 = vpop.f32.mrb[159].mxu1  ;;  %3878 = vmatmul.mubr.bf16.gmra.mrb[24].mxu0 %v3560_v63  ;;  %v3415_v16 = vmax.f32 %v3139_v7, 0.0 }
 0x3d7   : > { %v3145_v15 = vadd.f32 %v3144_v12, %v12919_v6  ;;  %v3416_v38 = vmax.f32 %v3141_v9, 0.0 }
 0x3d8   : > { %v3417_v17 = vmax.f32 %v3143_v11, 0.0 }
 0x3d9   : > { %v3418_v18 = vmax.f32 %v3145_v15, 0.0 }
 0x3da   : > { %v3562_v19 = vpack.c.bf16 %v3417_v17, %v3415_v16  ;;  %v11321_v16 = vld [vmem:[%s16203_s3 + $0x4f0] ss:$8 sps:$4 sm:$0xff]   ;;  %v11323_v17 = vld [vmem:[%s16203_s3 + $0x4f4] ss:$8 sps:$4 sm:$0xff]  }
 0x3db   : > { %v3148_v32 = vpop.f32.mrb[160].mxu1  ;;  %v3563_v39 = vpack.c.bf16 %v3418_v18, %v3416_v38  ;;  %4569 = vmatprep.subr.bf16.mxu1 %v11323_v17 }
 0x3dc   : > { %v3149_v20 = vadd.f32 %v3148_v32, %v12915_v4  ;;  %v3150_v36 = vpop.f32.mrb[161].mxu1  ;;  %4570 = vmatpush1.bf16.msra.mxu1 %v11321_v16 }
 0x3dd   : > { %v3151_v21 = vadd.f32 %v3150_v36, %v12919_v6  ;;  %v3152_v22 = vpop.f32.mrb[162].mxu1  ;;  %3887 = vmatprep.mubr.bf16.mxu0 %v3563_v39 }
 0x3de   : > { %v3153_v23 = vadd.f32 %v3152_v22, %v12915_v4  ;;  %v3154_v24 = vpop.f32.mrb[163].mxu1  ;;  %3888 = vmatmul.mubr.bf16.gmra.mrb[28].mxu0 %v3562_v19  ;;  %v3419_v26 = vmax.f32 %v3149_v20, 0.0 }
 0x3df   : > { %v3155_v25 = vadd.f32 %v3154_v24, %v12919_v6  ;;  %v3420_v28 = vmax.f32 %v3151_v21, 0.0 }
 0x3e0   : > { %v3421_v27 = vmax.f32 %v3153_v23, 0.0 }
 0x3e1   : > { %v3422_v29 = vmax.f32 %v3155_v25, 0.0 }
 0x3e2   : > { %v3564_v34 = vpack.c.bf16 %v3421_v27, %v3419_v26 }
 0x3e3   : > { %v3158_v37 = vpop.f32.mrb[164].mxu1  ;;  %v3565_v40 = vpack.c.bf16 %v3422_v29, %v3420_v28 }
 0x3e4   : > { %v3159_v41 = vadd.f32 %v3158_v37, %v12915_v4  ;;  %v3160_v42 = vpop.f32.mrb[165].mxu1 }
 0x3e5   : > { %v3161_v43 = vadd.f32 %v3160_v42, %v12919_v6  ;;  %v3162_v44 = vpop.f32.mrb[166].mxu1  ;;  %3897 = vmatprep.mubr.bf16.mxu0 %v3565_v40 }
 0x3e6   : > { %v3163_v45 = vadd.f32 %v3162_v44, %v12915_v4  ;;  %v3164_v46 = vpop.f32.mrb[167].mxu1  ;;  %3898 = vmatmul.mubr.bf16.gmra.mrb[32].mxu0 %v3564_v34  ;;  %v3423_v50 = vmax.f32 %v3159_v41, 0.0 }
 0x3e7   : > { %v3165_v49 = vadd.f32 %v3164_v46, %v12919_v6  ;;  %v3424_v52 = vmax.f32 %v3161_v43, 0.0 }
 0x3e8   : > { %v3425_v51 = vmax.f32 %v3163_v45, 0.0 }
 0x3e9   : > { %v3426_v0 = vmax.f32 %v3165_v49, 0.0 }
 0x3ea   : > { %v3566_v53 = vpack.c.bf16 %v3425_v51, %v3423_v50 }
 0x3eb   : > { %v3168_v54 = vpop.f32.mrb[168].mxu1  ;;  %v3567_v3 = vpack.c.bf16 %v3426_v0, %v3424_v52  ;;  %v11326_v0 = vld [vmem:[%s16202_s2 + $0x4] ss:$8 sps:$4 sm:$0xff]  }
 0x3ec   : > { %v3169_v55 = vadd.f32 %v3168_v54, %v12915_v4  ;;  %v3170_v56 = vpop.f32.mrb[169].mxu1  ;;  %4972 = vmatprep.subr.bf16.mxu1 %v11326_v0 }
 0x3ed   : > { %v3171_v57 = vadd.f32 %v3170_v56, %v12919_v6  ;;  %v3172_v58 = vpop.f32.mrb[170].mxu1  ;;  %3907 = vmatprep.mubr.bf16.mxu0 %v3567_v3 }
 0x3ee   : > { %v3173_v59 = vadd.f32 %v3172_v58, %v12915_v4  ;;  %v3174_v60 = vpop.f32.mrb[171].mxu1  ;;  %3908 = vmatmul.mubr.bf16.gmra.mrb[36].mxu0 %v3566_v53  ;;  %v3427_v62 = vmax.f32 %v3169_v55, 0.0 }
 0x3ef   : > { %v3175_v61 = vadd.f32 %v3174_v60, %v12919_v6  ;;  %v3428_v1 = vmax.f32 %v3171_v57, 0.0 }
 0x3f0   : > { %v3429_v63 = vmax.f32 %v3173_v59, 0.0 }
 0x3f1   : > { %v3430_v5 = vmax.f32 %v3175_v61, 0.0 }
 0x3f2   : > { %v3568_v7 = vpack.c.bf16 %v3429_v63, %v3427_v62 }
 0x3f3   : > { %v3178_v8 = vpop.f32.mrb[172].mxu1  ;;  %v3569_v9 = vpack.c.bf16 %v3430_v5, %v3428_v1 }
 0x3f4   : > { %v3179_v10 = vadd.f32 %v3178_v8, %v12915_v4  ;;  %v3180_v11 = vpop.f32.mrb[173].mxu1 }
 0x3f5   : > { %v3181_v12 = vadd.f32 %v3180_v11, %v12919_v6  ;;  %v3182_v13 = vpop.f32.mrb[174].mxu1  ;;  %3917 = vmatprep.mubr.bf16.mxu0 %v3569_v9 }
 0x3f6   : > { %v3183_v14 = vadd.f32 %v3182_v13, %v12915_v4  ;;  %v3184_v15 = vpop.f32.mrb[175].mxu1  ;;  %3918 = vmatmul.mubr.bf16.gmra.mrb[40].mxu0 %v3568_v7  ;;  %v3431_v18 = vmax.f32 %v3179_v10, 0.0 }
 0x3f7   : > { %v3185_v38 = vadd.f32 %v3184_v15, %v12919_v6  ;;  %v3432_v32 = vmax.f32 %v3181_v12, 0.0 }
 0x3f8   : > { %v3433_v19 = vmax.f32 %v3183_v14, 0.0 }
 0x3f9   : > { %v3434_v39 = vmax.f32 %v3185_v38, 0.0 }
 0x3fa   : > { %v3570_v20 = vpack.c.bf16 %v3433_v19, %v3431_v18 }
 0x3fb   : > { %v3188_v36 = vpop.f32.mrb[176].mxu1  ;;  %v3571_v21 = vpack.c.bf16 %v3434_v39, %v3432_v32 }
 0x3fc   : > { %v3189_v22 = vadd.f32 %v3188_v36, %v12915_v4  ;;  %v3190_v23 = vpop.f32.mrb[177].mxu1 }
 0x3fd   : > { %v3191_v24 = vadd.f32 %v3190_v23, %v12919_v6  ;;  %v3192_v25 = vpop.f32.mrb[178].mxu1  ;;  %3927 = vmatprep.mubr.bf16.mxu0 %v3571_v21 }
 0x3fe   : > { %v3193_v26 = vadd.f32 %v3192_v25, %v12915_v4  ;;  %v3194_v27 = vpop.f32.mrb[179].mxu1  ;;  %3928 = vmatmul.mubr.bf16.gmra.mrb[44].mxu0 %v3570_v20  ;;  %v3435_v29 = vmax.f32 %v3189_v22, 0.0 }
 0x3ff   : > { %v3195_v28 = vadd.f32 %v3194_v27, %v12919_v6  ;;  %v3436_v37 = vmax.f32 %v3191_v24, 0.0 }
 0x400   : > { %v3437_v34 = vmax.f32 %v3193_v26, 0.0 }
 0x401   : > { %v3438_v40 = vmax.f32 %v3195_v28, 0.0 }
 0x402   : > { %v3572_v41 = vpack.c.bf16 %v3437_v34, %v3435_v29 }
 0x403   : > { %v3198_v42 = vpop.f32.mrb[180].mxu1  ;;  %v3573_v43 = vpack.c.bf16 %v3438_v40, %v3436_v37 }
 0x404   : > { %v3199_v44 = vadd.f32 %v3198_v42, %v12915_v4  ;;  %v3200_v45 = vpop.f32.mrb[181].mxu1 }
 0x405   : > { %v3201_v46 = vadd.f32 %v3200_v45, %v12919_v6  ;;  %v3202_v47 = vpop.f32.mrb[182].mxu1  ;;  %3937 = vmatprep.mubr.bf16.mxu0 %v3573_v43 }
 0x406   : > { %v3203_v48 = vadd.f32 %v3202_v47, %v12915_v4  ;;  %v3204_v49 = vpop.f32.mrb[183].mxu1  ;;  %3938 = vmatmul.mubr.bf16.gmra.mrb[48].mxu0 %v3572_v41  ;;  %v3439_v51 = vmax.f32 %v3199_v44, 0.0 }
 0x407   : > { %v3205_v50 = vadd.f32 %v3204_v49, %v12919_v6  ;;  %v3440_v53 = vmax.f32 %v3201_v46, 0.0 }
 0x408   : > { %v3441_v52 = vmax.f32 %v3203_v48, 0.0 }
 0x409   : > { %v3442_v54 = vmax.f32 %v3205_v50, 0.0 }
 0x40a   : > { %v3574_v3 = vpack.c.bf16 %v3441_v52, %v3439_v51 }
 0x40b   : > { %v3208_v55 = vpop.f32.mrb[184].mxu1  ;;  %v3575_v56 = vpack.c.bf16 %v3442_v54, %v3440_v53 }
 0x40c   : > { %v3209_v57 = vadd.f32 %v3208_v55, %v12915_v4  ;;  %v3210_v58 = vpop.f32.mrb[185].mxu1 }
 0x40d   : > { %v3211_v59 = vadd.f32 %v3210_v58, %v12919_v6  ;;  %v3212_v60 = vpop.f32.mrb[186].mxu1  ;;  %3947 = vmatprep.mubr.bf16.mxu0 %v3575_v56 }
 0x40e   : > { %v3213_v61 = vadd.f32 %v3212_v60, %v12915_v4  ;;  %v3214_v62 = vpop.f32.mrb[187].mxu1  ;;  %3948 = vmatmul.mubr.bf16.gmra.mrb[52].mxu0 %v3574_v3  ;;  %v3443_v1 = vmax.f32 %v3209_v57, 0.0 }
 0x40f   : > { %v3215_v63 = vadd.f32 %v3214_v62, %v12919_v6  ;;  %v3444_v7 = vmax.f32 %v3211_v59, 0.0 }
 0x410   : > { %v3445_v5 = vmax.f32 %v3213_v61, 0.0 }
 0x411   : > { %v3446_v8 = vmax.f32 %v3215_v63, 0.0 }
 0x412   : > { %v3576_v9 = vpack.c.bf16 %v3445_v5, %v3443_v1 }
 0x413   : > { %v3218_v10 = vpop.f32.mrb[188].mxu1  ;;  %v3577_v11 = vpack.c.bf16 %v3446_v8, %v3444_v7 }
 0x414   : > { %v3219_v12 = vadd.f32 %v3218_v10, %v12915_v4  ;;  %v3220_v13 = vpop.f32.mrb[189].mxu1 }
 0x415   : > { %v3221_v14 = vadd.f32 %v3220_v13, %v12919_v6  ;;  %v3222_v15 = vpop.f32.mrb[190].mxu1  ;;  %3957 = vmatprep.mubr.bf16.mxu0 %v3577_v11 }
 0x416   : > { %v3223_v16 = vadd.f32 %v3222_v15, %v12915_v4  ;;  %v3224_v17 = vpop.f32.mrb[191].mxu1  ;;  %3958 = vmatmul.mubr.bf16.gmra.mrb[56].mxu0 %v3576_v9  ;;  %v3447_v18 = vmax.f32 %v3219_v12, 0.0 }
 0x417   : > { %v3225_v38 = vadd.f32 %v3224_v17, %v12919_v6  ;;  %v3448_v32 = vmax.f32 %v3221_v14, 0.0 }
 0x418   : > { %v3449_v19 = vmax.f32 %v3223_v16, 0.0 }
 0x419   : > { %v3450_v39 = vmax.f32 %v3225_v38, 0.0 }
 0x41a   : > { %v3578_v20 = vpack.c.bf16 %v3449_v19, %v3447_v18 }
 0x41b   : > { %v3228_v36 = vpop.f32.mrb[192].mxu1  ;;  %v3579_v21 = vpack.c.bf16 %v3450_v39, %v3448_v32 }
 0x41c   : > { %v3229_v22 = vadd.f32 %v3228_v36, %v12915_v4  ;;  %v3230_v23 = vpop.f32.mrb[193].mxu1 }
 0x41d   : > { %v3231_v24 = vadd.f32 %v3230_v23, %v12919_v6  ;;  %v3232_v25 = vpop.f32.mrb[194].mxu1  ;;  %3967 = vmatprep.mubr.bf16.mxu0 %v3579_v21 }
 0x41e   : > { %v3233_v26 = vadd.f32 %v3232_v25, %v12915_v4  ;;  %v3234_v27 = vpop.f32.mrb[195].mxu1  ;;  %3968 = vmatmul.mubr.bf16.gmra.mrb[60].mxu0 %v3578_v20  ;;  %v3451_v29 = vmax.f32 %v3229_v22, 0.0 }
 0x41f   : > { %v3235_v28 = vadd.f32 %v3234_v27, %v12919_v6  ;;  %v3452_v37 = vmax.f32 %v3231_v24, 0.0 }
 0x420   : > { %v3453_v34 = vmax.f32 %v3233_v26, 0.0 }
 0x421   : > { %v3454_v40 = vmax.f32 %v3235_v28, 0.0 }
 0x422   : > { %v3580_v41 = vpack.c.bf16 %v3453_v34, %v3451_v29 }
 0x423   : > { %v3238_v42 = vpop.f32.mrb[196].mxu1  ;;  %v3581_v43 = vpack.c.bf16 %v3454_v40, %v3452_v37 }
 0x424   : > { %v3239_v44 = vadd.f32 %v3238_v42, %v12915_v4  ;;  %v3240_v45 = vpop.f32.mrb[197].mxu1 }
 0x425   : > { %v3241_v46 = vadd.f32 %v3240_v45, %v12919_v6  ;;  %v3242_v47 = vpop.f32.mrb[198].mxu1  ;;  %3977 = vmatprep.mubr.bf16.mxu0 %v3581_v43 }
 0x426   : > { %v3243_v48 = vadd.f32 %v3242_v47, %v12915_v4  ;;  %v3244_v49 = vpop.f32.mrb[199].mxu1  ;;  %3978 = vmatmul.mubr.bf16.gmra.mrb[64].mxu0 %v3580_v41  ;;  %v3455_v51 = vmax.f32 %v3239_v44, 0.0 }
 0x427   : > { %v3245_v50 = vadd.f32 %v3244_v49, %v12919_v6  ;;  %v3456_v0 = vmax.f32 %v3241_v46, 0.0 }
 0x428   : > { %v3457_v52 = vmax.f32 %v3243_v48, 0.0 }
 0x429   : > { %v3458_v53 = vmax.f32 %v3245_v50, 0.0 }
 0x42a   : > { %v3582_v54 = vpack.c.bf16 %v3457_v52, %v3455_v51 }
 0x42b   : > { %v3248_v3 = vpop.f32.mrb[200].mxu1  ;;  %v3583_v55 = vpack.c.bf16 %v3458_v53, %v3456_v0 }
 0x42c   : > { %v3249_v56 = vadd.f32 %v3248_v3, %v12915_v4  ;;  %v3250_v57 = vpop.f32.mrb[201].mxu1 }
 0x42d   : > { %v3251_v58 = vadd.f32 %v3250_v57, %v12919_v6  ;;  %v3252_v59 = vpop.f32.mrb[202].mxu1  ;;  %3987 = vmatprep.mubr.bf16.mxu0 %v3583_v55 }
 0x42e   : > { %v3253_v60 = vadd.f32 %v3252_v59, %v12915_v4  ;;  %v3254_v61 = vpop.f32.mrb[203].mxu1  ;;  %3988 = vmatmul.mubr.bf16.gmra.mrb[68].mxu0 %v3582_v54  ;;  %v3459_v63 = vmax.f32 %v3249_v56, 0.0 }
 0x42f   : > { %v3255_v62 = vadd.f32 %v3254_v61, %v12919_v6  ;;  %v3460_v5 = vmax.f32 %v3251_v58, 0.0 }
 0x430   : > { %v3461_v1 = vmax.f32 %v3253_v60, 0.0 }
 0x431   : > { %v3462_v7 = vmax.f32 %v3255_v62, 0.0 }
 0x432   : > { %v3584_v8 = vpack.c.bf16 %v3461_v1, %v3459_v63 }
 0x433   : > { %v3258_v9 = vpop.f32.mrb[204].mxu1  ;;  %v3585_v10 = vpack.c.bf16 %v3462_v7, %v3460_v5 }
 0x434   : > { %v3259_v11 = vadd.f32 %v3258_v9, %v12915_v4  ;;  %v3260_v12 = vpop.f32.mrb[205].mxu1 }
 0x435   : > { %v3261_v13 = vadd.f32 %v3260_v12, %v12919_v6  ;;  %v3262_v14 = vpop.f32.mrb[206].mxu1  ;;  %3997 = vmatprep.mubr.bf16.mxu0 %v3585_v10 }
 0x436   : > { %v3263_v15 = vadd.f32 %v3262_v14, %v12915_v4  ;;  %v3264_v16 = vpop.f32.mrb[207].mxu1  ;;  %3998 = vmatmul.mubr.bf16.gmra.mrb[72].mxu0 %v3584_v8  ;;  %v3463_v38 = vmax.f32 %v3259_v11, 0.0 }
 0x437   : > { %v3265_v17 = vadd.f32 %v3264_v16, %v12919_v6  ;;  %v3464_v19 = vmax.f32 %v3261_v13, 0.0 }
 0x438   : > { %v3465_v18 = vmax.f32 %v3263_v15, 0.0 }
 0x439   : > { %v3466_v32 = vmax.f32 %v3265_v17, 0.0 }
 0x43a   : > { %v3586_v39 = vpack.c.bf16 %v3465_v18, %v3463_v38 }
 0x43b   : > { %v3268_v20 = vpop.f32.mrb[208].mxu1  ;;  %v3587_v36 = vpack.c.bf16 %v3466_v32, %v3464_v19 }
 0x43c   : > { %v3269_v21 = vadd.f32 %v3268_v20, %v12915_v4  ;;  %v3270_v22 = vpop.f32.mrb[209].mxu1 }
 0x43d   : > { %v3271_v23 = vadd.f32 %v3270_v22, %v12919_v6  ;;  %v3272_v24 = vpop.f32.mrb[210].mxu1  ;;  %4007 = vmatprep.mubr.bf16.mxu0 %v3587_v36 }
 0x43e   : > { %v3273_v25 = vadd.f32 %v3272_v24, %v12915_v4  ;;  %v3274_v26 = vpop.f32.mrb[211].mxu1  ;;  %4008 = vmatmul.mubr.bf16.gmra.mrb[76].mxu0 %v3586_v39  ;;  %v3467_v28 = vmax.f32 %v3269_v21, 0.0 }
 0x43f   : > { %v3275_v27 = vadd.f32 %v3274_v26, %v12919_v6  ;;  %v3468_v34 = vmax.f32 %v3271_v23, 0.0 }
 0x440   : > { %v3469_v29 = vmax.f32 %v3273_v25, 0.0 }
 0x441   : > { %v3470_v37 = vmax.f32 %v3275_v27, 0.0 }
 0x442   : > { %v3588_v40 = vpack.c.bf16 %v3469_v29, %v3467_v28 }
 0x443   : > { %v3278_v41 = vpop.f32.mrb[212].mxu1  ;;  %v3589_v42 = vpack.c.bf16 %v3470_v37, %v3468_v34 }
 0x444   : > { %v3279_v43 = vadd.f32 %v3278_v41, %v12915_v4  ;;  %v3280_v44 = vpop.f32.mrb[213].mxu1 }
 0x445   : > { %v3281_v45 = vadd.f32 %v3280_v44, %v12919_v6  ;;  %v3282_v46 = vpop.f32.mrb[214].mxu1  ;;  %4017 = vmatprep.mubr.bf16.mxu0 %v3589_v42 }
 0x446   : > { %v3283_v47 = vadd.f32 %v3282_v46, %v12915_v4  ;;  %v3284_v48 = vpop.f32.mrb[215].mxu1  ;;  %4018 = vmatmul.mubr.bf16.gmra.mrb[80].mxu0 %v3588_v40  ;;  %v3471_v50 = vmax.f32 %v3279_v43, 0.0 }
 0x447   : > { %v3285_v49 = vadd.f32 %v3284_v48, %v12919_v6  ;;  %v3472_v52 = vmax.f32 %v3281_v45, 0.0 }
 0x448   : > { %v3473_v51 = vmax.f32 %v3283_v47, 0.0 }
 0x449   : > { %v3474_v0 = vmax.f32 %v3285_v49, 0.0 }
 0x44a   : > { %v3590_v53 = vpack.c.bf16 %v3473_v51, %v3471_v50 }
 0x44b   : > { %v3288_v54 = vpop.f32.mrb[216].mxu1  ;;  %v3591_v3 = vpack.c.bf16 %v3474_v0, %v3472_v52 }
 0x44c   : > { %v3289_v55 = vadd.f32 %v3288_v54, %v12915_v4  ;;  %v3290_v56 = vpop.f32.mrb[217].mxu1 }
 0x44d   : > { %v3291_v57 = vadd.f32 %v3290_v56, %v12919_v6  ;;  %v3292_v58 = vpop.f32.mrb[218].mxu1  ;;  %4027 = vmatprep.mubr.bf16.mxu0 %v3591_v3 }
 0x44e   : > { %v3293_v59 = vadd.f32 %v3292_v58, %v12915_v4  ;;  %v3294_v60 = vpop.f32.mrb[219].mxu1  ;;  %4028 = vmatmul.mubr.bf16.gmra.mrb[84].mxu0 %v3590_v53  ;;  %v3475_v62 = vmax.f32 %v3289_v55, 0.0 }
 0x44f   : > { %v3295_v61 = vadd.f32 %v3294_v60, %v12919_v6  ;;  %v3476_v1 = vmax.f32 %v3291_v57, 0.0 }
 0x450   : > { %v3477_v63 = vmax.f32 %v3293_v59, 0.0 }
 0x451   : > { %v3478_v5 = vmax.f32 %v3295_v61, 0.0 }
 0x452   : > { %v3592_v7 = vpack.c.bf16 %v3477_v63, %v3475_v62 }
 0x453   : > { %v3298_v8 = vpop.f32.mrb[220].mxu1  ;;  %v3593_v9 = vpack.c.bf16 %v3478_v5, %v3476_v1 }
 0x454   : > { %v3299_v10 = vadd.f32 %v3298_v8, %v12915_v4  ;;  %v3300_v11 = vpop.f32.mrb[221].mxu1 }
 0x455   : > { %v3301_v12 = vadd.f32 %v3300_v11, %v12919_v6  ;;  %v3302_v13 = vpop.f32.mrb[222].mxu1  ;;  %4037 = vmatprep.mubr.bf16.mxu0 %v3593_v9  ;;  %v10323_v9 = vld [vmem:[%s16204_s4 + $0x8] sm:$0x3] }
 0x456   : > { %v3303_v14 = vadd.f32 %v3302_v13, %v12915_v4  ;;  %v3304_v15 = vpop.f32.mrb[223].mxu1  ;;  %4038 = vmatmul.mubr.bf16.gmra.mrb[88].mxu0 %v3592_v7  ;;  %v3479_v17 = vmax.f32 %v3299_v10, 0.0 }
 0x457   : > { %v3305_v16 = vadd.f32 %v3304_v15, %v12919_v6  ;;  %v3480_v18 = vmax.f32 %v3301_v12, 0.0 }
 0x458   : > { %v3481_v38 = vmax.f32 %v3303_v14, 0.0 }
 0x459   : > { %v3482_v19 = vmax.f32 %v3305_v16, 0.0  ;;  %v13091_v16 = vrot.slane %v10323_v9, %v12208_v33 }
 0x45a   : > { %v3594_v32 = vpack.c.bf16 %v3481_v38, %v3479_v17  ;;  %v13095_v38 = vrot.slane %v10323_v9, %v12214_v35 }
 0x45b   : > { %v3308_v39 = vpop.f32.mrb[224].mxu1  ;;  %v3595_v20 = vpack.c.bf16 %v3482_v19, %v3480_v18 }
 0x45c   : > { %v3309_v36 = vadd.f32 %v3308_v39, %v12915_v4  ;;  %v3310_v21 = vpop.f32.mrb[225].mxu1 }
 0x45d   : > { %v3311_v22 = vadd.f32 %v3310_v21, %v12919_v6  ;;  %v3312_v23 = vpop.f32.mrb[226].mxu1  ;;  %4047 = vmatprep.mubr.bf16.mxu0 %v3595_v20 }
 0x45e   : > { %v3313_v24 = vadd.f32 %v3312_v23, %v12915_v4  ;;  %v3314_v25 = vpop.f32.mrb[227].mxu1  ;;  %4048 = vmatmul.mubr.bf16.gmra.mrb[92].mxu0 %v3594_v32  ;;  %v3483_v27 = vmax.f32 %v3309_v36, 0.0 }
 0x45f   : > { %v3315_v26 = vadd.f32 %v3314_v25, %v12919_v6  ;;  %v3484_v29 = vmax.f32 %v3311_v22, 0.0 }
 0x460   : > { %v3485_v28 = vmax.f32 %v3313_v24, 0.0 }
 0x461   : > { %v3486_v34 = vmax.f32 %v3315_v26, 0.0 }
 0x462   : > { %v3596_v37 = vpack.c.bf16 %v3485_v28, %v3483_v27 }
 0x463   : > { %v3318_v40 = vpop.f32.mrb[228].mxu1  ;;  %v3597_v41 = vpack.c.bf16 %v3486_v34, %v3484_v29 }
 0x464   : > { %v3319_v42 = vadd.f32 %v3318_v40, %v12915_v4  ;;  %v3320_v43 = vpop.f32.mrb[229].mxu1 }
 0x465   : > { %v3321_v44 = vadd.f32 %v3320_v43, %v12919_v6  ;;  %v3322_v45 = vpop.f32.mrb[230].mxu1  ;;  %4057 = vmatprep.mubr.bf16.mxu0 %v3597_v41 }
 0x466   : > { %v3323_v46 = vadd.f32 %v3322_v45, %v12915_v4  ;;  %v3324_v47 = vpop.f32.mrb[231].mxu1  ;;  %4058 = vmatmul.mubr.bf16.gmra.mrb[96].mxu0 %v3596_v37  ;;  %v3487_v49 = vmax.f32 %v3319_v42, 0.0 }
 0x467   : > { %v3325_v48 = vadd.f32 %v3324_v47, %v12919_v6  ;;  %v3488_v51 = vmax.f32 %v3321_v44, 0.0 }
 0x468   : > { %v3489_v50 = vmax.f32 %v3323_v46, 0.0 }
 0x469   : > { %v3490_v52 = vmax.f32 %v3325_v48, 0.0 }
 0x46a   : > { %v3598_v0 = vpack.c.bf16 %v3489_v50, %v3487_v49 }
 0x46b   : > { %v3328_v53 = vpop.f32.mrb[232].mxu1  ;;  %v3599_v54 = vpack.c.bf16 %v3490_v52, %v3488_v51 }
 0x46c   : > { %v3329_v3 = vadd.f32 %v3328_v53, %v12915_v4  ;;  %v3330_v55 = vpop.f32.mrb[233].mxu1 }
 0x46d   : > { %v3331_v56 = vadd.f32 %v3330_v55, %v12919_v6  ;;  %v3332_v57 = vpop.f32.mrb[234].mxu1  ;;  %4067 = vmatprep.mubr.bf16.mxu0 %v3599_v54 }
 0x46e   : > { %v3333_v58 = vadd.f32 %v3332_v57, %v12915_v4  ;;  %v3334_v59 = vpop.f32.mrb[235].mxu1  ;;  %4068 = vmatmul.mubr.bf16.gmra.mrb[100].mxu0 %v3598_v0  ;;  %v3491_v61 = vmax.f32 %v3329_v3, 0.0  ;;  %v11324_v3 = vld [vmem:[%s16202_s2] ss:$8 sps:$4 sm:$0xff]  }
 0x46f   : > { %v3335_v60 = vadd.f32 %v3334_v59, %v12919_v6  ;;  %v3492_v63 = vmax.f32 %v3331_v56, 0.0 }
 0x470   : > { %v3493_v62 = vmax.f32 %v3333_v58, 0.0  ;;  %v11329_v58 = vld [vmem:[%s16202_s2 + $0x14] ss:$8 sps:$4 sm:$0xff]  }
 0x471   : > { %v3494_v1 = vmax.f32 %v3335_v60, 0.0 }
 0x472   : > { %v3600_v5 = vpack.c.bf16 %v3493_v62, %v3491_v61 }
 0x473   : > { %v3338_v7 = vpop.f32.mrb[236].mxu1  ;;  %v3601_v8 = vpack.c.bf16 %v3494_v1, %v3492_v63 }
 0x474   : > { %v3339_v10 = vadd.f32 %v3338_v7, %v12915_v4  ;;  %v3340_v11 = vpop.f32.mrb[237].mxu1 }
 0x475   : > { %v3341_v12 = vadd.f32 %v3340_v11, %v12919_v6  ;;  %v3342_v13 = vpop.f32.mrb[238].mxu1  ;;  %4077 = vmatprep.mubr.bf16.mxu0 %v3601_v8  ;;  %v11327_v11 = vld [vmem:[%s16202_s2 + $0x10] ss:$8 sps:$4 sm:$0xff]  }
 0x476   : > { %v3343_v14 = vadd.f32 %v3342_v13, %v12915_v4  ;;  %v3344_v15 = vpop.f32.mrb[239].mxu1  ;;  %4078 = vmatmul.mubr.bf16.gmra.mrb[104].mxu0 %v3600_v5  ;;  %v3495_v18 = vmax.f32 %v3339_v10, 0.0 }
 0x477   : > { %v3345_v17 = vadd.f32 %v3344_v15, %v12919_v6  ;;  %v3496_v32 = vmax.f32 %v3341_v12, 0.0 }
 0x478   : > { %v3497_v19 = vmax.f32 %v3343_v14, 0.0 }
 0x479   : > { %v3498_v39 = vmax.f32 %v3345_v17, 0.0  ;;  %v3819_v20 = vpop.f32.mrb[0].mxu0  ;;  %v11332_v17 = vld [vmem:[%s16202_s2 + $0x24] ss:$8 sps:$4 sm:$0xff]  }
 0x47a   : > { %v3602_v36 = vpack.c.bf16 %v3497_v19, %v3495_v18  ;;  %v3820_v21 = vadd.f32 %v3819_v20, %v13091_v16  ;;  %v3821_v22 = vpop.f32.mrb[1].mxu0 }
 0x47b   : > { %v3822_v23 = vadd.f32 %v3821_v22, %v13095_v38  ;;  %v3348_v24 = vpop.f32.mrb[240].mxu1  ;;  %v3823_v25 = vpop.f32.mrb[2].mxu0  ;;  %v3603_v26 = vpack.c.bf16 %v3498_v39, %v3496_v32 }
 0x47c   : > { %v3349_v27 = vadd.f32 %v3348_v24, %v12915_v4  ;;  %v3824_v28 = vadd.f32 %v3823_v25, %v13091_v16  ;;  %v3350_v29 = vpop.f32.mrb[241].mxu1  ;;  %v3825_v34 = vpop.f32.mrb[3].mxu0  ;;  %v4138_v42 = vmax.f32 %v3820_v21, 0.0  ;;  %v11330_v25 = vld [vmem:[%s16202_s2 + $0x20] ss:$8 sps:$4 sm:$0xff]  }
 0x47d   : > { %v3351_v37 = vadd.f32 %v3350_v29, %v12919_v6  ;;  %v3826_v40 = vadd.f32 %v3825_v34, %v13095_v38  ;;  %v3352_v41 = vpop.f32.mrb[242].mxu1  ;;  %4087 = vmatprep.mubr.bf16.mxu0 %v3603_v26  ;;  %v4139_v46 = vmax.f32 %v3822_v23, 0.0  ;;  %v11335_v29 = vld [vmem:[%s16202_s2 + $0x34] ss:$8 sps:$4 sm:$0xff]  }
 0x47e   : > { %v4140_v43 = vmax.f32 %v3824_v28, 0.0  ;;  %v3353_v44 = vadd.f32 %v3352_v41, %v12915_v4  ;;  %v3354_v45 = vpop.f32.mrb[243].mxu1  ;;  %4088 = vmatmul.mubr.bf16.gmra.mrb[108].mxu0 %v3602_v36  ;;  %v3499_v49 = vmax.f32 %v3349_v27, 0.0 }
 0x47f   : > { %v4141_v47 = vmax.f32 %v3826_v40, 0.0  ;;  %v3355_v48 = vadd.f32 %v3354_v45, %v12919_v6  ;;  %v3500_v52 = vmax.f32 %v3351_v37, 0.0 }
 0x480   : > { %v4315_v50 = vpack.c.bf16 %v4140_v43, %v4138_v42  ;;  %v3501_v51 = vmax.f32 %v3353_v44, 0.0 }
 0x481   : > { %v3502_v0 = vmax.f32 %v3355_v48, 0.0  ;;  %v3829_v53 = vpop.f32.mrb[4].mxu0  ;;  %v4316_v54 = vpack.c.bf16 %v4141_v47, %v4139_v46 }
 0x482   : > { %v3604_v55 = vpack.c.bf16 %v3501_v51, %v3499_v49  ;;  %v3830_v56 = vadd.f32 %v3829_v53, %v13091_v16  ;;  %v3831_v57 = vpop.f32.mrb[5].mxu0  ;;  %v11333_v49 = vld [vmem:[%s16202_s2 + $0x30] ss:$8 sps:$4 sm:$0xff]   ;;  %v11338_v53 = vld [vmem:[%s16202_s2 + $0x44] ss:$8 sps:$4 sm:$0xff]  }
 0x483   : > { %v3832_v59 = vadd.f32 %v3831_v57, %v13095_v38  ;;  %v3358_v60 = vpop.f32.mrb[244].mxu1  ;;  %v3833_v61 = vpop.f32.mrb[6].mxu0  ;;  %4571 = vmatprep.mubr.bf16.mxu1 %v4316_v54  ;;  %v3605_v62 = vpack.c.bf16 %v3502_v0, %v3500_v52 }
 0x484   : > { %v3359_v63 = vadd.f32 %v3358_v60, %v12915_v4  ;;  %v3834_v1 = vadd.f32 %v3833_v61, %v13091_v16  ;;  %v3360_v5 = vpop.f32.mrb[245].mxu1  ;;  %v3835_v7 = vpop.f32.mrb[7].mxu0  ;;  %4572 = vmatmul.mubr.bf16.vlgmr.msra.gmra.mrb[0].mxu1 %v4315_v50  ;;  %v4142_v12 = vmax.f32 %v3830_v56, 0.0 }
 0x485   : > { %v3361_v8 = vadd.f32 %v3360_v5, %v12919_v6  ;;  %v3836_v9 = vadd.f32 %v3835_v7, %v13095_v38  ;;  %4973 = vmatpush1.bf16.msra.mxu1 %v11324_v3  ;;  %v3362_v10 = vpop.f32.mrb[246].mxu1  ;;  %4097 = vmatprep.mubr.bf16.mxu0 %v3605_v62  ;;  %v4143_v18 = vmax.f32 %v3832_v59, 0.0 }
 0x486   : > { %v4144_v13 = vmax.f32 %v3834_v1, 0.0  ;;  %v3363_v14 = vadd.f32 %v3362_v10, %v12915_v4  ;;  %v3364_v15 = vpop.f32.mrb[247].mxu1  ;;  %4098 = vmatmul.mubr.bf16.gmra.mrb[112].mxu0 %v3604_v55  ;;  %4974 = vmatprep.subr.bf16.mxu1 %v11329_v58  ;;  %v3503_v39 = vmax.f32 %v3359_v63, 0.0  ;;  %v11336_v63 = vld [vmem:[%s16202_s2 + $0x40] ss:$8 sps:$4 sm:$0xff]  }
 0x487   : > { %v4145_v19 = vmax.f32 %v3836_v9, 0.0  ;;  %v3365_v32 = vadd.f32 %v3364_v15, %v12919_v6  ;;  %v3504_v21 = vmax.f32 %v3361_v8, 0.0 }
 0x488   : > { %v4317_v20 = vpack.c.bf16 %v4144_v13, %v4142_v12  ;;  %v3505_v36 = vmax.f32 %v3363_v14, 0.0 }
 0x489   : > { %v3506_v22 = vmax.f32 %v3365_v32, 0.0  ;;  %v3839_v23 = vpop.f32.mrb[8].mxu0  ;;  %v4318_v24 = vpack.c.bf16 %v4145_v19, %v4143_v18  ;;  %4975 = vmatpush1.bf16.msra.mxu1 %v11327_v11 }
 0x48a   : > { %v3606_v26 = vpack.c.bf16 %v3505_v36, %v3503_v39  ;;  %v3840_v27 = vadd.f32 %v3839_v23, %v13091_v16  ;;  %v3841_v28 = vpop.f32.mrb[9].mxu0  ;;  %4976 = vmatprep.subr.bf16.mxu1 %v11332_v17 }
 0x48b   : > { %v3842_v34 = vadd.f32 %v3841_v28, %v13095_v38  ;;  %v3368_v37 = vpop.f32.mrb[248].mxu1  ;;  %v3843_v40 = vpop.f32.mrb[10].mxu0  ;;  %4581 = vmatprep.mubr.bf16.mxu1 %v4318_v24  ;;  %v3607_v41 = vpack.c.bf16 %v3506_v22, %v3504_v21 }
 0x48c   : > { %v3369_v42 = vadd.f32 %v3368_v37, %v12915_v4  ;;  %v3844_v43 = vadd.f32 %v3843_v40, %v13091_v16  ;;  %v3370_v44 = vpop.f32.mrb[249].mxu1  ;;  %v3845_v45 = vpop.f32.mrb[11].mxu0  ;;  %4582 = vmatmul.mubr.bf16.gmra.mrb[4].mxu1 %v4317_v20  ;;  %v4146_v50 = vmax.f32 %v3840_v27, 0.0 }
 0x48d   : > { %v3371_v46 = vadd.f32 %v3370_v44, %v12919_v6  ;;  %v3846_v47 = vadd.f32 %v3845_v45, %v13095_v38  ;;  %v3372_v48 = vpop.f32.mrb[250].mxu1  ;;  %4107 = vmatprep.mubr.bf16.mxu0 %v3607_v41  ;;  %4977 = vmatpush1.bf16.msra.mxu1 %v11330_v25  ;;  %v4147_v54 = vmax.f32 %v3842_v34, 0.0 }
 0x48e   : > { %v4148_v51 = vmax.f32 %v3844_v43, 0.0  ;;  %v3373_v52 = vadd.f32 %v3372_v48, %v12915_v4  ;;  %v3374_v0 = vpop.f32.mrb[251].mxu1  ;;  %4108 = vmatmul.mubr.bf16.gmra.mrb[116].mxu0 %v3606_v26  ;;  %4978 = vmatprep.subr.bf16.mxu1 %v11335_v29  ;;  %v3507_v56 = vmax.f32 %v3369_v42, 0.0 }
 0x48f   : > { %v4149_v3 = vmax.f32 %v3846_v47, 0.0  ;;  %v3375_v55 = vadd.f32 %v3374_v0, %v12919_v6  ;;  %v3508_v59 = vmax.f32 %v3371_v46, 0.0 }
 0x490   : > { %v4319_v57 = vpack.c.bf16 %v4148_v51, %v4146_v50  ;;  %v3509_v58 = vmax.f32 %v3373_v52, 0.0 }
 0x491   : > { %v3510_v60 = vmax.f32 %v3375_v55, 0.0  ;;  %v3849_v61 = vpop.f32.mrb[12].mxu0  ;;  %v4320_v62 = vpack.c.bf16 %v4149_v3, %v4147_v54  ;;  %4979 = vmatpush1.bf16.msra.mxu1 %v11333_v49 }
 0x492   : > { %v3608_v1 = vpack.c.bf16 %v3509_v58, %v3507_v56  ;;  %v3850_v5 = vadd.f32 %v3849_v61, %v13091_v16  ;;  %v3851_v7 = vpop.f32.mrb[13].mxu0  ;;  %4980 = vmatprep.subr.bf16.mxu1 %v11338_v53 }
 0x493   : > { %v3852_v8 = vadd.f32 %v3851_v7, %v13095_v38  ;;  %v3378_v9 = vpop.f32.mrb[252].mxu1  ;;  %v3853_v10 = vpop.f32.mrb[14].mxu0  ;;  %4591 = vmatprep.mubr.bf16.mxu1 %v4320_v62  ;;  %v3609_v11 = vpack.c.bf16 %v3510_v60, %v3508_v59 }
 0x494   : > { %v3379_v12 = vadd.f32 %v3378_v9, %v12915_v4  ;;  %v3854_v13 = vadd.f32 %v3853_v10, %v13091_v16  ;;  %v3380_v14 = vpop.f32.mrb[253].mxu1  ;;  %v3855_v15 = vpop.f32.mrb[15].mxu0  ;;  %4592 = vmatmul.mubr.bf16.gmra.mrb[8].mxu1 %v4319_v57  ;;  %v4150_v32 = vmax.f32 %v3850_v5, 0.0 }
 0x495   : > { %v3381_v17 = vadd.f32 %v3380_v14, %v12919_v6  ;;  %v3856_v18 = vadd.f32 %v3855_v15, %v13095_v38  ;;  %v3382_v19 = vpop.f32.mrb[254].mxu1  ;;  %4117 = vmatprep.mubr.bf16.mxu0 %v3609_v11  ;;  %4981 = vmatpush1.bf16.msra.mxu1 %v11336_v63  ;;  %v4151_v21 = vmax.f32 %v3852_v8, 0.0  ;;  %v11339_v63 = vld [vmem:[%s16202_s2 + $0x50] ss:$8 sps:$4 sm:$0xff]  }
 0x496   : > { %v4152_v39 = vmax.f32 %v3854_v13, 0.0  ;;  %v3383_v20 = vadd.f32 %v3382_v19, %v12915_v4  ;;  %v3384_v36 = vpop.f32.mrb[255].mxu1  ;;  %4118 = vmatmul.mubr.bf16.gmra.mrb[120].mxu0 %v3608_v1  ;;  %v3511_v24 = vmax.f32 %v3379_v12, 0.0  ;;  %v11341_v1 = vld [vmem:[%s16202_s2 + $0x54] ss:$8 sps:$4 sm:$0xff]  }
 0x497   : > { %v4153_v22 = vmax.f32 %v3856_v18, 0.0  ;;  %v3385_v23 = vadd.f32 %v3384_v36, %v12919_v6  ;;  %v3512_v27 = vmax.f32 %v3381_v17, 0.0  ;;  %4982 = vmatprep.subr.bf16.mxu1 %v11341_v1  ;;  %v11342_v1 = vld [vmem:[%s16202_s2 + $0x60] ss:$8 sps:$4 sm:$0xff]  }
 0x498   : > { %v4321_v25 = vpack.c.bf16 %v4152_v39, %v4150_v32  ;;  %v3513_v26 = vmax.f32 %v3383_v20, 0.0 }
 0x499   : > { %v3514_v28 = vmax.f32 %v3385_v23, 0.0  ;;  %v3859_v29 = vpop.f32.mrb[16].mxu0  ;;  %v4322_v34 = vpack.c.bf16 %v4153_v22, %v4151_v21  ;;  %4983 = vmatpush1.bf16.msra.mxu1 %v11339_v63 }
 0x49a   : > { %v3610_v37 = vpack.c.bf16 %v3513_v26, %v3511_v24  ;;  %v3860_v40 = vadd.f32 %v3859_v29, %v13091_v16  ;;  %v3861_v41 = vpop.f32.mrb[17].mxu0 }
 0x49b   : > { %v3862_v42 = vadd.f32 %v3861_v41, %v13095_v38  ;;  %v3863_v4 = vpop.f32.mrb[18].mxu0  ;;  %4601 = vmatprep.mubr.bf16.mxu1 %v4322_v34  ;;  %v3611_v43 = vpack.c.bf16 %v3514_v28, %v3512_v27 }
 0x49c   : > { %v3864_v44 = vadd.f32 %v3863_v4, %v13091_v16  ;;  %v3865_v45 = vpop.f32.mrb[19].mxu0  ;;  %4602 = vmatmul.mubr.bf16.gmra.mrb[12].mxu1 %v4321_v25  ;;  %v4154_v46 = vmax.f32 %v3860_v40, 0.0 }
 0x49d   : > { %v3866_v6 = vadd.f32 %v3865_v45, %v13095_v38  ;;  %4127 = vmatprep.mubr.bf16.mxu0 %v3611_v43  ;;  %v4155_v48 = vmax.f32 %v3862_v42, 0.0 }
 0x49e   : > { %v4156_v47 = vmax.f32 %v3864_v44, 0.0  ;;  %4128 = vmatmul.mubr.bf16.gmra.mrb[124].mxu0 %v3610_v37 }
 0x49f   : > { %v4157_v49 = vmax.f32 %v3866_v6, 0.0 }
 0x4a0   : > { %v4323_v50 = vpack.c.bf16 %v4156_v47, %v4154_v46 }
 0x4a1   : > { %v3869_v51 = vpop.f32.mrb[20].mxu0  ;;  %v4324_v52 = vpack.c.bf16 %v4157_v49, %v4155_v48 }
 0x4a2   : > { %v3870_v0 = vadd.f32 %v3869_v51, %v13091_v16  ;;  %v3871_v53 = vpop.f32.mrb[21].mxu0 }
 0x4a3   : > { %v3872_v54 = vadd.f32 %v3871_v53, %v13095_v38  ;;  %v3873_v3 = vpop.f32.mrb[22].mxu0  ;;  %4611 = vmatprep.mubr.bf16.mxu1 %v4324_v52 }
 0x4a4   : > { %v3874_v55 = vadd.f32 %v3873_v3, %v13091_v16  ;;  %v3875_v56 = vpop.f32.mrb[23].mxu0  ;;  %4612 = vmatmul.mubr.bf16.gmra.mrb[16].mxu1 %v4323_v50  ;;  %v4158_v58 = vmax.f32 %v3870_v0, 0.0 }
 0x4a5   : > { %v3876_v57 = vadd.f32 %v3875_v56, %v13095_v38  ;;  %v4159_v60 = vmax.f32 %v3872_v54, 0.0 }
 0x4a6   : > { %v4160_v59 = vmax.f32 %v3874_v55, 0.0 }
 0x4a7   : > { %v4161_v61 = vmax.f32 %v3876_v57, 0.0 }
 0x4a8   : > { %v4325_v62 = vpack.c.bf16 %v4160_v59, %v4158_v58 }
 0x4a9   : > { %v3879_v5 = vpop.f32.mrb[24].mxu0  ;;  %v4326_v7 = vpack.c.bf16 %v4161_v61, %v4159_v60 }
 0x4aa   : > { %v3880_v8 = vadd.f32 %v3879_v5, %v13091_v16  ;;  %v3881_v9 = vpop.f32.mrb[25].mxu0  ;;  %v11344_v5 = vld [vmem:[%s16202_s2 + $0x64] ss:$8 sps:$4 sm:$0xff]  }
 0x4ab   : > { %v3882_v10 = vadd.f32 %v3881_v9, %v13095_v38  ;;  %v3883_v11 = vpop.f32.mrb[26].mxu0  ;;  %4621 = vmatprep.mubr.bf16.mxu1 %v4326_v7  ;;  %4984 = vmatprep.subr.bf16.mxu1 %v11344_v5 }
 0x4ac   : > { %v3884_v12 = vadd.f32 %v3883_v11, %v13091_v16  ;;  %v3885_v13 = vpop.f32.mrb[27].mxu0  ;;  %4622 = vmatmul.mubr.bf16.gmra.mrb[20].mxu1 %v4325_v62  ;;  %v4162_v15 = vmax.f32 %v3880_v8, 0.0 }
 0x4ad   : > { %v3886_v14 = vadd.f32 %v3885_v13, %v13095_v38  ;;  %v4163_v18 = vmax.f32 %v3882_v10, 0.0  ;;  %4985 = vmatpush1.bf16.msra.mxu1 %v11342_v1 }
 0x4ae   : > { %v4164_v17 = vmax.f32 %v3884_v12, 0.0 }
 0x4af   : > { %v4165_v19 = vmax.f32 %v3886_v14, 0.0 }
 0x4b0   : > { %v4327_v32 = vpack.c.bf16 %v4164_v17, %v4162_v15 }
 0x4b1   : > { %v3889_v39 = vpop.f32.mrb[28].mxu0  ;;  %v4328_v20 = vpack.c.bf16 %v4165_v19, %v4163_v18 }
 0x4b2   : > { %v3890_v36 = vadd.f32 %v3889_v39, %v13091_v16  ;;  %v3891_v21 = vpop.f32.mrb[29].mxu0 }
 0x4b3   : > { %v3892_v22 = vadd.f32 %v3891_v21, %v13095_v38  ;;  %v3893_v23 = vpop.f32.mrb[30].mxu0  ;;  %4631 = vmatprep.mubr.bf16.mxu1 %v4328_v20 }
 0x4b4   : > { %v3894_v24 = vadd.f32 %v3893_v23, %v13091_v16  ;;  %v3895_v25 = vpop.f32.mrb[31].mxu0  ;;  %4632 = vmatmul.mubr.bf16.gmra.mrb[24].mxu1 %v4327_v32  ;;  %v4166_v27 = vmax.f32 %v3890_v36, 0.0 }
 0x4b5   : > { %v3896_v26 = vadd.f32 %v3895_v25, %v13095_v38  ;;  %v4167_v29 = vmax.f32 %v3892_v22, 0.0 }
 0x4b6   : > { %v4168_v28 = vmax.f32 %v3894_v24, 0.0 }
 0x4b7   : > { %v4169_v34 = vmax.f32 %v3896_v26, 0.0 }
 0x4b8   : > { %v4329_v37 = vpack.c.bf16 %v4168_v28, %v4166_v27 }
 0x4b9   : > { %v3899_v40 = vpop.f32.mrb[32].mxu0  ;;  %v4330_v41 = vpack.c.bf16 %v4169_v34, %v4167_v29 }
 0x4ba   : > { %v3900_v42 = vadd.f32 %v3899_v40, %v13091_v16  ;;  %v3901_v4 = vpop.f32.mrb[33].mxu0 }
 0x4bb   : > { %v3902_v43 = vadd.f32 %v3901_v4, %v13095_v38  ;;  %v3903_v44 = vpop.f32.mrb[34].mxu0  ;;  %4641 = vmatprep.mubr.bf16.mxu1 %v4330_v41 }
 0x4bc   : > { %v3904_v45 = vadd.f32 %v3903_v44, %v13091_v16  ;;  %v3905_v6 = vpop.f32.mrb[35].mxu0  ;;  %4642 = vmatmul.mubr.bf16.gmra.mrb[28].mxu1 %v4329_v37  ;;  %v4170_v47 = vmax.f32 %v3900_v42, 0.0 }
 0x4bd   : > { %v3906_v46 = vadd.f32 %v3905_v6, %v13095_v38  ;;  %v4171_v49 = vmax.f32 %v3902_v43, 0.0 }
 0x4be   : > { %v4172_v48 = vmax.f32 %v3904_v45, 0.0 }
 0x4bf   : > { %v4173_v50 = vmax.f32 %v3906_v46, 0.0 }
 0x4c0   : > { %v4331_v51 = vpack.c.bf16 %v4172_v48, %v4170_v47 }
 0x4c1   : > { %v3909_v52 = vpop.f32.mrb[36].mxu0  ;;  %v4332_v0 = vpack.c.bf16 %v4173_v50, %v4171_v49 }
 0x4c2   : > { %v3910_v53 = vadd.f32 %v3909_v52, %v13091_v16  ;;  %v3911_v54 = vpop.f32.mrb[37].mxu0 }
 0x4c3   : > { %v3912_v3 = vadd.f32 %v3911_v54, %v13095_v38  ;;  %v3913_v55 = vpop.f32.mrb[38].mxu0  ;;  %4651 = vmatprep.mubr.bf16.mxu1 %v4332_v0 }
 0x4c4   : > { %v3914_v56 = vadd.f32 %v3913_v55, %v13091_v16  ;;  %v3915_v57 = vpop.f32.mrb[39].mxu0  ;;  %4652 = vmatmul.mubr.bf16.gmra.mrb[32].mxu1 %v4331_v51  ;;  %v4174_v59 = vmax.f32 %v3910_v53, 0.0 }
 0x4c5   : > { %v3916_v58 = vadd.f32 %v3915_v57, %v13095_v38  ;;  %v4175_v61 = vmax.f32 %v3912_v3, 0.0 }
 0x4c6   : > { %v4176_v60 = vmax.f32 %v3914_v56, 0.0 }
 0x4c7   : > { %v4177_v62 = vmax.f32 %v3916_v58, 0.0 }
 0x4c8   : > { %v4333_v63 = vpack.c.bf16 %v4176_v60, %v4174_v59  ;;  %v11345_v59 = vld [vmem:[%s16203_s3 + $0x500] ss:$8 sps:$4 sm:$0xff]   ;;  %v11347_v60 = vld [vmem:[%s16203_s3 + $0x504] ss:$8 sps:$4 sm:$0xff]  }
 0x4c9   : > { %v3919_v7 = vpop.f32.mrb[40].mxu0  ;;  %v4334_v8 = vpack.c.bf16 %v4177_v62, %v4175_v61  ;;  %5864 = vmatprep.subr.bf16.mxu0 %v11347_v60 }
 0x4ca   : > { %v3920_v9 = vadd.f32 %v3919_v7, %v13091_v16  ;;  %v3921_v10 = vpop.f32.mrb[41].mxu0  ;;  %5865 = vmatpush1.bf16.msra.mxu0 %v11345_v59 }
 0x4cb   : > { %v3922_v11 = vadd.f32 %v3921_v10, %v13095_v38  ;;  %v3923_v12 = vpop.f32.mrb[42].mxu0  ;;  %4661 = vmatprep.mubr.bf16.mxu1 %v4334_v8  ;;  %v11348_v8 = vld [vmem:[%s16202_s2 + $0x70] ss:$8 sps:$4 sm:$0xff]  }
 0x4cc   : > { %v3924_v13 = vadd.f32 %v3923_v12, %v13091_v16  ;;  %v3925_v14 = vpop.f32.mrb[43].mxu0  ;;  %4662 = vmatmul.mubr.bf16.gmra.mrb[36].mxu1 %v4333_v63  ;;  %v4178_v17 = vmax.f32 %v3920_v9, 0.0  ;;  %v11350_v9 = vld [vmem:[%s16202_s2 + $0x74] ss:$8 sps:$4 sm:$0xff]  }
 0x4cd   : > { %v3926_v15 = vadd.f32 %v3925_v14, %v13095_v38  ;;  %v4179_v19 = vmax.f32 %v3922_v11, 0.0  ;;  %4986 = vmatprep.subr.bf16.mxu1 %v11350_v9 }
 0x4ce   : > { %v4180_v18 = vmax.f32 %v3924_v13, 0.0  ;;  %4987 = vmatpush1.bf16.msra.mxu1 %v11348_v8 }
 0x4cf   : > { %v4181_v32 = vmax.f32 %v3926_v15, 0.0 }
 0x4d0   : > { %v4335_v39 = vpack.c.bf16 %v4180_v18, %v4178_v17 }
 0x4d1   : > { %v3929_v20 = vpop.f32.mrb[44].mxu0  ;;  %v4336_v36 = vpack.c.bf16 %v4181_v32, %v4179_v19 }
 0x4d2   : > { %v3930_v21 = vadd.f32 %v3929_v20, %v13091_v16  ;;  %v3931_v22 = vpop.f32.mrb[45].mxu0 }
 0x4d3   : > { %v3932_v23 = vadd.f32 %v3931_v22, %v13095_v38  ;;  %v3933_v24 = vpop.f32.mrb[46].mxu0  ;;  %4671 = vmatprep.mubr.bf16.mxu1 %v4336_v36 }
 0x4d4   : > { %v3934_v25 = vadd.f32 %v3933_v24, %v13091_v16  ;;  %v3935_v26 = vpop.f32.mrb[47].mxu0  ;;  %4672 = vmatmul.mubr.bf16.gmra.mrb[40].mxu1 %v4335_v39  ;;  %v4182_v28 = vmax.f32 %v3930_v21, 0.0 }
 0x4d5   : > { %v3936_v27 = vadd.f32 %v3935_v26, %v13095_v38  ;;  %v4183_v34 = vmax.f32 %v3932_v23, 0.0 }
 0x4d6   : > { %v4184_v29 = vmax.f32 %v3934_v25, 0.0 }
 0x4d7   : > { %v4185_v37 = vmax.f32 %v3936_v27, 0.0 }
 0x4d8   : > { %v4337_v40 = vpack.c.bf16 %v4184_v29, %v4182_v28 }
 0x4d9   : > { %v3939_v41 = vpop.f32.mrb[48].mxu0  ;;  %v4338_v42 = vpack.c.bf16 %v4185_v37, %v4183_v34  ;;  %v11351_v34 = vld [vmem:[%s16203_s3 + $0x510] ss:$8 sps:$4 sm:$0xff]   ;;  %v11353_v37 = vld [vmem:[%s16203_s3 + $0x514] ss:$8 sps:$4 sm:$0xff]  }
 0x4da   : > { %v3940_v4 = vadd.f32 %v3939_v41, %v13091_v16  ;;  %v3941_v43 = vpop.f32.mrb[49].mxu0  ;;  %5866 = vmatprep.subr.bf16.mxu0 %v11353_v37 }
 0x4db   : > { %v3942_v44 = vadd.f32 %v3941_v43, %v13095_v38  ;;  %v3943_v45 = vpop.f32.mrb[50].mxu0  ;;  %4681 = vmatprep.mubr.bf16.mxu1 %v4338_v42  ;;  %5867 = vmatpush1.bf16.msra.mxu0 %v11351_v34 }
 0x4dc   : > { %v3944_v6 = vadd.f32 %v3943_v45, %v13091_v16  ;;  %v3945_v46 = vpop.f32.mrb[51].mxu0  ;;  %4682 = vmatmul.mubr.bf16.gmra.mrb[44].mxu1 %v4337_v40  ;;  %v4186_v48 = vmax.f32 %v3940_v4, 0.0 }
 0x4dd   : > { %v3946_v47 = vadd.f32 %v3945_v46, %v13095_v38  ;;  %v4187_v50 = vmax.f32 %v3942_v44, 0.0 }
 0x4de   : > { %v4188_v49 = vmax.f32 %v3944_v6, 0.0 }
 0x4df   : > { %v4189_v51 = vmax.f32 %v3946_v47, 0.0 }
 0x4e0   : > { %v4339_v52 = vpack.c.bf16 %v4188_v49, %v4186_v48 }
 0x4e1   : > { %v3949_v0 = vpop.f32.mrb[52].mxu0  ;;  %v4340_v53 = vpack.c.bf16 %v4189_v51, %v4187_v50 }
 0x4e2   : > { %v3950_v54 = vadd.f32 %v3949_v0, %v13091_v16  ;;  %v3951_v3 = vpop.f32.mrb[53].mxu0  ;;  %v11356_v0 = vld [vmem:[%s16203_s3 + $0x524] ss:$8 sps:$4 sm:$0xff]  }
 0x4e3   : > { %v3952_v55 = vadd.f32 %v3951_v3, %v13095_v38  ;;  %v3953_v56 = vpop.f32.mrb[54].mxu0  ;;  %4691 = vmatprep.mubr.bf16.mxu1 %v4340_v53  ;;  %5868 = vmatprep.subr.bf16.mxu0 %v11356_v0 }
 0x4e4   : > { %v3954_v57 = vadd.f32 %v3953_v56, %v13091_v16  ;;  %v3955_v58 = vpop.f32.mrb[55].mxu0  ;;  %4692 = vmatmul.mubr.bf16.gmra.mrb[48].mxu1 %v4339_v52  ;;  %v4190_v62 = vmax.f32 %v3950_v54, 0.0  ;;  %v11354_v52 = vld [vmem:[%s16203_s3 + $0x520] ss:$8 sps:$4 sm:$0xff]  }
 0x4e5   : > { %v3956_v61 = vadd.f32 %v3955_v58, %v13095_v38  ;;  %v4191_v1 = vmax.f32 %v3952_v55, 0.0  ;;  %5869 = vmatpush1.bf16.msra.mxu0 %v11354_v52 }
 0x4e6   : > { %v4192_v63 = vmax.f32 %v3954_v57, 0.0 }
 0x4e7   : > { %v4193_v5 = vmax.f32 %v3956_v61, 0.0 }
 0x4e8   : > { %v4341_v7 = vpack.c.bf16 %v4192_v63, %v4190_v62 }
 0x4e9   : > { %v3959_v10 = vpop.f32.mrb[56].mxu0  ;;  %v4342_v11 = vpack.c.bf16 %v4193_v5, %v4191_v1 }
 0x4ea   : > { %v3960_v12 = vadd.f32 %v3959_v10, %v13091_v16  ;;  %v3961_v13 = vpop.f32.mrb[57].mxu0 }
 0x4eb   : > { %v3962_v14 = vadd.f32 %v3961_v13, %v13095_v38  ;;  %v3963_v15 = vpop.f32.mrb[58].mxu0  ;;  %4701 = vmatprep.mubr.bf16.mxu1 %v4342_v11 }
 0x4ec   : > { %v3964_v17 = vadd.f32 %v3963_v15, %v13091_v16  ;;  %v3965_v18 = vpop.f32.mrb[59].mxu0  ;;  %4702 = vmatmul.mubr.bf16.gmra.mrb[52].mxu1 %v4341_v7  ;;  %v4194_v32 = vmax.f32 %v3960_v12, 0.0 }
 0x4ed   : > { %v3966_v19 = vadd.f32 %v3965_v18, %v13095_v38  ;;  %v4195_v20 = vmax.f32 %v3962_v14, 0.0 }
 0x4ee   : > { %v4196_v39 = vmax.f32 %v3964_v17, 0.0 }
 0x4ef   : > { %v4197_v36 = vmax.f32 %v3966_v19, 0.0 }
 0x4f0   : > { %v4343_v21 = vpack.c.bf16 %v4196_v39, %v4194_v32 }
 0x4f1   : > { %v3969_v22 = vpop.f32.mrb[60].mxu0  ;;  %v4344_v23 = vpack.c.bf16 %v4197_v36, %v4195_v20  ;;  %v11357_v20 = vld [vmem:[%s16203_s3 + $0x530] ss:$8 sps:$4 sm:$0xff]   ;;  %v11359_v36 = vld [vmem:[%s16203_s3 + $0x534] ss:$8 sps:$4 sm:$0xff]  }
 0x4f2   : > { %v3970_v24 = vadd.f32 %v3969_v22, %v13091_v16  ;;  %v3971_v25 = vpop.f32.mrb[61].mxu0  ;;  %5870 = vmatprep.subr.bf16.mxu0 %v11359_v36 }
 0x4f3   : > { %v3972_v26 = vadd.f32 %v3971_v25, %v13095_v38  ;;  %v3973_v27 = vpop.f32.mrb[62].mxu0  ;;  %4711 = vmatprep.mubr.bf16.mxu1 %v4344_v23  ;;  %5871 = vmatpush1.bf16.msra.mxu0 %v11357_v20 }
 0x4f4   : > { %v3974_v28 = vadd.f32 %v3973_v27, %v13091_v16  ;;  %v3975_v29 = vpop.f32.mrb[63].mxu0  ;;  %4712 = vmatmul.mubr.bf16.gmra.mrb[56].mxu1 %v4343_v21  ;;  %v4198_v41 = vmax.f32 %v3970_v24, 0.0 }
 0x4f5   : > { %v3976_v40 = vadd.f32 %v3975_v29, %v13095_v38  ;;  %v4199_v4 = vmax.f32 %v3972_v26, 0.0 }
 0x4f6   : > { %v4200_v42 = vmax.f32 %v3974_v28, 0.0 }
 0x4f7   : > { %v4201_v43 = vmax.f32 %v3976_v40, 0.0 }
 0x4f8   : > { %v4345_v44 = vpack.c.bf16 %v4200_v42, %v4198_v41 }
 0x4f9   : > { %v3979_v45 = vpop.f32.mrb[64].mxu0  ;;  %v4346_v6 = vpack.c.bf16 %v4201_v43, %v4199_v4 }
 0x4fa   : > { %v3980_v46 = vadd.f32 %v3979_v45, %v13091_v16  ;;  %v3981_v47 = vpop.f32.mrb[65].mxu0 }
 0x4fb   : > { %v3982_v48 = vadd.f32 %v3981_v47, %v13095_v38  ;;  %v3983_v49 = vpop.f32.mrb[66].mxu0  ;;  %4721 = vmatprep.mubr.bf16.mxu1 %v4346_v6 }
 0x4fc   : > { %v3984_v50 = vadd.f32 %v3983_v49, %v13091_v16  ;;  %v3985_v51 = vpop.f32.mrb[67].mxu0  ;;  %4722 = vmatmul.mubr.bf16.gmra.mrb[60].mxu1 %v4345_v44  ;;  %v4202_v54 = vmax.f32 %v3980_v46, 0.0 }
 0x4fd   : > { %v3986_v53 = vadd.f32 %v3985_v51, %v13095_v38  ;;  %v4203_v55 = vmax.f32 %v3982_v48, 0.0 }
 0x4fe   : > { %v4204_v3 = vmax.f32 %v3984_v50, 0.0 }
 0x4ff   : > { %v4205_v56 = vmax.f32 %v3986_v53, 0.0 }
 0x500   : > { %v4347_v57 = vpack.c.bf16 %v4204_v3, %v4202_v54  ;;  %v11360_v54 = vld [vmem:[%s16203_s3 + $0x540] ss:$8 sps:$4 sm:$0xff]   ;;  %v11362_v3 = vld [vmem:[%s16203_s3 + $0x544] ss:$8 sps:$4 sm:$0xff]  }
 0x501   : > { %v3989_v58 = vpop.f32.mrb[68].mxu0  ;;  %v4348_v59 = vpack.c.bf16 %v4205_v56, %v4203_v55  ;;  %5872 = vmatprep.subr.bf16.mxu0 %v11362_v3 }
 0x502   : > { %v3990_v60 = vadd.f32 %v3989_v58, %v13091_v16  ;;  %v3991_v61 = vpop.f32.mrb[69].mxu0  ;;  %5873 = vmatpush1.bf16.msra.mxu0 %v11360_v54 }
 0x503   : > { %v3992_v62 = vadd.f32 %v3991_v61, %v13095_v38  ;;  %v3993_v63 = vpop.f32.mrb[70].mxu0  ;;  %4731 = vmatprep.mubr.bf16.mxu1 %v4348_v59 }
 0x504   : > { %v3994_v1 = vadd.f32 %v3993_v63, %v13091_v16  ;;  %v3995_v5 = vpop.f32.mrb[71].mxu0  ;;  %4732 = vmatmul.mubr.bf16.gmra.mrb[64].mxu1 %v4347_v57  ;;  %v4206_v8 = vmax.f32 %v3990_v60, 0.0 }
 0x505   : > { %v3996_v7 = vadd.f32 %v3995_v5, %v13095_v38  ;;  %v4207_v10 = vmax.f32 %v3992_v62, 0.0 }
 0x506   : > { %v4208_v9 = vmax.f32 %v3994_v1, 0.0 }
 0x507   : > { %v4209_v11 = vmax.f32 %v3996_v7, 0.0 }
 0x508   : > { %v4349_v12 = vpack.c.bf16 %v4208_v9, %v4206_v8 }
 0x509   : > { %v3999_v13 = vpop.f32.mrb[72].mxu0  ;;  %v4350_v14 = vpack.c.bf16 %v4209_v11, %v4207_v10 }
 0x50a   : > { %v4000_v15 = vadd.f32 %v3999_v13, %v13091_v16  ;;  %v4001_v17 = vpop.f32.mrb[73].mxu0 }
 0x50b   : > { %v4002_v18 = vadd.f32 %v4001_v17, %v13095_v38  ;;  %v4003_v19 = vpop.f32.mrb[74].mxu0  ;;  %4741 = vmatprep.mubr.bf16.mxu1 %v4350_v14 }
 0x50c   : > { %v4004_v32 = vadd.f32 %v4003_v19, %v13091_v16  ;;  %v4005_v39 = vpop.f32.mrb[75].mxu0  ;;  %4742 = vmatmul.mubr.bf16.gmra.mrb[68].mxu1 %v4349_v12  ;;  %v4210_v22 = vmax.f32 %v4000_v15, 0.0 }
 0x50d   : > { %v4006_v21 = vadd.f32 %v4005_v39, %v13095_v38  ;;  %v4211_v24 = vmax.f32 %v4002_v18, 0.0 }
 0x50e   : > { %v4212_v23 = vmax.f32 %v4004_v32, 0.0 }
 0x50f   : > { %v4213_v25 = vmax.f32 %v4006_v21, 0.0 }
 0x510   : > { %v4351_v26 = vpack.c.bf16 %v4212_v23, %v4210_v22  ;;  %v11363_v22 = vld [vmem:[%s16203_s3 + $0x550] ss:$8 sps:$4 sm:$0xff]   ;;  %v11365_v23 = vld [vmem:[%s16203_s3 + $0x554] ss:$8 sps:$4 sm:$0xff]  }
 0x511   : > { %v4009_v27 = vpop.f32.mrb[76].mxu0  ;;  %v4352_v28 = vpack.c.bf16 %v4213_v25, %v4211_v24  ;;  %5874 = vmatprep.subr.bf16.mxu0 %v11365_v23 }
 0x512   : > { %v4010_v29 = vadd.f32 %v4009_v27, %v13091_v16  ;;  %v4011_v34 = vpop.f32.mrb[77].mxu0  ;;  %5875 = vmatpush1.bf16.msra.mxu0 %v11363_v22 }
 0x513   : > { %v4012_v37 = vadd.f32 %v4011_v34, %v13095_v38  ;;  %v4013_v40 = vpop.f32.mrb[78].mxu0  ;;  %4751 = vmatprep.mubr.bf16.mxu1 %v4352_v28 }
 0x514   : > { %v4014_v41 = vadd.f32 %v4013_v40, %v13091_v16  ;;  %v4015_v42 = vpop.f32.mrb[79].mxu0  ;;  %4752 = vmatmul.mubr.bf16.gmra.mrb[72].mxu1 %v4351_v26  ;;  %v4214_v43 = vmax.f32 %v4010_v29, 0.0 }
 0x515   : > { %v4016_v4 = vadd.f32 %v4015_v42, %v13095_v38  ;;  %v4215_v45 = vmax.f32 %v4012_v37, 0.0 }
 0x516   : > { %v4216_v44 = vmax.f32 %v4014_v41, 0.0 }
 0x517   : > { %v4217_v6 = vmax.f32 %v4016_v4, 0.0 }
 0x518   : > { %v4353_v46 = vpack.c.bf16 %v4216_v44, %v4214_v43 }
 0x519   : > { %v4019_v47 = vpop.f32.mrb[80].mxu0  ;;  %v4354_v48 = vpack.c.bf16 %v4217_v6, %v4215_v45 }
 0x51a   : > { %v4020_v49 = vadd.f32 %v4019_v47, %v13091_v16  ;;  %v4021_v50 = vpop.f32.mrb[81].mxu0 }
 0x51b   : > { %v4022_v51 = vadd.f32 %v4021_v50, %v13095_v38  ;;  %v4023_v52 = vpop.f32.mrb[82].mxu0  ;;  %4761 = vmatprep.mubr.bf16.mxu1 %v4354_v48 }
 0x51c   : > { %v4024_v0 = vadd.f32 %v4023_v52, %v13091_v16  ;;  %v4025_v53 = vpop.f32.mrb[83].mxu0  ;;  %4762 = vmatmul.mubr.bf16.gmra.mrb[76].mxu1 %v4353_v46  ;;  %v4218_v56 = vmax.f32 %v4020_v49, 0.0 }
 0x51d   : > { %v4026_v55 = vadd.f32 %v4025_v53, %v13095_v38  ;;  %v4219_v58 = vmax.f32 %v4022_v51, 0.0 }
 0x51e   : > { %v4220_v57 = vmax.f32 %v4024_v0, 0.0 }
 0x51f   : > { %v4221_v59 = vmax.f32 %v4026_v55, 0.0 }
 0x520   : > { %v4355_v60 = vpack.c.bf16 %v4220_v57, %v4218_v56  ;;  %v11366_v56 = vld [vmem:[%s16203_s3 + $0x560] ss:$8 sps:$4 sm:$0xff]   ;;  %v11368_v57 = vld [vmem:[%s16203_s3 + $0x564] ss:$8 sps:$4 sm:$0xff]  }
 0x521   : > { %v4029_v61 = vpop.f32.mrb[84].mxu0  ;;  %v4356_v62 = vpack.c.bf16 %v4221_v59, %v4219_v58  ;;  %5876 = vmatprep.subr.bf16.mxu0 %v11368_v57 }
 0x522   : > { %v4030_v63 = vadd.f32 %v4029_v61, %v13091_v16  ;;  %v4031_v1 = vpop.f32.mrb[85].mxu0  ;;  %5877 = vmatpush1.bf16.msra.mxu0 %v11366_v56 }
 0x523   : > { %v4032_v5 = vadd.f32 %v4031_v1, %v13095_v38  ;;  %v4033_v7 = vpop.f32.mrb[86].mxu0  ;;  %4771 = vmatprep.mubr.bf16.mxu1 %v4356_v62 }
 0x524   : > { %v4034_v8 = vadd.f32 %v4033_v7, %v13091_v16  ;;  %v4035_v9 = vpop.f32.mrb[87].mxu0  ;;  %4772 = vmatmul.mubr.bf16.gmra.mrb[80].mxu1 %v4355_v60  ;;  %v4222_v11 = vmax.f32 %v4030_v63, 0.0 }
 0x525   : > { %v4036_v10 = vadd.f32 %v4035_v9, %v13095_v38  ;;  %v4223_v13 = vmax.f32 %v4032_v5, 0.0 }
 0x526   : > { %v4224_v12 = vmax.f32 %v4034_v8, 0.0 }
 0x527   : > { %v4225_v14 = vmax.f32 %v4036_v10, 0.0 }
 0x528   : > { %v4357_v15 = vpack.c.bf16 %v4224_v12, %v4222_v11 }
 0x529   : > { %v4039_v17 = vpop.f32.mrb[88].mxu0  ;;  %v4358_v18 = vpack.c.bf16 %v4225_v14, %v4223_v13 }
 0x52a   : > { %v4040_v19 = vadd.f32 %v4039_v17, %v13091_v16  ;;  %v4041_v32 = vpop.f32.mrb[89].mxu0 }
 0x52b   : > { %v4042_v39 = vadd.f32 %v4041_v32, %v13095_v38  ;;  %v4043_v20 = vpop.f32.mrb[90].mxu0  ;;  %4781 = vmatprep.mubr.bf16.mxu1 %v4358_v18 }
 0x52c   : > { %v4044_v36 = vadd.f32 %v4043_v20, %v13091_v16  ;;  %v4045_v21 = vpop.f32.mrb[91].mxu0  ;;  %4782 = vmatmul.mubr.bf16.gmra.mrb[84].mxu1 %v4357_v15  ;;  %v4226_v25 = vmax.f32 %v4040_v19, 0.0 }
 0x52d   : > { %v4046_v24 = vadd.f32 %v4045_v21, %v13095_v38  ;;  %v4227_v27 = vmax.f32 %v4042_v39, 0.0 }
 0x52e   : > { %v4228_v26 = vmax.f32 %v4044_v36, 0.0 }
 0x52f   : > { %v4229_v28 = vmax.f32 %v4046_v24, 0.0 }
 0x530   : > { %v4359_v29 = vpack.c.bf16 %v4228_v26, %v4226_v25  ;;  %v11369_v25 = vld [vmem:[%s16203_s3 + $0x570] ss:$8 sps:$4 sm:$0xff]   ;;  %v11371_v26 = vld [vmem:[%s16203_s3 + $0x574] ss:$8 sps:$4 sm:$0xff]  }
 0x531   : > { %v4049_v34 = vpop.f32.mrb[92].mxu0  ;;  %v4360_v37 = vpack.c.bf16 %v4229_v28, %v4227_v27  ;;  %5878 = vmatprep.subr.bf16.mxu0 %v11371_v26 }
 0x532   : > { %v4050_v40 = vadd.f32 %v4049_v34, %v13091_v16  ;;  %v4051_v41 = vpop.f32.mrb[93].mxu0  ;;  %5879 = vmatpush1.bf16.msra.mxu0 %v11369_v25 }
 0x533   : > { %v4052_v42 = vadd.f32 %v4051_v41, %v13095_v38  ;;  %v4053_v4 = vpop.f32.mrb[94].mxu0  ;;  %4791 = vmatprep.mubr.bf16.mxu1 %v4360_v37 }
 0x534   : > { %v4054_v43 = vadd.f32 %v4053_v4, %v13091_v16  ;;  %v4055_v44 = vpop.f32.mrb[95].mxu0  ;;  %4792 = vmatmul.mubr.bf16.gmra.mrb[88].mxu1 %v4359_v29  ;;  %v4230_v6 = vmax.f32 %v4050_v40, 0.0 }
 0x535   : > { %v4056_v45 = vadd.f32 %v4055_v44, %v13095_v38  ;;  %v4231_v47 = vmax.f32 %v4052_v42, 0.0 }
 0x536   : > { %v4232_v46 = vmax.f32 %v4054_v43, 0.0 }
 0x537   : > { %v4233_v48 = vmax.f32 %v4056_v45, 0.0 }
 0x538   : > { %v4361_v49 = vpack.c.bf16 %v4232_v46, %v4230_v6 }
 0x539   : > { %v4059_v50 = vpop.f32.mrb[96].mxu0  ;;  %v4362_v51 = vpack.c.bf16 %v4233_v48, %v4231_v47 }
 0x53a   : > { %v4060_v52 = vadd.f32 %v4059_v50, %v13091_v16  ;;  %v4061_v0 = vpop.f32.mrb[97].mxu0 }
 0x53b   : > { %v4062_v53 = vadd.f32 %v4061_v0, %v13095_v38  ;;  %v4063_v54 = vpop.f32.mrb[98].mxu0  ;;  %4801 = vmatprep.mubr.bf16.mxu1 %v4362_v51 }
 0x53c   : > { %v4064_v3 = vadd.f32 %v4063_v54, %v13091_v16  ;;  %v4065_v55 = vpop.f32.mrb[99].mxu0  ;;  %4802 = vmatmul.mubr.bf16.gmra.mrb[92].mxu1 %v4361_v49  ;;  %v4234_v59 = vmax.f32 %v4060_v52, 0.0 }
 0x53d   : > { %v4066_v58 = vadd.f32 %v4065_v55, %v13095_v38  ;;  %v4235_v61 = vmax.f32 %v4062_v53, 0.0 }
 0x53e   : > { %v4236_v60 = vmax.f32 %v4064_v3, 0.0 }
 0x53f   : > { %v4237_v62 = vmax.f32 %v4066_v58, 0.0 }
 0x540   : > { %v4363_v63 = vpack.c.bf16 %v4236_v60, %v4234_v59  ;;  %v11372_v59 = vld [vmem:[%s16203_s3 + $0x580] ss:$8 sps:$4 sm:$0xff]   ;;  %v11374_v60 = vld [vmem:[%s16203_s3 + $0x584] ss:$8 sps:$4 sm:$0xff]  }
 0x541   : > { %v4069_v1 = vpop.f32.mrb[100].mxu0  ;;  %v4364_v5 = vpack.c.bf16 %v4237_v62, %v4235_v61  ;;  %5880 = vmatprep.subr.bf16.mxu0 %v11374_v60  ;;  %v11799_v60 = vld [vmem:[%s11972_s24 + $0x18] sm:$0xff]  }
 0x542   : > { %v4070_v7 = vadd.f32 %v4069_v1, %v13091_v16  ;;  %v4071_v8 = vpop.f32.mrb[101].mxu0  ;;  %5881 = vmatpush1.bf16.msra.mxu0 %v11372_v59  ;;  %v11798_v59 = vld [vmem:[%s11972_s24 + $0x10] sm:$0xff]  }
 0x543   : > { %v4072_v9 = vadd.f32 %v4071_v8, %v13095_v38  ;;  %v4073_v10 = vpop.f32.mrb[102].mxu0  ;;  %4811 = vmatprep.mubr.bf16.mxu1 %v4364_v5 }
 0x544   : > { %v4074_v11 = vadd.f32 %v4073_v10, %v13091_v16  ;;  %v4075_v12 = vpop.f32.mrb[103].mxu0  ;;  %4812 = vmatmul.mubr.bf16.gmra.mrb[96].mxu1 %v4363_v63  ;;  %v4238_v14 = vmax.f32 %v4070_v7, 0.0 }
 0x545   : > { %v4076_v13 = vadd.f32 %v4075_v12, %v13095_v38  ;;  %v4239_v17 = vmax.f32 %v4072_v9, 0.0 }
 0x546   : > { %v4240_v15 = vmax.f32 %v4074_v11, 0.0 }
 0x547   : > { %v4241_v18 = vmax.f32 %v4076_v13, 0.0 }
 0x548   : > { %v4365_v19 = vpack.c.bf16 %v4240_v15, %v4238_v14 }
 0x549   : > { %v4079_v32 = vpop.f32.mrb[104].mxu0  ;;  %v4366_v39 = vpack.c.bf16 %v4241_v18, %v4239_v17 }
 0x54a   : > { %v4080_v20 = vadd.f32 %v4079_v32, %v13091_v16  ;;  %v4081_v36 = vpop.f32.mrb[105].mxu0 }
 0x54b   : > { %v4082_v21 = vadd.f32 %v4081_v36, %v13095_v38  ;;  %v4083_v22 = vpop.f32.mrb[106].mxu0  ;;  %4821 = vmatprep.mubr.bf16.mxu1 %v4366_v39 }
 0x54c   : > { %v4084_v23 = vadd.f32 %v4083_v22, %v13091_v16  ;;  %v4085_v24 = vpop.f32.mrb[107].mxu0  ;;  %4822 = vmatmul.mubr.bf16.gmra.mrb[100].mxu1 %v4365_v19  ;;  %v4242_v28 = vmax.f32 %v4080_v20, 0.0 }
 0x54d   : > { %v4086_v27 = vadd.f32 %v4085_v24, %v13095_v38  ;;  %v4243_v34 = vmax.f32 %v4082_v21, 0.0 }
 0x54e   : > { %v4244_v29 = vmax.f32 %v4084_v23, 0.0 }
 0x54f   : > { %v4245_v37 = vmax.f32 %v4086_v27, 0.0 }
 0x550   : > { %v4367_v40 = vpack.c.bf16 %v4244_v29, %v4242_v28  ;;  %v11375_v28 = vld [vmem:[%s16203_s3 + $0x590] ss:$8 sps:$4 sm:$0xff]   ;;  %v11377_v29 = vld [vmem:[%s16203_s3 + $0x594] ss:$8 sps:$4 sm:$0xff]  }
 0x551   : > { %v4089_v41 = vpop.f32.mrb[108].mxu0  ;;  %v4368_v42 = vpack.c.bf16 %v4245_v37, %v4243_v34  ;;  %5882 = vmatprep.subr.bf16.mxu0 %v11377_v29  ;;  %v11820_v29 = vld [vmem:[%s11972_s24 + $0xc0] sm:$0xff]  }
 0x552   : > { %v4090_v4 = vadd.f32 %v4089_v41, %v13091_v16  ;;  %v4091_v43 = vpop.f32.mrb[109].mxu0  ;;  %5883 = vmatpush1.bf16.msra.mxu0 %v11375_v28  ;;  %v11819_v28 = vld [vmem:[%s11972_s24 + $0xb8] sm:$0xff]  }
 0x553   : > { %v4092_v44 = vadd.f32 %v4091_v43, %v13095_v38  ;;  %v4093_v45 = vpop.f32.mrb[110].mxu0  ;;  %4831 = vmatprep.mubr.bf16.mxu1 %v4368_v42 }
 0x554   : > { %v4094_v6 = vadd.f32 %v4093_v45, %v13091_v16  ;;  %v4095_v46 = vpop.f32.mrb[111].mxu0  ;;  %4832 = vmatmul.mubr.bf16.gmra.mrb[104].mxu1 %v4367_v40  ;;  %v4246_v48 = vmax.f32 %v4090_v4, 0.0 }
 0x555   : > { %v4096_v47 = vadd.f32 %v4095_v46, %v13095_v38  ;;  %v4247_v50 = vmax.f32 %v4092_v44, 0.0 }
 0x556   : > { %v4248_v49 = vmax.f32 %v4094_v6, 0.0 }
 0x557   : > { %v4249_v51 = vmax.f32 %v4096_v47, 0.0 }
 0x558   : > { %v4369_v52 = vpack.c.bf16 %v4248_v49, %v4246_v48 }
 0x559   : > { %v4099_v0 = vpop.f32.mrb[112].mxu0  ;;  %v4370_v53 = vpack.c.bf16 %v4249_v51, %v4247_v50 }
 0x55a   : > { %v4100_v54 = vadd.f32 %v4099_v0, %v13091_v16  ;;  %v4101_v3 = vpop.f32.mrb[113].mxu0 }
 0x55b   : > { %v4102_v55 = vadd.f32 %v4101_v3, %v13095_v38  ;;  %v4103_v56 = vpop.f32.mrb[114].mxu0  ;;  %4841 = vmatprep.mubr.bf16.mxu1 %v4370_v53 }
 0x55c   : > { %v4104_v57 = vadd.f32 %v4103_v56, %v13091_v16  ;;  %v4105_v58 = vpop.f32.mrb[115].mxu0  ;;  %4842 = vmatmul.mubr.bf16.gmra.mrb[108].mxu1 %v4369_v52  ;;  %v4250_v62 = vmax.f32 %v4100_v54, 0.0  ;;  %v11797_v56 = vld [vmem:[%s11972_s24 + $0x8] sm:$0xff]  }
 0x55d   : > { %v4106_v61 = vadd.f32 %v4105_v58, %v13095_v38  ;;  %v4251_v1 = vmax.f32 %v4102_v55, 0.0  ;;  %v11378_v55 = vld [vmem:[%s16203_s3 + $0x5a0] ss:$8 sps:$4 sm:$0xff]   ;;  %v11383_v58 = vld [vmem:[%s16203_s3 + $0x5b4] ss:$8 sps:$4 sm:$0xff]  }
 0x55e   : > { %v4252_v63 = vmax.f32 %v4104_v57, 0.0  ;;  %v11381_v57 = vld [vmem:[%s16203_s3 + $0x5b0] ss:$8 sps:$4 sm:$0xff]  }
 0x55f   : > { %v4253_v5 = vmax.f32 %v4106_v61, 0.0  ;;  %v11384_v61 = vld [vmem:[%s16203_s3 + $0x5c0] ss:$8 sps:$4 sm:$0xff]  }
 0x560   : > { %v4371_v7 = vpack.c.bf16 %v4252_v63, %v4250_v62  ;;  %v11386_v62 = vld [vmem:[%s16203_s3 + $0x5c4] ss:$8 sps:$4 sm:$0xff]  }
 0x561   : > { %v4109_v8 = vpop.f32.mrb[116].mxu0  ;;  %v4372_v9 = vpack.c.bf16 %v4253_v5, %v4251_v1  ;;  %v11800_v63 = vld [vmem:[%s11972_s24 + $0x20] sm:$0xff]   ;;  %v11801_v1 = vld [vmem:[%s11972_s24 + $0x28] sm:$0xff]   ;;  %v11387_v5 = vld [vmem:[%s16203_s3 + $0x5d0] ss:$8 sps:$4 sm:$0xff]  }
 0x562   : > { %v4110_v10 = vadd.f32 %v4109_v8, %v13091_v16  ;;  %v4111_v11 = vpop.f32.mrb[117].mxu0  ;;  %v11802_v8 = vld [vmem:[%s11972_s24 + $0x30] sm:$0xff]  }
 0x563   : > { %v4112_v12 = vadd.f32 %v4111_v11, %v13095_v38  ;;  %v4113_v13 = vpop.f32.mrb[118].mxu0  ;;  %4851 = vmatprep.mubr.bf16.mxu1 %v4372_v9  ;;  %v11803_v9 = vld [vmem:[%s11972_s24 + $0x38] sm:$0xff]   ;;  %v11392_v11 = vld [vmem:[%s16203_s3 + $0x5e4] ss:$8 sps:$4 sm:$0xff]  }
 0x564   : > { %v4114_v14 = vadd.f32 %v4113_v13, %v13091_v16  ;;  %v4115_v15 = vpop.f32.mrb[119].mxu0  ;;  %4852 = vmatmul.mubr.bf16.gmra.mrb[112].mxu1 %v4371_v7  ;;  %v4254_v18 = vmax.f32 %v4110_v10, 0.0  ;;  %v11389_v7 = vld [vmem:[%s16203_s3 + $0x5d4] ss:$8 sps:$4 sm:$0xff]   ;;  %v11390_v10 = vld [vmem:[%s16203_s3 + $0x5e0] ss:$8 sps:$4 sm:$0xff]  }
 0x565   : > { %v4116_v17 = vadd.f32 %v4115_v15, %v13095_v38  ;;  %v4255_v32 = vmax.f32 %v4112_v12, 0.0  ;;  %v11804_v12 = vld [vmem:[%s11972_s24 + $0x40] sm:$0xff]   ;;  %v11805_v13 = vld [vmem:[%s11972_s24 + $0x48] sm:$0xff]   ;;  %v11395_v15 = vld [vmem:[%s16203_s3 + $0x5f4] ss:$8 sps:$4 sm:$0xff]  }
 0x566   : > { %v4256_v19 = vmax.f32 %v4114_v14, 0.0  ;;  %v11393_v14 = vld [vmem:[%s16203_s3 + $0x5f0] ss:$8 sps:$4 sm:$0xff]  }
 0x567   : > { %v4257_v39 = vmax.f32 %v4116_v17, 0.0  ;;  %v11806_v17 = vld [vmem:[%s11972_s24 + $0x50] sm:$0xff]  }
 0x568   : > { %v4373_v20 = vpack.c.bf16 %v4256_v19, %v4254_v18  ;;  %v11807_v18 = vld [vmem:[%s11972_s24 + $0x58] sm:$0xff]   ;;  %v11808_v19 = vld [vmem:[%s11972_s24 + $0x60] sm:$0xff]  }
 0x569   : > { %v4119_v36 = vpop.f32.mrb[120].mxu0  ;;  %v4374_v21 = vpack.c.bf16 %v4257_v39, %v4255_v32  ;;  %v11398_v32 = vld [vmem:[%s16203_s3 + $0x604] ss:$8 sps:$4 sm:$0xff]  }
 0x56a   : > { %v4120_v22 = vadd.f32 %v4119_v36, %v13091_v16  ;;  %v4121_v23 = vpop.f32.mrb[121].mxu0  ;;  %v11809_v39 = vld [vmem:[%s11972_s24 + $0x68] sm:$0xff]   ;;  %v11811_v36 = vld [vmem:[%s11972_s24 + $0x78] sm:$0xff]  }
 0x56b   : > { %v4122_v24 = vadd.f32 %v4121_v23, %v13095_v38  ;;  %v4123_v25 = vpop.f32.mrb[122].mxu0  ;;  %4861 = vmatprep.mubr.bf16.mxu1 %v4374_v21  ;;  %v11812_v21 = vld [vmem:[%s11972_s24 + $0x80] sm:$0xff]   ;;  %v11814_v23 = vld [vmem:[%s11972_s24 + $0x90] sm:$0xff]  }
 0x56c   : > { %v4124_v26 = vadd.f32 %v4123_v25, %v13091_v16  ;;  %v4125_v27 = vpop.f32.mrb[123].mxu0  ;;  %4862 = vmatmul.mubr.bf16.gmra.mrb[116].mxu1 %v4373_v20  ;;  %v4258_v37 = vmax.f32 %v4120_v22, 0.0  ;;  %v11810_v20 = vld [vmem:[%s11972_s24 + $0x70] sm:$0xff]   ;;  %v11813_v22 = vld [vmem:[%s11972_s24 + $0x88] sm:$0xff]   ;;  %v11816_v25 = vld [vmem:[%s11972_s24 + $0xa0] sm:$0xff]  }
 0x56d   : > { %v4126_v34 = vadd.f32 %v4125_v27, %v13095_v38  ;;  %v4259_v41 = vmax.f32 %v4122_v24, 0.0  ;;  %v11815_v24 = vld [vmem:[%s11972_s24 + $0x98] sm:$0xff]   ;;  %v11818_v27 = vld [vmem:[%s11972_s24 + $0xb0] sm:$0xff]  }
 0x56e   : > { %v4260_v40 = vmax.f32 %v4124_v26, 0.0  ;;  %v11817_v26 = vld [vmem:[%s11972_s24 + $0xa8] sm:$0xff]  }
 0x56f   : > { %v4261_v42 = vmax.f32 %v4126_v34, 0.0  ;;  %v11821_v34 = vld [vmem:[%s11972_s24 + $0xc8] sm:$0xff]  }
 0x570   : > { %v4375_v4 = vpack.c.bf16 %v4260_v40, %v4258_v37  ;;  %v10436_v37 = vld [vmem:[%s16204_s4 + $0xa] sm:$0x3]  ;;  %v11822_v40 = vld [vmem:[%s11972_s24 + $0xd0] sm:$0xff]  }
 0x571   : > { %v4129_v43 = vpop.f32.mrb[124].mxu0  ;;  %v4376_v44 = vpack.c.bf16 %v4261_v42, %v4259_v41  ;;  %v13443_v41 = vrot.slane %v10436_v37, %v12208_v33  ;;  %v13446_v42 = vrot.slane %v10436_v37, %v12214_v35 }
 0x572   : > { %v4130_v45 = vadd.f32 %v4129_v43, %v13091_v16  ;;  %v4131_v6 = vpop.f32.mrb[125].mxu0 }
 0x573   : > { %v4132_v46 = vadd.f32 %v4131_v6, %v13095_v38  ;;  %v4133_v47 = vpop.f32.mrb[126].mxu0  ;;  %4871 = vmatprep.mubr.bf16.mxu1 %v4376_v44 }
 0x574   : > { %v4134_v48 = vadd.f32 %v4133_v47, %v13091_v16  ;;  %v4135_v49 = vpop.f32.mrb[127].mxu0  ;;  %4872 = vmatmul.mubr.bf16.gmra.mrb[120].mxu1 %v4375_v4  ;;  %v4262_v51 = vmax.f32 %v4130_v45, 0.0  ;;  %v11380_v16 = vld [vmem:[%s16203_s3 + $0x5a4] ss:$8 sps:$4 sm:$0xff]  }
 0x575   : > { %v4136_v50 = vadd.f32 %v4135_v49, %v13095_v38  ;;  %v4263_v0 = vmax.f32 %v4132_v46, 0.0  ;;  %5884 = vmatprep.subr.bf16.mxu0 %v11380_v16  ;;  %v11796_v38 = vld [vmem:[%s11972_s24] sm:$0xff]  }
 0x576   : > { %v4264_v52 = vmax.f32 %v4134_v48, 0.0  ;;  %5885 = vmatpush1.bf16.msra.mxu0 %v11378_v55  ;;  %v11396_v55 = vld [vmem:[%s16203_s3 + $0x600] ss:$8 sps:$4 sm:$0xff]  }
 0x577   : > { %v4265_v53 = vmax.f32 %v4136_v50, 0.0  ;;  %5886 = vmatprep.subr.bf16.mxu0 %v11383_v58 }
 0x578   : > { %v4377_v54 = vpack.c.bf16 %v4264_v52, %v4262_v51  ;;  %v11823_v51 = vld [vmem:[%s11972_s24 + $0xd8] sm:$0xff]  }
 0x579   : > { %v4378_v3 = vpack.c.bf16 %v4265_v53, %v4263_v0 }
 0x57a   : > { %5887 = vmatpush1.bf16.msra.mxu0 %v11381_v57 }
 0x57b   : > { %4881 = vmatprep.mubr.bf16.mxu1 %v4378_v3  ;;  %5888 = vmatprep.subr.bf16.mxu0 %v11386_v62  ;;  %v11399_v62 = vld [vmem:[%s16203_s3 + $0x610] ss:$8 sps:$4 sm:$0xff]  }
 0x57c   : > { %4882 = vmatmul.mubr.bf16.gmra.mrb[124].mxu1 %v4377_v54 }
 0x57d   : > { %5004 = vmatprep.mubr.bf16.mxu1 %v11870_v2 }
 0x57e   : > { %5889 = vmatpush1.bf16.msra.mxu0 %v11384_v61 }
 0x57f   : > { %5890 = vmatprep.subr.bf16.mxu0 %v11389_v7  ;;  %v11404_v7 = vld [vmem:[%s16203_s3 + $0x624] ss:$8 sps:$4 sm:$0xff]  }
 0x582   : > { %5891 = vmatpush1.bf16.msra.mxu0 %v11387_v5  ;;  %v11824_v5 = vld [vmem:[%s11972_s24 + $0xe0] sm:$0xff]  }
 0x583   : > { %5892 = vmatprep.subr.bf16.mxu0 %v11392_v11 }
 0x584   : > { %5005 = vmatmul.mubr.bf16.vlgmr.msra.gmra.mrb[0].mxu1 %v11796_v38 }
 0x585   : > { %5014 = vmatprep.mubr.bf16.mxu1 %v11870_v2 }
 0x586   : > { %5893 = vmatpush1.bf16.msra.mxu0 %v11390_v10 }
 0x587   : > { %5894 = vmatprep.subr.bf16.mxu0 %v11395_v15 }
 0x58a   : > { %5895 = vmatpush1.bf16.msra.mxu0 %v11393_v14 }
 0x58b   : > { %6615 = vmatprep.subr.bf16.mxu0 %v11398_v32 }
 0x58c   : > { %5015 = vmatmul.mubr.bf16.gmra.mrb[4].mxu1 %v11797_v56  ;;  %v11401_v56 = vld [vmem:[%s16203_s3 + $0x614] ss:$8 sps:$4 sm:$0xff]  }
 0x58d   : > { %5024 = vmatprep.mubr.bf16.mxu1 %v11870_v2 }
 0x594   : > { %5025 = vmatmul.mubr.bf16.gmra.mrb[8].mxu1 %v11798_v59 }
 0x595   : > { %5034 = vmatprep.mubr.bf16.mxu1 %v11870_v2 }
 0x59c   : > { %5035 = vmatmul.mubr.bf16.gmra.mrb[12].mxu1 %v11799_v60 }
 0x59d   : > { %5044 = vmatprep.mubr.bf16.mxu1 %v11870_v2 }
 0x5a4   : > { %5045 = vmatmul.mubr.bf16.gmra.mrb[16].mxu1 %v11800_v63 }
 0x5a5   : > { %5054 = vmatprep.mubr.bf16.mxu1 %v11870_v2 }
 0x5ac   : > { %5055 = vmatmul.mubr.bf16.gmra.mrb[20].mxu1 %v11801_v1 }
 0x5ad   : > { %5064 = vmatprep.mubr.bf16.mxu1 %v11870_v2 }
 0x5b4   : > { %5065 = vmatmul.mubr.bf16.gmra.mrb[24].mxu1 %v11802_v8 }
 0x5b5   : > { %5074 = vmatprep.mubr.bf16.mxu1 %v11870_v2 }
 0x5bc   : > { %5075 = vmatmul.mubr.bf16.gmra.mrb[28].mxu1 %v11803_v9 }
 0x5bd   : > { %5084 = vmatprep.mubr.bf16.mxu1 %v11870_v2 }
 0x5c4   : > { %5085 = vmatmul.mubr.bf16.gmra.mrb[32].mxu1 %v11804_v12 }
 0x5c5   : > { %5094 = vmatprep.mubr.bf16.mxu1 %v11870_v2 }
 0x5cc   : > { %5095 = vmatmul.mubr.bf16.gmra.mrb[36].mxu1 %v11805_v13  ;;  %v11402_v13 = vld [vmem:[%s16203_s3 + $0x620] ss:$8 sps:$4 sm:$0xff]  }
 0x5cd   : > { %5104 = vmatprep.mubr.bf16.mxu1 %v11870_v2 }
 0x5d4   : > { %5105 = vmatmul.mubr.bf16.gmra.mrb[40].mxu1 %v11806_v17  ;;  %v11407_v17 = vld [vmem:[%s16203_s3 + $0x634] ss:$8 sps:$4 sm:$0xff]  }
 0x5d5   : > { %5114 = vmatprep.mubr.bf16.mxu1 %v11870_v2 }
 0x5dc   : > { %5115 = vmatmul.mubr.bf16.gmra.mrb[44].mxu1 %v11807_v18 }
 0x5dd   : > { %5124 = vmatprep.mubr.bf16.mxu1 %v11870_v2 }
 0x5e4   : > { %5125 = vmatmul.mubr.bf16.gmra.mrb[48].mxu1 %v11808_v19 }
 0x5e5   : > { %5134 = vmatprep.mubr.bf16.mxu1 %v11870_v2 }
 0x5ec   : > { %5135 = vmatmul.mubr.bf16.gmra.mrb[52].mxu1 %v11809_v39 }
 0x5ed   : > { %5144 = vmatprep.mubr.bf16.mxu1 %v11870_v2 }
 0x5f4   : > { %5145 = vmatmul.mubr.bf16.gmra.mrb[56].mxu1 %v11810_v20 }
 0x5f5   : > { %5154 = vmatprep.mubr.bf16.mxu1 %v11870_v2 }
 0x5fc   : > { %5155 = vmatmul.mubr.bf16.gmra.mrb[60].mxu1 %v11811_v36  ;;  %v11405_v36 = vld [vmem:[%s16203_s3 + $0x630] ss:$8 sps:$4 sm:$0xff]  }
 0x5fd   : > { %5164 = vmatprep.mubr.bf16.mxu1 %v11870_v2 }
 0x604   : > { %5165 = vmatmul.mubr.bf16.gmra.mrb[64].mxu1 %v11812_v21 }
 0x605   : > { %5174 = vmatprep.mubr.bf16.mxu1 %v11870_v2 }
 0x60c   : > { %5175 = vmatmul.mubr.bf16.gmra.mrb[68].mxu1 %v11813_v22 }
 0x60d   : > { %5184 = vmatprep.mubr.bf16.mxu1 %v11870_v2 }
 0x614   : > { %5185 = vmatmul.mubr.bf16.gmra.mrb[72].mxu1 %v11814_v23  ;;  %v11825_v23 = vld [vmem:[%s11972_s24 + $0xe8] sm:$0xff]  }
 0x615   : > { %5194 = vmatprep.mubr.bf16.mxu1 %v11870_v2 }
 0x61c   : > { %5195 = vmatmul.mubr.bf16.gmra.mrb[76].mxu1 %v11815_v24  ;;  %v11410_v24 = vld [vmem:[%s16203_s3 + $0x644] ss:$8 sps:$4 sm:$0xff]  }
 0x61d   : > { %5204 = vmatprep.mubr.bf16.mxu1 %v11870_v2 }
 0x624   : > { %5205 = vmatmul.mubr.bf16.gmra.mrb[80].mxu1 %v11816_v25 }
 0x625   : > { %5214 = vmatprep.mubr.bf16.mxu1 %v11870_v2 }
 0x62c   : > { %5215 = vmatmul.mubr.bf16.gmra.mrb[84].mxu1 %v11817_v26 }
 0x62d   : > { %5224 = vmatprep.mubr.bf16.mxu1 %v11870_v2 }
 0x634   : > { %5225 = vmatmul.mubr.bf16.gmra.mrb[88].mxu1 %v11818_v27 }
 0x635   : > { %5234 = vmatprep.mubr.bf16.mxu1 %v11870_v2 }
 0x63c   : > { %5235 = vmatmul.mubr.bf16.gmra.mrb[92].mxu1 %v11819_v28 }
 0x63d   : > { %5244 = vmatprep.mubr.bf16.mxu1 %v11870_v2 }
 0x644   : > { %5245 = vmatmul.mubr.bf16.gmra.mrb[96].mxu1 %v11820_v29 }
 0x645   : > { %5254 = vmatprep.mubr.bf16.mxu1 %v11870_v2 }
 0x64c   : > { %5255 = vmatmul.mubr.bf16.gmra.mrb[100].mxu1 %v11821_v34  ;;  %v11408_v34 = vld [vmem:[%s16203_s3 + $0x640] ss:$8 sps:$4 sm:$0xff]  }
 0x64d   : > { %5264 = vmatprep.mubr.bf16.mxu1 %v11870_v2 }
 0x654   : > { %5265 = vmatmul.mubr.bf16.gmra.mrb[104].mxu1 %v11822_v40 }
 0x655   : > { %5274 = vmatprep.mubr.bf16.mxu1 %v11870_v2 }
 0x657   : > { %v5006_v4 = vpop.f32.mrb[0].mxu1 }
 0x658   : > { %v5338_v43 = vadd.f32 %v13443_v41, %v5006_v4  ;;  %v5008_v44 = vpop.f32.mrb[1].mxu1  ;;  %v11413_v4 = vld [vmem:[%s16203_s3 + $0x654] ss:$8 sps:$4 sm:$0xff]  }
 0x659   : > { %v5339_v45 = vadd.f32 %v13446_v42, %v5008_v44  ;;  %v5010_v6 = vpop.f32.mrb[2].mxu1 }
 0x65a   : > { %v5340_v46 = vadd.f32 %v13443_v41, %v5010_v6  ;;  %v5012_v47 = vpop.f32.mrb[3].mxu1  ;;  %v5466_v49 = vmax.f32 %v5338_v43, 0.0 }
 0x65b   : > { %v5341_v48 = vadd.f32 %v13446_v42, %v5012_v47  ;;  %v5467_v52 = vmax.f32 %v5339_v45, 0.0  ;;  %v11411_v47 = vld [vmem:[%s16203_s3 + $0x650] ss:$8 sps:$4 sm:$0xff]  }
 0x65c   : > { %v5468_v50 = vmax.f32 %v5340_v46, 0.0  ;;  %5275 = vmatmul.mubr.bf16.gmra.mrb[108].mxu1 %v11823_v51  ;;  %v11416_v51 = vld [vmem:[%s16203_s3 + $0x664] ss:$8 sps:$4 sm:$0xff]  }
 0x65d   : > { %v5469_v0 = vmax.f32 %v5341_v48, 0.0  ;;  %5284 = vmatprep.mubr.bf16.mxu1 %v11870_v2 }
 0x65e   : > { %v5627_v53 = vpack.c.bf16 %v5468_v50, %v5466_v49  ;;  %v11826_v50 = vld [vmem:[%s11972_s24 + $0xf0] sm:$0xff]  }
 0x65f   : > { %v5016_v54 = vpop.f32.mrb[4].mxu1  ;;  %v5628_v3 = vpack.c.bf16 %v5469_v0, %v5467_v52 }
 0x660   : > { %v5342_v16 = vadd.f32 %v13443_v41, %v5016_v54  ;;  %v5018_v38 = vpop.f32.mrb[5].mxu1 }
 0x661   : > { %v5343_v57 = vadd.f32 %v13446_v42, %v5018_v38  ;;  %v5020_v58 = vpop.f32.mrb[6].mxu1  ;;  %5896 = vmatprep.mubr.bf16.mxu0 %v5628_v3 }
 0x662   : > { %v5344_v59 = vadd.f32 %v13443_v41, %v5020_v58  ;;  %v5022_v60 = vpop.f32.mrb[7].mxu1  ;;  %5897 = vmatmul.mubr.bf16.vlgmr.msra.gmra.mrb[128].mxu0 %v5627_v53  ;;  %v5470_v63 = vmax.f32 %v5342_v16, 0.0 }
 0x663   : > { %v5345_v61 = vadd.f32 %v13446_v42, %v5022_v60  ;;  %6616 = vmatpush1.bf16.msra.mxu0 %v11396_v55  ;;  %v5471_v8 = vmax.f32 %v5343_v57, 0.0  ;;  %v11414_v55 = vld [vmem:[%s16203_s3 + $0x660] ss:$8 sps:$4 sm:$0xff]  }
 0x664   : > { %v5472_v1 = vmax.f32 %v5344_v59, 0.0  ;;  %5285 = vmatmul.mubr.bf16.gmra.mrb[112].mxu1 %v11824_v5  ;;  %6617 = vmatprep.subr.bf16.mxu0 %v11401_v56  ;;  %v11419_v56 = vld [vmem:[%s16203_s3 + $0x674] ss:$8 sps:$4 sm:$0xff]  }
 0x665   : > { %v5473_v9 = vmax.f32 %v5345_v61, 0.0  ;;  %5294 = vmatprep.mubr.bf16.mxu1 %v11870_v2  ;;  %v11827_v5 = vld [vmem:[%s11972_s24 + $0xf8] sm:$0xff]  }
 0x666   : > { %v5629_v10 = vpack.c.bf16 %v5472_v1, %v5470_v63 }
 0x667   : > { %v5026_v11 = vpop.f32.mrb[8].mxu1  ;;  %v5630_v12 = vpack.c.bf16 %v5473_v9, %v5471_v8  ;;  %6618 = vmatpush1.bf16.msra.mxu0 %v11399_v62  ;;  %v11417_v62 = vld [vmem:[%s16203_s3 + $0x670] ss:$8 sps:$4 sm:$0xff]  }
 0x668   : > { %v5346_v14 = vadd.f32 %v13443_v41, %v5026_v11  ;;  %v5028_v15 = vpop.f32.mrb[9].mxu1  ;;  %6619 = vmatprep.subr.bf16.mxu0 %v11404_v7  ;;  %v11422_v7 = vld [vmem:[%s16203_s3 + $0x684] ss:$8 sps:$4 sm:$0xff]  }
 0x669   : > { %v5347_v18 = vadd.f32 %v13446_v42, %v5028_v15  ;;  %v5030_v19 = vpop.f32.mrb[10].mxu1  ;;  %5906 = vmatprep.mubr.bf16.mxu0 %v5630_v12 }
 0x66a   : > { %v5348_v32 = vadd.f32 %v13443_v41, %v5030_v19  ;;  %v5032_v39 = vpop.f32.mrb[11].mxu1  ;;  %5907 = vmatmul.mubr.bf16.gmra.mrb[132].mxu0 %v5629_v10  ;;  %v5474_v21 = vmax.f32 %v5346_v14, 0.0 }
 0x66b   : > { %v5349_v20 = vadd.f32 %v13446_v42, %v5032_v39  ;;  %6620 = vmatpush1.bf16.msra.mxu0 %v11402_v13  ;;  %v5475_v25 = vmax.f32 %v5347_v18, 0.0  ;;  %v11420_v13 = vld [vmem:[%s16203_s3 + $0x680] ss:$8 sps:$4 sm:$0xff]  }
 0x66c   : > { %v5476_v22 = vmax.f32 %v5348_v32, 0.0  ;;  %5295 = vmatmul.mubr.bf16.gmra.mrb[116].mxu1 %v11825_v23  ;;  %6621 = vmatprep.subr.bf16.mxu0 %v11407_v17  ;;  %v11425_v17 = vld [vmem:[%s16203_s3 + $0x694] ss:$8 sps:$4 sm:$0xff]  }
 0x66d   : > { %v5477_v26 = vmax.f32 %v5349_v20, 0.0  ;;  %5304 = vmatprep.mubr.bf16.mxu1 %v11870_v2 }
 0x66e   : > { %v5631_v27 = vpack.c.bf16 %v5476_v22, %v5474_v21 }
 0x66f   : > { %v5036_v28 = vpop.f32.mrb[12].mxu1  ;;  %v5632_v29 = vpack.c.bf16 %v5477_v26, %v5475_v25  ;;  %6622 = vmatpush1.bf16.msra.mxu0 %v11405_v36  ;;  %v11423_v36 = vld [vmem:[%s16203_s3 + $0x690] ss:$8 sps:$4 sm:$0xff]   ;;  %v11428_v26 = vld [vmem:[%s16203_s3 + $0x6a4] ss:$8 sps:$4 sm:$0xff]  }
 0x670   : > { %v5350_v37 = vadd.f32 %v13443_v41, %v5036_v28  ;;  %v5038_v40 = vpop.f32.mrb[13].mxu1  ;;  %6623 = vmatprep.subr.bf16.mxu0 %v11410_v24 }
 0x671   : > { %v5351_v43 = vadd.f32 %v13446_v42, %v5038_v40  ;;  %v5040_v44 = vpop.f32.mrb[14].mxu1  ;;  %5916 = vmatprep.mubr.bf16.mxu0 %v5632_v29  ;;  %v11426_v29 = vld [vmem:[%s16203_s3 + $0x6a0] ss:$8 sps:$4 sm:$0xff]  }
 0x672   : > { %v5352_v45 = vadd.f32 %v13443_v41, %v5040_v44  ;;  %v5042_v6 = vpop.f32.mrb[15].mxu1  ;;  %5917 = vmatmul.mubr.bf16.gmra.mrb[136].mxu0 %v5631_v27  ;;  %v5478_v48 = vmax.f32 %v5350_v37, 0.0 }
 0x673   : > { %v5353_v46 = vadd.f32 %v13446_v42, %v5042_v6  ;;  %6624 = vmatpush1.bf16.msra.mxu0 %v11408_v34  ;;  %v5479_v52 = vmax.f32 %v5351_v43, 0.0 }
 0x674   : > { %v5480_v49 = vmax.f32 %v5352_v45, 0.0  ;;  %5305 = vmatmul.mubr.bf16.gmra.mrb[120].mxu1 %v11826_v50  ;;  %6625 = vmatprep.subr.bf16.mxu0 %v11413_v4 }
 0x675   : > { %v5481_v0 = vmax.f32 %v5353_v46, 0.0  ;;  %5314 = vmatprep.mubr.bf16.mxu1 %v11870_v2 }
 0x676   : > { %v5633_v53 = vpack.c.bf16 %v5480_v49, %v5478_v48 }
 0x677   : > { %v5046_v54 = vpop.f32.mrb[16].mxu1  ;;  %v5634_v3 = vpack.c.bf16 %v5481_v0, %v5479_v52  ;;  %6626 = vmatpush1.bf16.msra.mxu0 %v11411_v47 }
 0x678   : > { %v5354_v16 = vadd.f32 %v13443_v41, %v5046_v54  ;;  %v5048_v38 = vpop.f32.mrb[17].mxu1  ;;  %6627 = vmatprep.subr.bf16.mxu0 %v11416_v51 }
 0x679   : > { %v5355_v57 = vadd.f32 %v13446_v42, %v5048_v38  ;;  %v5050_v58 = vpop.f32.mrb[18].mxu1  ;;  %5926 = vmatprep.mubr.bf16.mxu0 %v5634_v3 }
 0x67a   : > { %v5356_v59 = vadd.f32 %v13443_v41, %v5050_v58  ;;  %v5052_v60 = vpop.f32.mrb[19].mxu1  ;;  %5927 = vmatmul.mubr.bf16.gmra.mrb[140].mxu0 %v5633_v53  ;;  %v5482_v63 = vmax.f32 %v5354_v16, 0.0 }
 0x67b   : > { %v5357_v61 = vadd.f32 %v13446_v42, %v5052_v60  ;;  %6628 = vmatpush1.bf16.msra.mxu0 %v11414_v55  ;;  %v5483_v8 = vmax.f32 %v5355_v57, 0.0  ;;  %v11429_v60 = vld [vmem:[%s16203_s3 + $0x6b0] ss:$8 sps:$4 sm:$0xff]  }
 0x67c   : > { %v5484_v1 = vmax.f32 %v5356_v59, 0.0  ;;  %5315 = vmatmul.mubr.bf16.gmra.mrb[124].mxu1 %v11827_v5  ;;  %6629 = vmatprep.subr.bf16.mxu0 %v11419_v56 }
 0x67d   : > { %v5485_v9 = vmax.f32 %v5357_v61, 0.0  ;;  %v11431_v61 = vld [vmem:[%s16203_s3 + $0x6b4] ss:$8 sps:$4 sm:$0xff]  }
 0x67e   : > { %v5635_v10 = vpack.c.bf16 %v5484_v1, %v5482_v63 }
 0x67f   : > { %v5056_v11 = vpop.f32.mrb[20].mxu1  ;;  %v5636_v12 = vpack.c.bf16 %v5485_v9, %v5483_v8  ;;  %6630 = vmatpush1.bf16.msra.mxu0 %v11417_v62 }
 0x680   : > { %v5358_v14 = vadd.f32 %v13443_v41, %v5056_v11  ;;  %v5058_v15 = vpop.f32.mrb[21].mxu1  ;;  %6631 = vmatprep.subr.bf16.mxu0 %v11422_v7 }
 0x681   : > { %v5359_v18 = vadd.f32 %v13446_v42, %v5058_v15  ;;  %v5060_v19 = vpop.f32.mrb[22].mxu1  ;;  %5936 = vmatprep.mubr.bf16.mxu0 %v5636_v12 }
 0x682   : > { %v5360_v32 = vadd.f32 %v13443_v41, %v5060_v19  ;;  %v5062_v39 = vpop.f32.mrb[23].mxu1  ;;  %5937 = vmatmul.mubr.bf16.gmra.mrb[144].mxu0 %v5635_v10  ;;  %v5486_v21 = vmax.f32 %v5358_v14, 0.0 }
 0x683   : > { %v5361_v20 = vadd.f32 %v13446_v42, %v5062_v39  ;;  %6632 = vmatpush1.bf16.msra.mxu0 %v11420_v13  ;;  %v5487_v23 = vmax.f32 %v5359_v18, 0.0 }
 0x684   : > { %v5488_v22 = vmax.f32 %v5360_v32, 0.0  ;;  %6633 = vmatprep.subr.bf16.mxu0 %v11425_v17 }
 0x685   : > { %v5489_v24 = vmax.f32 %v5361_v20, 0.0 }
 0x686   : > { %v5637_v25 = vpack.c.bf16 %v5488_v22, %v5486_v21 }
 0x687   : > { %v5066_v27 = vpop.f32.mrb[24].mxu1  ;;  %v5638_v28 = vpack.c.bf16 %v5489_v24, %v5487_v23  ;;  %6634 = vmatpush1.bf16.msra.mxu0 %v11423_v36 }
 0x688   : > { %v5362_v34 = vadd.f32 %v13443_v41, %v5066_v27  ;;  %v5068_v37 = vpop.f32.mrb[25].mxu1  ;;  %6635 = vmatprep.subr.bf16.mxu0 %v11428_v26 }
 0x689   : > { %v5363_v40 = vadd.f32 %v13446_v42, %v5068_v37  ;;  %v5070_v4 = vpop.f32.mrb[26].mxu1  ;;  %5946 = vmatprep.mubr.bf16.mxu0 %v5638_v28 }
 0x68a   : > { %v5364_v43 = vadd.f32 %v13443_v41, %v5070_v4  ;;  %v5072_v44 = vpop.f32.mrb[27].mxu1  ;;  %5947 = vmatmul.mubr.bf16.gmra.mrb[148].mxu0 %v5637_v25  ;;  %v5490_v6 = vmax.f32 %v5362_v34, 0.0  ;;  %v11434_v34 = vld [vmem:[%s16203_s3 + $0x6c4] ss:$8 sps:$4 sm:$0xff]  }
 0x68b   : > { %v5365_v45 = vadd.f32 %v13446_v42, %v5072_v44  ;;  %6636 = vmatpush1.bf16.msra.mxu0 %v11426_v29  ;;  %v5491_v47 = vmax.f32 %v5363_v40, 0.0  ;;  %v11432_v29 = vld [vmem:[%s16203_s3 + $0x6c0] ss:$8 sps:$4 sm:$0xff]  }
 0x68c   : > { %v5492_v46 = vmax.f32 %v5364_v43, 0.0  ;;  %6637 = vmatprep.subr.bf16.mxu0 %v11431_v61 }
 0x68d   : > { %v5493_v48 = vmax.f32 %v5365_v45, 0.0 }
 0x68e   : > { %v5639_v49 = vpack.c.bf16 %v5492_v46, %v5490_v6 }
 0x68f   : > { %v5076_v50 = vpop.f32.mrb[28].mxu1  ;;  %v5640_v51 = vpack.c.bf16 %v5493_v48, %v5491_v47  ;;  %6638 = vmatpush1.bf16.msra.mxu0 %v11429_v60 }
 0x690   : > { %v5366_v52 = vadd.f32 %v13443_v41, %v5076_v50  ;;  %v5078_v0 = vpop.f32.mrb[29].mxu1  ;;  %6639 = vmatprep.subr.bf16.mxu0 %v11434_v34  ;;  %v11440_v34 = vld [vmem:[%s16205_s5 + $0x4] ss:$12 sps:$4 sm:$0xff]  }
 0x691   : > { %v5367_v53 = vadd.f32 %v13446_v42, %v5078_v0  ;;  %v5080_v54 = vpop.f32.mrb[30].mxu1  ;;  %5956 = vmatprep.mubr.bf16.mxu0 %v5640_v51  ;;  %7497 = vmatprep.subr.bf16.mxu1 %v11440_v34 }
 0x692   : > { %v5368_v3 = vadd.f32 %v13443_v41, %v5080_v54  ;;  %v5082_v55 = vpop.f32.mrb[31].mxu1  ;;  %5957 = vmatmul.mubr.bf16.gmra.mrb[152].mxu0 %v5639_v49  ;;  %v5494_v38 = vmax.f32 %v5366_v52, 0.0 }
 0x693   : > { %v5369_v16 = vadd.f32 %v13446_v42, %v5082_v55  ;;  %v5495_v57 = vmax.f32 %v5367_v53, 0.0  ;;  %6640 = vmatpush1.bf16.msra.mxu0 %v11432_v29  ;;  %v11438_v29 = vld [vmem:[%s16205_s5] ss:$12 sps:$4 sm:$0xff]  }
 0x694   : > { %v5496_v56 = vmax.f32 %v5368_v3, 0.0  ;;  %7498 = vmatpush1.bf16.msra.mxu1 %v11438_v29 }
 0x695   : > { %v5497_v58 = vmax.f32 %v5369_v16, 0.0 }
 0x696   : > { %v5641_v59 = vpack.c.bf16 %v5496_v56, %v5494_v38 }
 0x697   : > { %v5086_v62 = vpop.f32.mrb[32].mxu1  ;;  %v5642_v63 = vpack.c.bf16 %v5497_v58, %v5495_v57 }
 0x698   : > { %v5370_v1 = vadd.f32 %v13443_v41, %v5086_v62  ;;  %v5088_v5 = vpop.f32.mrb[33].mxu1 }
 0x699   : > { %v5371_v7 = vadd.f32 %v13446_v42, %v5088_v5  ;;  %v5090_v8 = vpop.f32.mrb[34].mxu1  ;;  %5966 = vmatprep.mubr.bf16.mxu0 %v5642_v63  ;;  %v11435_v63 = vld [vmem:[%s16203_s3 + $0x6d0] ss:$8 sps:$4 sm:$0xff]  }
 0x69a   : > { %v5372_v9 = vadd.f32 %v13443_v41, %v5090_v8  ;;  %v5092_v10 = vpop.f32.mrb[35].mxu1  ;;  %5967 = vmatmul.mubr.bf16.gmra.mrb[156].mxu0 %v5641_v59  ;;  %v5498_v12 = vmax.f32 %v5370_v1, 0.0  ;;  %v11437_v1 = vld [vmem:[%s16203_s3 + $0x6d4] ss:$8 sps:$4 sm:$0xff]  }
 0x69b   : > { %v5373_v11 = vadd.f32 %v13446_v42, %v5092_v10  ;;  %v5499_v14 = vmax.f32 %v5371_v7, 0.0  ;;  %6641 = vmatprep.subr.bf16.mxu0 %v11437_v1 }
 0x69c   : > { %v5500_v13 = vmax.f32 %v5372_v9, 0.0  ;;  %6642 = vmatpush1.bf16.msra.mxu0 %v11435_v63 }
 0x69d   : > { %v5501_v15 = vmax.f32 %v5373_v11, 0.0 }
 0x69e   : > { %v5643_v17 = vpack.c.bf16 %v5500_v13, %v5498_v12 }
 0x69f   : > { %v5096_v18 = vpop.f32.mrb[36].mxu1  ;;  %v5644_v19 = vpack.c.bf16 %v5501_v15, %v5499_v14 }
 0x6a0   : > { %v5374_v32 = vadd.f32 %v13443_v41, %v5096_v18  ;;  %v5098_v39 = vpop.f32.mrb[37].mxu1 }
 0x6a1   : > { %v5375_v20 = vadd.f32 %v13446_v42, %v5098_v39  ;;  %v5100_v36 = vpop.f32.mrb[38].mxu1  ;;  %5976 = vmatprep.mubr.bf16.mxu0 %v5644_v19 }
 0x6a2   : > { %v5376_v21 = vadd.f32 %v13443_v41, %v5100_v36  ;;  %v5102_v22 = vpop.f32.mrb[39].mxu1  ;;  %5977 = vmatmul.mubr.bf16.gmra.mrb[160].mxu0 %v5643_v17  ;;  %v5502_v24 = vmax.f32 %v5374_v32, 0.0 }
 0x6a3   : > { %v5377_v23 = vadd.f32 %v13446_v42, %v5102_v22  ;;  %v5503_v26 = vmax.f32 %v5375_v20, 0.0 }
 0x6a4   : > { %v5504_v25 = vmax.f32 %v5376_v21, 0.0 }
 0x6a5   : > { %v5505_v27 = vmax.f32 %v5377_v23, 0.0 }
 0x6a6   : > { %v5645_v28 = vpack.c.bf16 %v5504_v25, %v5502_v24 }
 0x6a7   : > { %v5106_v37 = vpop.f32.mrb[40].mxu1  ;;  %v5646_v40 = vpack.c.bf16 %v5505_v27, %v5503_v26 }
 0x6a8   : > { %v5378_v4 = vadd.f32 %v13443_v41, %v5106_v37  ;;  %v5108_v43 = vpop.f32.mrb[41].mxu1 }
 0x6a9   : > { %v5379_v44 = vadd.f32 %v13446_v42, %v5108_v43  ;;  %v5110_v45 = vpop.f32.mrb[42].mxu1  ;;  %5986 = vmatprep.mubr.bf16.mxu0 %v5646_v40  ;;  %v11441_v43 = vld [vmem:[%s16203_s3 + $0x6e0] ss:$8 sps:$4 sm:$0xff]  }
 0x6aa   : > { %v5380_v6 = vadd.f32 %v13443_v41, %v5110_v45  ;;  %v5112_v46 = vpop.f32.mrb[43].mxu1  ;;  %5987 = vmatmul.mubr.bf16.gmra.mrb[164].mxu0 %v5645_v28  ;;  %v5506_v48 = vmax.f32 %v5378_v4, 0.0 }
 0x6ab   : > { %v5381_v47 = vadd.f32 %v13446_v42, %v5112_v46  ;;  %v5507_v50 = vmax.f32 %v5379_v44, 0.0  ;;  %v11443_v44 = vld [vmem:[%s16203_s3 + $0x6e4] ss:$8 sps:$4 sm:$0xff]  }
 0x6ac   : > { %v5508_v49 = vmax.f32 %v5380_v6, 0.0  ;;  %6643 = vmatprep.subr.bf16.mxu0 %v11443_v44 }
 0x6ad   : > { %v5509_v51 = vmax.f32 %v5381_v47, 0.0  ;;  %6644 = vmatpush1.bf16.msra.mxu0 %v11441_v43 }
 0x6ae   : > { %v5647_v52 = vpack.c.bf16 %v5508_v49, %v5506_v48 }
 0x6af   : > { %v5116_v0 = vpop.f32.mrb[44].mxu1  ;;  %v5648_v53 = vpack.c.bf16 %v5509_v51, %v5507_v50 }
 0x6b0   : > { %v5382_v54 = vadd.f32 %v13443_v41, %v5116_v0  ;;  %v5118_v3 = vpop.f32.mrb[45].mxu1 }
 0x6b1   : > { %v5383_v55 = vadd.f32 %v13446_v42, %v5118_v3  ;;  %v5120_v16 = vpop.f32.mrb[46].mxu1  ;;  %5996 = vmatprep.mubr.bf16.mxu0 %v5648_v53 }
 0x6b2   : > { %v5384_v38 = vadd.f32 %v13443_v41, %v5120_v16  ;;  %v5122_v56 = vpop.f32.mrb[47].mxu1  ;;  %5997 = vmatmul.mubr.bf16.gmra.mrb[168].mxu0 %v5647_v52  ;;  %v5510_v58 = vmax.f32 %v5382_v54, 0.0 }
 0x6b3   : > { %v5385_v57 = vadd.f32 %v13446_v42, %v5122_v56  ;;  %v5511_v60 = vmax.f32 %v5383_v55, 0.0 }
 0x6b4   : > { %v5512_v59 = vmax.f32 %v5384_v38, 0.0 }
 0x6b5   : > { %v5513_v61 = vmax.f32 %v5385_v57, 0.0 }
 0x6b6   : > { %v5649_v62 = vpack.c.bf16 %v5512_v59, %v5510_v58 }
 0x6b7   : > { %v5126_v5 = vpop.f32.mrb[48].mxu1  ;;  %v5650_v7 = vpack.c.bf16 %v5513_v61, %v5511_v60 }
 0x6b8   : > { %v5386_v8 = vadd.f32 %v13443_v41, %v5126_v5  ;;  %v5128_v9 = vpop.f32.mrb[49].mxu1  ;;  %v11444_v5 = vld [vmem:[%s16205_s5 + $0x18] ss:$12 sps:$4 sm:$0xff]  }
 0x6b9   : > { %v5387_v10 = vadd.f32 %v13446_v42, %v5128_v9  ;;  %v5130_v11 = vpop.f32.mrb[50].mxu1  ;;  %6006 = vmatprep.mubr.bf16.mxu0 %v5650_v7  ;;  %v11446_v7 = vld [vmem:[%s16205_s5 + $0x1c] ss:$12 sps:$4 sm:$0xff]  }
 0x6ba   : > { %v5388_v12 = vadd.f32 %v13443_v41, %v5130_v11  ;;  %v5132_v13 = vpop.f32.mrb[51].mxu1  ;;  %6007 = vmatmul.mubr.bf16.gmra.mrb[172].mxu0 %v5649_v62  ;;  %v5514_v15 = vmax.f32 %v5386_v8, 0.0  ;;  %7499 = vmatprep.subr.bf16.mxu1 %v11446_v7  ;;  %v11447_v11 = vld [vmem:[%s16203_s3 + $0x6f0] ss:$8 sps:$4 sm:$0xff]  }
 0x6bb   : > { %v5389_v14 = vadd.f32 %v13446_v42, %v5132_v13  ;;  %v5515_v18 = vmax.f32 %v5387_v10, 0.0  ;;  %7500 = vmatpush1.bf16.msra.mxu1 %v11444_v5 }
 0x6bc   : > { %v5516_v17 = vmax.f32 %v5388_v12, 0.0  ;;  %v11449_v12 = vld [vmem:[%s16203_s3 + $0x6f4] ss:$8 sps:$4 sm:$0xff]  }
 0x6bd   : > { %v5517_v19 = vmax.f32 %v5389_v14, 0.0  ;;  %6645 = vmatprep.subr.bf16.mxu0 %v11449_v12  ;;  %v11455_v12 = vld [vmem:[%s16205_s5 + $0x4c] ss:$12 sps:$4 sm:$0xff]  }
 0x6be   : > { %v5651_v32 = vpack.c.bf16 %v5516_v17, %v5514_v15  ;;  %6646 = vmatpush1.bf16.msra.mxu0 %v11447_v11  ;;  %v11453_v11 = vld [vmem:[%s16205_s5 + $0x48] ss:$12 sps:$4 sm:$0xff]  }
 0x6bf   : > { %v5136_v39 = vpop.f32.mrb[52].mxu1  ;;  %v5652_v20 = vpack.c.bf16 %v5517_v19, %v5515_v18  ;;  %7850 = vmatprep.subr.bf16.mxu0 %v11870_v2 }
 0x6c0   : > { %v5390_v36 = vadd.f32 %v13443_v41, %v5136_v39  ;;  %v5138_v21 = vpop.f32.mrb[53].mxu1 }
 0x6c1   : > { %v5391_v22 = vadd.f32 %v13446_v42, %v5138_v21  ;;  %v5140_v23 = vpop.f32.mrb[54].mxu1  ;;  %6016 = vmatprep.mubr.bf16.mxu0 %v5652_v20 }
 0x6c2   : > { %v5392_v24 = vadd.f32 %v13443_v41, %v5140_v23  ;;  %v5142_v25 = vpop.f32.mrb[55].mxu1  ;;  %6017 = vmatmul.mubr.bf16.gmra.mrb[176].mxu0 %v5651_v32  ;;  %v5518_v27 = vmax.f32 %v5390_v36, 0.0 }
 0x6c3   : > { %v5393_v26 = vadd.f32 %v13446_v42, %v5142_v25  ;;  %v5519_v37 = vmax.f32 %v5391_v22, 0.0 }
 0x6c4   : > { %v5520_v28 = vmax.f32 %v5392_v24, 0.0 }
 0x6c5   : > { %v5521_v40 = vmax.f32 %v5393_v26, 0.0 }
 0x6c6   : > { %v5653_v4 = vpack.c.bf16 %v5520_v28, %v5518_v27 }
 0x6c7   : > { %v5146_v45 = vpop.f32.mrb[56].mxu1  ;;  %v5654_v6 = vpack.c.bf16 %v5521_v40, %v5519_v37 }
 0x6c8   : > { %v5394_v46 = vadd.f32 %v13443_v41, %v5146_v45  ;;  %v5148_v47 = vpop.f32.mrb[57].mxu1  ;;  %v11450_v45 = vld [vmem:[%s16205_s5 + $0x30] ss:$12 sps:$4 sm:$0xff]  }
 0x6c9   : > { %v5395_v48 = vadd.f32 %v13446_v42, %v5148_v47  ;;  %v5150_v49 = vpop.f32.mrb[58].mxu1  ;;  %6026 = vmatprep.mubr.bf16.mxu0 %v5654_v6  ;;  %v11452_v6 = vld [vmem:[%s16205_s5 + $0x34] ss:$12 sps:$4 sm:$0xff]  }
 0x6ca   : > { %v5396_v50 = vadd.f32 %v13443_v41, %v5150_v49  ;;  %v5152_v51 = vpop.f32.mrb[59].mxu1  ;;  %6027 = vmatmul.mubr.bf16.gmra.mrb[180].mxu0 %v5653_v4  ;;  %v5522_v0 = vmax.f32 %v5394_v46, 0.0  ;;  %7501 = vmatprep.subr.bf16.mxu1 %v11452_v6 }
 0x6cb   : > { %v5397_v52 = vadd.f32 %v13446_v42, %v5152_v51  ;;  %v5523_v54 = vmax.f32 %v5395_v48, 0.0  ;;  %7502 = vmatpush1.bf16.msra.mxu1 %v11450_v45 }
 0x6cc   : > { %v5524_v53 = vmax.f32 %v5396_v50, 0.0  ;;  %7503 = vmatprep.subr.bf16.mxu1 %v11455_v12 }
 0x6cd   : > { %v5525_v3 = vmax.f32 %v5397_v52, 0.0 }
 0x6ce   : > { %v5655_v55 = vpack.c.bf16 %v5524_v53, %v5522_v0 }
 0x6cf   : > { %v5156_v16 = vpop.f32.mrb[60].mxu1  ;;  %v5656_v38 = vpack.c.bf16 %v5525_v3, %v5523_v54  ;;  %7504 = vmatpush1.bf16.msra.mxu1 %v11453_v11 }
 0x6d0   : > { %v5398_v56 = vadd.f32 %v13443_v41, %v5156_v16  ;;  %v5158_v57 = vpop.f32.mrb[61].mxu1 }
 0x6d1   : > { %v5399_v58 = vadd.f32 %v13446_v42, %v5158_v57  ;;  %v5160_v59 = vpop.f32.mrb[62].mxu1  ;;  %6036 = vmatprep.mubr.bf16.mxu0 %v5656_v38 }
 0x6d2   : > { %v5400_v60 = vadd.f32 %v13443_v41, %v5160_v59  ;;  %v5162_v61 = vpop.f32.mrb[63].mxu1  ;;  %6037 = vmatmul.mubr.bf16.gmra.mrb[184].mxu0 %v5655_v55  ;;  %v5526_v63 = vmax.f32 %v5398_v56, 0.0 }
 0x6d3   : > { %v5401_v62 = vadd.f32 %v13446_v42, %v5162_v61  ;;  %v5527_v8 = vmax.f32 %v5399_v58, 0.0 }
 0x6d4   : > { %v5528_v1 = vmax.f32 %v5400_v60, 0.0 }
 0x6d5   : > { %v5529_v9 = vmax.f32 %v5401_v62, 0.0 }
 0x6d6   : > { %v5657_v10 = vpack.c.bf16 %v5528_v1, %v5526_v63 }
 0x6d7   : > { %v5166_v13 = vpop.f32.mrb[64].mxu1  ;;  %v5658_v14 = vpack.c.bf16 %v5529_v9, %v5527_v8 }
 0x6d8   : > { %v5402_v15 = vadd.f32 %v13443_v41, %v5166_v13  ;;  %v5168_v17 = vpop.f32.mrb[65].mxu1 }
 0x6d9   : > { %v5403_v18 = vadd.f32 %v13446_v42, %v5168_v17  ;;  %v5170_v19 = vpop.f32.mrb[66].mxu1  ;;  %6046 = vmatprep.mubr.bf16.mxu0 %v5658_v14 }
 0x6da   : > { %v5404_v32 = vadd.f32 %v13443_v41, %v5170_v19  ;;  %v5172_v39 = vpop.f32.mrb[67].mxu1  ;;  %6047 = vmatmul.mubr.bf16.gmra.mrb[188].mxu0 %v5657_v10  ;;  %v5530_v36 = vmax.f32 %v5402_v15, 0.0 }
 0x6db   : > { %v5405_v20 = vadd.f32 %v13446_v42, %v5172_v39  ;;  %v5531_v22 = vmax.f32 %v5403_v18, 0.0 }
 0x6dc   : > { %v5532_v21 = vmax.f32 %v5404_v32, 0.0 }
 0x6dd   : > { %v5533_v23 = vmax.f32 %v5405_v20, 0.0 }
 0x6de   : > { %v5659_v24 = vpack.c.bf16 %v5532_v21, %v5530_v36 }
 0x6df   : > { %v5176_v25 = vpop.f32.mrb[68].mxu1  ;;  %v5660_v26 = vpack.c.bf16 %v5533_v23, %v5531_v22 }
 0x6e0   : > { %v5406_v27 = vadd.f32 %v13443_v41, %v5176_v25  ;;  %v5178_v28 = vpop.f32.mrb[69].mxu1 }
 0x6e1   : > { %v5407_v29 = vadd.f32 %v13446_v42, %v5178_v28  ;;  %v5180_v34 = vpop.f32.mrb[70].mxu1  ;;  %6056 = vmatprep.mubr.bf16.mxu0 %v5660_v26 }
 0x6e2   : > { %v5408_v37 = vadd.f32 %v13443_v41, %v5180_v34  ;;  %v5182_v40 = vpop.f32.mrb[71].mxu1  ;;  %6057 = vmatmul.mubr.bf16.gmra.mrb[192].mxu0 %v5659_v24  ;;  %v5534_v43 = vmax.f32 %v5406_v27, 0.0 }
 0x6e3   : > { %v5409_v4 = vadd.f32 %v13446_v42, %v5182_v40  ;;  %v5535_v46 = vmax.f32 %v5407_v29, 0.0 }
 0x6e4   : > { %v5536_v44 = vmax.f32 %v5408_v37, 0.0 }
 0x6e5   : > { %v5537_v47 = vmax.f32 %v5409_v4, 0.0 }
 0x6e6   : > { %v5661_v48 = vpack.c.bf16 %v5536_v44, %v5534_v43 }
 0x6e7   : > { %v5186_v49 = vpop.f32.mrb[72].mxu1  ;;  %v5662_v50 = vpack.c.bf16 %v5537_v47, %v5535_v46  ;;  %v11456_v47 = vld [vmem:[%s16205_s5 + $0x60] ss:$12 sps:$4 sm:$0xff]  }
 0x6e8   : > { %v5410_v51 = vadd.f32 %v13443_v41, %v5186_v49  ;;  %v5188_v52 = vpop.f32.mrb[73].mxu1 }
 0x6e9   : > { %v5411_v0 = vadd.f32 %v13446_v42, %v5188_v52  ;;  %v5190_v53 = vpop.f32.mrb[74].mxu1  ;;  %6066 = vmatprep.mubr.bf16.mxu0 %v5662_v50 }
 0x6ea   : > { %v5412_v54 = vadd.f32 %v13443_v41, %v5190_v53  ;;  %v5192_v3 = vpop.f32.mrb[75].mxu1  ;;  %6067 = vmatmul.mubr.bf16.gmra.mrb[196].mxu0 %v5661_v48  ;;  %v5538_v16 = vmax.f32 %v5410_v51, 0.0  ;;  %v11458_v48 = vld [vmem:[%s16205_s5 + $0x64] ss:$12 sps:$4 sm:$0xff]  }
 0x6eb   : > { %v5413_v55 = vadd.f32 %v13446_v42, %v5192_v3  ;;  %v5539_v56 = vmax.f32 %v5411_v0, 0.0  ;;  %7505 = vmatprep.subr.bf16.mxu1 %v11458_v48 }
 0x6ec   : > { %v5540_v38 = vmax.f32 %v5412_v54, 0.0  ;;  %7506 = vmatpush1.bf16.msra.mxu1 %v11456_v47 }
 0x6ed   : > { %v5541_v57 = vmax.f32 %v5413_v55, 0.0 }
 0x6ee   : > { %v5663_v58 = vpack.c.bf16 %v5540_v38, %v5538_v16 }
 0x6ef   : > { %v5196_v59 = vpop.f32.mrb[76].mxu1  ;;  %v5664_v60 = vpack.c.bf16 %v5541_v57, %v5539_v56 }
 0x6f0   : > { %v5414_v61 = vadd.f32 %v13443_v41, %v5196_v59  ;;  %v5198_v62 = vpop.f32.mrb[77].mxu1 }
 0x6f1   : > { %v5415_v63 = vadd.f32 %v13446_v42, %v5198_v62  ;;  %v5200_v1 = vpop.f32.mrb[78].mxu1  ;;  %6076 = vmatprep.mubr.bf16.mxu0 %v5664_v60 }
 0x6f2   : > { %v5416_v5 = vadd.f32 %v13443_v41, %v5200_v1  ;;  %v5202_v7 = vpop.f32.mrb[79].mxu1  ;;  %6077 = vmatmul.mubr.bf16.gmra.mrb[200].mxu0 %v5663_v58  ;;  %v5542_v9 = vmax.f32 %v5414_v61, 0.0 }
 0x6f3   : > { %v5417_v8 = vadd.f32 %v13446_v42, %v5202_v7  ;;  %v5543_v13 = vmax.f32 %v5415_v63, 0.0 }
 0x6f4   : > { %v5544_v10 = vmax.f32 %v5416_v5, 0.0 }
 0x6f5   : > { %v5545_v14 = vmax.f32 %v5417_v8, 0.0 }
 0x6f6   : > { %v5665_v15 = vpack.c.bf16 %v5544_v10, %v5542_v9 }
 0x6f7   : > { %v5206_v17 = vpop.f32.mrb[80].mxu1  ;;  %v5666_v18 = vpack.c.bf16 %v5545_v14, %v5543_v13  ;;  %v11459_v14 = vld [vmem:[%s16205_s5 + $0x78] ss:$12 sps:$4 sm:$0xff]  }
 0x6f8   : > { %v5418_v19 = vadd.f32 %v13443_v41, %v5206_v17  ;;  %v5208_v32 = vpop.f32.mrb[81].mxu1 }
 0x6f9   : > { %v5419_v39 = vadd.f32 %v13446_v42, %v5208_v32  ;;  %v5210_v20 = vpop.f32.mrb[82].mxu1  ;;  %6086 = vmatprep.mubr.bf16.mxu0 %v5666_v18 }
 0x6fa   : > { %v5420_v36 = vadd.f32 %v13443_v41, %v5210_v20  ;;  %v5212_v21 = vpop.f32.mrb[83].mxu1  ;;  %6087 = vmatmul.mubr.bf16.gmra.mrb[204].mxu0 %v5665_v15  ;;  %v5546_v23 = vmax.f32 %v5418_v19, 0.0  ;;  %v11461_v15 = vld [vmem:[%s16205_s5 + $0x7c] ss:$12 sps:$4 sm:$0xff]  }
 0x6fb   : > { %v5421_v22 = vadd.f32 %v13446_v42, %v5212_v21  ;;  %v5547_v25 = vmax.f32 %v5419_v39, 0.0  ;;  %7507 = vmatprep.subr.bf16.mxu1 %v11461_v15 }
 0x6fc   : > { %v5548_v24 = vmax.f32 %v5420_v36, 0.0  ;;  %7508 = vmatpush1.bf16.msra.mxu1 %v11459_v14 }
 0x6fd   : > { %v5549_v26 = vmax.f32 %v5421_v22, 0.0 }
 0x6fe   : > { %v5667_v27 = vpack.c.bf16 %v5548_v24, %v5546_v23 }
 0x6ff   : > { %v5216_v28 = vpop.f32.mrb[84].mxu1  ;;  %v5668_v29 = vpack.c.bf16 %v5549_v26, %v5547_v25 }
 0x700   : > { %v5422_v34 = vadd.f32 %v13443_v41, %v5216_v28  ;;  %v5218_v37 = vpop.f32.mrb[85].mxu1 }
 0x701   : > { %v5423_v40 = vadd.f32 %v13446_v42, %v5218_v37  ;;  %v5220_v4 = vpop.f32.mrb[86].mxu1  ;;  %6096 = vmatprep.mubr.bf16.mxu0 %v5668_v29 }
 0x702   : > { %v5424_v43 = vadd.f32 %v13443_v41, %v5220_v4  ;;  %v5222_v44 = vpop.f32.mrb[87].mxu1  ;;  %6097 = vmatmul.mubr.bf16.gmra.mrb[208].mxu0 %v5667_v27  ;;  %v5550_v6 = vmax.f32 %v5422_v34, 0.0 }
 0x703   : > { %v5425_v45 = vadd.f32 %v13446_v42, %v5222_v44  ;;  %v5551_v49 = vmax.f32 %v5423_v40, 0.0 }
 0x704   : > { %v5552_v46 = vmax.f32 %v5424_v43, 0.0 }
 0x705   : > { %v5553_v50 = vmax.f32 %v5425_v45, 0.0 }
 0x706   : > { %v5669_v51 = vpack.c.bf16 %v5552_v46, %v5550_v6 }
 0x707   : > { %v5226_v52 = vpop.f32.mrb[88].mxu1  ;;  %v5670_v0 = vpack.c.bf16 %v5553_v50, %v5551_v49  ;;  %v11462_v50 = vld [vmem:[%s16205_s5 + $0x90] ss:$12 sps:$4 sm:$0xff]  }
 0x708   : > { %v5426_v53 = vadd.f32 %v13443_v41, %v5226_v52  ;;  %v5228_v54 = vpop.f32.mrb[89].mxu1 }
 0x709   : > { %v5427_v3 = vadd.f32 %v13446_v42, %v5228_v54  ;;  %v5230_v55 = vpop.f32.mrb[90].mxu1  ;;  %6106 = vmatprep.mubr.bf16.mxu0 %v5670_v0 }
 0x70a   : > { %v5428_v16 = vadd.f32 %v13443_v41, %v5230_v55  ;;  %v5232_v38 = vpop.f32.mrb[91].mxu1  ;;  %6107 = vmatmul.mubr.bf16.gmra.mrb[212].mxu0 %v5669_v51  ;;  %v5554_v57 = vmax.f32 %v5426_v53, 0.0  ;;  %v11464_v51 = vld [vmem:[%s16205_s5 + $0x94] ss:$12 sps:$4 sm:$0xff]  }
 0x70b   : > { %v5429_v56 = vadd.f32 %v13446_v42, %v5232_v38  ;;  %v5555_v59 = vmax.f32 %v5427_v3, 0.0  ;;  %7509 = vmatprep.subr.bf16.mxu1 %v11464_v51 }
 0x70c   : > { %v5556_v58 = vmax.f32 %v5428_v16, 0.0  ;;  %7510 = vmatpush1.bf16.msra.mxu1 %v11462_v50 }
 0x70d   : > { %v5557_v60 = vmax.f32 %v5429_v56, 0.0 }
 0x70e   : > { %v5671_v61 = vpack.c.bf16 %v5556_v58, %v5554_v57 }
 0x70f   : > { %v5236_v62 = vpop.f32.mrb[92].mxu1  ;;  %v5672_v63 = vpack.c.bf16 %v5557_v60, %v5555_v59 }
 0x710   : > { %v5430_v1 = vadd.f32 %v13443_v41, %v5236_v62  ;;  %v5238_v5 = vpop.f32.mrb[93].mxu1 }
 0x711   : > { %v5431_v7 = vadd.f32 %v13446_v42, %v5238_v5  ;;  %v5240_v8 = vpop.f32.mrb[94].mxu1  ;;  %6116 = vmatprep.mubr.bf16.mxu0 %v5672_v63 }
 0x712   : > { %v5432_v9 = vadd.f32 %v13443_v41, %v5240_v8  ;;  %v5242_v10 = vpop.f32.mrb[95].mxu1  ;;  %6117 = vmatmul.mubr.bf16.gmra.mrb[216].mxu0 %v5671_v61  ;;  %v5558_v12 = vmax.f32 %v5430_v1, 0.0  ;;  %v10469_v8 = vld [vmem:[%s16204_s4 + $0xc] sm:$0x3] }
 0x713   : > { %v5433_v11 = vadd.f32 %v13446_v42, %v5242_v10  ;;  %v5559_v17 = vmax.f32 %v5431_v7, 0.0  ;;  %v13709_v15 = vrot.slane %v10469_v8, %v12208_v33 }
 0x714   : > { %v5560_v13 = vmax.f32 %v5432_v9, 0.0 }
 0x715   : > { %v5561_v18 = vmax.f32 %v5433_v11, 0.0 }
 0x716   : > { %v5673_v19 = vpack.c.bf16 %v5560_v13, %v5558_v12 }
 0x717   : > { %v5246_v32 = vpop.f32.mrb[96].mxu1  ;;  %v5674_v39 = vpack.c.bf16 %v5561_v18, %v5559_v17  ;;  %v13713_v18 = vrot.slane %v10469_v8, %v12214_v35 }
 0x718   : > { %v5434_v20 = vadd.f32 %v13443_v41, %v5246_v32  ;;  %v5248_v36 = vpop.f32.mrb[97].mxu1 }
 0x719   : > { %v5435_v21 = vadd.f32 %v13446_v42, %v5248_v36  ;;  %v5250_v22 = vpop.f32.mrb[98].mxu1  ;;  %6126 = vmatprep.mubr.bf16.mxu0 %v5674_v39  ;;  %v11465_v39 = vld [vmem:[%s16205_s5 + $0xa8] ss:$12 sps:$4 sm:$0xff]  }
 0x71a   : > { %v5436_v23 = vadd.f32 %v13443_v41, %v5250_v22  ;;  %v5252_v24 = vpop.f32.mrb[99].mxu1  ;;  %6127 = vmatmul.mubr.bf16.gmra.mrb[220].mxu0 %v5673_v19  ;;  %v5562_v26 = vmax.f32 %v5434_v20, 0.0  ;;  %v11467_v20 = vld [vmem:[%s16205_s5 + $0xac] ss:$12 sps:$4 sm:$0xff]  }
 0x71b   : > { %v5437_v25 = vadd.f32 %v13446_v42, %v5252_v24  ;;  %v5563_v28 = vmax.f32 %v5435_v21, 0.0  ;;  %7511 = vmatprep.subr.bf16.mxu1 %v11467_v20 }
 0x71c   : > { %v5564_v27 = vmax.f32 %v5436_v23, 0.0  ;;  %7512 = vmatpush1.bf16.msra.mxu1 %v11465_v39 }
 0x71d   : > { %v5565_v29 = vmax.f32 %v5437_v25, 0.0 }
 0x71e   : > { %v5675_v34 = vpack.c.bf16 %v5564_v27, %v5562_v26 }
 0x71f   : > { %v5256_v37 = vpop.f32.mrb[100].mxu1  ;;  %v5676_v40 = vpack.c.bf16 %v5565_v29, %v5563_v28 }
 0x720   : > { %v5438_v4 = vadd.f32 %v13443_v41, %v5256_v37  ;;  %v5258_v43 = vpop.f32.mrb[101].mxu1 }
 0x721   : > { %v5439_v44 = vadd.f32 %v13446_v42, %v5258_v43  ;;  %v5260_v45 = vpop.f32.mrb[102].mxu1  ;;  %6136 = vmatprep.mubr.bf16.mxu0 %v5676_v40 }
 0x722   : > { %v5440_v6 = vadd.f32 %v13443_v41, %v5260_v45  ;;  %v5262_v46 = vpop.f32.mrb[103].mxu1  ;;  %6137 = vmatmul.mubr.bf16.gmra.mrb[224].mxu0 %v5675_v34  ;;  %v5566_v48 = vmax.f32 %v5438_v4, 0.0 }
 0x723   : > { %v5441_v47 = vadd.f32 %v13446_v42, %v5262_v46  ;;  %v5567_v52 = vmax.f32 %v5439_v44, 0.0 }
 0x724   : > { %v5568_v49 = vmax.f32 %v5440_v6, 0.0 }
 0x725   : > { %v5569_v0 = vmax.f32 %v5441_v47, 0.0 }
 0x726   : > { %v5677_v53 = vpack.c.bf16 %v5568_v49, %v5566_v48 }
 0x727   : > { %v5266_v54 = vpop.f32.mrb[104].mxu1  ;;  %v5678_v3 = vpack.c.bf16 %v5569_v0, %v5567_v52 }
 0x728   : > { %v5442_v55 = vadd.f32 %v13443_v41, %v5266_v54  ;;  %v5268_v16 = vpop.f32.mrb[105].mxu1 }
 0x729   : > { %v5443_v38 = vadd.f32 %v13446_v42, %v5268_v16  ;;  %v5270_v56 = vpop.f32.mrb[106].mxu1  ;;  %6146 = vmatprep.mubr.bf16.mxu0 %v5678_v3 }
 0x72a   : > { %v5444_v57 = vadd.f32 %v13443_v41, %v5270_v56  ;;  %v5272_v58 = vpop.f32.mrb[107].mxu1  ;;  %6147 = vmatmul.mubr.bf16.gmra.mrb[228].mxu0 %v5677_v53  ;;  %v5570_v60 = vmax.f32 %v5442_v55, 0.0 }
 0x72b   : > { %v5445_v59 = vadd.f32 %v13446_v42, %v5272_v58  ;;  %v5571_v62 = vmax.f32 %v5443_v38, 0.0 }
 0x72c   : > { %v5572_v61 = vmax.f32 %v5444_v57, 0.0 }
 0x72d   : > { %v5573_v63 = vmax.f32 %v5445_v59, 0.0 }
 0x72e   : > { %v5679_v1 = vpack.c.bf16 %v5572_v61, %v5570_v60 }
 0x72f   : > { %v5276_v5 = vpop.f32.mrb[108].mxu1  ;;  %v5680_v7 = vpack.c.bf16 %v5573_v63, %v5571_v62 }
 0x730   : > { %v5446_v9 = vadd.f32 %v13443_v41, %v5276_v5  ;;  %v5278_v10 = vpop.f32.mrb[109].mxu1 }
 0x731   : > { %v5447_v11 = vadd.f32 %v13446_v42, %v5278_v10  ;;  %v5280_v12 = vpop.f32.mrb[110].mxu1  ;;  %6156 = vmatprep.mubr.bf16.mxu0 %v5680_v7 }
 0x732   : > { %v5448_v13 = vadd.f32 %v13443_v41, %v5280_v12  ;;  %v5282_v14 = vpop.f32.mrb[111].mxu1  ;;  %6157 = vmatmul.mubr.bf16.gmra.mrb[232].mxu0 %v5679_v1  ;;  %v5574_v19 = vmax.f32 %v5446_v9, 0.0 }
 0x733   : > { %v5449_v17 = vadd.f32 %v13446_v42, %v5282_v14  ;;  %v5575_v36 = vmax.f32 %v5447_v11, 0.0 }
 0x734   : > { %v5576_v32 = vmax.f32 %v5448_v13, 0.0 }
 0x735   : > { %v5577_v21 = vmax.f32 %v5449_v17, 0.0  ;;  %v5898_v22 = vpop.f32.mrb[128].mxu0 }
 0x736   : > { %v5681_v23 = vpack.c.bf16 %v5576_v32, %v5574_v19  ;;  %v5899_v24 = vadd.f32 %v5898_v22, %v13709_v15  ;;  %v5900_v25 = vpop.f32.mrb[129].mxu0 }
 0x737   : > { %v5901_v26 = vadd.f32 %v5900_v25, %v13713_v18  ;;  %v5286_v27 = vpop.f32.mrb[112].mxu1  ;;  %v5902_v28 = vpop.f32.mrb[130].mxu0  ;;  %v5682_v29 = vpack.c.bf16 %v5577_v21, %v5575_v36  ;;  %v11468_v36 = vld [vmem:[%s16205_s5 + $0xc0] ss:$12 sps:$4 sm:$0xff]   ;;  %v11470_v21 = vld [vmem:[%s16205_s5 + $0xc4] ss:$12 sps:$4 sm:$0xff]  }
 0x738   : > { %v5450_v34 = vadd.f32 %v13443_v41, %v5286_v27  ;;  %v5903_v37 = vadd.f32 %v5902_v28, %v13709_v15  ;;  %v5288_v40 = vpop.f32.mrb[113].mxu1  ;;  %v5904_v4 = vpop.f32.mrb[131].mxu0  ;;  %v6217_v6 = vmax.f32 %v5899_v24, 0.0  ;;  %7513 = vmatprep.subr.bf16.mxu1 %v11470_v21 }
 0x739   : > { %v5451_v43 = vadd.f32 %v13446_v42, %v5288_v40  ;;  %v5905_v44 = vadd.f32 %v5904_v4, %v13713_v18  ;;  %v5290_v45 = vpop.f32.mrb[114].mxu1  ;;  %6166 = vmatprep.mubr.bf16.mxu0 %v5682_v29  ;;  %v6218_v49 = vmax.f32 %v5901_v26, 0.0  ;;  %7514 = vmatpush1.bf16.msra.mxu1 %v11468_v36 }
 0x73a   : > { %v6219_v46 = vmax.f32 %v5903_v37, 0.0  ;;  %v5452_v47 = vadd.f32 %v13443_v41, %v5290_v45  ;;  %v5292_v48 = vpop.f32.mrb[115].mxu1  ;;  %6167 = vmatmul.mubr.bf16.gmra.mrb[236].mxu0 %v5681_v23  ;;  %v5578_v52 = vmax.f32 %v5450_v34, 0.0 }
 0x73b   : > { %v6220_v50 = vmax.f32 %v5905_v44, 0.0  ;;  %v5453_v51 = vadd.f32 %v13446_v42, %v5292_v48  ;;  %v5579_v54 = vmax.f32 %v5451_v43, 0.0 }
 0x73c   : > { %v13729_v0 = vpack.c.bf16 %v6219_v46, %v6217_v6  ;;  %v5580_v53 = vmax.f32 %v5452_v47, 0.0 }
 0x73d   : > { %v5581_v3 = vmax.f32 %v5453_v51, 0.0  ;;  %v5908_v55 = vpop.f32.mrb[132].mxu0  ;;  %v13731_v16 = vpack.c.bf16 %v6220_v50, %v6218_v49 }
 0x73e   : > { %v5683_v38 = vpack.c.bf16 %v5580_v53, %v5578_v52  ;;  %v5909_v56 = vadd.f32 %v5908_v55, %v13709_v15  ;;  %v5910_v57 = vpop.f32.mrb[133].mxu0 }
 0x73f   : > { %v5911_v58 = vadd.f32 %v5910_v57, %v13713_v18  ;;  %v5296_v59 = vpop.f32.mrb[116].mxu1  ;;  %v5912_v60 = vpop.f32.mrb[134].mxu0  ;;  %v5684_v61 = vpack.c.bf16 %v5581_v3, %v5579_v54 }
 0x740   : > { %v5454_v62 = vadd.f32 %v13443_v41, %v5296_v59  ;;  %v5913_v63 = vadd.f32 %v5912_v60, %v13709_v15  ;;  %v5298_v1 = vpop.f32.mrb[117].mxu1  ;;  %v5914_v5 = vpop.f32.mrb[135].mxu0  ;;  %v6221_v10 = vmax.f32 %v5909_v56, 0.0 }
 0x741   : > { %v5455_v7 = vadd.f32 %v13446_v42, %v5298_v1  ;;  %v5915_v8 = vadd.f32 %v5914_v5, %v13713_v18  ;;  %v5300_v9 = vpop.f32.mrb[118].mxu1  ;;  %6176 = vmatprep.mubr.bf16.mxu0 %v5684_v61  ;;  %v6222_v14 = vmax.f32 %v5911_v58, 0.0 }
 0x742   : > { %v6223_v11 = vmax.f32 %v5913_v63, 0.0  ;;  %v5456_v12 = vadd.f32 %v13443_v41, %v5300_v9  ;;  %v5302_v13 = vpop.f32.mrb[119].mxu1  ;;  %6177 = vmatmul.mubr.bf16.gmra.mrb[240].mxu0 %v5683_v38  ;;  %v5582_v32 = vmax.f32 %v5454_v62, 0.0 }
 0x743   : > { %v6224_v17 = vmax.f32 %v5915_v8, 0.0  ;;  %v5457_v19 = vadd.f32 %v13446_v42, %v5302_v13  ;;  %v5583_v22 = vmax.f32 %v5455_v7, 0.0 }
 0x744   : > { %v13741_v39 = vpack.c.bf16 %v6223_v11, %v6221_v10  ;;  %v5584_v20 = vmax.f32 %v5456_v12, 0.0 }
 0x745   : > { %v5585_v23 = vmax.f32 %v5457_v19, 0.0  ;;  %v5918_v24 = vpop.f32.mrb[136].mxu0  ;;  %v13749_v25 = vpack.c.bf16 %v6224_v17, %v6222_v14 }
 0x746   : > { %v5685_v26 = vpack.c.bf16 %v5584_v20, %v5582_v32  ;;  %v5919_v27 = vadd.f32 %v5918_v24, %v13709_v15  ;;  %v5920_v28 = vpop.f32.mrb[137].mxu0 }
 0x747   : > { %v5921_v29 = vadd.f32 %v5920_v28, %v13713_v18  ;;  %v5306_v34 = vpop.f32.mrb[120].mxu1  ;;  %v5922_v37 = vpop.f32.mrb[138].mxu0  ;;  %v5686_v40 = vpack.c.bf16 %v5585_v23, %v5583_v22  ;;  %v11473_v28 = vld [vmem:[%s16205_s5 + $0xdc] ss:$12 sps:$4 sm:$0xff]  }
 0x748   : > { %v5458_v4 = vadd.f32 %v13443_v41, %v5306_v34  ;;  %v5923_v43 = vadd.f32 %v5922_v37, %v13709_v15  ;;  %v5308_v44 = vpop.f32.mrb[121].mxu1  ;;  %v5924_v45 = vpop.f32.mrb[139].mxu0  ;;  %v6225_v48 = vmax.f32 %v5919_v27, 0.0  ;;  %v11471_v27 = vld [vmem:[%s16205_s5 + $0xd8] ss:$12 sps:$4 sm:$0xff]   ;;  %7515 = vmatprep.subr.bf16.mxu1 %v11473_v28 }
 0x749   : > { %v5459_v6 = vadd.f32 %v13446_v42, %v5308_v44  ;;  %v5925_v46 = vadd.f32 %v5924_v45, %v13713_v18  ;;  %v5310_v47 = vpop.f32.mrb[122].mxu1  ;;  %6186 = vmatprep.mubr.bf16.mxu0 %v5686_v40  ;;  %v6226_v52 = vmax.f32 %v5921_v29, 0.0  ;;  %7516 = vmatpush1.bf16.msra.mxu1 %v11471_v27 }
 0x74a   : > { %v6227_v49 = vmax.f32 %v5923_v43, 0.0  ;;  %v5460_v50 = vadd.f32 %v13443_v41, %v5310_v47  ;;  %v5312_v51 = vpop.f32.mrb[123].mxu1  ;;  %6187 = vmatmul.mubr.bf16.gmra.mrb[244].mxu0 %v5685_v26  ;;  %v5586_v3 = vmax.f32 %v5458_v4, 0.0 }
 0x74b   : > { %v6228_v53 = vmax.f32 %v5925_v46, 0.0  ;;  %v5461_v54 = vadd.f32 %v13446_v42, %v5312_v51  ;;  %v5587_v56 = vmax.f32 %v5459_v6, 0.0 }
 0x74c   : > { %v13759_v55 = vpack.c.bf16 %v6227_v49, %v6225_v48  ;;  %v5588_v38 = vmax.f32 %v5460_v50, 0.0 }
 0x74d   : > { %v5589_v57 = vmax.f32 %v5461_v54, 0.0  ;;  %v5928_v58 = vpop.f32.mrb[140].mxu0  ;;  %v13761_v59 = vpack.c.bf16 %v6228_v53, %v6226_v52 }
 0x74e   : > { %v5687_v60 = vpack.c.bf16 %v5588_v38, %v5586_v3  ;;  %v5929_v61 = vadd.f32 %v5928_v58, %v13709_v15  ;;  %v5930_v62 = vpop.f32.mrb[141].mxu0 }
 0x74f   : > { %v5931_v63 = vadd.f32 %v5930_v62, %v13713_v18  ;;  %v5316_v1 = vpop.f32.mrb[124].mxu1  ;;  %v5932_v5 = vpop.f32.mrb[142].mxu0  ;;  %v5688_v7 = vpack.c.bf16 %v5589_v57, %v5587_v56 }
 0x750   : > { %v5462_v8 = vadd.f32 %v13443_v41, %v5316_v1  ;;  %v5933_v9 = vadd.f32 %v5932_v5, %v13709_v15  ;;  %v5318_v10 = vpop.f32.mrb[125].mxu1  ;;  %v5934_v11 = vpop.f32.mrb[143].mxu0  ;;  %v6229_v17 = vmax.f32 %v5929_v61, 0.0 }
 0x751   : > { %v5463_v12 = vadd.f32 %v13446_v42, %v5318_v10  ;;  %v5935_v13 = vadd.f32 %v5934_v11, %v13713_v18  ;;  %v5320_v14 = vpop.f32.mrb[126].mxu1  ;;  %6196 = vmatprep.mubr.bf16.mxu0 %v5688_v7  ;;  %v6230_v36 = vmax.f32 %v5931_v63, 0.0  ;;  %v11474_v7 = vld [vmem:[%s16205_s5 + $0xf0] ss:$12 sps:$4 sm:$0xff]  }
 0x752   : > { %v6231_v19 = vmax.f32 %v5933_v9, 0.0  ;;  %v5464_v32 = vadd.f32 %v13443_v41, %v5320_v14  ;;  %v5322_v20 = vpop.f32.mrb[127].mxu1  ;;  %6197 = vmatmul.mubr.bf16.gmra.mrb[248].mxu0 %v5687_v60  ;;  %v5590_v23 = vmax.f32 %v5462_v8, 0.0  ;;  %v11476_v8 = vld [vmem:[%s16205_s5 + $0xf4] ss:$12 sps:$4 sm:$0xff]  }
 0x753   : > { %v6232_v21 = vmax.f32 %v5935_v13, 0.0  ;;  %v5465_v22 = vadd.f32 %v13446_v42, %v5322_v20  ;;  %v5591_v29 = vmax.f32 %v5463_v12, 0.0  ;;  %7517 = vmatprep.subr.bf16.mxu1 %v11476_v8 }
 0x754   : > { %v13771_v24 = vpack.c.bf16 %v6231_v19, %v6229_v17  ;;  %v5592_v26 = vmax.f32 %v5464_v32, 0.0  ;;  %7518 = vmatpush1.bf16.msra.mxu1 %v11474_v7 }
 0x755   : > { %v5593_v41 = vmax.f32 %v5465_v22, 0.0  ;;  %v5938_v34 = vpop.f32.mrb[144].mxu0  ;;  %v13779_v37 = vpack.c.bf16 %v6232_v21, %v6230_v36 }
 0x756   : > { %v5689_v40 = vpack.c.bf16 %v5592_v26, %v5590_v23  ;;  %v5939_v42 = vadd.f32 %v5938_v34, %v13709_v15  ;;  %v5940_v4 = vpop.f32.mrb[145].mxu0 }
 0x757   : > { %v5941_v43 = vadd.f32 %v5940_v4, %v13713_v18  ;;  %v5942_v44 = vpop.f32.mrb[146].mxu0  ;;  %v5690_v45 = vpack.c.bf16 %v5593_v41, %v5591_v29 }
 0x758   : > { %v5943_v6 = vadd.f32 %v5942_v44, %v13709_v15  ;;  %v5944_v46 = vpop.f32.mrb[147].mxu0  ;;  %v6233_v48 = vmax.f32 %v5939_v42, 0.0  ;;  %v11477_v44 = vld [vmem:[%s16205_s5 + $0x108] ss:$12 sps:$4 sm:$0xff]  }
 0x759   : > { %v5945_v47 = vadd.f32 %v5944_v46, %v13713_v18  ;;  %6206 = vmatprep.mubr.bf16.mxu0 %v5690_v45  ;;  %v6234_v50 = vmax.f32 %v5941_v43, 0.0  ;;  %v11479_v45 = vld [vmem:[%s16205_s5 + $0x10c] ss:$12 sps:$4 sm:$0xff]  }
 0x75a   : > { %v6235_v49 = vmax.f32 %v5943_v6, 0.0  ;;  %6207 = vmatmul.mubr.bf16.gmra.mrb[252].mxu0 %v5689_v40  ;;  %7519 = vmatprep.subr.bf16.mxu1 %v11479_v45 }
 0x75b   : > { %v6236_v51 = vmax.f32 %v5945_v47, 0.0  ;;  %6647 = vmatprep.mubr.bf16.mxu0 %v13731_v16  ;;  %7520 = vmatpush1.bf16.msra.mxu1 %v11477_v44 }
 0x75c   : > { %v13786_v52 = vpack.c.bf16 %v6235_v49, %v6233_v48 }
 0x75d   : > { %v5948_v53 = vpop.f32.mrb[148].mxu0  ;;  %v13788_v54 = vpack.c.bf16 %v6236_v51, %v6234_v50 }
 0x75e   : > { %v5949_v3 = vadd.f32 %v5948_v53, %v13709_v15  ;;  %v5950_v38 = vpop.f32.mrb[149].mxu0 }
 0x75f   : > { %v5951_v56 = vadd.f32 %v5950_v38, %v13713_v18  ;;  %v5952_v57 = vpop.f32.mrb[150].mxu0 }
 0x760   : > { %v5953_v58 = vadd.f32 %v5952_v57, %v13709_v15  ;;  %v5954_v60 = vpop.f32.mrb[151].mxu0  ;;  %v6237_v62 = vmax.f32 %v5949_v3, 0.0 }
 0x761   : > { %v5955_v61 = vadd.f32 %v5954_v60, %v13713_v18  ;;  %v6238_v16 = vmax.f32 %v5951_v56, 0.0 }
 0x762   : > { %v6239_v63 = vmax.f32 %v5953_v58, 0.0  ;;  %6648 = vmatmul.mubr.bf16.vlgmr.msra.gmra.mrb[0].mxu0 %v13729_v0 }
 0x763   : > { %v6240_v1 = vmax.f32 %v5955_v61, 0.0  ;;  %6657 = vmatprep.mubr.bf16.mxu0 %v13749_v25 }
 0x764   : > { %v13796_v5 = vpack.c.bf16 %v6239_v63, %v6237_v62 }
 0x765   : > { %v5958_v9 = vpop.f32.mrb[152].mxu0  ;;  %v13804_v10 = vpack.c.bf16 %v6240_v1, %v6238_v16 }
 0x766   : > { %v5959_v11 = vadd.f32 %v5958_v9, %v13709_v15  ;;  %v5960_v0 = vpop.f32.mrb[153].mxu0 }
 0x767   : > { %v5961_v12 = vadd.f32 %v5960_v0, %v13713_v18  ;;  %v5962_v25 = vpop.f32.mrb[154].mxu0 }
 0x768   : > { %v5963_v13 = vadd.f32 %v5962_v25, %v13709_v15  ;;  %v5964_v14 = vpop.f32.mrb[155].mxu0  ;;  %v6241_v19 = vmax.f32 %v5959_v11, 0.0  ;;  %v11482_v25 = vld [vmem:[%s16205_s5 + $0x124] ss:$12 sps:$4 sm:$0xff]  }
 0x769   : > { %v5965_v17 = vadd.f32 %v5964_v14, %v13713_v18  ;;  %v6242_v20 = vmax.f32 %v5961_v12, 0.0  ;;  %v11480_v12 = vld [vmem:[%s16205_s5 + $0x120] ss:$12 sps:$4 sm:$0xff]   ;;  %7521 = vmatprep.subr.bf16.mxu1 %v11482_v25 }
 0x76a   : > { %v6243_v32 = vmax.f32 %v5963_v13, 0.0  ;;  %6658 = vmatmul.mubr.bf16.gmra.mrb[4].mxu0 %v13741_v39  ;;  %7522 = vmatpush1.bf16.msra.mxu1 %v11480_v12 }
 0x76b   : > { %v6244_v36 = vmax.f32 %v5965_v17, 0.0  ;;  %6667 = vmatprep.mubr.bf16.mxu0 %v13761_v59 }
 0x76c   : > { %v13812_v21 = vpack.c.bf16 %v6243_v32, %v6241_v19 }
 0x76d   : > { %v5968_v22 = vpop.f32.mrb[156].mxu0  ;;  %v13814_v23 = vpack.c.bf16 %v6244_v36, %v6242_v20 }
 0x76e   : > { %v5969_v26 = vadd.f32 %v5968_v22, %v13709_v15  ;;  %v5970_v27 = vpop.f32.mrb[157].mxu0 }
 0x76f   : > { %v5971_v28 = vadd.f32 %v5970_v27, %v13713_v18  ;;  %v5972_v29 = vpop.f32.mrb[158].mxu0 }
 0x770   : > { %v5973_v41 = vadd.f32 %v5972_v29, %v13709_v15  ;;  %v5974_v34 = vpop.f32.mrb[159].mxu0  ;;  %v6245_v40 = vmax.f32 %v5969_v26, 0.0 }
 0x771   : > { %v5975_v39 = vadd.f32 %v5974_v34, %v13713_v18  ;;  %v6246_v59 = vmax.f32 %v5971_v28, 0.0 }
 0x772   : > { %v6247_v42 = vmax.f32 %v5973_v41, 0.0  ;;  %6668 = vmatmul.mubr.bf16.gmra.mrb[8].mxu0 %v13759_v55 }
 0x773   : > { %v6248_v4 = vmax.f32 %v5975_v39, 0.0  ;;  %6677 = vmatprep.mubr.bf16.mxu0 %v13779_v37 }
 0x774   : > { %v13822_v43 = vpack.c.bf16 %v6247_v42, %v6245_v40 }
 0x775   : > { %v5978_v6 = vpop.f32.mrb[160].mxu0  ;;  %v13830_v46 = vpack.c.bf16 %v6248_v4, %v6246_v59 }
 0x776   : > { %v5979_v47 = vadd.f32 %v5978_v6, %v13709_v15  ;;  %v5980_v55 = vpop.f32.mrb[161].mxu0 }
 0x777   : > { %v5981_v48 = vadd.f32 %v5980_v55, %v13713_v18  ;;  %v5982_v37 = vpop.f32.mrb[162].mxu0 }
 0x778   : > { %v5983_v49 = vadd.f32 %v5982_v37, %v13709_v15  ;;  %v5984_v50 = vpop.f32.mrb[163].mxu0  ;;  %v6249_v53 = vmax.f32 %v5979_v47, 0.0  ;;  %v11485_v37 = vld [vmem:[%s16205_s5 + $0x13c] ss:$12 sps:$4 sm:$0xff]  }
 0x779   : > { %v5985_v51 = vadd.f32 %v5984_v50, %v13713_v18  ;;  %v6250_v38 = vmax.f32 %v5981_v48, 0.0  ;;  %v11483_v48 = vld [vmem:[%s16205_s5 + $0x138] ss:$12 sps:$4 sm:$0xff]   ;;  %7523 = vmatprep.subr.bf16.mxu1 %v11485_v37 }
 0x77a   : > { %v6251_v3 = vmax.f32 %v5983_v49, 0.0  ;;  %6678 = vmatmul.mubr.bf16.gmra.mrb[12].mxu0 %v13771_v24  ;;  %7524 = vmatpush1.bf16.msra.mxu1 %v11483_v48 }
 0x77b   : > { %v6252_v56 = vmax.f32 %v5985_v51, 0.0  ;;  %6687 = vmatprep.mubr.bf16.mxu0 %v13788_v54 }
 0x77c   : > { %v13838_v57 = vpack.c.bf16 %v6251_v3, %v6249_v53 }
 0x77d   : > { %v5988_v58 = vpop.f32.mrb[164].mxu0  ;;  %v13840_v60 = vpack.c.bf16 %v6252_v56, %v6250_v38 }
 0x77e   : > { %v5989_v61 = vadd.f32 %v5988_v58, %v13709_v15  ;;  %v5990_v62 = vpop.f32.mrb[165].mxu0 }
 0x77f   : > { %v5991_v63 = vadd.f32 %v5990_v62, %v13713_v18  ;;  %v5992_v16 = vpop.f32.mrb[166].mxu0 }
 0x780   : > { %v5993_v1 = vadd.f32 %v5992_v16, %v13709_v15  ;;  %v5994_v7 = vpop.f32.mrb[167].mxu0  ;;  %v6253_v8 = vmax.f32 %v5989_v61, 0.0 }
 0x781   : > { %v5995_v24 = vadd.f32 %v5994_v7, %v13713_v18  ;;  %v6254_v54 = vmax.f32 %v5991_v63, 0.0 }
 0x782   : > { %v6255_v9 = vmax.f32 %v5993_v1, 0.0  ;;  %6688 = vmatmul.mubr.bf16.gmra.mrb[16].mxu0 %v13786_v52 }
 0x783   : > { %v6256_v11 = vmax.f32 %v5995_v24, 0.0  ;;  %6697 = vmatprep.mubr.bf16.mxu0 %v13804_v10 }
 0x784   : > { %v13848_v0 = vpack.c.bf16 %v6255_v9, %v6253_v8 }
 0x785   : > { %v5998_v13 = vpop.f32.mrb[168].mxu0  ;;  %v13856_v14 = vpack.c.bf16 %v6256_v11, %v6254_v54 }
 0x786   : > { %v5999_v17 = vadd.f32 %v5998_v13, %v13709_v15  ;;  %v6000_v52 = vpop.f32.mrb[169].mxu0 }
 0x787   : > { %v6001_v19 = vadd.f32 %v6000_v52, %v13713_v18  ;;  %v6002_v10 = vpop.f32.mrb[170].mxu0 }
 0x788   : > { %v6003_v32 = vadd.f32 %v6002_v10, %v13709_v15  ;;  %v6004_v20 = vpop.f32.mrb[171].mxu0  ;;  %v6257_v22 = vmax.f32 %v5999_v17, 0.0  ;;  %v11486_v10 = vld [vmem:[%s16205_s5 + $0x150] ss:$12 sps:$4 sm:$0xff]  }
 0x789   : > { %v6005_v36 = vadd.f32 %v6004_v20, %v13713_v18  ;;  %v6258_v27 = vmax.f32 %v6001_v19, 0.0 }
 0x78a   : > { %v6259_v26 = vmax.f32 %v6003_v32, 0.0  ;;  %6698 = vmatmul.mubr.bf16.gmra.mrb[20].mxu0 %v13796_v5  ;;  %v11488_v32 = vld [vmem:[%s16205_s5 + $0x154] ss:$12 sps:$4 sm:$0xff]  }
 0x78b   : > { %v6260_v28 = vmax.f32 %v6005_v36, 0.0  ;;  %6707 = vmatprep.mubr.bf16.mxu0 %v13814_v23  ;;  %7525 = vmatprep.subr.bf16.mxu1 %v11488_v32  ;;  %v11499_v32 = vld [vmem:[%s16205_s5 + $0xb0] ss:$12 sps:$4 sm:$0xff]  }
 0x78c   : > { %v13864_v29 = vpack.c.bf16 %v6259_v26, %v6257_v22  ;;  %7526 = vmatpush1.bf16.msra.mxu1 %v11486_v10 }
 0x78d   : > { %v6008_v41 = vpop.f32.mrb[172].mxu0  ;;  %v13866_v34 = vpack.c.bf16 %v6260_v28, %v6258_v27 }
 0x78e   : > { %v6009_v39 = vadd.f32 %v6008_v41, %v13709_v15  ;;  %v6010_v40 = vpop.f32.mrb[173].mxu0 }
 0x78f   : > { %v6011_v42 = vadd.f32 %v6010_v40, %v13713_v18  ;;  %v6012_v59 = vpop.f32.mrb[174].mxu0  ;;  %v11491_v40 = vld [vmem:[%s16205_s5 + $0x38] ss:$12 sps:$4 sm:$0xff]  }
 0x790   : > { %v6013_v4 = vadd.f32 %v6012_v59, %v13709_v15  ;;  %v6014_v44 = vpop.f32.mrb[175].mxu0  ;;  %v6261_v45 = vmax.f32 %v6009_v39, 0.0 }
 0x791   : > { %v6015_v5 = vadd.f32 %v6014_v44, %v13713_v18  ;;  %v6262_v23 = vmax.f32 %v6011_v42, 0.0 }
 0x792   : > { %v6263_v6 = vmax.f32 %v6013_v4, 0.0  ;;  %6708 = vmatmul.mubr.bf16.gmra.mrb[24].mxu0 %v13812_v21 }
 0x793   : > { %v6264_v47 = vmax.f32 %v6015_v5, 0.0  ;;  %6717 = vmatprep.mubr.bf16.mxu0 %v13830_v46 }
 0x794   : > { %v13874_v55 = vpack.c.bf16 %v6263_v6, %v6261_v45 }
 0x795   : > { %v6018_v49 = vpop.f32.mrb[176].mxu0  ;;  %v13882_v50 = vpack.c.bf16 %v6264_v47, %v6262_v23  ;;  %v11495_v23 = vld [vmem:[%s16205_s5 + $0x50] ss:$12 sps:$4 sm:$0xff]  }
 0x796   : > { %v6019_v51 = vadd.f32 %v6018_v49, %v13709_v15  ;;  %v6020_v21 = vpop.f32.mrb[177].mxu0 }
 0x797   : > { %v6021_v53 = vadd.f32 %v6020_v21, %v13713_v18  ;;  %v6022_v46 = vpop.f32.mrb[178].mxu0  ;;  %v11496_v21 = vld [vmem:[%s16205_s5 + $0x68] ss:$12 sps:$4 sm:$0xff]  }
 0x798   : > { %v6023_v3 = vadd.f32 %v6022_v46, %v13709_v15  ;;  %v6024_v38 = vpop.f32.mrb[179].mxu0  ;;  %v6265_v58 = vmax.f32 %v6019_v51, 0.0 }
 0x799   : > { %v6025_v56 = vadd.f32 %v6024_v38, %v13713_v18  ;;  %v6266_v62 = vmax.f32 %v6021_v53, 0.0 }
 0x79a   : > { %v6267_v61 = vmax.f32 %v6023_v3, 0.0  ;;  %6718 = vmatmul.mubr.bf16.gmra.mrb[28].mxu0 %v13822_v43 }
 0x79b   : > { %v6268_v63 = vmax.f32 %v6025_v56, 0.0  ;;  %6727 = vmatprep.mubr.bf16.mxu0 %v13840_v60  ;;  %v11489_v60 = vld [vmem:[%s16205_s5 + $0x8] ss:$12 sps:$4 sm:$0xff]  }
 0x79c   : > { %v13890_v16 = vpack.c.bf16 %v6267_v61, %v6265_v58  ;;  %7851 = vmatpush1.bf16.msra.mxu0 %v11489_v60  ;;  %v11492_v58 = vld [vmem:[%s16205_s5 + $0x168] ss:$12 sps:$4 sm:$0xff]   ;;  %v11494_v61 = vld [vmem:[%s16205_s5 + $0x16c] ss:$12 sps:$4 sm:$0xff]  }
 0x79d   : > { %v6028_v1 = vpop.f32.mrb[180].mxu0  ;;  %v13892_v7 = vpack.c.bf16 %v6268_v63, %v6266_v62  ;;  %7852 = vmatprep.subr.bf16.mxu0 %v11870_v2  ;;  %7527 = vmatprep.subr.bf16.mxu1 %v11494_v61 }
 0x79e   : > { %v6029_v24 = vadd.f32 %v6028_v1, %v13709_v15  ;;  %v6030_v8 = vpop.f32.mrb[181].mxu0  ;;  %7528 = vmatpush1.bf16.msra.mxu1 %v11492_v58  ;;  %v11504_v58 = vld [vmem:[%s16205_s5 + $0x110] ss:$12 sps:$4 sm:$0xff]  }
 0x79f   : > { %v6031_v9 = vadd.f32 %v6030_v8, %v13713_v18  ;;  %v6032_v54 = vpop.f32.mrb[182].mxu0 }
 0x7a0   : > { %v6033_v11 = vadd.f32 %v6032_v54, %v13709_v15  ;;  %v6034_v12 = vpop.f32.mrb[183].mxu0  ;;  %v6269_v25 = vmax.f32 %v6029_v24, 0.0 }
 0x7a1   : > { %v6035_v43 = vadd.f32 %v6034_v12, %v13713_v18  ;;  %v6270_v17 = vmax.f32 %v6031_v9, 0.0  ;;  %v11498_v12 = vld [vmem:[%s16205_s5 + $0x98] ss:$12 sps:$4 sm:$0xff]  }
 0x7a2   : > { %v6271_v13 = vmax.f32 %v6033_v11, 0.0  ;;  %6728 = vmatmul.mubr.bf16.gmra.mrb[32].mxu0 %v13838_v57  ;;  %v11490_v57 = vld [vmem:[%s16205_s5 + $0x20] ss:$12 sps:$4 sm:$0xff]  }
 0x7a3   : > { %v6272_v52 = vmax.f32 %v6035_v43, 0.0  ;;  %6737 = vmatprep.mubr.bf16.mxu0 %v13856_v14  ;;  %7853 = vmatpush1.bf16.msra.mxu0 %v11490_v57 }
 0x7a4   : > { %v13903_v19 = vpack.c.bf16 %v6271_v13, %v6269_v25  ;;  %7854 = vmatprep.subr.bf16.mxu0 %v11870_v2 }
 0x7a5   : > { %v6038_v20 = vpop.f32.mrb[184].mxu0  ;;  %v13912_v36 = vpack.c.bf16 %v6272_v52, %v6270_v17 }
 0x7a6   : > { %v6039_v14 = vadd.f32 %v6038_v20, %v13709_v15  ;;  %v6040_v22 = vpop.f32.mrb[185].mxu0 }
 0x7a7   : > { %v6041_v26 = vadd.f32 %v6040_v22, %v13713_v18  ;;  %v6042_v27 = vpop.f32.mrb[186].mxu0  ;;  %7855 = vmatpush1.bf16.msra.mxu0 %v11491_v40 }
 0x7a8   : > { %v6043_v28 = vadd.f32 %v6042_v27, %v13709_v15  ;;  %v6044_v41 = vpop.f32.mrb[187].mxu0  ;;  %v6273_v42 = vmax.f32 %v6039_v14, 0.0  ;;  %7856 = vmatprep.subr.bf16.mxu0 %v11870_v2  ;;  %v11501_v27 = vld [vmem:[%s16205_s5 + $0xc8] ss:$12 sps:$4 sm:$0xff]  }
 0x7a9   : > { %v6045_v39 = vadd.f32 %v6044_v41, %v13713_v18  ;;  %v6274_v4 = vmax.f32 %v6041_v26, 0.0 }
 0x7aa   : > { %v6275_v59 = vmax.f32 %v6043_v28, 0.0  ;;  %6738 = vmatmul.mubr.bf16.gmra.mrb[36].mxu0 %v13848_v0 }
 0x7ab   : > { %v6276_v44 = vmax.f32 %v6045_v39, 0.0  ;;  %6747 = vmatprep.mubr.bf16.mxu0 %v13866_v34  ;;  %7857 = vmatpush1.bf16.msra.mxu0 %v11495_v23 }
 0x7ac   : > { %v13927_v5 = vpack.c.bf16 %v6275_v59, %v6273_v42  ;;  %7858 = vmatprep.subr.bf16.mxu0 %v11870_v2  ;;  %v13992_v59 = vld [vmem:[%s16208_s8] sm:$0xff]  }
 0x7ad   : > { %v6048_v45 = vpop.f32.mrb[188].mxu0  ;;  %v13930_v6 = vpack.c.bf16 %v6276_v44, %v6274_v4  ;;  %10731 = vmatprep.subr.bf16.mxu1 %v13992_v59 }
 0x7ae   : > { %v6049_v47 = vadd.f32 %v6048_v45, %v13709_v15  ;;  %v6050_v48 = vpop.f32.mrb[189].mxu0 }
 0x7af   : > { %v6051_v0 = vadd.f32 %v6050_v48, %v13713_v18  ;;  %v6052_v37 = vpop.f32.mrb[190].mxu0  ;;  %7859 = vmatpush1.bf16.msra.mxu0 %v11496_v21 }
 0x7b0   : > { %v6053_v34 = vadd.f32 %v6052_v37, %v13709_v15  ;;  %v6054_v49 = vpop.f32.mrb[191].mxu0  ;;  %v6277_v53 = vmax.f32 %v6049_v47, 0.0  ;;  %7860 = vmatprep.subr.bf16.mxu0 %v11870_v2 }
 0x7b1   : > { %v6055_v51 = vadd.f32 %v6054_v49, %v13713_v18  ;;  %v6278_v3 = vmax.f32 %v6051_v0, 0.0 }
 0x7b2   : > { %v6279_v46 = vmax.f32 %v6053_v34, 0.0  ;;  %6748 = vmatmul.mubr.bf16.gmra.mrb[40].mxu0 %v13864_v29  ;;  %v11497_v29 = vld [vmem:[%s16205_s5 + $0x80] ss:$12 sps:$4 sm:$0xff]   ;;  %v11503_v34 = vld [vmem:[%s16205_s5 + $0xf8] ss:$12 sps:$4 sm:$0xff]  }
 0x7b3   : > { %v6280_v38 = vmax.f32 %v6055_v51, 0.0  ;;  %6757 = vmatprep.mubr.bf16.mxu0 %v13882_v50  ;;  %7861 = vmatpush1.bf16.msra.mxu0 %v11497_v29 }
 0x7b4   : > { %v13945_v56 = vpack.c.bf16 %v6279_v46, %v6277_v53  ;;  %7862 = vmatprep.subr.bf16.mxu0 %v11870_v2 }
 0x7b5   : > { %v6058_v62 = vpop.f32.mrb[192].mxu0  ;;  %v13954_v63 = vpack.c.bf16 %v6280_v38, %v6278_v3 }
 0x7b6   : > { %v6059_v50 = vadd.f32 %v6058_v62, %v13709_v15  ;;  %v6060_v1 = vpop.f32.mrb[193].mxu0 }
 0x7b7   : > { %v6061_v24 = vadd.f32 %v6060_v1, %v13713_v18  ;;  %v6062_v8 = vpop.f32.mrb[194].mxu0  ;;  %7863 = vmatpush1.bf16.msra.mxu0 %v11498_v12 }
 0x7b8   : > { %v6063_v9 = vadd.f32 %v6062_v8, %v13709_v15  ;;  %v6064_v54 = vpop.f32.mrb[195].mxu0  ;;  %v6281_v43 = vmax.f32 %v6059_v50, 0.0  ;;  %7864 = vmatprep.subr.bf16.mxu0 %v11870_v2 }
 0x7b9   : > { %v6065_v11 = vadd.f32 %v6064_v54, %v13713_v18  ;;  %v6282_v25 = vmax.f32 %v6061_v24, 0.0  ;;  %v11505_v24 = vld [vmem:[%s16205_s5 + $0x128] ss:$12 sps:$4 sm:$0xff]  }
 0x7ba   : > { %v6283_v60 = vmax.f32 %v6063_v9, 0.0  ;;  %6758 = vmatmul.mubr.bf16.gmra.mrb[44].mxu0 %v13874_v55 }
 0x7bb   : > { %v6284_v13 = vmax.f32 %v6065_v11, 0.0  ;;  %6767 = vmatprep.mubr.bf16.mxu0 %v13892_v7  ;;  %7865 = vmatpush1.bf16.msra.mxu0 %v11499_v32 }
 0x7bc   : > { %v13969_v17 = vpack.c.bf16 %v6283_v60, %v6281_v43  ;;  %7866 = vmatprep.subr.bf16.mxu0 %v11870_v2 }
 0x7bd   : > { %v6068_v52 = vpop.f32.mrb[196].mxu0  ;;  %v13972_v10 = vpack.c.bf16 %v6284_v13, %v6282_v25  ;;  %v11506_v25 = vld [vmem:[%s16205_s5 + $0x140] ss:$12 sps:$4 sm:$0xff]  }
 0x7be   : > { %v6069_v20 = vadd.f32 %v6068_v52, %v13709_v15  ;;  %v6070_v57 = vpop.f32.mrb[197].mxu0 }
 0x7bf   : > { %v6071_v55 = vadd.f32 %v6070_v57, %v13713_v18  ;;  %v6072_v14 = vpop.f32.mrb[198].mxu0  ;;  %7867 = vmatpush1.bf16.msra.mxu0 %v11501_v27 }
 0x7c0   : > { %v6073_v7 = vadd.f32 %v6072_v14, %v13709_v15  ;;  %v6074_v22 = vpop.f32.mrb[199].mxu0  ;;  %v6285_v28 = vmax.f32 %v6069_v20, 0.0  ;;  %7868 = vmatprep.subr.bf16.mxu0 %v11870_v2 }
 0x7c1   : > { %v6075_v26 = vadd.f32 %v6074_v22, %v13713_v18  ;;  %v6286_v39 = vmax.f32 %v6071_v55, 0.0  ;;  %v11507_v55 = vld [vmem:[%s16205_s5 + $0x158] ss:$12 sps:$4 sm:$0xff]  }
 0x7c2   : > { %v6287_v41 = vmax.f32 %v6073_v7, 0.0  ;;  %6768 = vmatmul.mubr.bf16.gmra.mrb[48].mxu0 %v13890_v16  ;;  %v11502_v16 = vld [vmem:[%s16205_s5 + $0xe0] ss:$12 sps:$4 sm:$0xff]  }
 0x7c3   : > { %v6288_v40 = vmax.f32 %v6075_v26, 0.0  ;;  %6777 = vmatprep.mubr.bf16.mxu0 %v13912_v36  ;;  %7869 = vmatpush1.bf16.msra.mxu0 %v11502_v16 }
 0x7c4   : > { %v13987_v42 = vpack.c.bf16 %v6287_v41, %v6285_v28  ;;  %7870 = vmatprep.subr.bf16.mxu0 %v11870_v2 }
 0x7c5   : > { %v6078_v4 = vpop.f32.mrb[200].mxu0  ;;  %v13995_v44 = vpack.c.bf16 %v6288_v40, %v6286_v39  ;;  %v11508_v39 = vld [vmem:[%s16205_s5 + $0x170] ss:$12 sps:$4 sm:$0xff]  }
 0x7c6   : > { %v6079_v45 = vadd.f32 %v6078_v4, %v13709_v15  ;;  %v6080_v36 = vpop.f32.mrb[201].mxu0 }
 0x7c7   : > { %v6081_v23 = vadd.f32 %v6080_v36, %v13713_v18  ;;  %v6082_v47 = vpop.f32.mrb[202].mxu0  ;;  %7871 = vmatpush1.bf16.msra.mxu0 %v11503_v34 }
 0x7c8   : > { %v6083_v48 = vadd.f32 %v6082_v47, %v13709_v15  ;;  %v6084_v0 = vpop.f32.mrb[203].mxu0  ;;  %v6289_v49 = vmax.f32 %v6079_v45, 0.0  ;;  %7872 = vmatprep.subr.bf16.mxu0 %v11870_v2 }
 0x7c9   : > { %v6085_v37 = vadd.f32 %v6084_v0, %v13713_v18  ;;  %v6290_v21 = vmax.f32 %v6081_v23, 0.0 }
 0x7ca   : > { %v6291_v51 = vmax.f32 %v6083_v48, 0.0  ;;  %6778 = vmatmul.mubr.bf16.gmra.mrb[52].mxu0 %v13903_v19 }
 0x7cb   : > { %v6292_v53 = vmax.f32 %v6085_v37, 0.0  ;;  %6787 = vmatprep.mubr.bf16.mxu0 %v13930_v6  ;;  %7873 = vmatpush1.bf16.msra.mxu0 %v11504_v58 }
 0x7cc   : > { %v14011_v46 = vpack.c.bf16 %v6291_v51, %v6289_v49  ;;  %7874 = vmatprep.subr.bf16.mxu0 %v11870_v2 }
 0x7cd   : > { %v6088_v3 = vpop.f32.mrb[204].mxu0  ;;  %v14014_v38 = vpack.c.bf16 %v6292_v53, %v6290_v21 }
 0x7ce   : > { %v6089_v61 = vadd.f32 %v6088_v3, %v13709_v15  ;;  %v6090_v62 = vpop.f32.mrb[205].mxu0 }
 0x7cf   : > { %v6091_v19 = vadd.f32 %v6090_v62, %v13713_v18  ;;  %v6092_v29 = vpop.f32.mrb[206].mxu0  ;;  %7875 = vmatpush1.bf16.msra.mxu0 %v11505_v24 }
 0x7d0   : > { %v6093_v6 = vadd.f32 %v6092_v29, %v13709_v15  ;;  %v6094_v50 = vpop.f32.mrb[207].mxu0  ;;  %v6293_v8 = vmax.f32 %v6089_v61, 0.0  ;;  %7876 = vmatprep.subr.bf16.mxu0 %v11870_v2 }
 0x7d1   : > { %v6095_v1 = vadd.f32 %v6094_v50, %v13713_v18  ;;  %v6294_v54 = vmax.f32 %v6091_v19, 0.0 }
 0x7d2   : > { %v6295_v9 = vmax.f32 %v6093_v6, 0.0  ;;  %6788 = vmatmul.mubr.bf16.gmra.mrb[56].mxu0 %v13927_v5 }
 0x7d3   : > { %v6296_v11 = vmax.f32 %v6095_v1, 0.0  ;;  %6797 = vmatprep.mubr.bf16.mxu0 %v13954_v63  ;;  %7877 = vmatpush1.bf16.msra.mxu0 %v11506_v25 }
 0x7d4   : > { %v14029_v12 = vpack.c.bf16 %v6295_v9, %v6293_v8  ;;  %7878 = vmatprep.subr.bf16.mxu0 %v11870_v2 }
 0x7d5   : > { %v6098_v43 = vpop.f32.mrb[208].mxu0  ;;  %v14032_v60 = vpack.c.bf16 %v6296_v11, %v6294_v54 }
 0x7d6   : > { %v6099_v13 = vadd.f32 %v6098_v43, %v13709_v15  ;;  %v6100_v52 = vpop.f32.mrb[209].mxu0 }
 0x7d7   : > { %v6101_v5 = vadd.f32 %v6100_v52, %v13713_v18  ;;  %v6102_v32 = vpop.f32.mrb[210].mxu0  ;;  %7879 = vmatpush1.bf16.msra.mxu0 %v11507_v55 }
 0x7d8   : > { %v6103_v63 = vadd.f32 %v6102_v32, %v13709_v15  ;;  %v6104_v20 = vpop.f32.mrb[211].mxu0  ;;  %v6297_v14 = vmax.f32 %v6099_v13, 0.0  ;;  %7880 = vmatprep.subr.bf16.mxu0 %v11870_v2 }
 0x7d9   : > { %v6105_v57 = vadd.f32 %v6104_v20, %v13713_v18  ;;  %v6298_v22 = vmax.f32 %v6101_v5, 0.0 }
 0x7da   : > { %v6299_v7 = vmax.f32 %v6103_v63, 0.0  ;;  %6798 = vmatmul.mubr.bf16.gmra.mrb[60].mxu0 %v13945_v56 }
 0x7db   : > { %v6300_v26 = vmax.f32 %v6105_v57, 0.0  ;;  %6807 = vmatprep.mubr.bf16.mxu0 %v13972_v10  ;;  %7881 = vmatpush1.bf16.msra.mxu0 %v11508_v39 }
 0x7dc   : > { %v14047_v27 = vpack.c.bf16 %v6299_v7, %v6297_v14 }
 0x7dd   : > { %v6108_v28 = vpop.f32.mrb[212].mxu0  ;;  %v6419_v41 = vpack.c.bf16 %v6300_v26, %v6298_v22 }
 0x7de   : > { %v6109_v40 = vadd.f32 %v6108_v28, %v13709_v15  ;;  %v6110_v4 = vpop.f32.mrb[213].mxu0 }
 0x7df   : > { %v6111_v56 = vadd.f32 %v6110_v4, %v13713_v18  ;;  %v6112_v16 = vpop.f32.mrb[214].mxu0 }
 0x7e0   : > { %v6113_v10 = vadd.f32 %v6112_v16, %v13709_v15  ;;  %v6114_v45 = vpop.f32.mrb[215].mxu0  ;;  %v6301_v23 = vmax.f32 %v6109_v40, 0.0 }
 0x7e1   : > { %v6115_v36 = vadd.f32 %v6114_v45, %v13713_v18  ;;  %v6302_v48 = vmax.f32 %v6111_v56, 0.0 }
 0x7e2   : > { %v6303_v47 = vmax.f32 %v6113_v10, 0.0  ;;  %6808 = vmatmul.mubr.bf16.gmra.mrb[64].mxu0 %v13969_v17 }
 0x7e3   : > { %v6304_v0 = vmax.f32 %v6115_v36, 0.0  ;;  %6817 = vmatprep.mubr.bf16.mxu0 %v13995_v44 }
 0x7e4   : > { %v14059_v37 = vpack.c.bf16 %v6303_v47, %v6301_v23 }
 0x7e5   : > { %v6118_v34 = vpop.f32.mrb[216].mxu0  ;;  %v6421_v49 = vpack.c.bf16 %v6304_v0, %v6302_v48 }
 0x7e6   : > { %v6119_v51 = vadd.f32 %v6118_v34, %v13709_v15  ;;  %v6120_v21 = vpop.f32.mrb[217].mxu0 }
 0x7e7   : > { %v6121_v53 = vadd.f32 %v6120_v21, %v13713_v18  ;;  %v6122_v3 = vpop.f32.mrb[218].mxu0 }
 0x7e8   : > { %v6123_v58 = vadd.f32 %v6122_v3, %v13709_v15  ;;  %v6124_v61 = vpop.f32.mrb[219].mxu0  ;;  %v6305_v17 = vmax.f32 %v6119_v51, 0.0 }
 0x7e9   : > { %v6125_v62 = vadd.f32 %v6124_v61, %v13713_v18  ;;  %v6306_v44 = vmax.f32 %v6121_v53, 0.0 }
 0x7ea   : > { %v6307_v19 = vmax.f32 %v6123_v58, 0.0  ;;  %6818 = vmatmul.mubr.bf16.gmra.mrb[68].mxu0 %v13987_v42 }
 0x7eb   : > { %v6308_v29 = vmax.f32 %v6125_v62, 0.0  ;;  %6827 = vmatprep.mubr.bf16.mxu0 %v14014_v38 }
 0x7ec   : > { %v14067_v6 = vpack.c.bf16 %v6307_v19, %v6305_v17 }
 0x7ed   : > { %v6128_v50 = vpop.f32.mrb[220].mxu0  ;;  %v6423_v1 = vpack.c.bf16 %v6308_v29, %v6306_v44 }
 0x7ee   : > { %v6129_v24 = vadd.f32 %v6128_v50, %v13709_v15  ;;  %v6130_v8 = vpop.f32.mrb[221].mxu0 }
 0x7ef   : > { %v6131_v9 = vadd.f32 %v6130_v8, %v13713_v18  ;;  %v6132_v54 = vpop.f32.mrb[222].mxu0 }
 0x7f0   : > { %v6133_v11 = vadd.f32 %v6132_v54, %v13709_v15  ;;  %v6134_v43 = vpop.f32.mrb[223].mxu0  ;;  %v6309_v42 = vmax.f32 %v6129_v24, 0.0 }
 0x7f1   : > { %v6135_v25 = vadd.f32 %v6134_v43, %v13713_v18  ;;  %v6310_v38 = vmax.f32 %v6131_v9, 0.0 }
 0x7f2   : > { %v6311_v13 = vmax.f32 %v6133_v11, 0.0  ;;  %6828 = vmatmul.mubr.bf16.gmra.mrb[72].mxu0 %v14011_v46 }
 0x7f3   : > { %v6312_v52 = vmax.f32 %v6135_v25, 0.0  ;;  %6837 = vmatprep.mubr.bf16.mxu0 %v14032_v60 }
 0x7f4   : > { %v14075_v5 = vpack.c.bf16 %v6311_v13, %v6309_v42 }
 0x7f5   : > { %v6138_v32 = vpop.f32.mrb[224].mxu0  ;;  %v6425_v63 = vpack.c.bf16 %v6312_v52, %v6310_v38 }
 0x7f6   : > { %v6139_v20 = vadd.f32 %v6138_v32, %v13709_v15  ;;  %v6140_v57 = vpop.f32.mrb[225].mxu0 }
 0x7f7   : > { %v6141_v55 = vadd.f32 %v6140_v57, %v13713_v18  ;;  %v6142_v14 = vpop.f32.mrb[226].mxu0 }
 0x7f8   : > { %v6143_v7 = vadd.f32 %v6142_v14, %v13709_v15  ;;  %v6144_v22 = vpop.f32.mrb[227].mxu0  ;;  %v6313_v46 = vmax.f32 %v6139_v20, 0.0 }
 0x7f9   : > { %v6145_v26 = vadd.f32 %v6144_v22, %v13713_v18  ;;  %v6314_v60 = vmax.f32 %v6141_v55, 0.0 }
 0x7fa   : > { %v6315_v28 = vmax.f32 %v6143_v7, 0.0  ;;  %6838 = vmatmul.mubr.bf16.gmra.mrb[76].mxu0 %v14029_v12 }
 0x7fb   : > { %v6316_v39 = vmax.f32 %v6145_v26, 0.0  ;;  %6847 = vmatprep.mubr.bf16.mxu0 %v6419_v41 }
 0x7fc   : > { %v14082_v40 = vpack.c.bf16 %v6315_v28, %v6313_v46 }
 0x7fd   : > { %v6148_v4 = vpop.f32.mrb[228].mxu0  ;;  %v6427_v56 = vpack.c.bf16 %v6316_v39, %v6314_v60 }
 0x7fe   : > { %v6149_v16 = vadd.f32 %v6148_v4, %v13709_v15  ;;  %v6150_v10 = vpop.f32.mrb[229].mxu0 }
 0x7ff   : > { %v6151_v45 = vadd.f32 %v6150_v10, %v13713_v18  ;;  %v6152_v36 = vpop.f32.mrb[230].mxu0 }
 0x800   : > { %v6153_v23 = vadd.f32 %v6152_v36, %v13709_v15  ;;  %v6154_v47 = vpop.f32.mrb[231].mxu0  ;;  %v6317_v0 = vmax.f32 %v6149_v16, 0.0 }
 0x801   : > { %v6155_v48 = vadd.f32 %v6154_v47, %v13713_v18  ;;  %v6318_v41 = vmax.f32 %v6151_v45, 0.0 }
 0x802   : > { %v6319_v12 = vmax.f32 %v6153_v23, 0.0  ;;  %6848 = vmatmul.mubr.bf16.gmra.mrb[80].mxu0 %v14047_v27 }
 0x803   : > { %v6320_v34 = vmax.f32 %v6155_v48, 0.0  ;;  %6857 = vmatprep.mubr.bf16.mxu0 %v6421_v49 }
 0x804   : > { %v14089_v51 = vpack.c.bf16 %v6319_v12, %v6317_v0 }
 0x805   : > { %v6158_v21 = vpop.f32.mrb[232].mxu0  ;;  %v6429_v53 = vpack.c.bf16 %v6320_v34, %v6318_v41 }
 0x806   : > { %v6159_v3 = vadd.f32 %v6158_v21, %v13709_v15  ;;  %v6160_v58 = vpop.f32.mrb[233].mxu0 }
 0x807   : > { %v6161_v61 = vadd.f32 %v6160_v58, %v13713_v18  ;;  %v6162_v62 = vpop.f32.mrb[234].mxu0 }
 0x808   : > { %v6163_v17 = vadd.f32 %v6162_v62, %v13709_v15  ;;  %v6164_v19 = vpop.f32.mrb[235].mxu0  ;;  %v6321_v29 = vmax.f32 %v6159_v3, 0.0 }
 0x809   : > { %v6165_v44 = vadd.f32 %v6164_v19, %v13713_v18  ;;  %v6322_v49 = vmax.f32 %v6161_v61, 0.0 }
 0x80a   : > { %v6323_v27 = vmax.f32 %v6163_v17, 0.0  ;;  %6858 = vmatmul.mubr.bf16.gmra.mrb[84].mxu0 %v14059_v37 }
 0x80b   : > { %v6324_v50 = vmax.f32 %v6165_v44, 0.0  ;;  %6867 = vmatprep.mubr.bf16.mxu0 %v6423_v1 }
 0x80c   : > { %v14096_v24 = vpack.c.bf16 %v6323_v27, %v6321_v29 }
 0x80d   : > { %v6168_v8 = vpop.f32.mrb[236].mxu0  ;;  %v6431_v9 = vpack.c.bf16 %v6324_v50, %v6322_v49 }
 0x80e   : > { %v6169_v54 = vadd.f32 %v6168_v8, %v13709_v15  ;;  %v6170_v11 = vpop.f32.mrb[237].mxu0 }
 0x80f   : > { %v6171_v43 = vadd.f32 %v6170_v11, %v13713_v18  ;;  %v6172_v25 = vpop.f32.mrb[238].mxu0 }
 0x810   : > { %v6173_v42 = vadd.f32 %v6172_v25, %v13709_v15  ;;  %v6174_v13 = vpop.f32.mrb[239].mxu0  ;;  %v6325_v52 = vmax.f32 %v6169_v54, 0.0 }
 0x811   : > { %v6175_v38 = vadd.f32 %v6174_v13, %v13713_v18  ;;  %v6326_v1 = vmax.f32 %v6171_v43, 0.0 }
 0x812   : > { %v6327_v37 = vmax.f32 %v6173_v42, 0.0  ;;  %6868 = vmatmul.mubr.bf16.gmra.mrb[88].mxu0 %v14067_v6 }
 0x813   : > { %v6328_v32 = vmax.f32 %v6175_v38, 0.0  ;;  %6877 = vmatprep.mubr.bf16.mxu0 %v6425_v63 }
 0x814   : > { %v14103_v20 = vpack.c.bf16 %v6327_v37, %v6325_v52  ;;  %v10534_v52 = vld [vmem:[%s16204_s4 + $0xe] sm:$0x3] }
 0x815   : > { %v6178_v57 = vpop.f32.mrb[240].mxu0  ;;  %v6433_v55 = vpack.c.bf16 %v6328_v32, %v6326_v1 }
 0x816   : > { %v6179_v14 = vadd.f32 %v6178_v57, %v13709_v15  ;;  %v6180_v7 = vpop.f32.mrb[241].mxu0  ;;  %v14141_v57 = vrot.slane %v10534_v52, %v12208_v33 }
 0x817   : > { %v6181_v22 = vadd.f32 %v6180_v7, %v13713_v18  ;;  %v6182_v26 = vpop.f32.mrb[242].mxu0 }
 0x818   : > { %v6183_v46 = vadd.f32 %v6182_v26, %v13709_v15  ;;  %v6184_v28 = vpop.f32.mrb[243].mxu0  ;;  %v6329_v39 = vmax.f32 %v6179_v14, 0.0 }
 0x819   : > { %v6185_v60 = vadd.f32 %v6184_v28, %v13713_v18  ;;  %v6330_v63 = vmax.f32 %v6181_v22, 0.0  ;;  %v14144_v22 = vrot.slane %v10534_v52, %v12214_v35 }
 0x81a   : > { %v6331_v6 = vmax.f32 %v6183_v46, 0.0  ;;  %6878 = vmatmul.mubr.bf16.gmra.mrb[92].mxu0 %v14075_v5 }
 0x81b   : > { %v6332_v4 = vmax.f32 %v6185_v60, 0.0  ;;  %6887 = vmatprep.mubr.bf16.mxu0 %v6427_v56 }
 0x81c   : > { %v14110_v16 = vpack.c.bf16 %v6331_v6, %v6329_v39 }
 0x81d   : > { %v6188_v10 = vpop.f32.mrb[244].mxu0  ;;  %v14112_v45 = vpack.c.bf16 %v6332_v4, %v6330_v63 }
 0x81e   : > { %v6189_v36 = vadd.f32 %v6188_v10, %v13709_v15  ;;  %v6190_v23 = vpop.f32.mrb[245].mxu0 }
 0x81f   : > { %v6191_v47 = vadd.f32 %v6190_v23, %v13713_v18  ;;  %v6192_v48 = vpop.f32.mrb[246].mxu0 }
 0x820   : > { %v6193_v0 = vadd.f32 %v6192_v48, %v13709_v15  ;;  %v6194_v12 = vpop.f32.mrb[247].mxu0  ;;  %v6333_v5 = vmax.f32 %v6189_v36, 0.0 }
 0x821   : > { %v6195_v41 = vadd.f32 %v6194_v12, %v13713_v18  ;;  %v6334_v56 = vmax.f32 %v6191_v47, 0.0 }
 0x822   : > { %v6335_v34 = vmax.f32 %v6193_v0, 0.0  ;;  %6888 = vmatmul.mubr.bf16.gmra.mrb[96].mxu0 %v14082_v40 }
 0x823   : > { %v6336_v21 = vmax.f32 %v6195_v41, 0.0  ;;  %6897 = vmatprep.mubr.bf16.mxu0 %v6429_v53  ;;  %v11509_v41 = vld [vmem:[%s16208_s8 + $0x8] sm:$0xff]  }
 0x824   : > { %v14119_v3 = vpack.c.bf16 %v6335_v34, %v6333_v5 }
 0x825   : > { %v6198_v58 = vpop.f32.mrb[248].mxu0  ;;  %v14121_v61 = vpack.c.bf16 %v6336_v21, %v6334_v56 }
 0x826   : > { %v6199_v62 = vadd.f32 %v6198_v58, %v13709_v15  ;;  %v6200_v17 = vpop.f32.mrb[249].mxu0 }
 0x827   : > { %v6201_v19 = vadd.f32 %v6200_v17, %v13713_v18  ;;  %v6202_v44 = vpop.f32.mrb[250].mxu0 }
 0x828   : > { %v6203_v29 = vadd.f32 %v6202_v44, %v13709_v15  ;;  %v6204_v27 = vpop.f32.mrb[251].mxu0  ;;  %v6337_v40 = vmax.f32 %v6199_v62, 0.0  ;;  %v11510_v62 = vld [vmem:[%s16208_s8 + $0x10] sm:$0xff]  }
 0x829   : > { %v6205_v49 = vadd.f32 %v6204_v27, %v13713_v18  ;;  %v6338_v53 = vmax.f32 %v6201_v19, 0.0 }
 0x82a   : > { %v6339_v50 = vmax.f32 %v6203_v29, 0.0  ;;  %6898 = vmatmul.mubr.bf16.gmra.mrb[100].mxu0 %v14089_v51 }
 0x82b   : > { %v6340_v8 = vmax.f32 %v6205_v49, 0.0  ;;  %6907 = vmatprep.mubr.bf16.mxu0 %v6431_v9 }
 0x82c   : > { %v14128_v54 = vpack.c.bf16 %v6339_v50, %v6337_v40 }
 0x82d   : > { %v6208_v11 = vpop.f32.mrb[252].mxu0  ;;  %v14130_v43 = vpack.c.bf16 %v6340_v8, %v6338_v53 }
 0x82e   : > { %v6209_v25 = vadd.f32 %v6208_v11, %v13709_v15  ;;  %v6210_v42 = vpop.f32.mrb[253].mxu0 }
 0x82f   : > { %v6211_v13 = vadd.f32 %v6210_v42, %v13713_v18  ;;  %v6212_v38 = vpop.f32.mrb[254].mxu0  ;;  %v11512_v42 = vld [vmem:[%s16208_s8 + $0x20] sm:$0xff]  }
 0x830   : > { %v6213_v51 = vadd.f32 %v6212_v38, %v13709_v15  ;;  %v6214_v37 = vpop.f32.mrb[255].mxu0  ;;  %v6341_v1 = vmax.f32 %v6209_v25, 0.0 }
 0x831   : > { %v6215_v9 = vadd.f32 %v6214_v37, %v13713_v18  ;;  %v6342_v14 = vmax.f32 %v6211_v13, 0.0 }
 0x832   : > { %v6343_v32 = vmax.f32 %v6213_v51, 0.0  ;;  %6908 = vmatmul.mubr.bf16.gmra.mrb[104].mxu0 %v14096_v24 }
 0x833   : > { %v6344_v7 = vmax.f32 %v6215_v9, 0.0  ;;  %6917 = vmatprep.mubr.bf16.mxu0 %v6433_v55 }
 0x834   : > { %v14146_v26 = vpack.c.bf16 %v6343_v32, %v6341_v1 }
 0x835   : > { %v6649_v46 = vpop.f32.mrb[0].mxu0  ;;  %v14148_v15 = vpack.c.bf16 %v6344_v7, %v6342_v14 }
 0x836   : > { %v6650_v18 = vadd.f32 %v6649_v46, %v14141_v57  ;;  %v6651_v28 = vpop.f32.mrb[1].mxu0 }
 0x837   : > { %v6652_v60 = vadd.f32 %v6651_v28, %v14144_v22  ;;  %v6653_v24 = vpop.f32.mrb[2].mxu0 }
 0x838   : > { %v6654_v39 = vadd.f32 %v6653_v24, %v14141_v57  ;;  %v6655_v6 = vpop.f32.mrb[3].mxu0  ;;  %v6968_v55 = vmax.f32 %v6650_v18, 0.0 }
 0x839   : > { %v6656_v63 = vadd.f32 %v6655_v6, %v14144_v22  ;;  %v6969_v10 = vmax.f32 %v6652_v60, 0.0 }
 0x83a   : > { %v6970_v4 = vmax.f32 %v6654_v39, 0.0  ;;  %6918 = vmatmul.mubr.bf16.gmra.mrb[108].mxu0 %v14103_v20 }
 0x83b   : > { %v6971_v36 = vmax.f32 %v6656_v63, 0.0  ;;  %6927 = vmatprep.mubr.bf16.mxu0 %v14112_v45 }
 0x83c   : > { %v14156_v23 = vpack.c.bf16 %v6970_v4, %v6968_v55 }
 0x83d   : > { %v6659_v47 = vpop.f32.mrb[4].mxu0  ;;  %v14158_v48 = vpack.c.bf16 %v6971_v36, %v6969_v10 }
 0x83e   : > { %v6660_v0 = vadd.f32 %v6659_v47, %v14141_v57  ;;  %v6661_v12 = vpop.f32.mrb[5].mxu0 }
 0x83f   : > { %v6662_v5 = vadd.f32 %v6661_v12, %v14144_v22  ;;  %v6663_v34 = vpop.f32.mrb[6].mxu0  ;;  %7529 = vmatprep.mubr.bf16.mxu1 %v14158_v48 }
 0x840   : > { %v6664_v20 = vadd.f32 %v6663_v34, %v14141_v57  ;;  %v6665_v45 = vpop.f32.mrb[7].mxu0  ;;  %7530 = vmatmul.mubr.bf16.vlgmr.msra.gmra.mrb[128].mxu1 %v14156_v23  ;;  %v6972_v21 = vmax.f32 %v6660_v0, 0.0 }
 0x841   : > { %v6666_v56 = vadd.f32 %v6665_v45, %v14144_v22  ;;  %10732 = vmatpush3.bf16.msra.mxu1 %v13992_v59  ;;  %v6973_v17 = vmax.f32 %v6662_v5, 0.0 }
 0x842   : > { %v6974_v58 = vmax.f32 %v6664_v20, 0.0  ;;  %6928 = vmatmul.mubr.bf16.gmra.mrb[112].mxu0 %v14110_v16  ;;  %10733 = vmatprep.subr.bf16.mxu1 %v11509_v41  ;;  %v11511_v16 = vld [vmem:[%s16208_s8 + $0x18] sm:$0xff]  }
 0x843   : > { %v6975_v19 = vmax.f32 %v6666_v56, 0.0  ;;  %6937 = vmatprep.mubr.bf16.mxu0 %v14121_v61 }
 0x844   : > { %v14175_v44 = vpack.c.bf16 %v6974_v58, %v6972_v21 }
 0x845   : > { %v6669_v29 = vpop.f32.mrb[8].mxu0  ;;  %v14177_v27 = vpack.c.bf16 %v6975_v19, %v6973_v17  ;;  %10734 = vmatpush3.bf16.msra.mxu1 %v11509_v41 }
 0x846   : > { %v6670_v59 = vadd.f32 %v6669_v29, %v14141_v57  ;;  %v6671_v49 = vpop.f32.mrb[9].mxu0  ;;  %10735 = vmatprep.subr.bf16.mxu1 %v11510_v62 }
 0x847   : > { %v6672_v40 = vadd.f32 %v6671_v49, %v14144_v22  ;;  %v6673_v50 = vpop.f32.mrb[10].mxu0  ;;  %7539 = vmatprep.mubr.bf16.mxu1 %v14177_v27 }
 0x848   : > { %v6674_v61 = vadd.f32 %v6673_v50, %v14141_v57  ;;  %v6675_v53 = vpop.f32.mrb[11].mxu0  ;;  %7540 = vmatmul.mubr.bf16.gmra.mrb[132].mxu1 %v14175_v44  ;;  %v6976_v11 = vmax.f32 %v6670_v59, 0.0 }
 0x849   : > { %v6676_v8 = vadd.f32 %v6675_v53, %v14144_v22  ;;  %10736 = vmatpush3.bf16.msra.mxu1 %v11510_v62  ;;  %v6977_v13 = vmax.f32 %v6672_v40, 0.0 }
 0x84a   : > { %v6978_v25 = vmax.f32 %v6674_v61, 0.0  ;;  %6938 = vmatmul.mubr.bf16.gmra.mrb[116].mxu0 %v14119_v3  ;;  %10737 = vmatprep.subr.bf16.mxu1 %v11511_v16 }
 0x84b   : > { %v6979_v38 = vmax.f32 %v6676_v8, 0.0  ;;  %6947 = vmatprep.mubr.bf16.mxu0 %v14130_v43 }
 0x84c   : > { %v14193_v52 = vpack.c.bf16 %v6978_v25, %v6976_v11 }
 0x84d   : > { %v6679_v51 = vpop.f32.mrb[12].mxu0  ;;  %v14195_v37 = vpack.c.bf16 %v6979_v38, %v6977_v13  ;;  %10738 = vmatpush3.bf16.msra.mxu1 %v11511_v16  ;;  %v11513_v16 = vld [vmem:[%s16208_s8 + $0x28] sm:$0xff]  }
 0x84e   : > { %v6680_v9 = vadd.f32 %v6679_v51, %v14141_v57  ;;  %v6681_v1 = vpop.f32.mrb[13].mxu0  ;;  %10739 = vmatprep.subr.bf16.mxu1 %v11512_v42 }
 0x84f   : > { %v6682_v3 = vadd.f32 %v6681_v1, %v14144_v22  ;;  %v6683_v32 = vpop.f32.mrb[14].mxu0  ;;  %7549 = vmatprep.mubr.bf16.mxu1 %v14195_v37 }
 0x850   : > { %v6684_v14 = vadd.f32 %v6683_v32, %v14141_v57  ;;  %v6685_v7 = vpop.f32.mrb[15].mxu0  ;;  %7550 = vmatmul.mubr.bf16.gmra.mrb[136].mxu1 %v14193_v52  ;;  %v6980_v46 = vmax.f32 %v6680_v9, 0.0 }
 0x851   : > { %v6686_v43 = vadd.f32 %v6685_v7, %v14144_v22  ;;  %10740 = vmatpush3.bf16.msra.mxu1 %v11512_v42  ;;  %v6981_v28 = vmax.f32 %v6682_v3, 0.0 }
 0x852   : > { %v6982_v18 = vmax.f32 %v6684_v14, 0.0  ;;  %6948 = vmatmul.mubr.bf16.gmra.mrb[120].mxu0 %v14128_v54  ;;  %10741 = vmatprep.subr.bf16.mxu1 %v11513_v16 }
 0x853   : > { %v6983_v60 = vmax.f32 %v6686_v43, 0.0  ;;  %6957 = vmatprep.mubr.bf16.mxu0 %v14148_v15 }
 0x854   : > { %v14205_v24 = vpack.c.bf16 %v6982_v18, %v6980_v46 }
 0x855   : > { %v6689_v39 = vpop.f32.mrb[16].mxu0  ;;  %v14207_v6 = vpack.c.bf16 %v6983_v60, %v6981_v28  ;;  %10742 = vmatpush3.bf16.msra.mxu1 %v11513_v16 }
 0x856   : > { %v6690_v63 = vadd.f32 %v6689_v39, %v14141_v57  ;;  %v6691_v55 = vpop.f32.mrb[17].mxu0 }
 0x857   : > { %v6692_v4 = vadd.f32 %v6691_v55, %v14144_v22  ;;  %v6693_v10 = vpop.f32.mrb[18].mxu0  ;;  %7559 = vmatprep.mubr.bf16.mxu1 %v14207_v6 }
 0x858   : > { %v6694_v36 = vadd.f32 %v6693_v10, %v14141_v57  ;;  %v6695_v54 = vpop.f32.mrb[19].mxu0  ;;  %7560 = vmatmul.mubr.bf16.gmra.mrb[140].mxu1 %v14205_v24  ;;  %v6984_v47 = vmax.f32 %v6690_v63, 0.0 }
 0x859   : > { %v6696_v15 = vadd.f32 %v6695_v54, %v14144_v22  ;;  %v6985_v12 = vmax.f32 %v6692_v4, 0.0 }
 0x85a   : > { %v6986_v0 = vmax.f32 %v6694_v36, 0.0  ;;  %6958 = vmatmul.mubr.bf16.gmra.mrb[124].mxu0 %v14146_v26 }
 0x85b   : > { %v6987_v41 = vmax.f32 %v6696_v15, 0.0  ;;  %7882 = vmatprep.mubr.bf16.mxu0 %v14158_v48 }
 0x85c   : > { %v14217_v5 = vpack.c.bf16 %v6986_v0, %v6984_v47 }
 0x85d   : > { %v6699_v34 = vpop.f32.mrb[20].mxu0  ;;  %v14219_v20 = vpack.c.bf16 %v6987_v41, %v6985_v12 }
 0x85e   : > { %v6700_v45 = vadd.f32 %v6699_v34, %v14141_v57  ;;  %v6701_v56 = vpop.f32.mrb[21].mxu0 }
 0x85f   : > { %v6702_v21 = vadd.f32 %v6701_v56, %v14144_v22  ;;  %v6703_v58 = vpop.f32.mrb[22].mxu0  ;;  %7569 = vmatprep.mubr.bf16.mxu1 %v14219_v20 }
 0x860   : > { %v6704_v62 = vadd.f32 %v6703_v58, %v14141_v57  ;;  %v6705_v26 = vpop.f32.mrb[23].mxu0  ;;  %7570 = vmatmul.mubr.bf16.gmra.mrb[144].mxu1 %v14217_v5  ;;  %v6988_v17 = vmax.f32 %v6700_v45, 0.0 }
 0x861   : > { %v6706_v48 = vadd.f32 %v6705_v26, %v14144_v22  ;;  %v6989_v29 = vmax.f32 %v6702_v21, 0.0 }
 0x862   : > { %v6990_v19 = vmax.f32 %v6704_v62, 0.0  ;;  %7883 = vmatmul.mubr.bf16.vlgmr.msra.gmra.mrb[128].mxu0 %v14156_v23 }
 0x863   : > { %v6991_v59 = vmax.f32 %v6706_v48, 0.0  ;;  %7890 = vmatprep.mubr.bf16.mxu0 %v14177_v27 }
 0x864   : > { %v14229_v49 = vpack.c.bf16 %v6990_v19, %v6988_v17 }
 0x865   : > { %v6709_v40 = vpop.f32.mrb[24].mxu0  ;;  %v14234_v50 = vpack.c.bf16 %v6991_v59, %v6989_v29 }
 0x866   : > { %v6710_v61 = vadd.f32 %v6709_v40, %v14141_v57  ;;  %v6711_v53 = vpop.f32.mrb[25].mxu0 }
 0x867   : > { %v6712_v8 = vadd.f32 %v6711_v53, %v14144_v22  ;;  %v6713_v23 = vpop.f32.mrb[26].mxu0  ;;  %7579 = vmatprep.mubr.bf16.mxu1 %v14234_v50 }
 0x868   : > { %v6714_v27 = vadd.f32 %v6713_v23, %v14141_v57  ;;  %v6715_v11 = vpop.f32.mrb[27].mxu0  ;;  %7580 = vmatmul.mubr.bf16.gmra.mrb[148].mxu1 %v14229_v49  ;;  %v6992_v42 = vmax.f32 %v6710_v61, 0.0  ;;  %v11514_v61 = vld [vmem:[%s16208_s8 + $0x30] sm:$0xff]  }
 0x869   : > { %v6716_v25 = vadd.f32 %v6715_v11, %v14144_v22  ;;  %v6993_v38 = vmax.f32 %v6712_v8, 0.0  ;;  %10743 = vmatprep.subr.bf16.mxu1 %v11514_v61 }
 0x86a   : > { %v6994_v13 = vmax.f32 %v6714_v27, 0.0  ;;  %7891 = vmatmul.mubr.bf16.gmra.mrb[132].mxu0 %v14175_v44  ;;  %10744 = vmatpush3.bf16.msra.mxu1 %v11514_v61 }
 0x86b   : > { %v6995_v51 = vmax.f32 %v6716_v25, 0.0  ;;  %7898 = vmatprep.mubr.bf16.mxu0 %v14195_v37 }
 0x86c   : > { %v14244_v9 = vpack.c.bf16 %v6994_v13, %v6992_v42 }
 0x86d   : > { %v6719_v1 = vpop.f32.mrb[28].mxu0  ;;  %v14246_v3 = vpack.c.bf16 %v6995_v51, %v6993_v38 }
 0x86e   : > { %v6720_v32 = vadd.f32 %v6719_v1, %v14141_v57  ;;  %v6721_v14 = vpop.f32.mrb[29].mxu0 }
 0x86f   : > { %v6722_v7 = vadd.f32 %v6721_v14, %v14144_v22  ;;  %v6723_v43 = vpop.f32.mrb[30].mxu0  ;;  %7589 = vmatprep.mubr.bf16.mxu1 %v14246_v3 }
 0x870   : > { %v6724_v46 = vadd.f32 %v6723_v43, %v14141_v57  ;;  %v6725_v44 = vpop.f32.mrb[31].mxu0  ;;  %7590 = vmatmul.mubr.bf16.gmra.mrb[152].mxu1 %v14244_v9  ;;  %v6996_v18 = vmax.f32 %v6720_v32, 0.0 }
 0x871   : > { %v6726_v37 = vadd.f32 %v6725_v44, %v14144_v22  ;;  %v6997_v60 = vmax.f32 %v6722_v7, 0.0 }
 0x872   : > { %v6998_v28 = vmax.f32 %v6724_v46, 0.0  ;;  %7899 = vmatmul.mubr.bf16.gmra.mrb[136].mxu0 %v14193_v52 }
 0x873   : > { %v6999_v39 = vmax.f32 %v6726_v37, 0.0  ;;  %7906 = vmatprep.mubr.bf16.mxu0 %v14207_v6 }
 0x874   : > { %v14256_v63 = vpack.c.bf16 %v6998_v28, %v6996_v18 }
 0x875   : > { %v6729_v55 = vpop.f32.mrb[32].mxu0  ;;  %v14258_v4 = vpack.c.bf16 %v6999_v39, %v6997_v60 }
 0x876   : > { %v6730_v10 = vadd.f32 %v6729_v55, %v14141_v57  ;;  %v6731_v36 = vpop.f32.mrb[33].mxu0 }
 0x877   : > { %v6732_v54 = vadd.f32 %v6731_v36, %v14144_v22  ;;  %v6733_v15 = vpop.f32.mrb[34].mxu0  ;;  %7599 = vmatprep.mubr.bf16.mxu1 %v14258_v4 }
 0x878   : > { %v6734_v47 = vadd.f32 %v6733_v15, %v14141_v57  ;;  %v6735_v52 = vpop.f32.mrb[35].mxu0  ;;  %7600 = vmatmul.mubr.bf16.gmra.mrb[156].mxu1 %v14256_v63  ;;  %v7000_v0 = vmax.f32 %v6730_v10, 0.0 }
 0x879   : > { %v6736_v6 = vadd.f32 %v6735_v52, %v14144_v22  ;;  %v7001_v41 = vmax.f32 %v6732_v54, 0.0 }
 0x87a   : > { %v7002_v12 = vmax.f32 %v6734_v47, 0.0  ;;  %7907 = vmatmul.mubr.bf16.gmra.mrb[140].mxu0 %v14205_v24 }
 0x87b   : > { %v7003_v34 = vmax.f32 %v6736_v6, 0.0  ;;  %7914 = vmatprep.mubr.bf16.mxu0 %v14219_v20 }
 0x87c   : > { %v14268_v45 = vpack.c.bf16 %v7002_v12, %v7000_v0 }
 0x87d   : > { %v6739_v56 = vpop.f32.mrb[36].mxu0  ;;  %v14270_v21 = vpack.c.bf16 %v7003_v34, %v7001_v41 }
 0x87e   : > { %v6740_v58 = vadd.f32 %v6739_v56, %v14141_v57  ;;  %v6741_v62 = vpop.f32.mrb[37].mxu0 }
 0x87f   : > { %v6742_v26 = vadd.f32 %v6741_v62, %v14144_v22  ;;  %v6743_v48 = vpop.f32.mrb[38].mxu0  ;;  %7609 = vmatprep.mubr.bf16.mxu1 %v14270_v21 }
 0x880   : > { %v6744_v17 = vadd.f32 %v6743_v48, %v14141_v57  ;;  %v6745_v24 = vpop.f32.mrb[39].mxu0  ;;  %7610 = vmatmul.mubr.bf16.gmra.mrb[160].mxu1 %v14268_v45  ;;  %v7004_v19 = vmax.f32 %v6740_v58, 0.0 }
 0x881   : > { %v6746_v20 = vadd.f32 %v6745_v24, %v14144_v22  ;;  %v7005_v59 = vmax.f32 %v6742_v26, 0.0 }
 0x882   : > { %v7006_v29 = vmax.f32 %v6744_v17, 0.0  ;;  %7915 = vmatmul.mubr.bf16.gmra.mrb[144].mxu0 %v14217_v5 }
 0x883   : > { %v7007_v16 = vmax.f32 %v6746_v20, 0.0  ;;  %7922 = vmatprep.mubr.bf16.mxu0 %v14234_v50 }
 0x884   : > { %v14280_v40 = vpack.c.bf16 %v7006_v29, %v7004_v19 }
 0x885   : > { %v6749_v53 = vpop.f32.mrb[40].mxu0  ;;  %v14285_v8 = vpack.c.bf16 %v7007_v16, %v7005_v59 }
 0x886   : > { %v6750_v23 = vadd.f32 %v6749_v53, %v14141_v57  ;;  %v6751_v27 = vpop.f32.mrb[41].mxu0 }
 0x887   : > { %v6752_v11 = vadd.f32 %v6751_v27, %v14144_v22  ;;  %v6753_v5 = vpop.f32.mrb[42].mxu0  ;;  %7619 = vmatprep.mubr.bf16.mxu1 %v14285_v8 }
 0x888   : > { %v6754_v50 = vadd.f32 %v6753_v5, %v14141_v57  ;;  %v6755_v25 = vpop.f32.mrb[43].mxu0  ;;  %7620 = vmatmul.mubr.bf16.gmra.mrb[164].mxu1 %v14280_v40  ;;  %v7008_v13 = vmax.f32 %v6750_v23, 0.0  ;;  %v11515_v23 = vld [vmem:[%s16208_s8 + $0x38] sm:$0xff]  }
 0x889   : > { %v6756_v42 = vadd.f32 %v6755_v25, %v14144_v22  ;;  %v7009_v51 = vmax.f32 %v6752_v11, 0.0  ;;  %10745 = vmatprep.subr.bf16.mxu1 %v11515_v23 }
 0x88a   : > { %v7010_v38 = vmax.f32 %v6754_v50, 0.0  ;;  %7923 = vmatmul.mubr.bf16.gmra.mrb[148].mxu0 %v14229_v49  ;;  %10746 = vmatpush3.bf16.msra.mxu1 %v11515_v23 }
 0x88b   : > { %v7011_v1 = vmax.f32 %v6756_v42, 0.0  ;;  %7930 = vmatprep.mubr.bf16.mxu0 %v14246_v3  ;;  %8748 = vmatprep.subr.bf16.mxu1 %v11870_v2 }
 0x88c   : > { %v14295_v32 = vpack.c.bf16 %v7010_v38, %v7008_v13 }
 0x88d   : > { %v6759_v14 = vpop.f32.mrb[44].mxu0  ;;  %v14297_v7 = vpack.c.bf16 %v7011_v1, %v7009_v51 }
 0x88e   : > { %v6760_v43 = vadd.f32 %v6759_v14, %v14141_v57  ;;  %v6761_v46 = vpop.f32.mrb[45].mxu0 }
 0x88f   : > { %v6762_v44 = vadd.f32 %v6761_v46, %v14144_v22  ;;  %v6763_v37 = vpop.f32.mrb[46].mxu0  ;;  %7629 = vmatprep.mubr.bf16.mxu1 %v14297_v7 }
 0x890   : > { %v6764_v18 = vadd.f32 %v6763_v37, %v14141_v57  ;;  %v6765_v49 = vpop.f32.mrb[47].mxu0  ;;  %7630 = vmatmul.mubr.bf16.gmra.mrb[168].mxu1 %v14295_v32  ;;  %v7012_v28 = vmax.f32 %v6760_v43, 0.0 }
 0x891   : > { %v6766_v3 = vadd.f32 %v6765_v49, %v14144_v22  ;;  %v7013_v39 = vmax.f32 %v6762_v44, 0.0 }
 0x892   : > { %v7014_v60 = vmax.f32 %v6764_v18, 0.0  ;;  %7931 = vmatmul.mubr.bf16.gmra.mrb[152].mxu0 %v14244_v9 }
 0x893   : > { %v7015_v55 = vmax.f32 %v6766_v3, 0.0  ;;  %7938 = vmatprep.mubr.bf16.mxu0 %v14258_v4 }
 0x894   : > { %v14307_v10 = vpack.c.bf16 %v7014_v60, %v7012_v28 }
 0x895   : > { %v6769_v36 = vpop.f32.mrb[48].mxu0  ;;  %v14309_v54 = vpack.c.bf16 %v7015_v55, %v7013_v39 }
 0x896   : > { %v6770_v15 = vadd.f32 %v6769_v36, %v14141_v57  ;;  %v6771_v47 = vpop.f32.mrb[49].mxu0 }
 0x897   : > { %v6772_v52 = vadd.f32 %v6771_v47, %v14144_v22  ;;  %v6773_v6 = vpop.f32.mrb[50].mxu0  ;;  %7639 = vmatprep.mubr.bf16.mxu1 %v14309_v54 }
 0x898   : > { %v6774_v0 = vadd.f32 %v6773_v6, %v14141_v57  ;;  %v6775_v9 = vpop.f32.mrb[51].mxu0  ;;  %7640 = vmatmul.mubr.bf16.gmra.mrb[172].mxu1 %v14307_v10  ;;  %v7016_v12 = vmax.f32 %v6770_v15, 0.0 }
 0x899   : > { %v6776_v4 = vadd.f32 %v6775_v9, %v14144_v22  ;;  %v7017_v34 = vmax.f32 %v6772_v52, 0.0 }
 0x89a   : > { %v7018_v41 = vmax.f32 %v6774_v0, 0.0  ;;  %7939 = vmatmul.mubr.bf16.gmra.mrb[156].mxu0 %v14256_v63 }
 0x89b   : > { %v7019_v56 = vmax.f32 %v6776_v4, 0.0  ;;  %7946 = vmatprep.mubr.bf16.mxu0 %v14270_v21 }
 0x89c   : > { %v14319_v58 = vpack.c.bf16 %v7018_v41, %v7016_v12 }
 0x89d   : > { %v6779_v62 = vpop.f32.mrb[52].mxu0  ;;  %v14321_v26 = vpack.c.bf16 %v7019_v56, %v7017_v34 }
 0x89e   : > { %v6780_v48 = vadd.f32 %v6779_v62, %v14141_v57  ;;  %v6781_v17 = vpop.f32.mrb[53].mxu0 }
 0x89f   : > { %v6782_v24 = vadd.f32 %v6781_v17, %v14144_v22  ;;  %v6783_v20 = vpop.f32.mrb[54].mxu0  ;;  %7649 = vmatprep.mubr.bf16.mxu1 %v14321_v26 }
 0x8a0   : > { %v6784_v19 = vadd.f32 %v6783_v20, %v14141_v57  ;;  %v6785_v63 = vpop.f32.mrb[55].mxu0  ;;  %7650 = vmatmul.mubr.bf16.gmra.mrb[176].mxu1 %v14319_v58  ;;  %v7020_v29 = vmax.f32 %v6780_v48, 0.0 }
 0x8a1   : > { %v6786_v21 = vadd.f32 %v6785_v63, %v14144_v22  ;;  %v7021_v16 = vmax.f32 %v6782_v24, 0.0 }
 0x8a2   : > { %v7022_v59 = vmax.f32 %v6784_v19, 0.0  ;;  %7947 = vmatmul.mubr.bf16.gmra.mrb[160].mxu0 %v14268_v45 }
 0x8a3   : > { %v7023_v61 = vmax.f32 %v6786_v21, 0.0  ;;  %7954 = vmatprep.mubr.bf16.mxu0 %v14285_v8 }
 0x8a4   : > { %v14331_v53 = vpack.c.bf16 %v7022_v59, %v7020_v29 }
 0x8a5   : > { %v6789_v27 = vpop.f32.mrb[56].mxu0  ;;  %v14336_v11 = vpack.c.bf16 %v7023_v61, %v7021_v16 }
 0x8a6   : > { %v6790_v5 = vadd.f32 %v6789_v27, %v14141_v57  ;;  %v6791_v50 = vpop.f32.mrb[57].mxu0 }
 0x8a7   : > { %v6792_v25 = vadd.f32 %v6791_v50, %v14144_v22  ;;  %v6793_v45 = vpop.f32.mrb[58].mxu0  ;;  %7659 = vmatprep.mubr.bf16.mxu1 %v14336_v11 }
 0x8a8   : > { %v6794_v8 = vadd.f32 %v6793_v45, %v14141_v57  ;;  %v6795_v42 = vpop.f32.mrb[59].mxu0  ;;  %7660 = vmatmul.mubr.bf16.gmra.mrb[180].mxu1 %v14331_v53  ;;  %v7024_v38 = vmax.f32 %v6790_v5, 0.0 }
 0x8a9   : > { %v6796_v13 = vadd.f32 %v6795_v42, %v14144_v22  ;;  %v7025_v1 = vmax.f32 %v6792_v25, 0.0 }
 0x8aa   : > { %v7026_v51 = vmax.f32 %v6794_v8, 0.0  ;;  %7955 = vmatmul.mubr.bf16.gmra.mrb[164].mxu0 %v14280_v40 }
 0x8ab   : > { %v7027_v14 = vmax.f32 %v6796_v13, 0.0  ;;  %7962 = vmatprep.mubr.bf16.mxu0 %v14297_v7 }
 0x8ac   : > { %v14347_v43 = vpack.c.bf16 %v7026_v51, %v7024_v38 }
 0x8ad   : > { %v6799_v46 = vpop.f32.mrb[60].mxu0  ;;  %v14349_v44 = vpack.c.bf16 %v7027_v14, %v7025_v1 }
 0x8ae   : > { %v6800_v37 = vadd.f32 %v6799_v46, %v14141_v57  ;;  %v6801_v18 = vpop.f32.mrb[61].mxu0 }
 0x8af   : > { %v6802_v49 = vadd.f32 %v6801_v18, %v14144_v22  ;;  %v6803_v3 = vpop.f32.mrb[62].mxu0  ;;  %7669 = vmatprep.mubr.bf16.mxu1 %v14349_v44 }
 0x8b0   : > { %v6804_v28 = vadd.f32 %v6803_v3, %v14141_v57  ;;  %v6805_v40 = vpop.f32.mrb[63].mxu0  ;;  %7670 = vmatmul.mubr.bf16.gmra.mrb[184].mxu1 %v14347_v43  ;;  %v7028_v60 = vmax.f32 %v6800_v37, 0.0 }
 0x8b1   : > { %v6806_v7 = vadd.f32 %v6805_v40, %v14144_v22  ;;  %v7029_v55 = vmax.f32 %v6802_v49, 0.0 }
 0x8b2   : > { %v7030_v39 = vmax.f32 %v6804_v28, 0.0  ;;  %7963 = vmatmul.mubr.bf16.gmra.mrb[168].mxu0 %v14295_v32 }
 0x8b3   : > { %v7031_v36 = vmax.f32 %v6806_v7, 0.0  ;;  %7970 = vmatprep.mubr.bf16.mxu0 %v14309_v54 }
 0x8b4   : > { %v14359_v15 = vpack.c.bf16 %v7030_v39, %v7028_v60 }
 0x8b5   : > { %v6809_v47 = vpop.f32.mrb[64].mxu0  ;;  %v14361_v52 = vpack.c.bf16 %v7031_v36, %v7029_v55 }
 0x8b6   : > { %v6810_v6 = vadd.f32 %v6809_v47, %v14141_v57  ;;  %v6811_v0 = vpop.f32.mrb[65].mxu0 }
 0x8b7   : > { %v6812_v9 = vadd.f32 %v6811_v0, %v14144_v22  ;;  %v6813_v4 = vpop.f32.mrb[66].mxu0  ;;  %7679 = vmatprep.mubr.bf16.mxu1 %v14361_v52 }
 0x8b8   : > { %v6814_v12 = vadd.f32 %v6813_v4, %v14141_v57  ;;  %v6815_v32 = vpop.f32.mrb[67].mxu0  ;;  %7680 = vmatmul.mubr.bf16.gmra.mrb[188].mxu1 %v14359_v15  ;;  %v7032_v41 = vmax.f32 %v6810_v6, 0.0 }
 0x8b9   : > { %v6816_v54 = vadd.f32 %v6815_v32, %v14144_v22  ;;  %v7033_v56 = vmax.f32 %v6812_v9, 0.0 }
 0x8ba   : > { %v7034_v34 = vmax.f32 %v6814_v12, 0.0  ;;  %7971 = vmatmul.mubr.bf16.gmra.mrb[172].mxu0 %v14307_v10 }
 0x8bb   : > { %v7035_v62 = vmax.f32 %v6816_v54, 0.0  ;;  %7978 = vmatprep.mubr.bf16.mxu0 %v14321_v26 }
 0x8bc   : > { %v14371_v48 = vpack.c.bf16 %v7034_v34, %v7032_v41 }
 0x8bd   : > { %v14373_v17 = vpack.c.bf16 %v7035_v62, %v7033_v56  ;;  %v6819_v24 = vpop.f32.mrb[68].mxu0 }
 0x8be   : > { %v6820_v20 = vadd.f32 %v6819_v24, %v14141_v57  ;;  %v6821_v19 = vpop.f32.mrb[69].mxu0 }
 0x8bf   : > { %v6822_v63 = vadd.f32 %v6821_v19, %v14144_v22  ;;  %v6823_v21 = vpop.f32.mrb[70].mxu0  ;;  %7689 = vmatprep.mubr.bf16.mxu1 %v14373_v17 }
 0x8c0   : > { %v6824_v29 = vadd.f32 %v6823_v21, %v14141_v57  ;;  %v6825_v10 = vpop.f32.mrb[71].mxu0  ;;  %7690 = vmatmul.mubr.bf16.gmra.mrb[192].mxu1 %v14371_v48  ;;  %v7036_v59 = vmax.f32 %v6820_v20, 0.0 }
 0x8c1   : > { %v6826_v26 = vadd.f32 %v6825_v10, %v14144_v22  ;;  %v7037_v61 = vmax.f32 %v6822_v63, 0.0 }
 0x8c2   : > { %v7038_v16 = vmax.f32 %v6824_v29, 0.0  ;;  %7979 = vmatmul.mubr.bf16.gmra.mrb[176].mxu0 %v14319_v58 }
 0x8c3   : > { %v7039_v23 = vmax.f32 %v6826_v26, 0.0  ;;  %7986 = vmatprep.mubr.bf16.mxu0 %v14336_v11 }
 0x8c4   : > { %v14383_v27 = vpack.c.bf16 %v7038_v16, %v7036_v59 }
 0x8c5   : > { %v14385_v5 = vpack.c.bf16 %v7039_v23, %v7037_v61  ;;  %v6829_v50 = vpop.f32.mrb[72].mxu0 }
 0x8c6   : > { %v6830_v25 = vadd.f32 %v6829_v50, %v14141_v57  ;;  %v6831_v45 = vpop.f32.mrb[73].mxu0 }
 0x8c7   : > { %v6832_v8 = vadd.f32 %v6831_v45, %v14144_v22  ;;  %v6833_v42 = vpop.f32.mrb[74].mxu0  ;;  %7699 = vmatprep.mubr.bf16.mxu1 %v14385_v5 }
 0x8c8   : > { %v6834_v13 = vadd.f32 %v6833_v42, %v14141_v57  ;;  %v6835_v58 = vpop.f32.mrb[75].mxu0  ;;  %7700 = vmatmul.mubr.bf16.gmra.mrb[196].mxu1 %v14383_v27  ;;  %v7040_v38 = vmax.f32 %v6830_v25, 0.0 }
 0x8c9   : > { %v6836_v11 = vadd.f32 %v6835_v58, %v14144_v22  ;;  %v7041_v1 = vmax.f32 %v6832_v8, 0.0 }
 0x8ca   : > { %v7042_v51 = vmax.f32 %v6834_v13, 0.0  ;;  %7987 = vmatmul.mubr.bf16.gmra.mrb[180].mxu0 %v14331_v53 }
 0x8cb   : > { %v7043_v14 = vmax.f32 %v6836_v11, 0.0  ;;  %7994 = vmatprep.mubr.bf16.mxu0 %v14349_v44 }
 0x8cc   : > { %v14395_v46 = vpack.c.bf16 %v7042_v51, %v7040_v38 }
 0x8cd   : > { %v14397_v37 = vpack.c.bf16 %v7043_v14, %v7041_v1  ;;  %v6839_v18 = vpop.f32.mrb[76].mxu0 }
 0x8ce   : > { %v6840_v49 = vadd.f32 %v6839_v18, %v14141_v57  ;;  %v6841_v3 = vpop.f32.mrb[77].mxu0 }
 0x8cf   : > { %v6842_v28 = vadd.f32 %v6841_v3, %v14144_v22  ;;  %v6843_v40 = vpop.f32.mrb[78].mxu0  ;;  %7709 = vmatprep.mubr.bf16.mxu1 %v14397_v37 }
 0x8d0   : > { %v6844_v7 = vadd.f32 %v6843_v40, %v14141_v57  ;;  %v6845_v53 = vpop.f32.mrb[79].mxu0  ;;  %7710 = vmatmul.mubr.bf16.gmra.mrb[200].mxu1 %v14395_v46  ;;  %v7044_v60 = vmax.f32 %v6840_v49, 0.0 }
 0x8d1   : > { %v6846_v44 = vadd.f32 %v6845_v53, %v14144_v22  ;;  %v7045_v55 = vmax.f32 %v6842_v28, 0.0 }
 0x8d2   : > { %v7046_v39 = vmax.f32 %v6844_v7, 0.0  ;;  %7995 = vmatmul.mubr.bf16.gmra.mrb[184].mxu0 %v14347_v43 }
 0x8d3   : > { %v7047_v36 = vmax.f32 %v6846_v44, 0.0  ;;  %8002 = vmatprep.mubr.bf16.mxu0 %v14361_v52 }
 0x8d4   : > { %v14407_v47 = vpack.c.bf16 %v7046_v39, %v7044_v60 }
 0x8d5   : > { %v14409_v6 = vpack.c.bf16 %v7047_v36, %v7045_v55  ;;  %v6849_v0 = vpop.f32.mrb[80].mxu0 }
 0x8d6   : > { %v6850_v9 = vadd.f32 %v6849_v0, %v14141_v57  ;;  %v6851_v4 = vpop.f32.mrb[81].mxu0 }
 0x8d7   : > { %v6852_v12 = vadd.f32 %v6851_v4, %v14144_v22  ;;  %v6853_v32 = vpop.f32.mrb[82].mxu0  ;;  %7719 = vmatprep.mubr.bf16.mxu1 %v14409_v6 }
 0x8d8   : > { %v6854_v54 = vadd.f32 %v6853_v32, %v14141_v57  ;;  %v6855_v43 = vpop.f32.mrb[83].mxu0  ;;  %7720 = vmatmul.mubr.bf16.gmra.mrb[204].mxu1 %v14407_v47  ;;  %v7048_v41 = vmax.f32 %v6850_v9, 0.0 }
 0x8d9   : > { %v6856_v52 = vadd.f32 %v6855_v43, %v14144_v22  ;;  %v7049_v56 = vmax.f32 %v6852_v12, 0.0 }
 0x8da   : > { %v7050_v34 = vmax.f32 %v6854_v54, 0.0  ;;  %8003 = vmatmul.mubr.bf16.gmra.mrb[188].mxu0 %v14359_v15 }
 0x8db   : > { %v7051_v62 = vmax.f32 %v6856_v52, 0.0  ;;  %8010 = vmatprep.mubr.bf16.mxu0 %v14373_v17 }
 0x8dc   : > { %v14419_v24 = vpack.c.bf16 %v7050_v34, %v7048_v41 }
 0x8dd   : > { %v14421_v20 = vpack.c.bf16 %v7051_v62, %v7049_v56  ;;  %v6859_v19 = vpop.f32.mrb[84].mxu0 }
 0x8de   : > { %v6860_v63 = vadd.f32 %v6859_v19, %v14141_v57  ;;  %v6861_v21 = vpop.f32.mrb[85].mxu0 }
 0x8df   : > { %v6862_v29 = vadd.f32 %v6861_v21, %v14144_v22  ;;  %v6863_v10 = vpop.f32.mrb[86].mxu0  ;;  %7729 = vmatprep.mubr.bf16.mxu1 %v14421_v20 }
 0x8e0   : > { %v6864_v26 = vadd.f32 %v6863_v10, %v14141_v57  ;;  %v6865_v15 = vpop.f32.mrb[87].mxu0  ;;  %7730 = vmatmul.mubr.bf16.gmra.mrb[208].mxu1 %v14419_v24  ;;  %v7052_v59 = vmax.f32 %v6860_v63, 0.0 }
 0x8e1   : > { %v6866_v17 = vadd.f32 %v6865_v15, %v14144_v22  ;;  %v7053_v61 = vmax.f32 %v6862_v29, 0.0 }
 0x8e2   : > { %v7054_v16 = vmax.f32 %v6864_v26, 0.0  ;;  %8011 = vmatmul.mubr.bf16.gmra.mrb[192].mxu0 %v14371_v48 }
 0x8e3   : > { %v7055_v23 = vmax.f32 %v6866_v17, 0.0  ;;  %8018 = vmatprep.mubr.bf16.mxu0 %v14385_v5 }
 0x8e4   : > { %v14431_v50 = vpack.c.bf16 %v7054_v16, %v7052_v59 }
 0x8e5   : > { %v14433_v25 = vpack.c.bf16 %v7055_v23, %v7053_v61  ;;  %v6869_v45 = vpop.f32.mrb[88].mxu0 }
 0x8e6   : > { %v6870_v8 = vadd.f32 %v6869_v45, %v14141_v57  ;;  %v6871_v42 = vpop.f32.mrb[89].mxu0 }
 0x8e7   : > { %v6872_v13 = vadd.f32 %v6871_v42, %v14144_v22  ;;  %v6873_v58 = vpop.f32.mrb[90].mxu0  ;;  %7739 = vmatprep.mubr.bf16.mxu1 %v14433_v25 }
 0x8e8   : > { %v6874_v11 = vadd.f32 %v6873_v58, %v14141_v57  ;;  %v6875_v48 = vpop.f32.mrb[91].mxu0  ;;  %7740 = vmatmul.mubr.bf16.gmra.mrb[212].mxu1 %v14431_v50  ;;  %v7056_v38 = vmax.f32 %v6870_v8, 0.0 }
 0x8e9   : > { %v6876_v5 = vadd.f32 %v6875_v48, %v14144_v22  ;;  %v7057_v1 = vmax.f32 %v6872_v13, 0.0 }
 0x8ea   : > { %v7058_v51 = vmax.f32 %v6874_v11, 0.0  ;;  %8019 = vmatmul.mubr.bf16.gmra.mrb[196].mxu0 %v14383_v27 }
 0x8eb   : > { %v7059_v14 = vmax.f32 %v6876_v5, 0.0  ;;  %8026 = vmatprep.mubr.bf16.mxu0 %v14397_v37 }
 0x8ec   : > { %v14443_v18 = vpack.c.bf16 %v7058_v51, %v7056_v38 }
 0x8ed   : > { %v14445_v49 = vpack.c.bf16 %v7059_v14, %v7057_v1  ;;  %v6879_v3 = vpop.f32.mrb[92].mxu0 }
 0x8ee   : > { %v6880_v28 = vadd.f32 %v6879_v3, %v14141_v57  ;;  %v6881_v40 = vpop.f32.mrb[93].mxu0 }
 0x8ef   : > { %v6882_v7 = vadd.f32 %v6881_v40, %v14144_v22  ;;  %v6883_v53 = vpop.f32.mrb[94].mxu0  ;;  %7749 = vmatprep.mubr.bf16.mxu1 %v14445_v49 }
 0x8f0   : > { %v6884_v44 = vadd.f32 %v6883_v53, %v14141_v57  ;;  %v6885_v27 = vpop.f32.mrb[95].mxu0  ;;  %7750 = vmatmul.mubr.bf16.gmra.mrb[216].mxu1 %v14443_v18  ;;  %v7060_v60 = vmax.f32 %v6880_v28, 0.0 }
 0x8f1   : > { %v6886_v37 = vadd.f32 %v6885_v27, %v14144_v22  ;;  %v7061_v55 = vmax.f32 %v6882_v7, 0.0 }
 0x8f2   : > { %v7062_v39 = vmax.f32 %v6884_v44, 0.0  ;;  %8027 = vmatmul.mubr.bf16.gmra.mrb[200].mxu0 %v14395_v46 }
 0x8f3   : > { %v7063_v36 = vmax.f32 %v6886_v37, 0.0  ;;  %8034 = vmatprep.mubr.bf16.mxu0 %v14409_v6 }
 0x8f4   : > { %v14455_v0 = vpack.c.bf16 %v7062_v39, %v7060_v60 }
 0x8f5   : > { %v14457_v9 = vpack.c.bf16 %v7063_v36, %v7061_v55  ;;  %v6889_v4 = vpop.f32.mrb[96].mxu0 }
 0x8f6   : > { %v6890_v12 = vadd.f32 %v6889_v4, %v14141_v57  ;;  %v6891_v32 = vpop.f32.mrb[97].mxu0 }
 0x8f7   : > { %v6892_v54 = vadd.f32 %v6891_v32, %v14144_v22  ;;  %v6893_v43 = vpop.f32.mrb[98].mxu0  ;;  %7759 = vmatprep.mubr.bf16.mxu1 %v14457_v9 }
 0x8f8   : > { %v6894_v52 = vadd.f32 %v6893_v43, %v14141_v57  ;;  %v6895_v46 = vpop.f32.mrb[99].mxu0  ;;  %7760 = vmatmul.mubr.bf16.gmra.mrb[220].mxu1 %v14455_v0  ;;  %v7064_v41 = vmax.f32 %v6890_v12, 0.0 }
 0x8f9   : > { %v6896_v6 = vadd.f32 %v6895_v46, %v14144_v22  ;;  %v7065_v56 = vmax.f32 %v6892_v54, 0.0 }
 0x8fa   : > { %v7066_v34 = vmax.f32 %v6894_v52, 0.0  ;;  %8035 = vmatmul.mubr.bf16.gmra.mrb[204].mxu0 %v14407_v47 }
 0x8fb   : > { %v7067_v62 = vmax.f32 %v6896_v6, 0.0  ;;  %8042 = vmatprep.mubr.bf16.mxu0 %v14421_v20 }
 0x8fc   : > { %v14467_v19 = vpack.c.bf16 %v7066_v34, %v7064_v41 }
 0x8fd   : > { %v14469_v63 = vpack.c.bf16 %v7067_v62, %v7065_v56  ;;  %v6899_v21 = vpop.f32.mrb[100].mxu0 }
 0x8fe   : > { %v6900_v29 = vadd.f32 %v6899_v21, %v14141_v57  ;;  %v6901_v10 = vpop.f32.mrb[101].mxu0 }
 0x8ff   : > { %v6902_v26 = vadd.f32 %v6901_v10, %v14144_v22  ;;  %v6903_v15 = vpop.f32.mrb[102].mxu0  ;;  %7769 = vmatprep.mubr.bf16.mxu1 %v14469_v63 }
 0x900   : > { %v6904_v17 = vadd.f32 %v6903_v15, %v14141_v57  ;;  %v6905_v47 = vpop.f32.mrb[103].mxu0  ;;  %7770 = vmatmul.mubr.bf16.gmra.mrb[224].mxu1 %v14467_v19  ;;  %v7068_v59 = vmax.f32 %v6900_v29, 0.0 }
 0x901   : > { %v6906_v20 = vadd.f32 %v6905_v47, %v14144_v22  ;;  %v7069_v61 = vmax.f32 %v6902_v26, 0.0  ;;  %v11837_v47 = vld [vmem:[%s11972_s24 + $0x48] sm:$0xff]  }
 0x902   : > { %v7070_v16 = vmax.f32 %v6904_v17, 0.0  ;;  %8043 = vmatmul.mubr.bf16.gmra.mrb[208].mxu0 %v14419_v24 }
 0x903   : > { %v7071_v23 = vmax.f32 %v6906_v20, 0.0  ;;  %8050 = vmatprep.mubr.bf16.mxu0 %v14433_v25 }
 0x904   : > { %v14479_v45 = vpack.c.bf16 %v7070_v16, %v7068_v59 }
 0x905   : > { %v14481_v8 = vpack.c.bf16 %v7071_v23, %v7069_v61  ;;  %v6909_v42 = vpop.f32.mrb[104].mxu0 }
 0x906   : > { %v6910_v13 = vadd.f32 %v6909_v42, %v14141_v57  ;;  %v6911_v58 = vpop.f32.mrb[105].mxu0 }
 0x907   : > { %v6912_v11 = vadd.f32 %v6911_v58, %v14144_v22  ;;  %v6913_v48 = vpop.f32.mrb[106].mxu0  ;;  %7779 = vmatprep.mubr.bf16.mxu1 %v14481_v8 }
 0x908   : > { %v6914_v5 = vadd.f32 %v6913_v48, %v14141_v57  ;;  %v6915_v24 = vpop.f32.mrb[107].mxu0  ;;  %7780 = vmatmul.mubr.bf16.gmra.mrb[228].mxu1 %v14479_v45  ;;  %v7072_v38 = vmax.f32 %v6910_v13, 0.0 }
 0x909   : > { %v6916_v25 = vadd.f32 %v6915_v24, %v14144_v22  ;;  %v7073_v1 = vmax.f32 %v6912_v11, 0.0 }
 0x90a   : > { %v7074_v51 = vmax.f32 %v6914_v5, 0.0  ;;  %8051 = vmatmul.mubr.bf16.gmra.mrb[212].mxu0 %v14431_v50  ;;  %v7224_v50 = vld [vmem:[%s16206_s6] sm:$0x7] }
 0x90b   : > { %v7075_v14 = vmax.f32 %v6916_v25, 0.0  ;;  %8058 = vmatprep.mubr.bf16.mxu0 %v14445_v49  ;;  %v14506_v36 = vrot.slane %v7224_v50, %v12208_v33  ;;  %v14510_v54 = vrot.slane %v7224_v50, %v12214_v35 }
 0x90c   : > { %v14491_v3 = vpack.c.bf16 %v7074_v51, %v7072_v38 }
 0x90d   : > { %v14493_v28 = vpack.c.bf16 %v7075_v14, %v7073_v1  ;;  %v6919_v40 = vpop.f32.mrb[108].mxu0 }
 0x90e   : > { %v6920_v7 = vadd.f32 %v6919_v40, %v14141_v57  ;;  %v6921_v53 = vpop.f32.mrb[109].mxu0 }
 0x90f   : > { %v6922_v44 = vadd.f32 %v6921_v53, %v14144_v22  ;;  %v6923_v27 = vpop.f32.mrb[110].mxu0  ;;  %7789 = vmatprep.mubr.bf16.mxu1 %v14493_v28 }
 0x910   : > { %v6924_v37 = vadd.f32 %v6923_v27, %v14141_v57  ;;  %v6925_v49 = vpop.f32.mrb[111].mxu0  ;;  %7790 = vmatmul.mubr.bf16.gmra.mrb[232].mxu1 %v14491_v3  ;;  %v7076_v39 = vmax.f32 %v6920_v7, 0.0 }
 0x911   : > { %v6926_v60 = vadd.f32 %v6925_v49, %v14144_v22  ;;  %v7077_v4 = vmax.f32 %v6922_v44, 0.0 }
 0x912   : > { %v7078_v55 = vmax.f32 %v6924_v37, 0.0  ;;  %8059 = vmatmul.mubr.bf16.gmra.mrb[216].mxu0 %v14443_v18 }
 0x913   : > { %v7079_v12 = vmax.f32 %v6926_v60, 0.0  ;;  %v7531_v32 = vpop.f32.mrb[128].mxu1  ;;  %8066 = vmatprep.mubr.bf16.mxu0 %v14457_v9 }
 0x914   : > { %v14512_v43 = vpack.c.bf16 %v7078_v55, %v7076_v39  ;;  %v7533_v52 = vpop.f32.mrb[129].mxu1  ;;  %v14517_v18 = vadd.f32 %v7531_v32, %v14506_v36 }
 0x915   : > { %v14514_v46 = vpack.c.bf16 %v7079_v12, %v7077_v4  ;;  %v6929_v6 = vpop.f32.mrb[112].mxu0  ;;  %v7535_v41 = vpop.f32.mrb[130].mxu1  ;;  %v14524_v35 = vadd.f32 %v7533_v52, %v14510_v54 }
 0x916   : > { %v6930_v33 = vadd.f32 %v6929_v6, %v14141_v57  ;;  %v14521_v34 = vadd.f32 %v7535_v41, %v14506_v36  ;;  %v6931_v56 = vpop.f32.mrb[113].mxu0  ;;  %v7537_v9 = vpop.f32.mrb[131].mxu1 }
 0x917   : > { %v6932_v62 = vadd.f32 %v6931_v56, %v14144_v22  ;;  %v14528_v21 = vadd.f32 %v7537_v9, %v14510_v54  ;;  %v6933_v29 = vpop.f32.mrb[114].mxu0  ;;  %7799 = vmatprep.mubr.bf16.mxu1 %v14514_v46 }
 0x918   : > { %v6934_v26 = vadd.f32 %v6933_v29, %v14141_v57  ;;  %v6935_v15 = vpop.f32.mrb[115].mxu0  ;;  %7800 = vmatmul.mubr.bf16.gmra.mrb[236].mxu1 %v14512_v43  ;;  %v7080_v20 = vmax.f32 %v6930_v33, 0.0 }
 0x919   : > { %v6936_v17 = vadd.f32 %v6935_v15, %v14144_v22  ;;  %v7081_v16 = vmax.f32 %v6932_v62, 0.0 }
 0x91a   : > { %v7082_v59 = vmax.f32 %v6934_v26, 0.0  ;;  %8067 = vmatmul.mubr.bf16.gmra.mrb[220].mxu0 %v14455_v0  ;;  %v11835_v26 = vld [vmem:[%s11972_s24 + $0x38] sm:$0xff]  }
 0x91b   : > { %v7083_v61 = vmax.f32 %v6936_v17, 0.0  ;;  %v7541_v23 = vpop.f32.mrb[132].mxu1  ;;  %8074 = vmatprep.mubr.bf16.mxu0 %v14469_v63 }
 0x91c   : > { %v14540_v42 = vpack.c.bf16 %v7082_v59, %v7080_v20  ;;  %v7543_v13 = vpop.f32.mrb[133].mxu1  ;;  %v14545_v5 = vadd.f32 %v7541_v23, %v14506_v36 }
 0x91d   : > { %v14542_v58 = vpack.c.bf16 %v7083_v61, %v7081_v16  ;;  %v6939_v11 = vpop.f32.mrb[116].mxu0  ;;  %v7545_v48 = vpop.f32.mrb[134].mxu1  ;;  %v14552_v51 = vadd.f32 %v7543_v13, %v14510_v54 }
 0x91e   : > { %v6940_v24 = vadd.f32 %v6939_v11, %v14141_v57  ;;  %v14549_v25 = vadd.f32 %v7545_v48, %v14506_v36  ;;  %v6941_v0 = vpop.f32.mrb[117].mxu0  ;;  %v7547_v38 = vpop.f32.mrb[135].mxu1 }
 0x91f   : > { %v6942_v63 = vadd.f32 %v6941_v0, %v14144_v22  ;;  %v14556_v1 = vadd.f32 %v7547_v38, %v14510_v54  ;;  %v6943_v14 = vpop.f32.mrb[118].mxu0  ;;  %7809 = vmatprep.mubr.bf16.mxu1 %v14542_v58 }
 0x920   : > { %v6944_v7 = vadd.f32 %v6943_v14, %v14141_v57  ;;  %v6945_v53 = vpop.f32.mrb[119].mxu0  ;;  %7810 = vmatmul.mubr.bf16.gmra.mrb[240].mxu1 %v14540_v42  ;;  %v7084_v50 = vmax.f32 %v6940_v24, 0.0 }
 0x921   : > { %v6946_v44 = vadd.f32 %v6945_v53, %v14144_v22  ;;  %v7085_v49 = vmax.f32 %v6942_v63, 0.0 }
 0x922   : > { %v7086_v37 = vmax.f32 %v6944_v7, 0.0  ;;  %8075 = vmatmul.mubr.bf16.gmra.mrb[224].mxu0 %v14467_v19 }
 0x923   : > { %v7087_v60 = vmax.f32 %v6946_v44, 0.0  ;;  %v7551_v39 = vpop.f32.mrb[136].mxu1  ;;  %8082 = vmatprep.mubr.bf16.mxu0 %v14481_v8 }
 0x924   : > { %v14568_v55 = vpack.c.bf16 %v7086_v37, %v7084_v50  ;;  %v7553_v4 = vpop.f32.mrb[137].mxu1  ;;  %v14573_v6 = vadd.f32 %v7551_v39, %v14506_v36 }
 0x925   : > { %v14570_v12 = vpack.c.bf16 %v7087_v60, %v7085_v49  ;;  %v6949_v32 = vpop.f32.mrb[120].mxu0  ;;  %v7555_v52 = vpop.f32.mrb[138].mxu1  ;;  %v14580_v9 = vadd.f32 %v7553_v4, %v14510_v54 }
 0x926   : > { %v6950_v41 = vadd.f32 %v6949_v32, %v14141_v57  ;;  %v14577_v33 = vadd.f32 %v7555_v52, %v14506_v36  ;;  %v6951_v19 = vpop.f32.mrb[121].mxu0  ;;  %v7557_v56 = vpop.f32.mrb[139].mxu1 }
 0x927   : > { %v6952_v8 = vadd.f32 %v6951_v19, %v14144_v22  ;;  %v14584_v62 = vadd.f32 %v7557_v56, %v14510_v54  ;;  %v6953_v29 = vpop.f32.mrb[122].mxu0  ;;  %7819 = vmatprep.mubr.bf16.mxu1 %v14570_v12 }
 0x928   : > { %v6954_v15 = vadd.f32 %v6953_v29, %v14141_v57  ;;  %v6955_v17 = vpop.f32.mrb[123].mxu0  ;;  %7820 = vmatmul.mubr.bf16.gmra.mrb[244].mxu1 %v14568_v55  ;;  %v7088_v16 = vmax.f32 %v6950_v41, 0.0 }
 0x929   : > { %v6956_v20 = vadd.f32 %v6955_v17, %v14144_v22  ;;  %v7089_v23 = vmax.f32 %v6952_v8, 0.0 }
 0x92a   : > { %v7090_v61 = vmax.f32 %v6954_v15, 0.0  ;;  %8083 = vmatmul.mubr.bf16.gmra.mrb[228].mxu0 %v14479_v45 }
 0x92b   : > { %v7091_v13 = vmax.f32 %v6956_v20, 0.0  ;;  %v7561_v11 = vpop.f32.mrb[140].mxu1  ;;  %8090 = vmatprep.mubr.bf16.mxu0 %v14493_v28 }
 0x92c   : > { %v14596_v48 = vpack.c.bf16 %v7090_v61, %v7088_v16  ;;  %v7563_v24 = vpop.f32.mrb[141].mxu1  ;;  %v14601_v14 = vadd.f32 %v7561_v11, %v14506_v36 }
 0x92d   : > { %v14598_v0 = vpack.c.bf16 %v7091_v13, %v7089_v23  ;;  %v6959_v38 = vpop.f32.mrb[124].mxu0  ;;  %v7565_v63 = vpop.f32.mrb[142].mxu1  ;;  %v14608_v50 = vadd.f32 %v7563_v24, %v14510_v54  ;;  %v11833_v24 = vld [vmem:[%s11972_s24 + $0x28] sm:$0xff]  }
 0x92e   : > { %v6960_v7 = vadd.f32 %v6959_v38, %v14141_v57  ;;  %v14605_v53 = vadd.f32 %v7565_v63, %v14506_v36  ;;  %v6961_v45 = vpop.f32.mrb[125].mxu0  ;;  %v7567_v44 = vpop.f32.mrb[143].mxu1  ;;  %v11828_v63 = vld [vmem:[%s11972_s24] sm:$0xff]  }
 0x92f   : > { %v6962_v28 = vadd.f32 %v6961_v45, %v14144_v22  ;;  %v14612_v37 = vadd.f32 %v7567_v44, %v14510_v54  ;;  %v6963_v49 = vpop.f32.mrb[126].mxu0  ;;  %7829 = vmatprep.mubr.bf16.mxu1 %v14598_v0 }
 0x930   : > { %v6964_v39 = vadd.f32 %v6963_v49, %v14141_v57  ;;  %v6965_v4 = vpop.f32.mrb[127].mxu0  ;;  %7830 = vmatmul.mubr.bf16.gmra.mrb[248].mxu1 %v14596_v48  ;;  %v7092_v41 = vmax.f32 %v6960_v7, 0.0 }
 0x931   : > { %v6966_v32 = vadd.f32 %v6965_v4, %v14144_v22  ;;  %v7093_v56 = vmax.f32 %v6962_v28, 0.0 }
 0x932   : > { %v7094_v19 = vmax.f32 %v6964_v39, 0.0  ;;  %8091 = vmatmul.mubr.bf16.gmra.mrb[232].mxu0 %v14491_v3  ;;  %v11516_v39 = vld [vmem:[%s16207_s7] sm:$0xff]  }
 0x933   : > { %v7095_v8 = vmax.f32 %v6966_v32, 0.0  ;;  %v7571_v29 = vpop.f32.mrb[144].mxu1  ;;  %8098 = vmatprep.mubr.bf16.mxu0 %v14514_v46 }
 0x934   : > { %v14624_v15 = vpack.c.bf16 %v7094_v19, %v7092_v41  ;;  %v7573_v57 = vpop.f32.mrb[145].mxu1  ;;  %v14631_v16 = vadd.f32 %v7571_v29, %v14506_v36 }
 0x935   : > { %v14626_v17 = vpack.c.bf16 %v7095_v8, %v7093_v56  ;;  %v7575_v20 = vpop.f32.mrb[146].mxu1  ;;  %v14628_v22 = vpop.f32.mrb[128].mxu0  ;;  %v14637_v13 = vadd.f32 %v7573_v57, %v14510_v54  ;;  %v11829_v57 = vld [vmem:[%s11972_s24 + $0x8] sm:$0xff]  }
 0x936   : > { %16256 = vst [vmem:[#allocation3_spill] sm:$0xff] %v14628_v22  ;;  %v14634_v61 = vadd.f32 %v7575_v20, %v14506_v36  ;;  %v7577_v3 = vpop.f32.mrb[147].mxu1  ;;  %v7886_v23 = vpop.f32.mrb[129].mxu0  ;;  %v11830_v20 = vld [vmem:[%s11972_s24 + $0x10] sm:$0xff]  }
 0x937   : > { %v14640_v46 = vadd.f32 %v7577_v3, %v14510_v54  ;;  %7839 = vmatprep.mubr.bf16.mxu1 %v14626_v17  ;;  %v14643_v11 = vpop.f32.mrb[130].mxu0  ;;  %v11517_v3 = vld [vmem:[%s16207_s7 + $0x8] sm:$0xff]  }
 0x938   : > { %16257 = vst [vmem:[#allocation4_spill] sm:$0xff] %v14643_v11  ;;  %7840 = vmatmul.mubr.bf16.gmra.mrb[252].mxu1 %v14624_v15  ;;  %v7889_v38 = vpop.f32.mrb[131].mxu0  ;;  %v11841_v11 = vld [vmem:[%s11972_s24 + $0x68] sm:$0xff]  }
 0x939   : > { %10747 = vmatprep.mubr.bf16.mxu1 %v11828_v63 }
 0x93a   : > { %8099 = vmatmul.mubr.bf16.gmra.mrb[236].mxu0 %v14512_v43 }
 0x93b   : > { %v7581_v45 = vpop.f32.mrb[148].mxu1  ;;  %8106 = vmatprep.mubr.bf16.mxu0 %v14542_v58 }
 0x93c   : > { %v7583_v44 = vpop.f32.mrb[149].mxu1  ;;  %v14659_v4 = vadd.f32 %v7581_v45, %v14506_v36 }
 0x93d   : > { %v7585_v28 = vpop.f32.mrb[150].mxu1  ;;  %v14653_v49 = vpop.f32.mrb[132].mxu0  ;;  %v14665_v19 = vadd.f32 %v7583_v44, %v14510_v54 }
 0x93e   : > { %16258 = vst [vmem:[#allocation5_spill] sm:$0xff] %v14653_v49  ;;  %v14662_v32 = vadd.f32 %v7585_v28, %v14506_v36  ;;  %v7587_v43 = vpop.f32.mrb[151].mxu1  ;;  %v7894_v41 = vpop.f32.mrb[133].mxu0  ;;  %v11518_v28 = vld [vmem:[%s16207_s7 + $0x10] sm:$0xff]  }
 0x93f   : > { %v14668_v58 = vadd.f32 %v7587_v43, %v14510_v54  ;;  %v14670_v56 = vpop.f32.mrb[134].mxu0 }
 0x940   : > { %16259 = vst [vmem:[#allocation6_spill] sm:$0xff] %v14670_v56  ;;  %v7897_v29 = vpop.f32.mrb[135].mxu0  ;;  %10748 = vmatmul.mubr.bf16.vlgmr.msra.gmra.mrb[0].mxu1 %v11829_v57 }
 0x941   : > { %8749 = vmatpush1.bf16.msra.mxu1 %v11516_v39  ;;  %10751 = vmatprep.mubr.bf16.mxu1 %v11830_v20 }
 0x942   : > { %8107 = vmatmul.mubr.bf16.gmra.mrb[240].mxu0 %v14540_v42  ;;  %8750 = vmatprep.subr.bf16.mxu1 %v11870_v2 }
 0x943   : > { %v7591_v38 = vpop.f32.mrb[152].mxu1  ;;  %8114 = vmatprep.mubr.bf16.mxu0 %v14570_v12 }
 0x944   : > { %v7593_v63 = vpop.f32.mrb[153].mxu1  ;;  %v14690_v39 = vadd.f32 %v7591_v38, %v14506_v36  ;;  %v11831_v38 = vld [vmem:[%s11972_s24 + $0x18] sm:$0xff]  }
 0x945   : > { %v7595_v45 = vpop.f32.mrb[154].mxu1  ;;  %v14684_v44 = vpop.f32.mrb[136].mxu0  ;;  %8751 = vmatpush1.bf16.msra.mxu1 %v11517_v3  ;;  %v14697_v12 = vadd.f32 %v7593_v63, %v14510_v54 }
 0x946   : > { %16260 = vst [vmem:[#allocation7_spill] sm:$0xff] %v14684_v44  ;;  %v14693_v42 = vadd.f32 %v7595_v45, %v14506_v36  ;;  %v7597_v43 = vpop.f32.mrb[155].mxu1  ;;  %v7902_v41 = vpop.f32.mrb[137].mxu0  ;;  %8752 = vmatprep.subr.bf16.mxu1 %v11870_v2  ;;  %v11832_v45 = vld [vmem:[%s11972_s24 + $0x20] sm:$0xff]  }
 0x947   : > { %v14700_v29 = vadd.f32 %v7597_v43, %v14510_v54  ;;  %v14702_v57 = vpop.f32.mrb[138].mxu0  ;;  %v11519_v41 = vld [vmem:[%s16207_s7 + $0x18] sm:$0xff]  }
 0x948   : > { %16261 = vst [vmem:[#allocation8_spill] sm:$0xff] %v14702_v57  ;;  %v7905_v3 = vpop.f32.mrb[139].mxu0  ;;  %10752 = vmatmul.mubr.bf16.gmra.mrb[4].mxu1 %v11831_v38  ;;  %v11839_v57 = vld [vmem:[%s11972_s24 + $0x58] sm:$0xff]  }
 0x949   : > { %10755 = vmatprep.mubr.bf16.mxu1 %v11832_v45  ;;  %8753 = vmatpush1.bf16.msra.mxu1 %v11518_v28  ;;  %v11520_v28 = vld [vmem:[%s16207_s7 + $0x20] sm:$0xff]  }
 0x94a   : > { %8115 = vmatmul.mubr.bf16.gmra.mrb[244].mxu0 %v14568_v55  ;;  %8754 = vmatprep.subr.bf16.mxu1 %v11870_v2 }
 0x94b   : > { %v7601_v43 = vpop.f32.mrb[156].mxu1  ;;  %8122 = vmatprep.mubr.bf16.mxu0 %v14598_v0 }
 0x94c   : > { %v7603_v3 = vpop.f32.mrb[157].mxu1  ;;  %v14722_v30 = vadd.f32 %v7601_v43, %v14506_v36 }
 0x94d   : > { %v7605_v38 = vpop.f32.mrb[158].mxu1  ;;  %v14716_v45 = vpop.f32.mrb[140].mxu0  ;;  %8755 = vmatpush1.bf16.msra.mxu1 %v11519_v41  ;;  %v14729_v0 = vadd.f32 %v7603_v3, %v14510_v54 }
 0x94e   : > { %16262 = vst [vmem:[#allocation9_spill] sm:$0xff] %v14716_v45  ;;  %v14725_v55 = vadd.f32 %v7605_v38, %v14506_v36  ;;  %v7607_v20 = vpop.f32.mrb[159].mxu1  ;;  %v7910_v63 = vpop.f32.mrb[141].mxu0  ;;  %8756 = vmatprep.subr.bf16.mxu1 %v11870_v2  ;;  %v11834_v38 = vld [vmem:[%s11972_s24 + $0x30] sm:$0xff]  }
 0x94f   : > { %v14732_v8 = vadd.f32 %v7607_v20, %v14510_v54  ;;  %v14734_v41 = vpop.f32.mrb[142].mxu0  ;;  %v11521_v63 = vld [vmem:[%s16207_s7 + $0x28] sm:$0xff]  }
 0x950   : > { %16263 = vst [vmem:[#allocation10_spill] sm:$0xff] %v14734_v41  ;;  %v7913_v43 = vpop.f32.mrb[143].mxu0  ;;  %10756 = vmatmul.mubr.bf16.gmra.mrb[8].mxu1 %v11833_v24 }
 0x951   : > { %10759 = vmatprep.mubr.bf16.mxu1 %v11834_v38  ;;  %8757 = vmatpush1.bf16.msra.mxu1 %v11520_v28  ;;  %v11522_v28 = vld [vmem:[%s16207_s7 + $0x30] sm:$0xff]  }
 0x952   : > { %8123 = vmatmul.mubr.bf16.gmra.mrb[248].mxu0 %v14596_v48  ;;  %8758 = vmatprep.subr.bf16.mxu1 %v11870_v2 }
 0x953   : > { %v7611_v20 = vpop.f32.mrb[160].mxu1  ;;  %8130 = vmatprep.mubr.bf16.mxu0 %v14626_v17 }
 0x954   : > { %v7613_v43 = vpop.f32.mrb[161].mxu1  ;;  %v14754_v23 = vadd.f32 %v7611_v20, %v14506_v36 }
 0x955   : > { %v7615_v24 = vpop.f32.mrb[162].mxu1  ;;  %v14748_v38 = vpop.f32.mrb[144].mxu0  ;;  %8759 = vmatpush1.bf16.msra.mxu1 %v11521_v63  ;;  %v14761_v17 = vadd.f32 %v7613_v43, %v14510_v54 }
 0x956   : > { %16264 = vst [vmem:[#allocation11_spill] sm:$0xff] %v14748_v38  ;;  %v14757_v48 = vadd.f32 %v7615_v24, %v14506_v36  ;;  %v7617_v3 = vpop.f32.mrb[163].mxu1  ;;  %v7918_v7 = vpop.f32.mrb[145].mxu0  ;;  %8760 = vmatprep.subr.bf16.mxu1 %v11870_v2  ;;  %v11836_v24 = vld [vmem:[%s11972_s24 + $0x40] sm:$0xff]  }
 0x957   : > { %v14764_v60 = vadd.f32 %v7617_v3, %v14510_v54  ;;  %v14766_v63 = vpop.f32.mrb[146].mxu0  ;;  %v11523_v7 = vld [vmem:[%s16207_s7 + $0x38] sm:$0xff]  }
 0x958   : > { %16265 = vst [vmem:[#allocation12_spill] sm:$0xff] %v14766_v63  ;;  %v7921_v20 = vpop.f32.mrb[147].mxu0  ;;  %10760 = vmatmul.mubr.bf16.gmra.mrb[12].mxu1 %v11835_v26 }
 0x959   : > { %10763 = vmatprep.mubr.bf16.mxu1 %v11836_v24  ;;  %8761 = vmatpush1.bf16.msra.mxu1 %v11522_v28  ;;  %v11524_v28 = vld [vmem:[%s16207_s7 + $0x40] sm:$0xff]  }
 0x95a   : > { %8131 = vmatmul.mubr.bf16.gmra.mrb[252].mxu0 %v14624_v15  ;;  %8762 = vmatprep.subr.bf16.mxu1 %v11870_v2 }
 0x95b   : > { %v7621_v3 = vpop.f32.mrb[164].mxu1 }
 0x95c   : > { %v7623_v52 = vpop.f32.mrb[165].mxu1  ;;  %v14785_v24 = vadd.f32 %v7621_v3, %v14506_v36 }
 0x95d   : > { %v7625_v20 = vpop.f32.mrb[166].mxu1  ;;  %v14779_v26 = vpop.f32.mrb[148].mxu0  ;;  %8763 = vmatpush1.bf16.msra.mxu1 %v11523_v7  ;;  %v14792_v40 = vadd.f32 %v7623_v52, %v14510_v54 }
 0x95e   : > { %16266 = vst [vmem:[#allocation13_spill] sm:$0xff] %v14779_v26  ;;  %v14788_v43 = vadd.f32 %v7625_v20, %v14506_v36  ;;  %v7627_v15 = vpop.f32.mrb[167].mxu1  ;;  %v7926_v59 = vpop.f32.mrb[149].mxu0  ;;  %8764 = vmatprep.subr.bf16.mxu1 %v11870_v2  ;;  %v11838_v20 = vld [vmem:[%s11972_s24 + $0x50] sm:$0xff]  }
 0x95f   : > { %v14795_v27 = vadd.f32 %v7627_v15, %v14510_v54  ;;  %v14797_v7 = vpop.f32.mrb[150].mxu0  ;;  %v11525_v59 = vld [vmem:[%s16207_s7 + $0x48] sm:$0xff]  }
 0x960   : > { %16267 = vst [vmem:[#allocation14_spill] sm:$0xff] %v14797_v7  ;;  %v7929_v3 = vpop.f32.mrb[151].mxu0  ;;  %10764 = vmatmul.mubr.bf16.gmra.mrb[16].mxu1 %v11837_v47  ;;  %v11526_v47 = vld [vmem:[%s16207_s7 + $0x50] sm:$0xff]  }
 0x961   : > { %10767 = vmatprep.mubr.bf16.mxu1 %v11838_v20  ;;  %8765 = vmatpush1.bf16.msra.mxu1 %v11524_v28 }
 0x962   : > { %8766 = vmatprep.subr.bf16.mxu1 %v11870_v2 }
 0x963   : > { %v7631_v15 = vpop.f32.mrb[168].mxu1 }
 0x964   : > { %v7633_v63 = vpop.f32.mrb[169].mxu1  ;;  %v14815_v28 = vadd.f32 %v7631_v15, %v14506_v36 }
 0x965   : > { %v7635_v7 = vpop.f32.mrb[170].mxu1  ;;  %v14809_v3 = vpop.f32.mrb[152].mxu0  ;;  %8767 = vmatpush1.bf16.msra.mxu1 %v11525_v59  ;;  %v14822_v38 = vadd.f32 %v7633_v63, %v14510_v54 }
 0x966   : > { %16268 = vst [vmem:[#allocation15_spill] sm:$0xff] %v14809_v3  ;;  %v14818_v20 = vadd.f32 %v7635_v7, %v14506_v36  ;;  %v7637_v10 = vpop.f32.mrb[171].mxu1  ;;  %v7934_v52 = vpop.f32.mrb[153].mxu0  ;;  %8768 = vmatprep.subr.bf16.mxu1 %v11870_v2  ;;  %v11840_v7 = vld [vmem:[%s11972_s24 + $0x60] sm:$0xff]  }
 0x967   : > { %v14825_v3 = vadd.f32 %v7637_v10, %v14510_v54  ;;  %v14827_v59 = vpop.f32.mrb[154].mxu0  ;;  %v11527_v52 = vld [vmem:[%s16207_s7 + $0x58] sm:$0xff]  }
 0x968   : > { %16269 = vst [vmem:[#allocation16_spill] sm:$0xff] %v14827_v59  ;;  %v7937_v15 = vpop.f32.mrb[155].mxu0  ;;  %10768 = vmatmul.mubr.bf16.gmra.mrb[20].mxu1 %v11839_v57  ;;  %v11528_v57 = vld [vmem:[%s16207_s7 + $0x60] sm:$0xff]  }
 0x969   : > { %10771 = vmatprep.mubr.bf16.mxu1 %v11840_v7  ;;  %8769 = vmatpush1.bf16.msra.mxu1 %v11526_v47 }
 0x96a   : > { %8770 = vmatprep.subr.bf16.mxu1 %v11870_v2 }
 0x96b   : > { %v7641_v10 = vpop.f32.mrb[172].mxu1 }
 0x96c   : > { %v7643_v59 = vpop.f32.mrb[173].mxu1  ;;  %v14845_v47 = vadd.f32 %v7641_v10, %v14506_v36 }
 0x96d   : > { %v7645_v41 = vpop.f32.mrb[174].mxu1  ;;  %v14839_v15 = vpop.f32.mrb[156].mxu0  ;;  %8771 = vmatpush1.bf16.msra.mxu1 %v11527_v52  ;;  %v14852_v44 = vadd.f32 %v7643_v59, %v14510_v54 }
 0x96e   : > { %16270 = vst [vmem:[#allocation17_spill] sm:$0xff] %v14839_v15  ;;  %16271 = vst [vmem:[#allocation18_spill] sm:$0xff] %v14845_v47  ;;  %v14848_v7 = vadd.f32 %v7645_v41, %v14506_v36  ;;  %v7647_v26 = vpop.f32.mrb[175].mxu1  ;;  %v7942_v63 = vpop.f32.mrb[157].mxu0  ;;  %8772 = vmatprep.subr.bf16.mxu1 %v11870_v2  ;;  %v11842_v41 = vld [vmem:[%s11972_s24 + $0x70] sm:$0xff]  }
 0x96f   : > { %v14855_v15 = vadd.f32 %v7647_v26, %v14510_v54  ;;  %v14857_v52 = vpop.f32.mrb[158].mxu0  ;;  %v11529_v63 = vld [vmem:[%s16207_s7 + $0x68] sm:$0xff]  }
 0x970   : > { %16272 = vst [vmem:[#allocation19_spill] sm:$0xff] %v14857_v52  ;;  %v7945_v10 = vpop.f32.mrb[159].mxu0  ;;  %10772 = vmatmul.mubr.bf16.gmra.mrb[24].mxu1 %v11841_v11  ;;  %v11530_v11 = vld [vmem:[%s16207_s7 + $0x70] sm:$0xff]  }
 0x971   : > { %10775 = vmatprep.mubr.bf16.mxu1 %v11842_v41  ;;  %8773 = vmatpush1.bf16.msra.mxu1 %v11528_v57 }
 0x972   : > { %8774 = vmatprep.subr.bf16.mxu1 %v11870_v2 }
 0x973   : > { %v7651_v26 = vpop.f32.mrb[176].mxu1 }
 0x974   : > { %v7653_v52 = vpop.f32.mrb[177].mxu1  ;;  %v14875_v57 = vadd.f32 %v7651_v26, %v14506_v36 }
 0x975   : > { %v7655_v56 = vpop.f32.mrb[178].mxu1  ;;  %v14869_v10 = vpop.f32.mrb[160].mxu0  ;;  %8775 = vmatpush1.bf16.msra.mxu1 %v11529_v63  ;;  %v14882_v22 = vadd.f32 %v7653_v52, %v14510_v54 }
 0x976   : > { %16273 = vst [vmem:[#allocation20_spill] sm:$0xff] %v14869_v10  ;;  %16274 = vst [vmem:[#allocation21_spill] sm:$0xff] %v14875_v57  ;;  %v14878_v41 = vadd.f32 %v7655_v56, %v14506_v36  ;;  %v7657_v45 = vpop.f32.mrb[179].mxu1  ;;  %v7950_v59 = vpop.f32.mrb[161].mxu0  ;;  %8776 = vmatprep.subr.bf16.mxu1 %v11870_v2  ;;  %v11844_v56 = vld [vmem:[%s11972_s24 + $0x80] sm:$0xff]  }
 0x977   : > { %16276 = vst [vmem:[#allocation23_spill] sm:$0xff] %v14882_v22  ;;  %v14885_v10 = vadd.f32 %v7657_v45, %v14510_v54  ;;  %v14887_v63 = vpop.f32.mrb[162].mxu0  ;;  %v11531_v59 = vld [vmem:[%s16207_s7 + $0x78] sm:$0xff]   ;;  %v11845_v22 = vld [vmem:[%s11972_s24 + $0x88] sm:$0xff]  }
 0x978   : > { %16275 = vst [vmem:[#allocation22_spill] sm:$0xff] %v14878_v41  ;;  %16278 = vst [vmem:[#allocation25_spill] sm:$0xff] %v14887_v63  ;;  %v7953_v26 = vpop.f32.mrb[163].mxu0  ;;  %10776 = vmatmul.mubr.bf16.gmra.mrb[28].mxu1 %v11843_v31 }
 0x979   : > { %16277 = vst [vmem:[#allocation24_spill] sm:$0xff] %v14885_v10  ;;  %10779 = vmatprep.mubr.bf16.mxu1 %v11844_v56  ;;  %8777 = vmatpush1.bf16.msra.mxu1 %v11530_v11 }
 0x97a   : > { %8778 = vmatprep.subr.bf16.mxu1 %v11870_v2 }
 0x97b   : > { %v7661_v45 = vpop.f32.mrb[180].mxu1 }
 0x97c   : > { %v7663_v63 = vpop.f32.mrb[181].mxu1  ;;  %v14902_v31 = vadd.f32 %v7661_v45, %v14506_v36  ;;  %v11846_v45 = vld [vmem:[%s11972_s24 + $0x90] sm:$0xff]  }
 0x97d   : > { %v7665_v49 = vpop.f32.mrb[182].mxu1  ;;  %v14899_v26 = vpop.f32.mrb[164].mxu0  ;;  %8779 = vmatpush1.bf16.msra.mxu1 %v11531_v59  ;;  %v14908_v52 = vadd.f32 %v7663_v63, %v14510_v54 }
 0x97e   : > { %16279 = vst [vmem:[#allocation26_spill] sm:$0xff] %v14899_v26  ;;  %16280 = vst [vmem:[#allocation27_spill] sm:$0xff] %v14902_v31  ;;  %v14905_v11 = vadd.f32 %v7665_v49, %v14506_v36  ;;  %v7667_v56 = vpop.f32.mrb[183].mxu1  ;;  %v7958_v57 = vpop.f32.mrb[165].mxu0 }
 0x97f   : > { %16282 = vst [vmem:[#allocation29_spill] sm:$0xff] %v14908_v52  ;;  %v14911_v2 = vadd.f32 %v7667_v56, %v14510_v54  ;;  %v14913_v41 = vpop.f32.mrb[166].mxu0  ;;  %v11847_v52 = vld [vmem:[%s11972_s24 + $0x98] sm:$0xff]  }
 0x980   : > { %16281 = vst [vmem:[#allocation28_spill] sm:$0xff] %v14905_v11  ;;  %16284 = vst [vmem:[#allocation31_spill] sm:$0xff] %v14913_v41  ;;  %v7961_v59 = vpop.f32.mrb[167].mxu0  ;;  %10780 = vmatmul.mubr.bf16.gmra.mrb[32].mxu1 %v11845_v22 }
 0x981   : > { %16283 = vst [vmem:[#allocation30_spill] sm:$0xff] %v14911_v2  ;;  %10783 = vmatprep.mubr.bf16.mxu1 %v11846_v45 }
 0x983   : > { %v7671_v57 = vpop.f32.mrb[184].mxu1 }
 0x984   : > { %v7673_v63 = vpop.f32.mrb[185].mxu1  ;;  %v14924_v41 = vadd.f32 %v7671_v57, %v14506_v36  ;;  %v11848_v57 = vld [vmem:[%s11972_s24 + $0xa0] sm:$0xff]  }
 0x985   : > { %v7675_v10 = vpop.f32.mrb[186].mxu1  ;;  %v14921_v56 = vpop.f32.mrb[168].mxu0  ;;  %v14930_v31 = vadd.f32 %v7673_v63, %v14510_v54 }
 0x986   : > { %16285 = vst [vmem:[#allocation32_spill] sm:$0xff] %v14921_v56  ;;  %16286 = vst [vmem:[#allocation33_spill] sm:$0xff] %v14924_v41  ;;  %v14927_v26 = vadd.f32 %v7675_v10, %v14506_v36  ;;  %v7677_v59 = vpop.f32.mrb[187].mxu1  ;;  %v7966_v22 = vpop.f32.mrb[169].mxu0 }
 0x987   : > { %16288 = vst [vmem:[#allocation35_spill] sm:$0xff] %v14930_v31  ;;  %v14933_v45 = vadd.f32 %v7677_v59, %v14510_v54  ;;  %v14935_v49 = vpop.f32.mrb[170].mxu0  ;;  %v11849_v31 = vld [vmem:[%s11972_s24 + $0xa8] sm:$0xff]  }
 0x988   : > { %16287 = vst [vmem:[#allocation34_spill] sm:$0xff] %v14927_v26  ;;  %16290 = vst [vmem:[#allocation37_spill] sm:$0xff] %v14935_v49  ;;  %v7969_v56 = vpop.f32.mrb[171].mxu0  ;;  %10784 = vmatmul.mubr.bf16.gmra.mrb[36].mxu1 %v11847_v52 }
 0x989   : > { %16289 = vst [vmem:[#allocation36_spill] sm:$0xff] %v14933_v45  ;;  %10787 = vmatprep.mubr.bf16.mxu1 %v11848_v57 }
 0x98b   : > { %v7681_v63 = vpop.f32.mrb[188].mxu1 }
 0x98c   : > { %v7683_v22 = vpop.f32.mrb[189].mxu1  ;;  %v14946_v49 = vadd.f32 %v7681_v63, %v14506_v36  ;;  %v11850_v63 = vld [vmem:[%s11972_s24 + $0xb0] sm:$0xff]  }
 0x98d   : > { %v7685_v2 = vpop.f32.mrb[190].mxu1  ;;  %v14943_v59 = vpop.f32.mrb[172].mxu0  ;;  %v14952_v41 = vadd.f32 %v7683_v22, %v14510_v54 }
 0x98e   : > { %16291 = vst [vmem:[#allocation38_spill] sm:$0xff] %v14943_v59  ;;  %16292 = vst [vmem:[#allocation39_spill] sm:$0xff] %v14946_v49  ;;  %v14949_v11 = vadd.f32 %v7685_v2, %v14506_v36  ;;  %v7687_v56 = vpop.f32.mrb[191].mxu1  ;;  %v7974_v52 = vpop.f32.mrb[173].mxu0 }
 0x98f   : > { %16294 = vst [vmem:[#allocation41_spill] sm:$0xff] %v14952_v41  ;;  %v14955_v57 = vadd.f32 %v7687_v56, %v14510_v54  ;;  %v14957_v10 = vpop.f32.mrb[174].mxu0  ;;  %v11851_v41 = vld [vmem:[%s11972_s24 + $0xb8] sm:$0xff]  }
 0x990   : > { %16293 = vst [vmem:[#allocation40_spill] sm:$0xff] %v14949_v11  ;;  %16296 = vst [vmem:[#allocation43_spill] sm:$0xff] %v14957_v10  ;;  %v7977_v59 = vpop.f32.mrb[175].mxu0  ;;  %10788 = vmatmul.mubr.bf16.gmra.mrb[40].mxu1 %v11849_v31 }
 0x991   : > { %16295 = vst [vmem:[#allocation42_spill] sm:$0xff] %v14955_v57  ;;  %10791 = vmatprep.mubr.bf16.mxu1 %v11850_v63 }
 0x993   : > { %v7691_v52 = vpop.f32.mrb[192].mxu1 }
 0x994   : > { %v7693_v22 = vpop.f32.mrb[193].mxu1  ;;  %v14968_v10 = vadd.f32 %v7691_v52, %v14506_v36  ;;  %v11852_v52 = vld [vmem:[%s11972_s24 + $0xc0] sm:$0xff]  }
 0x995   : > { %v7695_v45 = vpop.f32.mrb[194].mxu1  ;;  %v14965_v56 = vpop.f32.mrb[176].mxu0  ;;  %v14974_v49 = vadd.f32 %v7693_v22, %v14510_v54 }
 0x996   : > { %16297 = vst [vmem:[#allocation44_spill] sm:$0xff] %v14965_v56  ;;  %16298 = vst [vmem:[#allocation45_spill] sm:$0xff] %v14968_v10  ;;  %v14971_v26 = vadd.f32 %v7695_v45, %v14506_v36  ;;  %v7697_v59 = vpop.f32.mrb[195].mxu1  ;;  %v7982_v31 = vpop.f32.mrb[177].mxu0 }
 0x997   : > { %16300 = vst [vmem:[#allocation47_spill] sm:$0xff] %v14974_v49  ;;  %v14977_v63 = vadd.f32 %v7697_v59, %v14510_v54  ;;  %v14979_v2 = vpop.f32.mrb[178].mxu0  ;;  %v11853_v49 = vld [vmem:[%s11972_s24 + $0xc8] sm:$0xff]  }
 0x998   : > { %16299 = vst [vmem:[#allocation46_spill] sm:$0xff] %v14971_v26  ;;  %16302 = vst [vmem:[#allocation49_spill] sm:$0xff] %v14979_v2  ;;  %v7985_v56 = vpop.f32.mrb[179].mxu0  ;;  %10792 = vmatmul.mubr.bf16.gmra.mrb[44].mxu1 %v11851_v41 }
 0x999   : > { %16301 = vst [vmem:[#allocation48_spill] sm:$0xff] %v14977_v63  ;;  %10795 = vmatprep.mubr.bf16.mxu1 %v11852_v52 }
 0x99b   : > { %v7701_v31 = vpop.f32.mrb[196].mxu1 }
 0x99c   : > { %v7703_v22 = vpop.f32.mrb[197].mxu1  ;;  %v14990_v2 = vadd.f32 %v7701_v31, %v14506_v36 }
 0x99d   : > { %v7705_v57 = vpop.f32.mrb[198].mxu1  ;;  %v14987_v59 = vpop.f32.mrb[180].mxu0  ;;  %v14996_v10 = vadd.f32 %v7703_v22, %v14510_v54  ;;  %v11854_v22 = vld [vmem:[%s11972_s24 + $0xd0] sm:$0xff]  }
 0x99e   : > { %16303 = vst [vmem:[#allocation50_spill] sm:$0xff] %v14987_v59  ;;  %16304 = vst [vmem:[#allocation51_spill] sm:$0xff] %v14990_v2  ;;  %v14993_v11 = vadd.f32 %v7705_v57, %v14506_v36  ;;  %v7707_v56 = vpop.f32.mrb[199].mxu1  ;;  %v7990_v41 = vpop.f32.mrb[181].mxu0  ;;  %v11532_v57 = vld [vmem:[%s16210_s10] sm:$0xff]  }
 0x99f   : > { %16306 = vst [vmem:[#allocation53_spill] sm:$0xff] %v14996_v10  ;;  %v14999_v45 = vadd.f32 %v7707_v56, %v14510_v54  ;;  %v15001_v52 = vpop.f32.mrb[182].mxu0  ;;  %10811 = vmatprep.subr.bf16.mxu0 %v11532_v57 }
 0x9a0   : > { %16305 = vst [vmem:[#allocation52_spill] sm:$0xff] %v14993_v11  ;;  %16308 = vst [vmem:[#allocation55_spill] sm:$0xff] %v15001_v52  ;;  %v7993_v59 = vpop.f32.mrb[183].mxu0  ;;  %10796 = vmatmul.mubr.bf16.gmra.mrb[48].mxu1 %v11853_v49  ;;  %10812 = vmatpush3.bf16.msra.mxu0 %v11532_v57 }
 0x9a1   : > { %16307 = vst [vmem:[#allocation54_spill] sm:$0xff] %v14999_v45  ;;  %10799 = vmatprep.mubr.bf16.mxu1 %v11854_v22  ;;  %v11855_v45 = vld [vmem:[%s11972_s24 + $0xd8] sm:$0xff]  }
 0x9a3   : > { %v7711_v56 = vpop.f32.mrb[200].mxu1 }
 0x9a4   : > { %v7713_v41 = vpop.f32.mrb[201].mxu1  ;;  %v15015_v49 = vadd.f32 %v7711_v56, %v14506_v36  ;;  %v11856_v56 = vld [vmem:[%s11972_s24 + $0xe0] sm:$0xff]  }
 0x9a5   : > { %v7715_v52 = vpop.f32.mrb[202].mxu1  ;;  %v15012_v26 = vpop.f32.mrb[184].mxu0  ;;  %v15021_v31 = vadd.f32 %v7713_v41, %v14510_v54 }
 0x9a6   : > { %16309 = vst [vmem:[#allocation56_spill] sm:$0xff] %v15012_v26  ;;  %16310 = vst [vmem:[#allocation57_spill] sm:$0xff] %v15015_v49  ;;  %v15018_v59 = vadd.f32 %v7715_v52, %v14506_v36  ;;  %v7717_v2 = vpop.f32.mrb[203].mxu1  ;;  %v7998_v11 = vpop.f32.mrb[185].mxu0 }
 0x9a7   : > { %16312 = vst [vmem:[#allocation59_spill] sm:$0xff] %v15021_v31  ;;  %v15024_v22 = vadd.f32 %v7717_v2, %v14510_v54  ;;  %v15026_v57 = vpop.f32.mrb[186].mxu0  ;;  %v11857_v31 = vld [vmem:[%s11972_s24 + $0xe8] sm:$0xff]  }
 0x9a8   : > { %16311 = vst [vmem:[#allocation58_spill] sm:$0xff] %v15018_v59  ;;  %16314 = vst [vmem:[#allocation61_spill] sm:$0xff] %v15026_v57  ;;  %v8001_v26 = vpop.f32.mrb[187].mxu0  ;;  %10800 = vmatmul.mubr.bf16.gmra.mrb[52].mxu1 %v11855_v45 }
 0x9a9   : > { %16313 = vst [vmem:[#allocation60_spill] sm:$0xff] %v15024_v22  ;;  %10803 = vmatprep.mubr.bf16.mxu1 %v11856_v56 }
 0x9ab   : > { %v7721_v11 = vpop.f32.mrb[204].mxu1 }
 0x9ac   : > { %v7723_v41 = vpop.f32.mrb[205].mxu1  ;;  %v15037_v57 = vadd.f32 %v7721_v11, %v14506_v36  ;;  %v11858_v11 = vld [vmem:[%s11972_s24 + $0xf0] sm:$0xff]  }
 0x9ad   : > { %v7725_v63 = vpop.f32.mrb[206].mxu1  ;;  %v15034_v2 = vpop.f32.mrb[188].mxu0  ;;  %v15043_v49 = vadd.f32 %v7723_v41, %v14510_v54 }
 0x9ae   : > { %16315 = vst [vmem:[#allocation62_spill] sm:$0xff] %v15034_v2  ;;  %16316 = vst [vmem:[#allocation63_spill] sm:$0xff] %v15037_v57  ;;  %v15040_v10 = vadd.f32 %v7725_v63, %v14506_v36  ;;  %v7727_v26 = vpop.f32.mrb[207].mxu1  ;;  %v8006_v45 = vpop.f32.mrb[189].mxu0 }
 0x9af   : > { %16318 = vst [vmem:[#allocation65_spill] sm:$0xff] %v15043_v49  ;;  %v15046_v52 = vadd.f32 %v7727_v26, %v14510_v54  ;;  %v15048_v56 = vpop.f32.mrb[190].mxu0 }
 0x9b0   : > { %16317 = vst [vmem:[#allocation64_spill] sm:$0xff] %v15040_v10  ;;  %16319 = vst [vmem:[#allocation66_spill] sm:$0xff] %v15048_v56  ;;  %v8009_v2 = vpop.f32.mrb[191].mxu0  ;;  %10804 = vmatmul.mubr.bf16.gmra.mrb[56].mxu1 %v11857_v31  ;;  %v11859_v10 = vld [vmem:[%s11972_s24 + $0xf8] sm:$0xff]  }
 0x9b1   : > { %10807 = vmatprep.mubr.bf16.mxu1 %v11858_v11 }
 0x9b3   : > { %v7731_v45 = vpop.f32.mrb[208].mxu1 }
 0x9b4   : > { %v7733_v41 = vpop.f32.mrb[209].mxu1  ;;  %v15059_v26 = vadd.f32 %v7731_v45, %v14506_v36 }
 0x9b5   : > { %v7735_v22 = vpop.f32.mrb[210].mxu1  ;;  %v15056_v47 = vpop.f32.mrb[192].mxu0  ;;  %v15065_v31 = vadd.f32 %v7733_v41, %v14510_v54 }
 0x9b6   : > { %16320 = vst [vmem:[#allocation67_spill] sm:$0xff] %v15056_v47  ;;  %16321 = vst [vmem:[#allocation68_spill] sm:$0xff] %v15059_v26  ;;  %v15062_v56 = vadd.f32 %v7735_v22, %v14506_v36  ;;  %v7737_v2 = vpop.f32.mrb[211].mxu1  ;;  %v8014_v59 = vpop.f32.mrb[193].mxu0 }
 0x9b7   : > { %v15068_v63 = vadd.f32 %v7737_v2, %v14510_v54  ;;  %v15070_v11 = vpop.f32.mrb[194].mxu0  ;;  %v16324_v59 = vpack.c.bf16 %v14528_v21, %v14524_v35 }
 0x9b8   : > { %16322 = vst [vmem:[#allocation69_spill] sm:$0xff] %v15062_v56  ;;  %16323 = vst [vmem:[#allocation70_spill] sm:$0xff] %v15070_v11  ;;  %v8017_v47 = vpop.f32.mrb[195].mxu0  ;;  %10808 = vmatmul.mubr.bf16.gmra.mrb[60].mxu1 %v11859_v10  ;;  %v11533_v11 = vld [vmem:[%s16210_s10 + $0x8] sm:$0xff]  }
 0x9b9   : > { %8780 = vmatprep.mubr.bf16.mxu1 %v16324_v59  ;;  %10813 = vmatprep.subr.bf16.mxu0 %v11533_v11 }
 0x9ba   : > { %10814 = vmatpush3.bf16.msra.mxu0 %v11533_v11 }
 0x9bb   : > { %v7741_v45 = vpop.f32.mrb[212].mxu1 }
 0x9bc   : > { %v7743_v41 = vpop.f32.mrb[213].mxu1  ;;  %v15086_v47 = vadd.f32 %v7741_v45, %v14506_v36  ;;  %v16327_v45 = vpack.c.bf16 %v14521_v34, %v14517_v18 }
 0x9bd   : > { %v7745_v49 = vpop.f32.mrb[214].mxu1  ;;  %v15080_v2 = vpop.f32.mrb[196].mxu0  ;;  %v15092_v35 = vadd.f32 %v7743_v41, %v14510_v54 }
 0x9be   : > { %16325 = vst [vmem:[#allocation71_spill] sm:$0xff] %v15080_v2  ;;  %v15089_v10 = vadd.f32 %v7745_v49, %v14506_v36  ;;  %v7747_v57 = vpop.f32.mrb[215].mxu1  ;;  %v8022_v22 = vpop.f32.mrb[197].mxu0 }
 0x9bf   : > { %v15095_v21 = vadd.f32 %v7747_v57, %v14510_v54  ;;  %v15097_v59 = vpop.f32.mrb[198].mxu0  ;;  %v16328_v22 = vpack.c.bf16 %v14556_v1, %v14552_v51 }
 0x9c0   : > { %16326 = vst [vmem:[#allocation72_spill] sm:$0xff] %v15097_v59  ;;  %v8025_v26 = vpop.f32.mrb[199].mxu0  ;;  %8781 = vmatmul.mubr.bf16.vlgmr.msra.gmra.mrb[64].mxu1 %v16327_v45 }
 0x9c1   : > { %8788 = vmatprep.mubr.bf16.mxu1 %v16328_v22 }
 0x9c3   : > { %v7751_v57 = vpop.f32.mrb[216].mxu1 }
 0x9c4   : > { %v7753_v41 = vpop.f32.mrb[217].mxu1  ;;  %v15112_v2 = vadd.f32 %v7751_v57, %v14506_v36  ;;  %v16331_v57 = vpack.c.bf16 %v14549_v25, %v14545_v5 }
 0x9c5   : > { %v7755_v59 = vpop.f32.mrb[218].mxu1  ;;  %v15109_v56 = vpop.f32.mrb[200].mxu0  ;;  %v15118_v11 = vadd.f32 %v7753_v41, %v14510_v54  ;;  %v16332_v41 = vpack.c.bf16 %v14584_v62, %v14580_v9 }
 0x9c6   : > { %16329 = vst [vmem:[#allocation73_spill] sm:$0xff] %v15109_v56  ;;  %v15115_v26 = vadd.f32 %v7755_v59, %v14506_v36  ;;  %v7757_v18 = vpop.f32.mrb[219].mxu1  ;;  %v8030_v34 = vpop.f32.mrb[201].mxu0 }
 0x9c7   : > { %v15121_v45 = vadd.f32 %v7757_v18, %v14510_v54  ;;  %v15123_v51 = vpop.f32.mrb[202].mxu0 }
 0x9c8   : > { %16330 = vst [vmem:[#allocation74_spill] sm:$0xff] %v15123_v51  ;;  %v8033_v22 = vpop.f32.mrb[203].mxu0  ;;  %8789 = vmatmul.mubr.bf16.gmra.mrb[68].mxu1 %v16331_v57 }
 0x9c9   : > { %8796 = vmatprep.mubr.bf16.mxu1 %v16332_v41 }
 0x9cb   : > { %v7761_v34 = vpop.f32.mrb[220].mxu1 }
 0x9cc   : > { %v7763_v18 = vpop.f32.mrb[221].mxu1  ;;  %v15138_v51 = vadd.f32 %v7761_v34, %v14506_v36  ;;  %v16335_v34 = vpack.c.bf16 %v14577_v33, %v14573_v6 }
 0x9cd   : > { %v7765_v49 = vpop.f32.mrb[222].mxu1  ;;  %v15135_v56 = vpop.f32.mrb[204].mxu0  ;;  %v15144_v57 = vadd.f32 %v7763_v18, %v14510_v54  ;;  %v16336_v18 = vpack.c.bf16 %v14612_v37, %v14608_v50 }
 0x9ce   : > { %16333 = vst [vmem:[#allocation75_spill] sm:$0xff] %v15135_v56  ;;  %v15141_v22 = vadd.f32 %v7765_v49, %v14506_v36  ;;  %v7767_v5 = vpop.f32.mrb[223].mxu1  ;;  %v8038_v25 = vpop.f32.mrb[205].mxu0 }
 0x9cf   : > { %v15147_v1 = vadd.f32 %v7767_v5, %v14510_v54  ;;  %v15149_v9 = vpop.f32.mrb[206].mxu0 }
 0x9d0   : > { %16334 = vst [vmem:[#allocation76_spill] sm:$0xff] %v15149_v9  ;;  %v8041_v41 = vpop.f32.mrb[207].mxu0  ;;  %8797 = vmatmul.mubr.bf16.gmra.mrb[72].mxu1 %v16335_v34 }
 0x9d1   : > { %8804 = vmatprep.mubr.bf16.mxu1 %v16336_v18 }
 0x9d3   : > { %v7771_v25 = vpop.f32.mrb[224].mxu1 }
 0x9d4   : > { %v7773_v5 = vpop.f32.mrb[225].mxu1  ;;  %v15164_v9 = vadd.f32 %v7771_v25, %v14506_v36  ;;  %v16339_v25 = vpack.c.bf16 %v14605_v53, %v14601_v14 }
 0x9d5   : > { %v7775_v59 = vpop.f32.mrb[226].mxu1  ;;  %v15161_v56 = vpop.f32.mrb[208].mxu0  ;;  %v15170_v34 = vadd.f32 %v7773_v5, %v14510_v54  ;;  %v16340_v5 = vpack.c.bf16 %v14640_v46, %v14637_v13 }
 0x9d6   : > { %16337 = vst [vmem:[#allocation77_spill] sm:$0xff] %v15161_v56  ;;  %v15167_v41 = vadd.f32 %v7775_v59, %v14506_v36  ;;  %v7777_v6 = vpop.f32.mrb[227].mxu1  ;;  %v8046_v33 = vpop.f32.mrb[209].mxu0 }
 0x9d7   : > { %v15173_v62 = vadd.f32 %v7777_v6, %v14510_v54  ;;  %v15175_v50 = vpop.f32.mrb[210].mxu0 }
 0x9d8   : > { %16338 = vst [vmem:[#allocation78_spill] sm:$0xff] %v15175_v50  ;;  %v8049_v18 = vpop.f32.mrb[211].mxu0  ;;  %8805 = vmatmul.mubr.bf16.gmra.mrb[76].mxu1 %v16339_v25 }
 0x9d9   : > { %8812 = vmatprep.mubr.bf16.mxu1 %v16340_v5  ;;  %v11534_v18 = vld [vmem:[%s16210_s10 + $0x10] sm:$0xff]  }
 0x9da   : > { %10815 = vmatprep.subr.bf16.mxu0 %v11534_v18 }
 0x9db   : > { %v7781_v33 = vpop.f32.mrb[228].mxu1  ;;  %10816 = vmatpush3.bf16.msra.mxu0 %v11534_v18 }
 0x9dc   : > { %v7783_v6 = vpop.f32.mrb[229].mxu1  ;;  %v15193_v37 = vadd.f32 %v7781_v33, %v14506_v36  ;;  %v16343_v33 = vpack.c.bf16 %v14634_v61, %v14631_v16 }
 0x9dd   : > { %v7785_v49 = vpop.f32.mrb[230].mxu1  ;;  %v15187_v56 = vpop.f32.mrb[212].mxu0  ;;  %v15199_v13 = vadd.f32 %v7783_v6, %v14510_v54  ;;  %v16344_v6 = vpack.c.bf16 %v14668_v58, %v14665_v19 }
 0x9de   : > { %16341 = vst [vmem:[#allocation79_spill] sm:$0xff] %v15187_v56  ;;  %v15196_v14 = vadd.f32 %v7785_v49, %v14506_v36  ;;  %v7787_v53 = vpop.f32.mrb[231].mxu1  ;;  %v8054_v25 = vpop.f32.mrb[213].mxu0 }
 0x9df   : > { %v15202_v46 = vadd.f32 %v7787_v53, %v14510_v54  ;;  %v15204_v5 = vpop.f32.mrb[214].mxu0 }
 0x9e0   : > { %16342 = vst [vmem:[#allocation80_spill] sm:$0xff] %v15204_v5  ;;  %v8057_v50 = vpop.f32.mrb[215].mxu0  ;;  %8813 = vmatmul.mubr.bf16.gmra.mrb[80].mxu1 %v16343_v33 }
 0x9e1   : > { %8820 = vmatprep.mubr.bf16.mxu1 %v16344_v6 }
 0x9e3   : > { %v7791_v53 = vpop.f32.mrb[232].mxu1 }
 0x9e4   : > { %v7793_v25 = vpop.f32.mrb[233].mxu1  ;;  %v15219_v59 = vadd.f32 %v7791_v53, %v14506_v36  ;;  %v16347_v53 = vpack.c.bf16 %v14662_v32, %v14659_v4 }
 0x9e5   : > { %v7795_v5 = vpop.f32.mrb[234].mxu1  ;;  %v15216_v56 = vpop.f32.mrb[216].mxu0  ;;  %v15225_v18 = vadd.f32 %v7793_v25, %v14510_v54  ;;  %v16348_v25 = vpack.c.bf16 %v14700_v29, %v14697_v12 }
 0x9e6   : > { %16345 = vst [vmem:[#allocation81_spill] sm:$0xff] %v15216_v56  ;;  %v15222_v50 = vadd.f32 %v7795_v5, %v14506_v36  ;;  %v7797_v16 = vpop.f32.mrb[235].mxu1  ;;  %v8062_v61 = vpop.f32.mrb[217].mxu0 }
 0x9e7   : > { %v15228_v33 = vadd.f32 %v7797_v16, %v14510_v54  ;;  %v15230_v19 = vpop.f32.mrb[218].mxu0 }
 0x9e8   : > { %16346 = vst [vmem:[#allocation82_spill] sm:$0xff] %v15230_v19  ;;  %v8065_v6 = vpop.f32.mrb[219].mxu0  ;;  %8821 = vmatmul.mubr.bf16.gmra.mrb[84].mxu1 %v16347_v53 }
 0x9e9   : > { %8828 = vmatprep.mubr.bf16.mxu1 %v16348_v25 }
 0x9eb   : > { %v7801_v61 = vpop.f32.mrb[236].mxu1 }
 0x9ec   : > { %v7803_v16 = vpop.f32.mrb[237].mxu1  ;;  %v15245_v19 = vadd.f32 %v7801_v61, %v14506_v36  ;;  %v16351_v61 = vpack.c.bf16 %v14693_v42, %v14690_v39 }
 0x9ed   : > { %v7805_v49 = vpop.f32.mrb[238].mxu1  ;;  %v15242_v56 = vpop.f32.mrb[220].mxu0  ;;  %v15251_v53 = vadd.f32 %v7803_v16, %v14510_v54  ;;  %v16352_v16 = vpack.c.bf16 %v14732_v8, %v14729_v0 }
 0x9ee   : > { %16349 = vst [vmem:[#allocation83_spill] sm:$0xff] %v15242_v56  ;;  %v15248_v6 = vadd.f32 %v7805_v49, %v14506_v36  ;;  %v7807_v4 = vpop.f32.mrb[239].mxu1  ;;  %v8070_v32 = vpop.f32.mrb[221].mxu0 }
 0x9ef   : > { %v15254_v58 = vadd.f32 %v7807_v4, %v14510_v54  ;;  %v15256_v12 = vpop.f32.mrb[222].mxu0 }
 0x9f0   : > { %16350 = vst [vmem:[#allocation84_spill] sm:$0xff] %v15256_v12  ;;  %v8073_v25 = vpop.f32.mrb[223].mxu0  ;;  %8829 = vmatmul.mubr.bf16.gmra.mrb[88].mxu1 %v16351_v61 }
 0x9f1   : > { %8836 = vmatprep.mubr.bf16.mxu1 %v16352_v16 }
 0x9f3   : > { %v7811_v32 = vpop.f32.mrb[240].mxu1 }
 0x9f4   : > { %v7813_v4 = vpop.f32.mrb[241].mxu1  ;;  %v15271_v12 = vadd.f32 %v7811_v32, %v14506_v36  ;;  %v16355_v32 = vpack.c.bf16 %v14725_v55, %v14722_v30 }
 0x9f5   : > { %v7815_v5 = vpop.f32.mrb[242].mxu1  ;;  %v15268_v56 = vpop.f32.mrb[224].mxu0  ;;  %v15277_v61 = vadd.f32 %v7813_v4, %v14510_v54  ;;  %v16356_v4 = vpack.c.bf16 %v14764_v60, %v14761_v17 }
 0x9f6   : > { %16353 = vst [vmem:[#allocation85_spill] sm:$0xff] %v15268_v56  ;;  %v15274_v25 = vadd.f32 %v7815_v5, %v14506_v36  ;;  %v7817_v39 = vpop.f32.mrb[243].mxu1  ;;  %v8078_v42 = vpop.f32.mrb[225].mxu0 }
 0x9f7   : > { %v15280_v29 = vadd.f32 %v7817_v39, %v14510_v54  ;;  %v15282_v8 = vpop.f32.mrb[226].mxu0 }
 0x9f8   : > { %16354 = vst [vmem:[#allocation86_spill] sm:$0xff] %v15282_v8  ;;  %v8081_v16 = vpop.f32.mrb[227].mxu0  ;;  %8837 = vmatmul.mubr.bf16.gmra.mrb[92].mxu1 %v16355_v32 }
 0x9f9   : > { %8844 = vmatprep.mubr.bf16.mxu1 %v16356_v4  ;;  %v11535_v16 = vld [vmem:[%s16210_s10 + $0x18] sm:$0xff]  }
 0x9fa   : > { %10817 = vmatprep.subr.bf16.mxu0 %v11535_v16 }
 0x9fb   : > { %v7821_v42 = vpop.f32.mrb[244].mxu1  ;;  %10818 = vmatpush3.bf16.msra.mxu0 %v11535_v16 }
 0x9fc   : > { %v7823_v39 = vpop.f32.mrb[245].mxu1  ;;  %v15300_v0 = vadd.f32 %v7821_v42, %v14506_v36  ;;  %v16359_v42 = vpack.c.bf16 %v14757_v48, %v14754_v23 }
 0x9fd   : > { %v7825_v49 = vpop.f32.mrb[246].mxu1  ;;  %v15294_v56 = vpop.f32.mrb[228].mxu0  ;;  %v15306_v60 = vadd.f32 %v7823_v39, %v14510_v54  ;;  %v16360_v39 = vpack.c.bf16 %v14795_v27, %v14792_v40 }
 0x9fe   : > { %16357 = vst [vmem:[#allocation87_spill] sm:$0xff] %v15294_v56  ;;  %v15303_v30 = vadd.f32 %v7825_v49, %v14506_v36  ;;  %v7827_v55 = vpop.f32.mrb[247].mxu1  ;;  %v8086_v32 = vpop.f32.mrb[229].mxu0 }
 0x9ff   : > { %v15309_v17 = vadd.f32 %v7827_v55, %v14510_v54  ;;  %v15311_v4 = vpop.f32.mrb[230].mxu0 }
 0xa00   : > { %16358 = vst [vmem:[#allocation88_spill] sm:$0xff] %v15311_v4  ;;  %v8089_v8 = vpop.f32.mrb[231].mxu0  ;;  %8845 = vmatmul.mubr.bf16.gmra.mrb[96].mxu1 %v16359_v42 }
 0xa01   : > { %8852 = vmatprep.mubr.bf16.mxu1 %v16360_v39 }
 0xa03   : > { %v7831_v55 = vpop.f32.mrb[248].mxu1 }
 0xa04   : > { %v7833_v32 = vpop.f32.mrb[249].mxu1  ;;  %v15326_v5 = vadd.f32 %v7831_v55, %v14506_v36  ;;  %v16365_v55 = vpack.c.bf16 %v14788_v43, %v14785_v24 }
 0xa05   : > { %v7835_v4 = vpop.f32.mrb[250].mxu1  ;;  %v15323_v56 = vpop.f32.mrb[232].mxu0  ;;  %v15332_v16 = vadd.f32 %v7833_v32, %v14510_v54  ;;  %v16366_v32 = vpack.c.bf16 %v14825_v3, %v14822_v38  ;;  %v11537_v3 = vld [vmem:[%s16210_s10 + $0x28] sm:$0xff]  }
 0xa06   : > { %16361 = vst [vmem:[#allocation89_spill] sm:$0xff] %v15323_v56  ;;  %16362 = vst [vmem:[#allocation90_spill] sm:$0xff] %v15326_v5  ;;  %v15329_v8 = vadd.f32 %v7835_v4, %v14506_v36  ;;  %v7837_v23 = vpop.f32.mrb[251].mxu1  ;;  %v8094_v48 = vpop.f32.mrb[233].mxu0  ;;  %v16380_v4 = vld [vmem:[#allocation23_spill] sm:$0xff] }
 0xa07   : > { %v15335_v42 = vadd.f32 %v7837_v23, %v14510_v54  ;;  %v15337_v40 = vpop.f32.mrb[234].mxu0  ;;  %v16397_v5 = vld [vmem:[#allocation27_spill] sm:$0xff] }
 0xa08   : > { %16363 = vst [vmem:[#allocation91_spill] sm:$0xff] %v15329_v8  ;;  %16364 = vst [vmem:[#allocation92_spill] sm:$0xff] %v15337_v40  ;;  %v8097_v39 = vpop.f32.mrb[235].mxu0  ;;  %8853 = vmatmul.mubr.bf16.gmra.mrb[100].mxu1 %v16365_v55  ;;  %v16422_v8 = vld [vmem:[#allocation47_spill] sm:$0xff] }
 0xa09   : > { %8860 = vmatprep.mubr.bf16.mxu1 %v16366_v32 }
 0xa0b   : > { %v7841_v48 = vpop.f32.mrb[252].mxu1 }
 0xa0c   : > { %v7843_v23 = vpop.f32.mrb[253].mxu1  ;;  %v15352_v40 = vadd.f32 %v7841_v48, %v14506_v36  ;;  %v16373_v48 = vpack.c.bf16 %v14818_v20, %v14815_v28 }
 0xa0d   : > { %v7845_v49 = vpop.f32.mrb[254].mxu1  ;;  %v15349_v56 = vpop.f32.mrb[236].mxu0  ;;  %v15358_v55 = vadd.f32 %v7843_v23, %v14510_v54 }
 0xa0e   : > { %16367 = vst [vmem:[#allocation93_spill] sm:$0xff] %v15349_v56  ;;  %16368 = vst [vmem:[#allocation94_spill] sm:$0xff] %v15352_v40  ;;  %v15355_v39 = vadd.f32 %v7845_v49, %v14506_v36  ;;  %v7847_v43 = vpop.f32.mrb[255].mxu1  ;;  %v8102_v24 = vpop.f32.mrb[237].mxu0  ;;  %v16374_v49 = vpack.c.bf16 %v14855_v15, %v14852_v44  ;;  %v16377_v15 = vld [vmem:[#allocation18_spill] sm:$0xff]  ;;  %v16379_v36 = vld [vmem:[#allocation24_spill] sm:$0xff] }
 0xa0f   : > { %16370 = vst [vmem:[#allocation96_spill] sm:$0xff] %v15358_v55  ;;  %v15361_v27 = vadd.f32 %v7847_v43, %v14510_v54  ;;  %v15363_v38 = vpop.f32.mrb[238].mxu0  ;;  %v11536_v43 = vld [vmem:[%s16210_s10 + $0x20] sm:$0xff]   ;;  %v11539_v56 = vld [vmem:[%s16210_s10 + $0x38] sm:$0xff]  }
 0xa10   : > { %16369 = vst [vmem:[#allocation95_spill] sm:$0xff] %v15355_v39  ;;  %16372 = vst [vmem:[#allocation98_spill] sm:$0xff] %v15363_v38  ;;  %v8105_v32 = vpop.f32.mrb[239].mxu0  ;;  %8861 = vmatmul.mubr.bf16.gmra.mrb[104].mxu1 %v16373_v48  ;;  %10819 = vmatprep.subr.bf16.mxu0 %v11536_v43  ;;  %v16387_v40 = vld [vmem:[#allocation30_spill] sm:$0xff] }
 0xa11   : > { %16371 = vst [vmem:[#allocation97_spill] sm:$0xff] %v15361_v27  ;;  %8868 = vmatprep.mubr.bf16.mxu1 %v16374_v49  ;;  %10820 = vmatpush3.bf16.msra.mxu0 %v11536_v43  ;;  %v16378_v49 = vpack.c.bf16 %v14848_v7, %v16377_v15  ;;  %v11538_v43 = vld [vmem:[%s16210_s10 + $0x30] sm:$0xff]  }
 0xa12   : > { %10821 = vmatprep.subr.bf16.mxu0 %v11537_v3  ;;  %v16396_v27 = vld [vmem:[#allocation28_spill] sm:$0xff] }
 0xa13   : > { %v15375_v23 = vpop.f32.mrb[0].mxu1 }
 0xa14   : > { %v15377_v54 = vpop.f32.mrb[1].mxu1 }
 0xa15   : > { %v15382_v24 = vpop.f32.mrb[240].mxu0  ;;  %v15384_v32 = vpop.f32.mrb[2].mxu1  ;;  %10822 = vmatpush3.bf16.msra.mxu0 %v11537_v3  ;;  %v16385_v3 = vld [vmem:[#allocation21_spill] sm:$0xff] }
 0xa16   : > { %16375 = vst [vmem:[#allocation99_spill] sm:$0xff] %v15382_v24  ;;  %v8110_v28 = vpop.f32.mrb[241].mxu0  ;;  %v15386_v20 = vpop.f32.mrb[3].mxu1  ;;  %v16381_v24 = vpack.c.bf16 %v16379_v36, %v16380_v4  ;;  %10823 = vmatprep.subr.bf16.mxu0 %v11538_v43 }
 0xa17   : > { %v15388_v48 = vpop.f32.mrb[242].mxu0 }
 0xa18   : > { %16376 = vst [vmem:[#allocation100_spill] sm:$0xff] %v15388_v48  ;;  %v8113_v44 = vpop.f32.mrb[243].mxu0  ;;  %8869 = vmatmul.mubr.bf16.gmra.mrb[108].mxu1 %v16378_v49 }
 0xa19   : > { %8876 = vmatprep.mubr.bf16.mxu1 %v16381_v24  ;;  %10824 = vmatpush3.bf16.msra.mxu0 %v11538_v43  ;;  %v16384_v24 = vld [vmem:[#allocation22_spill] sm:$0xff] }
 0xa1a   : > { %v16386_v48 = vpack.c.bf16 %v16384_v24, %v16385_v3  ;;  %10825 = vmatprep.subr.bf16.mxu0 %v11539_v56 }
 0xa1b   : > { %v15399_v28 = vpop.f32.mrb[4].mxu1 }
 0xa1c   : > { %v15401_v38 = vpop.f32.mrb[5].mxu1 }
 0xa1d   : > { %v15406_v7 = vpop.f32.mrb[244].mxu0  ;;  %v15408_v44 = vpop.f32.mrb[6].mxu1  ;;  %10826 = vmatpush3.bf16.msra.mxu0 %v11539_v56 }
 0xa1e   : > { %16382 = vst [vmem:[#allocation18_spill] sm:$0xff] %v15406_v7  ;;  %v8118_v15 = vpop.f32.mrb[245].mxu0  ;;  %v15410_v49 = vpop.f32.mrb[7].mxu1  ;;  %v16388_v7 = vld [vmem:[#allocation29_spill] sm:$0xff] }
 0xa1f   : > { %v15412_v4 = vpop.f32.mrb[246].mxu0  ;;  %v16389_v39 = vpack.c.bf16 %v16387_v40, %v16388_v7  ;;  %v16398_v40 = vpack.c.bf16 %v16396_v27, %v16397_v5  ;;  %v16400_v7 = vld [vmem:[#allocation35_spill] sm:$0xff]  ;;  %v16408_v5 = vld [vmem:[#allocation34_spill] sm:$0xff]  ;;  %v16409_v27 = vld [vmem:[#allocation33_spill] sm:$0xff] }
 0xa20   : > { %16383 = vst [vmem:[#allocation24_spill] sm:$0xff] %v15412_v4  ;;  %v8121_v36 = vpop.f32.mrb[247].mxu0  ;;  %8877 = vmatmul.mubr.bf16.gmra.mrb[112].mxu1 %v16386_v48 }
 0xa21   : > { %8884 = vmatprep.mubr.bf16.mxu1 %v16389_v39  ;;  %v16399_v39 = vld [vmem:[#allocation36_spill] sm:$0xff] }
 0xa23   : > { %v15423_v15 = vpop.f32.mrb[8].mxu1 }
 0xa24   : > { %16390 = vst [vmem:[#allocation23_spill] sm:$0xff] %v15423_v15  ;;  %v15425_v55 = vpop.f32.mrb[9].mxu1  ;;  %v16401_v15 = vpack.c.bf16 %v16399_v39, %v16400_v7  ;;  %v16411_v39 = vld [vmem:[#allocation42_spill] sm:$0xff] }
 0xa25   : > { %16391 = vst [vmem:[#allocation22_spill] sm:$0xff] %v15425_v55  ;;  %v15427_v43 = vpop.f32.mrb[248].mxu0  ;;  %v15429_v36 = vpop.f32.mrb[10].mxu1 }
 0xa26   : > { %16392 = vst [vmem:[#allocation21_spill] sm:$0xff] %v15427_v43  ;;  %16393 = vst [vmem:[#allocation30_spill] sm:$0xff] %v15429_v36  ;;  %v8126_v24 = vpop.f32.mrb[249].mxu0  ;;  %v15431_v48 = vpop.f32.mrb[11].mxu1 }
 0xa27   : > { %16394 = vst [vmem:[#allocation29_spill] sm:$0xff] %v15431_v48  ;;  %v15433_v3 = vpop.f32.mrb[250].mxu0 }
 0xa28   : > { %16395 = vst [vmem:[#allocation101_spill] sm:$0xff] %v15433_v3  ;;  %v8129_v4 = vpop.f32.mrb[251].mxu0  ;;  %8885 = vmatmul.mubr.bf16.gmra.mrb[116].mxu1 %v16398_v40  ;;  %v16410_v40 = vpack.c.bf16 %v16408_v5, %v16409_v27 }
 0xa29   : > { %8892 = vmatprep.mubr.bf16.mxu1 %v16401_v15  ;;  %v16412_v15 = vld [vmem:[#allocation41_spill] sm:$0xff] }
 0xa2a   : > { %v16413_v7 = vpack.c.bf16 %v16411_v39, %v16412_v15 }
 0xa2b   : > { %v15441_v56 = vpop.f32.mrb[12].mxu1 }
 0xa2c   : > { %16402 = vst [vmem:[#allocation28_spill] sm:$0xff] %v15441_v56  ;;  %v15443_v55 = vpop.f32.mrb[13].mxu1 }
 0xa2d   : > { %16403 = vst [vmem:[#allocation27_spill] sm:$0xff] %v15443_v55  ;;  %v15445_v43 = vpop.f32.mrb[252].mxu0  ;;  %v15447_v24 = vpop.f32.mrb[14].mxu1 }
 0xa2e   : > { %16404 = vst [vmem:[#allocation36_spill] sm:$0xff] %v15445_v43  ;;  %16405 = vst [vmem:[#allocation35_spill] sm:$0xff] %v15447_v24  ;;  %v8134_v36 = vpop.f32.mrb[253].mxu0  ;;  %v15449_v48 = vpop.f32.mrb[15].mxu1  ;;  %v16418_v24 = vld [vmem:[#allocation40_spill] sm:$0xff] }
 0xa2f   : > { %16406 = vst [vmem:[#allocation102_spill] sm:$0xff] %v15449_v48  ;;  %v15451_v4 = vpop.f32.mrb[254].mxu0  ;;  %v16419_v48 = vld [vmem:[#allocation39_spill] sm:$0xff] }
 0xa30   : > { %16407 = vst [vmem:[#allocation103_spill] sm:$0xff] %v15451_v4  ;;  %v8137_v3 = vpop.f32.mrb[255].mxu0  ;;  %8893 = vmatmul.mubr.bf16.gmra.mrb[120].mxu1 %v16410_v40  ;;  %v16420_v4 = vpack.c.bf16 %v16418_v24, %v16419_v48 }
 0xa31   : > { %8900 = vmatprep.mubr.bf16.mxu1 %v16413_v7  ;;  %v16421_v3 = vld [vmem:[#allocation48_spill] sm:$0xff]  ;;  %v16428_v7 = vld [vmem:[#allocation46_spill] sm:$0xff] }
 0xa32   : > { %v16423_v5 = vpack.c.bf16 %v16421_v3, %v16422_v8 }
 0xa33   : > { %v15459_v56 = vpop.f32.mrb[16].mxu1 }
 0xa34   : > { %16414 = vst [vmem:[#allocation34_spill] sm:$0xff] %v15459_v56  ;;  %v15461_v55 = vpop.f32.mrb[17].mxu1 }
 0xa35   : > { %16415 = vst [vmem:[#allocation33_spill] sm:$0xff] %v15461_v55  ;;  %v15463_v43 = vpop.f32.mrb[18].mxu1  ;;  %v16432_v55 = vld [vmem:[#allocation53_spill] sm:$0xff] }
 0xa36   : > { %16416 = vst [vmem:[#allocation42_spill] sm:$0xff] %v15463_v43  ;;  %v15465_v36 = vpop.f32.mrb[19].mxu1  ;;  %v16429_v43 = vld [vmem:[#allocation45_spill] sm:$0xff] }
 0xa37   : > { %16417 = vst [vmem:[#allocation41_spill] sm:$0xff] %v15465_v36  ;;  %v16430_v56 = vpack.c.bf16 %v16428_v7, %v16429_v43  ;;  %v16431_v36 = vld [vmem:[#allocation54_spill] sm:$0xff] }
 0xa38   : > { %8901 = vmatmul.mubr.bf16.gmra.mrb[124].mxu1 %v16420_v4  ;;  %v16433_v48 = vpack.c.bf16 %v16431_v36, %v16432_v55 }
 0xa39   : > { %8908 = vmatprep.mubr.bf16.mxu1 %v16423_v5  ;;  %v16437_v5 = vld [vmem:[#allocation52_spill] sm:$0xff] }
 0xa3b   : > { %v15473_v27 = vpop.f32.mrb[20].mxu1 }
 0xa3c   : > { %16424 = vst [vmem:[#allocation40_spill] sm:$0xff] %v15473_v27  ;;  %v15475_v40 = vpop.f32.mrb[21].mxu1 }
 0xa3d   : > { %16425 = vst [vmem:[#allocation39_spill] sm:$0xff] %v15475_v40  ;;  %v15477_v39 = vpop.f32.mrb[22].mxu1  ;;  %v16441_v40 = vld [vmem:[#allocation59_spill] sm:$0xff] }
 0xa3e   : > { %16426 = vst [vmem:[#allocation48_spill] sm:$0xff] %v15477_v39  ;;  %v15479_v15 = vpop.f32.mrb[23].mxu1  ;;  %v16438_v39 = vld [vmem:[#allocation51_spill] sm:$0xff] }
 0xa3f   : > { %16427 = vst [vmem:[#allocation47_spill] sm:$0xff] %v15479_v15  ;;  %v16439_v27 = vpack.c.bf16 %v16437_v5, %v16438_v39  ;;  %v16440_v15 = vld [vmem:[#allocation60_spill] sm:$0xff] }
 0xa40   : > { %8909 = vmatmul.mubr.bf16.gmra.mrb[128].mxu1 %v16430_v56  ;;  %v16442_v43 = vpack.c.bf16 %v16440_v15, %v16441_v40 }
 0xa41   : > { %8916 = vmatprep.mubr.bf16.mxu1 %v16433_v48  ;;  %v16445_v48 = vld [vmem:[#allocation58_spill] sm:$0xff] }
 0xa43   : > { %v15487_v24 = vpop.f32.mrb[24].mxu1 }
 0xa44   : > { %16434 = vst [vmem:[#allocation46_spill] sm:$0xff] %v15487_v24  ;;  %v15489_v8 = vpop.f32.mrb[25].mxu1 }
 0xa45   : > { %v15491_v4 = vpop.f32.mrb[26].mxu1 }
 0xa46   : > { %16435 = vst [vmem:[#allocation45_spill] sm:$0xff] %v15491_v4  ;;  %v15493_v3 = vpop.f32.mrb[27].mxu1  ;;  %v16446_v4 = vld [vmem:[#allocation57_spill] sm:$0xff] }
 0xa47   : > { %16436 = vst [vmem:[#allocation54_spill] sm:$0xff] %v15493_v3  ;;  %v16447_v24 = vpack.c.bf16 %v16445_v48, %v16446_v4  ;;  %v16448_v3 = vld [vmem:[#allocation65_spill] sm:$0xff]  ;;  %v16455_v4 = vpack.c.bf16 %v15068_v63, %v15065_v31 }
 0xa48   : > { %8917 = vmatmul.mubr.bf16.gmra.mrb[132].mxu1 %v16439_v27  ;;  %v16449_v39 = vpack.c.bf16 %v15046_v52, %v16448_v3 }
 0xa49   : > { %8924 = vmatprep.mubr.bf16.mxu1 %v16442_v43  ;;  %v16452_v43 = vld [vmem:[#allocation64_spill] sm:$0xff] }
 0xa4b   : > { %v15501_v56 = vpop.f32.mrb[28].mxu1 }
 0xa4c   : > { %16443 = vst [vmem:[#allocation53_spill] sm:$0xff] %v15501_v56  ;;  %v15503_v55 = vpop.f32.mrb[29].mxu1 }
 0xa4d   : > { %v15505_v36 = vpop.f32.mrb[30].mxu1 }
 0xa4e   : > { %16444 = vst [vmem:[#allocation52_spill] sm:$0xff] %v15505_v36  ;;  %v15507_v7 = vpop.f32.mrb[31].mxu1  ;;  %v16453_v36 = vld [vmem:[#allocation63_spill] sm:$0xff] }
 0xa4f   : > { %v16454_v56 = vpack.c.bf16 %v16452_v43, %v16453_v36  ;;  %v16459_v36 = vpack.c.bf16 %v15095_v21, %v15092_v35 }
 0xa50   : > { %8925 = vmatmul.mubr.bf16.gmra.mrb[136].mxu1 %v16447_v24 }
 0xa51   : > { %8932 = vmatprep.mubr.bf16.mxu1 %v16449_v39  ;;  %v16456_v39 = vld [vmem:[#allocation69_spill] sm:$0xff] }
 0xa53   : > { %v15515_v27 = vpop.f32.mrb[32].mxu1 }
 0xa54   : > { %16450 = vst [vmem:[#allocation51_spill] sm:$0xff] %v15515_v27  ;;  %v15517_v40 = vpop.f32.mrb[33].mxu1 }
 0xa55   : > { %v15519_v15 = vpop.f32.mrb[34].mxu1 }
 0xa56   : > { %16451 = vst [vmem:[#allocation60_spill] sm:$0xff] %v15519_v15  ;;  %v15521_v5 = vpop.f32.mrb[35].mxu1  ;;  %v16457_v15 = vld [vmem:[#allocation68_spill] sm:$0xff] }
 0xa57   : > { %v16458_v27 = vpack.c.bf16 %v16456_v39, %v16457_v15  ;;  %v16461_v15 = vpack.c.bf16 %v15121_v45, %v15118_v11 }
 0xa58   : > { %8933 = vmatmul.mubr.bf16.gmra.mrb[140].mxu1 %v16454_v56 }
 0xa59   : > { %8940 = vmatprep.mubr.bf16.mxu1 %v16455_v4  ;;  %v16460_v4 = vpack.c.bf16 %v15089_v10, %v15086_v47  ;;  %v16463_v47 = vpack.c.bf16 %v15147_v1, %v15144_v57 }
 0xa5b   : > { %v15529_v24 = vpop.f32.mrb[36].mxu1 }
 0xa5c   : > { %v15531_v52 = vpop.f32.mrb[37].mxu1 }
 0xa5d   : > { %v15533_v3 = vpop.f32.mrb[38].mxu1 }
 0xa5e   : > { %v15535_v48 = vpop.f32.mrb[39].mxu1 }
 0xa60   : > { %8941 = vmatmul.mubr.bf16.gmra.mrb[144].mxu1 %v16458_v27 }
 0xa61   : > { %8948 = vmatprep.mubr.bf16.mxu1 %v16459_v36  ;;  %v16462_v36 = vpack.c.bf16 %v15115_v26, %v15112_v2  ;;  %v16465_v2 = vpack.c.bf16 %v15173_v62, %v15170_v34 }
 0xa63   : > { %v15543_v56 = vpop.f32.mrb[40].mxu1 }
 0xa64   : > { %v15545_v63 = vpop.f32.mrb[41].mxu1 }
 0xa65   : > { %v15547_v31 = vpop.f32.mrb[42].mxu1 }
 0xa66   : > { %v15549_v43 = vpop.f32.mrb[43].mxu1 }
 0xa68   : > { %8949 = vmatmul.mubr.bf16.gmra.mrb[148].mxu1 %v16460_v4 }
 0xa69   : > { %8956 = vmatprep.mubr.bf16.mxu1 %v16461_v15  ;;  %v16464_v15 = vpack.c.bf16 %v15141_v22, %v15138_v51  ;;  %v16467_v51 = vpack.c.bf16 %v15202_v46, %v15199_v13 }
 0xa6b   : > { %v15557_v27 = vpop.f32.mrb[44].mxu1 }
 0xa6c   : > { %v15559_v35 = vpop.f32.mrb[45].mxu1 }
 0xa6d   : > { %v15561_v21 = vpop.f32.mrb[46].mxu1 }
 0xa6e   : > { %v15563_v39 = vpop.f32.mrb[47].mxu1 }
 0xa70   : > { %8957 = vmatmul.mubr.bf16.gmra.mrb[152].mxu1 %v16462_v36 }
 0xa71   : > { %8964 = vmatprep.mubr.bf16.mxu1 %v16463_v47  ;;  %v16466_v47 = vpack.c.bf16 %v15167_v41, %v15164_v9  ;;  %v16469_v9 = vpack.c.bf16 %v15228_v33, %v15225_v18  ;;  %v15630_v18 = vld [vmem:[%s16209_s9] ss:$0 sm:$0xff] }
 0xa73   : > { %v15571_v10 = vpop.f32.mrb[48].mxu1 }
 0xa74   : > { %v15573_v11 = vpop.f32.mrb[49].mxu1 }
 0xa75   : > { %v15575_v45 = vpop.f32.mrb[50].mxu1 }
 0xa76   : > { %v15577_v4 = vpop.f32.mrb[51].mxu1 }
 0xa78   : > { %8965 = vmatmul.mubr.bf16.gmra.mrb[156].mxu1 %v16464_v15 }
 0xa79   : > { %8972 = vmatprep.mubr.bf16.mxu1 %v16465_v2  ;;  %v16468_v2 = vpack.c.bf16 %v15196_v14, %v15193_v37  ;;  %v16474_v37 = vpack.c.bf16 %v15254_v58, %v15251_v53  ;;  %v16475_v58 = vpack.c.bf16 %v15248_v6, %v15245_v19  ;;  %v16476_v53 = vpack.c.bf16 %v15280_v29, %v15277_v61 }
 0xa7a   : > { %v16477_v6 = vpack.c.bf16 %v15274_v25, %v15271_v12  ;;  %v16478_v29 = vpack.c.bf16 %v15309_v17, %v15306_v60  ;;  %v16479_v25 = vpack.c.bf16 %v15303_v30, %v15300_v0  ;;  %v16480_v60 = vpack.c.bf16 %v15335_v42, %v15332_v16  ;;  %v16481_v30 = vld [vmem:[#allocation91_spill] sm:$0xff]  ;;  %v16484_v42 = vld [vmem:[#allocation97_spill] sm:$0xff] }
 0xa7b   : > { %v15585_v26 = vpop.f32.mrb[52].mxu1 }
 0xa7c   : > { %v15587_v1 = vpop.f32.mrb[53].mxu1 }
 0xa7d   : > { %v15589_v57 = vpop.f32.mrb[54].mxu1 }
 0xa7e   : > { %v15591_v36 = vpop.f32.mrb[55].mxu1 }
 0xa80   : > { %8973 = vmatmul.mubr.bf16.gmra.mrb[160].mxu1 %v16466_v47 }
 0xa81   : > { %8980 = vmatprep.mubr.bf16.mxu1 %v16467_v51  ;;  %v16473_v51 = vpack.c.bf16 %v15222_v50, %v15219_v59 }
 0xa83   : > { %v15599_v22 = vpop.f32.mrb[56].mxu1 }
 0xa84   : > { %v15601_v62 = vpop.f32.mrb[57].mxu1 }
 0xa85   : > { %v15603_v34 = vpop.f32.mrb[58].mxu1 }
 0xa86   : > { %v15605_v15 = vpop.f32.mrb[59].mxu1 }
 0xa88   : > { %8981 = vmatmul.mubr.bf16.gmra.mrb[164].mxu1 %v16468_v2 }
 0xa89   : > { %8988 = vmatprep.mubr.bf16.mxu1 %v16469_v9 }
 0xa8b   : > { %v15613_v41 = vpop.f32.mrb[60].mxu1 }
 0xa8c   : > { %16470 = vst [vmem:[#allocation59_spill] sm:$0xff] %v15613_v41  ;;  %v15615_v13 = vpop.f32.mrb[61].mxu1 }
 0xa8d   : > { %v15617_v46 = vpop.f32.mrb[62].mxu1 }
 0xa8e   : > { %16471 = vst [vmem:[#allocation58_spill] sm:$0xff] %v15617_v46  ;;  %v15619_v47 = vpop.f32.mrb[63].mxu1 }
 0xa8f   : > { %16472 = vst [vmem:[#allocation57_spill] sm:$0xff] %v15619_v47 }
 0xa90   : > { %8989 = vmatmul.mubr.bf16.gmra.mrb[168].mxu1 %v16473_v51 }
 0xa91   : > { %8996 = vmatprep.mubr.bf16.mxu1 %v16474_v37 }
 0xa93   : > { %v8782_v14 = vpop.f32.mrb[64].mxu1 }
 0xa94   : > { %v8783_v33 = vadd.f32 %v8782_v14, %v15377_v54  ;;  %v8784_v2 = vpop.f32.mrb[65].mxu1 }
 0xa95   : > { %v8785_v9 = vpop.f32.mrb[66].mxu1 }
 0xa96   : > { %v9044_v46 = vadd.f32 %v15630_v18, %v8783_v33  ;;  %v8786_v41 = vadd.f32 %v8785_v9, %v15386_v20  ;;  %v8787_v59 = vpop.f32.mrb[67].mxu1 }
 0xa98   : > { %v9045_v50 = vadd.f32 %v15630_v18, %v8786_v41  ;;  %8997 = vmatmul.mubr.bf16.gmra.mrb[172].mxu1 %v16475_v58  ;;  %v9108_v51 = vmax.f32 %v9044_v46, 0.0 }
 0xa99   : > { %9004 = vmatprep.mubr.bf16.mxu1 %v16476_v53 }
 0xa9a   : > { %v9109_v37 = vmax.f32 %v9045_v50, 0.0 }
 0xa9b   : > { %v8790_v54 = vpop.f32.mrb[68].mxu1 }
 0xa9c   : > { %v8791_v14 = vadd.f32 %v15375_v23, %v8790_v54  ;;  %v8792_v2 = vpop.f32.mrb[69].mxu1  ;;  %v9188_v33 = vpack.c.bf16 %v9109_v37, %v9108_v51 }
 0xa9d   : > { %v8793_v47 = vpop.f32.mrb[70].mxu1 }
 0xa9e   : > { %v9046_v20 = vadd.f32 %v15630_v18, %v8791_v14  ;;  %v8794_v41 = vadd.f32 %v15384_v32, %v8793_v47  ;;  %v8795_v9 = vpop.f32.mrb[71].mxu1  ;;  %10827 = vmatprep.mubr.bf16.mxu0 %v9188_v33 }
 0xa9f   : > { %v16482_v9 = vld [vmem:[#allocation90_spill] sm:$0xff] }
 0xaa0   : > { %v9047_v19 = vadd.f32 %v15630_v18, %v8794_v41  ;;  %9005 = vmatmul.mubr.bf16.gmra.mrb[176].mxu1 %v16477_v6  ;;  %v9110_v61 = vmax.f32 %v9046_v20, 0.0  ;;  %v16483_v16 = vpack.c.bf16 %v16481_v30, %v16482_v9 }
 0xaa1   : > { %9012 = vmatprep.mubr.bf16.mxu1 %v16478_v29 }
 0xaa2   : > { %v9111_v23 = vmax.f32 %v9047_v19, 0.0  ;;  %v16485_v19 = vld [vmem:[#allocation96_spill] sm:$0xff] }
 0xaa3   : > { %v8798_v46 = vpop.f32.mrb[72].mxu1  ;;  %v16486_v6 = vpack.c.bf16 %v16484_v42, %v16485_v19 }
 0xaa4   : > { %v9189_v59 = vpack.c.bf16 %v9111_v23, %v9110_v61  ;;  %v8799_v50 = vadd.f32 %v8798_v46, %v15401_v38  ;;  %v8800_v58 = vpop.f32.mrb[73].mxu1  ;;  %v16487_v46 = vld [vmem:[#allocation22_spill] sm:$0xff] }
 0xaa5   : > { %v8801_v32 = vpop.f32.mrb[74].mxu1 }
 0xaa6   : > { %v9048_v47 = vadd.f32 %v15630_v18, %v8799_v50  ;;  %v8802_v53 = vadd.f32 %v8801_v32, %v15410_v49  ;;  %v8803_v51 = vpop.f32.mrb[75].mxu1  ;;  %10828 = vmatmul.mubr.bf16.vlgmr.msra.gmra.mrb[0].mxu0 %v9189_v59  ;;  %v16488_v32 = vld [vmem:[#allocation29_spill] sm:$0xff] }
 0xaa8   : > { %v9049_v12 = vadd.f32 %v15630_v18, %v8802_v53  ;;  %9013 = vmatmul.mubr.bf16.gmra.mrb[180].mxu1 %v16479_v25  ;;  %v9112_v17 = vmax.f32 %v9048_v47, 0.0  ;;  %v16490_v25 = vld [vmem:[#allocation94_spill] sm:$0xff] }
 0xaa9   : > { %9020 = vmatprep.mubr.bf16.mxu1 %v16480_v60 }
 0xaaa   : > { %v9113_v38 = vmax.f32 %v9049_v12, 0.0  ;;  %v16489_v12 = vld [vmem:[#allocation95_spill] sm:$0xff] }
 0xaab   : > { %v8806_v37 = vpop.f32.mrb[76].mxu1  ;;  %v16491_v60 = vpack.c.bf16 %v16489_v12, %v16490_v25 }
 0xaac   : > { %v8807_v54 = vadd.f32 %v15399_v28, %v8806_v37  ;;  %v8808_v14 = vpop.f32.mrb[77].mxu1  ;;  %v9190_v2 = vpack.c.bf16 %v9113_v38, %v9112_v17 }
 0xaad   : > { %v8809_v49 = vpop.f32.mrb[78].mxu1 }
 0xaae   : > { %v9050_v33 = vadd.f32 %v15630_v18, %v8807_v54  ;;  %v8810_v20 = vadd.f32 %v15408_v44, %v8809_v49  ;;  %v8811_v41 = vpop.f32.mrb[79].mxu1  ;;  %10831 = vmatprep.mubr.bf16.mxu0 %v9190_v2  ;;  %v16492_v54 = vld [vmem:[#allocation23_spill] sm:$0xff] }
 0xaaf   : > { %v16493_v41 = vld [vmem:[#allocation30_spill] sm:$0xff] }
 0xab0   : > { %v9051_v0 = vadd.f32 %v15630_v18, %v8810_v20  ;;  %9021 = vmatmul.mubr.bf16.gmra.mrb[184].mxu1 %v16483_v16  ;;  %v9114_v28 = vmax.f32 %v9050_v33, 0.0 }
 0xab1   : > { %9028 = vmatprep.mubr.bf16.mxu1 %v16486_v6 }
 0xab2   : > { %v9115_v29 = vmax.f32 %v9051_v0, 0.0 }
 0xab3   : > { %v8814_v61 = vpop.f32.mrb[80].mxu1 }
 0xab4   : > { %v9191_v23 = vpack.c.bf16 %v9115_v29, %v9114_v28  ;;  %v8815_v59 = vadd.f32 %v8814_v61, %v16487_v46  ;;  %v8816_v50 = vpop.f32.mrb[81].mxu1  ;;  %v16494_v28 = vld [vmem:[#allocation27_spill] sm:$0xff] }
 0xab5   : > { %v8817_v44 = vpop.f32.mrb[82].mxu1 }
 0xab6   : > { %v9052_v58 = vadd.f32 %v15630_v18, %v8815_v59  ;;  %v8818_v47 = vadd.f32 %v8817_v44, %v16488_v32  ;;  %v8819_v53 = vpop.f32.mrb[83].mxu1  ;;  %10832 = vmatmul.mubr.bf16.gmra.mrb[4].mxu0 %v9191_v23  ;;  %v16495_v59 = vld [vmem:[#allocation102_spill] sm:$0xff] }
 0xab8   : > { %v9053_v51 = vadd.f32 %v15630_v18, %v8818_v47  ;;  %9029 = vmatmul.mubr.bf16.gmra.mrb[188].mxu1 %v16491_v60  ;;  %v9116_v17 = vmax.f32 %v9052_v58, 0.0 }
 0xaba   : > { %v9117_v38 = vmax.f32 %v9053_v51, 0.0  ;;  %v16496_v51 = vld [vmem:[#allocation28_spill] sm:$0xff] }
 0xabb   : > { %v8822_v37 = vpop.f32.mrb[84].mxu1 }
 0xabc   : > { %v8823_v14 = vadd.f32 %v16492_v54, %v8822_v37  ;;  %v8824_v2 = vpop.f32.mrb[85].mxu1  ;;  %v9192_v49 = vpack.c.bf16 %v9117_v38, %v9116_v17  ;;  %v16497_v37 = vld [vmem:[#allocation35_spill] sm:$0xff] }
 0xabd   : > { %v8825_v33 = vpop.f32.mrb[86].mxu1 }
 0xabe   : > { %v9054_v20 = vadd.f32 %v15630_v18, %v8823_v14  ;;  %v8826_v0 = vadd.f32 %v16493_v41, %v8825_v33  ;;  %v8827_v30 = vpop.f32.mrb[87].mxu1  ;;  %10835 = vmatprep.mubr.bf16.mxu0 %v9192_v49 }
 0xac0   : > { %v9055_v9 = vadd.f32 %v15630_v18, %v8826_v0  ;;  %v9118_v16 = vmax.f32 %v9054_v20, 0.0  ;;  %v16498_v0 = vld [vmem:[#allocation33_spill] sm:$0xff] }
 0xac2   : > { %v9119_v42 = vmax.f32 %v9055_v9, 0.0 }
 0xac3   : > { %v8830_v19 = vpop.f32.mrb[88].mxu1 }
 0xac4   : > { %v9193_v6 = vpack.c.bf16 %v9119_v42, %v9118_v16  ;;  %v8831_v29 = vadd.f32 %v8830_v19, %v16494_v28  ;;  %v8832_v61 = vpop.f32.mrb[89].mxu1  ;;  %v16499_v19 = vld [vmem:[#allocation41_spill] sm:$0xff] }
 0xac5   : > { %v8833_v23 = vpop.f32.mrb[90].mxu1 }
 0xac6   : > { %v9056_v46 = vadd.f32 %v15630_v18, %v8831_v29  ;;  %v8834_v50 = vadd.f32 %v8833_v23, %v16495_v59  ;;  %v8835_v44 = vpop.f32.mrb[91].mxu1  ;;  %10836 = vmatmul.mubr.bf16.gmra.mrb[8].mxu0 %v9193_v6  ;;  %v16500_v59 = vld [vmem:[#allocation34_spill] sm:$0xff] }
 0xac8   : > { %v9057_v58 = vadd.f32 %v15630_v18, %v8834_v50  ;;  %v9120_v32 = vmax.f32 %v9056_v46, 0.0 }
 0xaca   : > { %v9121_v47 = vmax.f32 %v9057_v58, 0.0 }
 0xacb   : > { %v8838_v53 = vpop.f32.mrb[92].mxu1 }
 0xacc   : > { %v8839_v12 = vadd.f32 %v16496_v51, %v8838_v53  ;;  %v8840_v25 = vpop.f32.mrb[93].mxu1  ;;  %v9194_v60 = vpack.c.bf16 %v9121_v47, %v9120_v32  ;;  %v16501_v53 = vld [vmem:[#allocation42_spill] sm:$0xff] }
 0xacd   : > { %v8841_v17 = vpop.f32.mrb[94].mxu1 }
 0xace   : > { %v9058_v38 = vadd.f32 %v15630_v18, %v8839_v12  ;;  %v8842_v54 = vadd.f32 %v16497_v37, %v8841_v17  ;;  %v8843_v14 = vpop.f32.mrb[95].mxu1  ;;  %10839 = vmatprep.mubr.bf16.mxu0 %v9194_v60 }
 0xad0   : > { %v9059_v2 = vadd.f32 %v15630_v18, %v8842_v54  ;;  %v9122_v49 = vmax.f32 %v9058_v38, 0.0  ;;  %v16502_v54 = vld [vmem:[#allocation39_spill] sm:$0xff] }
 0xad2   : > { %v9123_v33 = vmax.f32 %v9059_v2, 0.0 }
 0xad3   : > { %v8846_v20 = vpop.f32.mrb[96].mxu1 }
 0xad4   : > { %v9195_v41 = vpack.c.bf16 %v9123_v33, %v9122_v49  ;;  %v8847_v30 = vadd.f32 %v8846_v20, %v16498_v0  ;;  %v8848_v9 = vpop.f32.mrb[97].mxu1  ;;  %v16503_v20 = vld [vmem:[#allocation47_spill] sm:$0xff] }
 0xad5   : > { %v8849_v16 = vpop.f32.mrb[98].mxu1 }
 0xad6   : > { %v9060_v42 = vadd.f32 %v15630_v18, %v8847_v30  ;;  %v8850_v6 = vadd.f32 %v8849_v16, %v16499_v19  ;;  %v8851_v28 = vpop.f32.mrb[99].mxu1  ;;  %10840 = vmatmul.mubr.bf16.gmra.mrb[12].mxu0 %v9195_v41  ;;  %v16504_v19 = vld [vmem:[#allocation40_spill] sm:$0xff] }
 0xad8   : > { %v9061_v29 = vadd.f32 %v15630_v18, %v8850_v6  ;;  %v9124_v61 = vmax.f32 %v9060_v42, 0.0 }
 0xada   : > { %v9125_v23 = vmax.f32 %v9061_v29, 0.0 }
 0xadb   : > { %v8854_v46 = vpop.f32.mrb[100].mxu1 }
 0xadc   : > { %v8855_v50 = vadd.f32 %v16500_v59, %v8854_v46  ;;  %v8856_v44 = vpop.f32.mrb[101].mxu1  ;;  %v9196_v58 = vpack.c.bf16 %v9125_v23, %v9124_v61  ;;  %v16505_v46 = vld [vmem:[#allocation48_spill] sm:$0xff] }
 0xadd   : > { %v8857_v32 = vpop.f32.mrb[102].mxu1 }
 0xade   : > { %v9062_v47 = vadd.f32 %v15630_v18, %v8855_v50  ;;  %v8858_v51 = vadd.f32 %v16501_v53, %v8857_v32  ;;  %v8859_v12 = vpop.f32.mrb[103].mxu1  ;;  %10843 = vmatprep.mubr.bf16.mxu0 %v9196_v58 }
 0xae0   : > { %v9063_v25 = vadd.f32 %v15630_v18, %v8858_v51  ;;  %v9126_v60 = vmax.f32 %v9062_v47, 0.0 }
 0xae2   : > { %v9127_v17 = vmax.f32 %v9063_v25, 0.0 }
 0xae3   : > { %v8862_v38 = vpop.f32.mrb[104].mxu1 }
 0xae4   : > { %v9197_v37 = vpack.c.bf16 %v9127_v17, %v9126_v60  ;;  %v8863_v14 = vadd.f32 %v8862_v38, %v16502_v54  ;;  %v8864_v2 = vpop.f32.mrb[105].mxu1  ;;  %v16506_v17 = vld [vmem:[#allocation54_spill] sm:$0xff] }
 0xae5   : > { %v8865_v49 = vpop.f32.mrb[106].mxu1 }
 0xae6   : > { %v9064_v33 = vadd.f32 %v15630_v18, %v8863_v14  ;;  %v8866_v41 = vadd.f32 %v8865_v49, %v16503_v20  ;;  %v8867_v0 = vpop.f32.mrb[107].mxu1  ;;  %10844 = vmatmul.mubr.bf16.gmra.mrb[16].mxu0 %v9197_v37 }
 0xae8   : > { %v9065_v30 = vadd.f32 %v15630_v18, %v8866_v41  ;;  %v9128_v9 = vmax.f32 %v9064_v33, 0.0  ;;  %v16507_v33 = vld [vmem:[#allocation46_spill] sm:$0xff] }
 0xaea   : > { %v9129_v16 = vmax.f32 %v9065_v30, 0.0 }
 0xaeb   : > { %v8870_v42 = vpop.f32.mrb[108].mxu1 }
 0xaec   : > { %v8871_v6 = vadd.f32 %v16504_v19, %v8870_v42  ;;  %v8872_v28 = vpop.f32.mrb[109].mxu1  ;;  %v9198_v29 = vpack.c.bf16 %v9129_v16, %v9128_v9  ;;  %v16508_v9 = vld [vmem:[#allocation45_spill] sm:$0xff] }
 0xaed   : > { %v8873_v61 = vpop.f32.mrb[110].mxu1 }
 0xaee   : > { %v9066_v23 = vadd.f32 %v15630_v18, %v8871_v6  ;;  %v8874_v59 = vadd.f32 %v16505_v46, %v8873_v61  ;;  %v8875_v50 = vpop.f32.mrb[111].mxu1  ;;  %10847 = vmatprep.mubr.bf16.mxu0 %v9198_v29 }
 0xaf0   : > { %v9067_v44 = vadd.f32 %v15630_v18, %v8874_v59  ;;  %v9130_v58 = vmax.f32 %v9066_v23, 0.0 }
 0xaf2   : > { %v9131_v32 = vmax.f32 %v9067_v44, 0.0 }
 0xaf3   : > { %v8878_v47 = vpop.f32.mrb[112].mxu1 }
 0xaf4   : > { %v9199_v53 = vpack.c.bf16 %v9131_v32, %v9130_v58  ;;  %v8879_v51 = vadd.f32 %v8878_v47, %v15489_v8  ;;  %v8880_v12 = vpop.f32.mrb[113].mxu1 }
 0xaf5   : > { %v8881_v25 = vpop.f32.mrb[114].mxu1  ;;  %v16509_v12 = vld [vmem:[#allocation53_spill] sm:$0xff] }
 0xaf6   : > { %v9068_v60 = vadd.f32 %v15630_v18, %v8879_v51  ;;  %v8882_v38 = vadd.f32 %v8881_v25, %v16506_v17  ;;  %v8883_v37 = vpop.f32.mrb[115].mxu1  ;;  %10848 = vmatmul.mubr.bf16.gmra.mrb[20].mxu0 %v9199_v53 }
 0xaf7   : > { %v16510_v37 = vld [vmem:[#allocation52_spill] sm:$0xff] }
 0xaf8   : > { %v9069_v54 = vadd.f32 %v15630_v18, %v8882_v38  ;;  %v9132_v14 = vmax.f32 %v9068_v60, 0.0 }
 0xafa   : > { %v9133_v2 = vmax.f32 %v9069_v54, 0.0 }
 0xafb   : > { %v8886_v49 = vpop.f32.mrb[116].mxu1 }
 0xafc   : > { %v8887_v20 = vadd.f32 %v16507_v33, %v8886_v49  ;;  %v8888_v41 = vpop.f32.mrb[117].mxu1  ;;  %v9200_v0 = vpack.c.bf16 %v9133_v2, %v9132_v14 }
 0xafd   : > { %v8889_v30 = vpop.f32.mrb[118].mxu1 }
 0xafe   : > { %v9070_v8 = vadd.f32 %v15630_v18, %v8887_v20  ;;  %v8890_v16 = vadd.f32 %v16508_v9, %v8889_v30  ;;  %v8891_v42 = vpop.f32.mrb[119].mxu1  ;;  %10851 = vmatprep.mubr.bf16.mxu0 %v9200_v0 }
 0xb00   : > { %v9071_v19 = vadd.f32 %v15630_v18, %v8890_v16  ;;  %v9134_v6 = vmax.f32 %v9070_v8, 0.0 }
 0xb02   : > { %v9135_v28 = vmax.f32 %v9071_v19, 0.0 }
 0xb03   : > { %v8894_v29 = vpop.f32.mrb[120].mxu1 }
 0xb04   : > { %v9201_v61 = vpack.c.bf16 %v9135_v28, %v9134_v6  ;;  %v8895_v23 = vadd.f32 %v8894_v29, %v15503_v55  ;;  %v8896_v46 = vpop.f32.mrb[121].mxu1  ;;  %v16511_v29 = vld [vmem:[#allocation51_spill] sm:$0xff] }
 0xb05   : > { %v8897_v59 = vpop.f32.mrb[122].mxu1 }
 0xb06   : > { %v9072_v50 = vadd.f32 %v15630_v18, %v8895_v23  ;;  %v8898_v44 = vadd.f32 %v8897_v59, %v15507_v7  ;;  %v8899_v58 = vpop.f32.mrb[123].mxu1  ;;  %10852 = vmatmul.mubr.bf16.gmra.mrb[24].mxu0 %v9201_v61 }
 0xb08   : > { %v9073_v32 = vadd.f32 %v15630_v18, %v8898_v44  ;;  %v9136_v47 = vmax.f32 %v9072_v50, 0.0  ;;  %v16512_v50 = vld [vmem:[#allocation60_spill] sm:$0xff] }
 0xb0a   : > { %v9137_v53 = vmax.f32 %v9073_v32, 0.0 }
 0xb0b   : > { %v8902_v51 = vpop.f32.mrb[124].mxu1 }
 0xb0c   : > { %v8903_v25 = vadd.f32 %v16509_v12, %v8902_v51  ;;  %v8904_v60 = vpop.f32.mrb[125].mxu1  ;;  %v9202_v17 = vpack.c.bf16 %v9137_v53, %v9136_v47 }
 0xb0d   : > { %v8905_v38 = vpop.f32.mrb[126].mxu1 }
 0xb0e   : > { %v9074_v55 = vadd.f32 %v15630_v18, %v8903_v25  ;;  %v8906_v54 = vadd.f32 %v16510_v37, %v8905_v38  ;;  %v8907_v14 = vpop.f32.mrb[127].mxu1  ;;  %10855 = vmatprep.mubr.bf16.mxu0 %v9202_v17 }
 0xb10   : > { %v9075_v7 = vadd.f32 %v15630_v18, %v8906_v54  ;;  %v9138_v2 = vmax.f32 %v9074_v55, 0.0 }
 0xb12   : > { %v9139_v49 = vmax.f32 %v9075_v7, 0.0 }
 0xb13   : > { %v8910_v33 = vpop.f32.mrb[128].mxu1 }
 0xb14   : > { %v9203_v20 = vpack.c.bf16 %v9139_v49, %v9138_v2  ;;  %v8911_v41 = vadd.f32 %v8910_v33, %v15517_v40  ;;  %v8912_v0 = vpop.f32.mrb[129].mxu1 }
 0xb15   : > { %v8913_v30 = vpop.f32.mrb[130].mxu1 }
 0xb16   : > { %v9076_v8 = vadd.f32 %v15630_v18, %v8911_v41  ;;  %v8914_v9 = vadd.f32 %v8913_v30, %v15521_v5  ;;  %v8915_v16 = vpop.f32.mrb[131].mxu1  ;;  %10856 = vmatmul.mubr.bf16.gmra.mrb[28].mxu0 %v9203_v20 }
 0xb18   : > { %v9077_v42 = vadd.f32 %v15630_v18, %v8914_v9  ;;  %v9140_v19 = vmax.f32 %v9076_v8, 0.0 }
 0xb1a   : > { %v9141_v6 = vmax.f32 %v9077_v42, 0.0 }
 0xb1b   : > { %v8918_v28 = vpop.f32.mrb[132].mxu1 }
 0xb1c   : > { %v8919_v61 = vadd.f32 %v16511_v29, %v8918_v28  ;;  %v8920_v23 = vpop.f32.mrb[133].mxu1  ;;  %v9204_v46 = vpack.c.bf16 %v9141_v6, %v9140_v19 }
 0xb1d   : > { %v8921_v59 = vpop.f32.mrb[134].mxu1 }
 0xb1e   : > { %v9078_v40 = vadd.f32 %v15630_v18, %v8919_v61  ;;  %v8922_v44 = vadd.f32 %v16512_v50, %v8921_v59  ;;  %v8923_v58 = vpop.f32.mrb[135].mxu1  ;;  %10859 = vmatprep.mubr.bf16.mxu0 %v9204_v46 }
 0xb20   : > { %v9079_v5 = vadd.f32 %v15630_v18, %v8922_v44  ;;  %v9142_v32 = vmax.f32 %v9078_v40, 0.0 }
 0xb22   : > { %v9143_v47 = vmax.f32 %v9079_v5, 0.0 }
 0xb23   : > { %v8926_v53 = vpop.f32.mrb[136].mxu1 }
 0xb24   : > { %v9205_v51 = vpack.c.bf16 %v9143_v47, %v9142_v32  ;;  %v8927_v12 = vadd.f32 %v8926_v53, %v15531_v52  ;;  %v8928_v25 = vpop.f32.mrb[137].mxu1 }
 0xb25   : > { %v8929_v60 = vpop.f32.mrb[138].mxu1 }
 0xb26   : > { %v9080_v17 = vadd.f32 %v15630_v18, %v8927_v12  ;;  %v8930_v38 = vadd.f32 %v8929_v60, %v15535_v48  ;;  %v8931_v55 = vpop.f32.mrb[139].mxu1  ;;  %10860 = vmatmul.mubr.bf16.gmra.mrb[32].mxu0 %v9205_v51 }
 0xb28   : > { %v9081_v37 = vadd.f32 %v15630_v18, %v8930_v38  ;;  %v9144_v54 = vmax.f32 %v9080_v17, 0.0 }
 0xb2a   : > { %v9145_v14 = vmax.f32 %v9081_v37, 0.0 }
 0xb2b   : > { %v8934_v7 = vpop.f32.mrb[140].mxu1 }
 0xb2c   : > { %v8935_v2 = vadd.f32 %v15529_v24, %v8934_v7  ;;  %v8936_v49 = vpop.f32.mrb[141].mxu1  ;;  %v9206_v33 = vpack.c.bf16 %v9145_v14, %v9144_v54 }
 0xb2d   : > { %v8937_v20 = vpop.f32.mrb[142].mxu1 }
 0xb2e   : > { %v9082_v52 = vadd.f32 %v15630_v18, %v8935_v2  ;;  %v8938_v41 = vadd.f32 %v15533_v3, %v8937_v20  ;;  %v8939_v0 = vpop.f32.mrb[143].mxu1  ;;  %10863 = vmatprep.mubr.bf16.mxu0 %v9206_v33 }
 0xb30   : > { %v9083_v48 = vadd.f32 %v15630_v18, %v8938_v41  ;;  %v9146_v30 = vmax.f32 %v9082_v52, 0.0 }
 0xb32   : > { %v9147_v8 = vmax.f32 %v9083_v48, 0.0 }
 0xb33   : > { %v8942_v9 = vpop.f32.mrb[144].mxu1 }
 0xb34   : > { %v9207_v16 = vpack.c.bf16 %v9147_v8, %v9146_v30  ;;  %v8943_v42 = vadd.f32 %v8942_v9, %v15545_v63  ;;  %v8944_v19 = vpop.f32.mrb[145].mxu1 }
 0xb35   : > { %v8945_v6 = vpop.f32.mrb[146].mxu1 }
 0xb36   : > { %v9084_v24 = vadd.f32 %v15630_v18, %v8943_v42  ;;  %v8946_v28 = vadd.f32 %v8945_v6, %v15549_v43  ;;  %v8947_v29 = vpop.f32.mrb[147].mxu1  ;;  %10864 = vmatmul.mubr.bf16.gmra.mrb[36].mxu0 %v9207_v16 }
 0xb38   : > { %v9085_v3 = vadd.f32 %v15630_v18, %v8946_v28  ;;  %v9148_v61 = vmax.f32 %v9084_v24, 0.0 }
 0xb3a   : > { %v9149_v23 = vmax.f32 %v9085_v3, 0.0 }
 0xb3b   : > { %v8950_v46 = vpop.f32.mrb[148].mxu1 }
 0xb3c   : > { %v8951_v59 = vadd.f32 %v15543_v56, %v8950_v46  ;;  %v8952_v40 = vpop.f32.mrb[149].mxu1  ;;  %v9208_v50 = vpack.c.bf16 %v9149_v23, %v9148_v61 }
 0xb3d   : > { %v8953_v44 = vpop.f32.mrb[150].mxu1 }
 0xb3e   : > { %v9086_v63 = vadd.f32 %v15630_v18, %v8951_v59  ;;  %v8954_v58 = vadd.f32 %v15547_v31, %v8953_v44  ;;  %v8955_v5 = vpop.f32.mrb[151].mxu1  ;;  %10867 = vmatprep.mubr.bf16.mxu0 %v9208_v50 }
 0xb40   : > { %v9087_v43 = vadd.f32 %v15630_v18, %v8954_v58  ;;  %v9150_v32 = vmax.f32 %v9086_v63, 0.0 }
 0xb42   : > { %v9151_v47 = vmax.f32 %v9087_v43, 0.0 }
 0xb43   : > { %v8958_v53 = vpop.f32.mrb[152].mxu1 }
 0xb44   : > { %v9209_v51 = vpack.c.bf16 %v9151_v47, %v9150_v32  ;;  %v8959_v12 = vadd.f32 %v8958_v53, %v15559_v35  ;;  %v8960_v25 = vpop.f32.mrb[153].mxu1 }
 0xb45   : > { %v8961_v60 = vpop.f32.mrb[154].mxu1 }
 0xb46   : > { %v9088_v56 = vadd.f32 %v15630_v18, %v8959_v12  ;;  %v8962_v17 = vadd.f32 %v8961_v60, %v15563_v39  ;;  %v8963_v38 = vpop.f32.mrb[155].mxu1  ;;  %10868 = vmatmul.mubr.bf16.gmra.mrb[40].mxu0 %v9209_v51 }
 0xb48   : > { %v9089_v31 = vadd.f32 %v15630_v18, %v8962_v17  ;;  %v9152_v55 = vmax.f32 %v9088_v56, 0.0 }
 0xb4a   : > { %v9153_v37 = vmax.f32 %v9089_v31, 0.0 }
 0xb4b   : > { %v8966_v54 = vpop.f32.mrb[156].mxu1 }
 0xb4c   : > { %v8967_v14 = vadd.f32 %v15557_v27, %v8966_v54  ;;  %v8968_v7 = vpop.f32.mrb[157].mxu1  ;;  %v9210_v2 = vpack.c.bf16 %v9153_v37, %v9152_v55 }
 0xb4d   : > { %v8969_v49 = vpop.f32.mrb[158].mxu1 }
 0xb4e   : > { %v9090_v35 = vadd.f32 %v15630_v18, %v8967_v14  ;;  %v8970_v33 = vadd.f32 %v15561_v21, %v8969_v49  ;;  %v8971_v20 = vpop.f32.mrb[159].mxu1  ;;  %10871 = vmatprep.mubr.bf16.mxu0 %v9210_v2 }
 0xb50   : > { %v9091_v39 = vadd.f32 %v15630_v18, %v8970_v33  ;;  %v9154_v52 = vmax.f32 %v9090_v35, 0.0 }
 0xb52   : > { %v9155_v41 = vmax.f32 %v9091_v39, 0.0 }
 0xb53   : > { %v8974_v0 = vpop.f32.mrb[160].mxu1 }
 0xb54   : > { %v9211_v48 = vpack.c.bf16 %v9155_v41, %v9154_v52  ;;  %v8975_v30 = vadd.f32 %v8974_v0, %v15573_v11  ;;  %v8976_v8 = vpop.f32.mrb[161].mxu1 }
 0xb55   : > { %v8977_v9 = vpop.f32.mrb[162].mxu1 }
 0xb56   : > { %v9092_v27 = vadd.f32 %v15630_v18, %v8975_v30  ;;  %v8978_v16 = vadd.f32 %v8977_v9, %v15577_v4  ;;  %v8979_v42 = vpop.f32.mrb[163].mxu1  ;;  %10872 = vmatmul.mubr.bf16.gmra.mrb[44].mxu0 %v9211_v48 }
 0xb58   : > { %v9093_v21 = vadd.f32 %v15630_v18, %v8978_v16  ;;  %v9156_v19 = vmax.f32 %v9092_v27, 0.0 }
 0xb5a   : > { %v9157_v6 = vmax.f32 %v9093_v21, 0.0 }
 0xb5b   : > { %v8982_v24 = vpop.f32.mrb[164].mxu1 }
 0xb5c   : > { %v8983_v28 = vadd.f32 %v15571_v10, %v8982_v24  ;;  %v8984_v29 = vpop.f32.mrb[165].mxu1  ;;  %v9212_v3 = vpack.c.bf16 %v9157_v6, %v9156_v19 }
 0xb5d   : > { %v8985_v61 = vpop.f32.mrb[166].mxu1 }
 0xb5e   : > { %v9094_v11 = vadd.f32 %v15630_v18, %v8983_v28  ;;  %v8986_v23 = vadd.f32 %v15575_v45, %v8985_v61  ;;  %v8987_v46 = vpop.f32.mrb[167].mxu1  ;;  %10875 = vmatprep.mubr.bf16.mxu0 %v9212_v3 }
 0xb60   : > { %v9095_v4 = vadd.f32 %v15630_v18, %v8986_v23  ;;  %v9158_v59 = vmax.f32 %v9094_v11, 0.0 }
 0xb62   : > { %v9159_v40 = vmax.f32 %v9095_v4, 0.0 }
 0xb63   : > { %v8990_v50 = vpop.f32.mrb[168].mxu1 }
 0xb64   : > { %v9213_v44 = vpack.c.bf16 %v9159_v40, %v9158_v59  ;;  %v8991_v63 = vadd.f32 %v8990_v50, %v15587_v1  ;;  %v8992_v58 = vpop.f32.mrb[169].mxu1 }
 0xb65   : > { %v8993_v5 = vpop.f32.mrb[170].mxu1 }
 0xb66   : > { %v9096_v10 = vadd.f32 %v15630_v18, %v8991_v63  ;;  %v8994_v43 = vadd.f32 %v8993_v5, %v15591_v36  ;;  %v8995_v32 = vpop.f32.mrb[171].mxu1  ;;  %10876 = vmatmul.mubr.bf16.gmra.mrb[48].mxu0 %v9213_v44  ;;  %v16513_v5 = vld [vmem:[#allocation57_spill] sm:$0xff] }
 0xb67   : > { %v16514_v32 = vld [vmem:[#allocation2_spill] sm:$0xff] }
 0xb68   : > { %v9097_v45 = vadd.f32 %v15630_v18, %v8994_v43  ;;  %v9160_v47 = vmax.f32 %v9096_v10, 0.0 }
 0xb6a   : > { %v9161_v53 = vmax.f32 %v9097_v45, 0.0  ;;  %v7236_v45 = vsub.s32 2, %v16514_v32 }
 0xb6b   : > { %v8998_v51 = vpop.f32.mrb[172].mxu1 }
 0xb6c   : > { %v8999_v12 = vadd.f32 %v15585_v26, %v8998_v51  ;;  %v9000_v25 = vpop.f32.mrb[173].mxu1  ;;  %v9214_v60 = vpack.c.bf16 %v9161_v53, %v9160_v47 }
 0xb6d   : > { %v9001_v56 = vpop.f32.mrb[174].mxu1 }
 0xb6e   : > { %v9098_v1 = vadd.f32 %v15630_v18, %v8999_v12  ;;  %v9002_v17 = vadd.f32 %v15589_v57, %v9001_v56  ;;  %v9003_v38 = vpop.f32.mrb[175].mxu1  ;;  %10879 = vmatprep.mubr.bf16.mxu0 %v9214_v60  ;;  %v15777_v57 = vld [vmem:[%s16211_s11] ss:$0 sm:$0xff] }
 0xb70   : > { %v9099_v36 = vadd.f32 %v15630_v18, %v9002_v17  ;;  %v9162_v31 = vmax.f32 %v9098_v1, 0.0 }
 0xb72   : > { %v9163_v55 = vmax.f32 %v9099_v36, 0.0 }
 0xb73   : > { %v9006_v37 = vpop.f32.mrb[176].mxu1 }
 0xb74   : > { %v9215_v54 = vpack.c.bf16 %v9163_v55, %v9162_v31  ;;  %v9007_v14 = vadd.f32 %v9006_v37, %v15601_v62  ;;  %v9008_v7 = vpop.f32.mrb[177].mxu1 }
 0xb75   : > { %v9009_v2 = vpop.f32.mrb[178].mxu1  ;;  %v16515_v7 = vld [vmem:[#allocation59_spill] sm:$0xff] }
 0xb76   : > { %v9100_v26 = vadd.f32 %v15630_v18, %v9007_v14  ;;  %v9010_v49 = vadd.f32 %v9009_v2, %v15605_v15  ;;  %v9011_v35 = vpop.f32.mrb[179].mxu1  ;;  %10880 = vmatmul.mubr.bf16.gmra.mrb[52].mxu0 %v9215_v54 }
 0xb78   : > { %v9101_v33 = vadd.f32 %v15630_v18, %v9010_v49  ;;  %v9164_v39 = vmax.f32 %v9100_v26, 0.0 }
 0xb79   : > { %v10829_v20 = vpop.f32.mrb[0].mxu0 }
 0xb7a   : > { %v9165_v52 = vmax.f32 %v9101_v33, 0.0  ;;  %v9318_v62 = vadd.f32 %v10829_v20, %v15777_v57  ;;  %v9309_v41 = vpop.f32.mrb[1].mxu0 }
 0xb7b   : > { %v9310_v0 = vadd.f32 %v15777_v57, %v9309_v41  ;;  %v9014_v48 = vpop.f32.mrb[180].mxu1  ;;  %v10830_v30 = vpop.f32.mrb[2].mxu0 }
 0xb7c   : > { %v9566_v15 = vsub.f32 0.0, %v9318_v62  ;;  %v9015_v8 = vadd.f32 %v15599_v22, %v9014_v48  ;;  %v9321_v9 = vadd.f32 %v10830_v30, %v15777_v57  ;;  %v9016_v27 = vpop.f32.mrb[181].mxu1  ;;  %v9312_v16 = vpop.f32.mrb[3].mxu0  ;;  %v9216_v42 = vpack.c.bf16 %v9165_v52, %v9164_v39 }
 0xb7d   : > { %v9564_v21 = vsub.f32 0.0, %v9310_v0  ;;  %v9313_v19 = vadd.f32 %v15777_v57, %v9312_v16  ;;  %v9017_v6 = vpop.f32.mrb[182].mxu1  ;;  %v16516_v16 = vld [vmem:[#allocation58_spill] sm:$0xff] }
 0xb7e   : > { %v9632_v24 = vmul.f32 1.442695, %v9566_v15  ;;  %v9102_v28 = vadd.f32 %v15630_v18, %v9015_v8  ;;  %v9567_v29 = vsub.f32 0.0, %v9321_v9  ;;  %v9018_v3 = vadd.f32 %v15603_v34, %v9017_v6  ;;  %v9019_v61 = vpop.f32.mrb[183].mxu1  ;;  %10883 = vmatprep.mubr.bf16.mxu0 %v9216_v42 }
 0xb7f   : > { %v9628_v11 = vmul.f32 1.442695, %v9564_v21  ;;  %v9565_v23 = vsub.f32 0.0, %v9313_v19  ;;  %v16517_v19 = vlaneseq }
 0xb80   : > { %11540 = vpow2.f32 %v9632_v24  ;;  %v9634_v22 = vmul.f32 1.442695, %v9567_v29  ;;  %v9103_v46 = vadd.f32 %v15630_v18, %v9018_v3  ;;  %v9166_v59 = vmax.f32 %v9102_v28, 0.0  ;;  %v16518_v29 = vld [vmem:[#allocation5_spill] sm:$0xff] }
 0xb81   : > { %11542 = vpow2.f32 %v9628_v11  ;;  %v9630_v4 = vmul.f32 1.442695, %v9565_v23  ;;  %v15806_v6 = vand.u32 127, %v16517_v19  ;;  %v16519_v11 = vld [vmem:[#allocation3_spill] sm:$0xff] }
 0xb82   : > { %11544 = vpow2.f32 %v9634_v22  ;;  %v9167_v40 = vmax.f32 %v9103_v46, 0.0  ;;  %v16520_v22 = vld [vmem:[#allocation6_spill] sm:$0xff] }
 0xb83   : > { %11546 = vpow2.f32 %v9630_v4  ;;  %v9022_v50 = vpop.f32.mrb[184].mxu1  ;;  %vm9886_vm0 = vcmp.lt.s32.totalorder %v15806_v6, 3 }
 0xb84   : > { %v9217_v44 = vpack.c.bf16 %v9167_v40, %v9166_v59  ;;  %v9023_v63 = vadd.f32 %v9022_v50, %v15615_v13  ;;  %v9024_v58 = vpop.f32.mrb[185].mxu1  ;;  %v11860_v13 = vld [vmem:[%s16206_s6] sm:$0x7]  ;;  %v16521_v40 = vld [vmem:[#allocation4_spill] sm:$0xff] }
 0xb85   : > { %v9025_v34 = vpop.f32.mrb[186].mxu1  ;;  %v15797_v1 = vrot.slane %v11860_v13, %v7236_v45 }
 0xb86   : > { %v9026_v10 = vadd.f32 %v9025_v34, %v16513_v5  ;;  %v9027_v43 = vpop.f32.mrb[187].mxu1  ;;  %10884 = vmatmul.mubr.bf16.gmra.mrb[56].mxu0 %v9217_v44  ;;  %v9104_v12 = vadd.f32 %v15630_v18, %v9023_v63 }
 0xb87   : > { %v7893_v3 = vadd.f32 %v16518_v29, %v15797_v1  ;;  %v7885_v23 = vadd.f32 %v16519_v11, %v15797_v1  ;;  %v7896_v46 = vadd.f32 %v16520_v22, %v15797_v1  ;;  %v7888_v50 = vadd.f32 %v16521_v40, %v15797_v1 }
 0xb88   : > { %v9105_v47 = vadd.f32 %v15630_v18, %v9026_v10  ;;  %v9168_v0 = vmax.f32 %v9104_v12, 0.0 }
 0xb89   : > { %v10833_v53 = vpop.f32.mrb[4].mxu0  ;;  %v8139_v58 = vmax.f32 %v7885_v23, 0.0  ;;  %v8142_v5 = vmax.f32 %v7896_v46, 0.0  ;;  %v8140_v32 = vmax.f32 %v7888_v50, 0.0 }
 0xb8a   : > { %v11541_v51 = vpop.eup %11540  ;;  %v9334_v25 = vadd.f32 %v10833_v53, %v15777_v57  ;;  %v9325_v60 = vpop.f32.mrb[5].mxu0  ;;  %v9169_v38 = vmax.f32 %v9105_v47, 0.0 }
 0xb8b   : > { %v11543_v56 = vpop.eup %11542  ;;  %v9758_v17 = vadd.f32 1.0, %v11541_v51  ;;  %v9326_v36 = vadd.f32 %v15777_v57, %v9325_v60  ;;  %v9030_v31 = vpop.f32.mrb[188].mxu1 }
 0xb8c   : > { %v10834_v55 = vpop.f32.mrb[6].mxu0  ;;  %v11545_v37 = vpop.eup %11544  ;;  %v9756_v54 = vadd.f32 1.0, %v11543_v56  ;;  %v9570_v14 = vsub.f32 0.0, %v9334_v25  ;;  %v9031_v2 = vadd.f32 %v16515_v7, %v9030_v31  ;;  %v9218_v21 = vpack.c.bf16 %v9169_v38, %v9168_v0  ;;  %v16522_v0 = vld [vmem:[#allocation9_spill] sm:$0xff] }
 0xb8d   : > { %v9337_v26 = vadd.f32 %v10834_v55, %v15777_v57  ;;  %v9032_v49 = vpop.f32.mrb[189].mxu1  ;;  %v9328_v35 = vpop.f32.mrb[7].mxu0  ;;  %11548 = vrcp.f32 %v9758_v17  ;;  %v9759_v20 = vadd.f32 1.0, %v11545_v37  ;;  %v9568_v39 = vsub.f32 0.0, %v9326_v36 }
 0xb8e   : > { %v11547_v33 = vpop.eup %11546  ;;  %v9329_v52 = vadd.f32 %v15777_v57, %v9328_v35  ;;  %v9033_v62 = vpop.f32.mrb[190].mxu1  ;;  %11550 = vrcp.f32 %v9756_v54  ;;  %v9640_v48 = vmul.f32 1.442695, %v9570_v14  ;;  %v9106_v27 = vadd.f32 %v15630_v18, %v9031_v2  ;;  %10887 = vmatprep.mubr.bf16.mxu0 %v9218_v21 }
 0xb8f   : > { %v9757_v41 = vadd.f32 1.0, %v11547_v33  ;;  %v9035_v30 = vpop.f32.mrb[191].mxu1  ;;  %11552 = vrcp.f32 %v9759_v20  ;;  %v9636_v15 = vmul.f32 1.442695, %v9568_v39  ;;  %v9571_v8 = vsub.f32 0.0, %v9337_v26 }
 0xb90   : > { %v9569_v9 = vsub.f32 0.0, %v9329_v52  ;;  %v9034_v42 = vadd.f32 %v16516_v16, %v9033_v62  ;;  %v9170_v4 = vmax.f32 %v9106_v27, 0.0  ;;  %v16523_v30 = vld [vmem:[#allocation7_spill] sm:$0xff]  ;;  %v16525_v27 = vld [vmem:[#allocation8_spill] sm:$0xff] }
 0xb91   : > { %11554 = vrcp.f32 %v9757_v41  ;;  %v9642_v24 = vmul.f32 1.442695, %v9571_v8  ;;  %v16524_v8 = vld [vmem:[#allocation10_spill] sm:$0xff]  ;;  %v7904_v16 = vadd.f32 %v16525_v27, %v15797_v1 }
 0xb92   : > { %11556 = vpow2.f32 %v9640_v48  ;;  %v9638_v28 = vmul.f32 1.442695, %v9569_v9  ;;  %v9107_v61 = vadd.f32 %v15630_v18, %v9034_v42  ;;  %v8141_v18 = vmax.f32 %v7893_v3, 0.0 }
 0xb93   : > { %11558 = vpow2.f32 %v9636_v15  ;;  %v7909_v48 = vadd.f32 %v16522_v0, %v15797_v1  ;;  %v7901_v15 = vadd.f32 %v16523_v30, %v15797_v1  ;;  %v7912_v9 = vadd.f32 %v16524_v8, %v15797_v1 }
 0xb94   : > { %11560 = vpow2.f32 %v9642_v24  ;;  %v9171_v59 = vmax.f32 %v9107_v61, 0.0  ;;  %v8144_v11 = vmax.f32 %v7904_v16, 0.0 }
 0xb95   : > { %11562 = vpow2.f32 %v9638_v28  ;;  %v8145_v42 = vmax.f32 %v7909_v48, 0.0  ;;  %v8143_v19 = vmax.f32 %v7901_v15, 0.0  ;;  %v8146_v28 = vmax.f32 %v7912_v9, 0.0 }
 0xb96   : > { %v9219_v44 = vpack.c.bf16 %v9171_v59, %v9170_v4 }
 0xb97   : > { %v11549_v63 = vpop.eup %11548 }
 0xb98   : > { %v11551_v34 = vpop.eup %11550  ;;  %v9889_v10 = vsel %vm9886_vm0, %v11549_v63, %v8141_v18  ;;  %10888 = vmatmul.mubr.bf16.gmra.mrb[60].mxu0 %v9219_v44 }
 0xb99   : > { %v11553_v43 = vpop.eup %11552  ;;  %9953 = vst [vmem:[%s15822_s16 + $0x10] sm:$0xff] %v9889_v10  ;;  %v9887_v45 = vsel %vm9886_vm0, %v11551_v34, %v8139_v58  ;;  %v10837_v47 = vpop.f32.mrb[8].mxu0 }
 0xb9a   : > { %9951 = vst [vmem:[%s15822_s16] sm:$0xff] %v9887_v45  ;;  %v9890_v51 = vsel %vm9886_vm0, %v11553_v43, %v8142_v5  ;;  %v9350_v12 = vadd.f32 %v10837_v47, %v15777_v57  ;;  %v9341_v25 = vpop.f32.mrb[9].mxu0 }
 0xb9b   : > { %v11555_v53 = vpop.eup %11554  ;;  %9954 = vst [vmem:[%s15822_s16 + $0x18] sm:$0xff] %v9890_v51  ;;  %v9342_v13 = vadd.f32 %v15777_v57, %v9341_v25  ;;  %v10838_v17 = vpop.f32.mrb[10].mxu0 }
 0xb9c   : > { %v11557_v60 = vpop.eup %11556  ;;  %v9888_v56 = vsel %vm9886_vm0, %v11555_v53, %v8140_v32  ;;  %v9574_v31 = vsub.f32 0.0, %v9350_v12  ;;  %v9353_v55 = vadd.f32 %v10838_v17, %v15777_v57  ;;  %v9344_v37 = vpop.f32.mrb[11].mxu0 }
 0xb9d   : > { %v11559_v38 = vpop.eup %11558  ;;  %9952 = vst [vmem:[%s15822_s16 + $0x8] sm:$0xff] %v9888_v56  ;;  %v9762_v36 = vadd.f32 1.0, %v11557_v60  ;;  %v9572_v7 = vsub.f32 0.0, %v9342_v13  ;;  %v9345_v2 = vadd.f32 %v15777_v57, %v9344_v37 }
 0xb9e   : > { %v11561_v54 = vpop.eup %11560  ;;  %v9760_v14 = vadd.f32 1.0, %v11559_v38  ;;  %v9648_v35 = vmul.f32 1.442695, %v9574_v31  ;;  %v9575_v33 = vsub.f32 0.0, %v9353_v55  ;;  %v16527_v55 = vld [vmem:[#allocation11_spill] sm:$0xff] }
 0xb9f   : > { %v11563_v26 = vpop.eup %11562  ;;  %11564 = vrcp.f32 %v9762_v36  ;;  %v9763_v49 = vadd.f32 1.0, %v11561_v54  ;;  %v9644_v39 = vmul.f32 1.442695, %v9572_v7  ;;  %v9573_v52 = vsub.f32 0.0, %v9345_v2  ;;  %v16526_v36 = vld [vmem:[#allocation13_spill] sm:$0xff]  ;;  %v16528_v54 = vld [vmem:[#allocation14_spill] sm:$0xff] }
 0xba0   : > { %11566 = vrcp.f32 %v9760_v14  ;;  %v9761_v20 = vadd.f32 1.0, %v11563_v26  ;;  %v9650_v62 = vmul.f32 1.442695, %v9575_v33  ;;  %v7925_v31 = vadd.f32 %v16526_v36, %v15797_v1  ;;  %v16529_v7 = vld [vmem:[#allocation12_spill] sm:$0xff] }
 0xba1   : > { %11568 = vrcp.f32 %v9763_v49  ;;  %v9646_v41 = vmul.f32 1.442695, %v9573_v52  ;;  %v7917_v37 = vadd.f32 %v16527_v55, %v15797_v1  ;;  %v7928_v14 = vadd.f32 %v16528_v54, %v15797_v1 }
 0xba2   : > { %11570 = vrcp.f32 %v9761_v20  ;;  %v7920_v2 = vadd.f32 %v16529_v7, %v15797_v1  ;;  %v8149_v26 = vmax.f32 %v7925_v31, 0.0 }
 0xba3   : > { %11572 = vpow2.f32 %v9648_v35  ;;  %v8147_v35 = vmax.f32 %v7917_v37, 0.0 }
 0xba4   : > { %11574 = vpow2.f32 %v9644_v39  ;;  %v8150_v39 = vmax.f32 %v7928_v14, 0.0  ;;  %v8148_v48 = vmax.f32 %v7920_v2, 0.0 }
 0xba5   : > { %11576 = vpow2.f32 %v9650_v62 }
 0xba6   : > { %11578 = vpow2.f32 %v9646_v41 }
 0xba9   : > { %v11565_v21 = vpop.eup %11564  ;;  %v10841_v3 = vpop.f32.mrb[12].mxu0 }
 0xbaa   : > { %v11567_v24 = vpop.eup %11566  ;;  %v9893_v29 = vsel %vm9886_vm0, %v11565_v21, %v8145_v42  ;;  %v9366_v22 = vadd.f32 %v10841_v3, %v15777_v57  ;;  %v9357_v46 = vpop.f32.mrb[13].mxu0 }
 0xbab   : > { %v11569_v61 = vpop.eup %11568  ;;  %9957 = vst [vmem:[%s15822_s16 + $0x30] sm:$0xff] %v9893_v29  ;;  %v9891_v23 = vsel %vm9886_vm0, %v11567_v24, %v8143_v19  ;;  %v9358_v40 = vadd.f32 %v15777_v57, %v9357_v46  ;;  %v10842_v50 = vpop.f32.mrb[14].mxu0 }
 0xbac   : > { %v11571_v4 = vpop.eup %11570  ;;  %9955 = vst [vmem:[%s15822_s16 + $0x20] sm:$0xff] %v9891_v23  ;;  %v9894_v59 = vsel %vm9886_vm0, %v11569_v61, %v8146_v28  ;;  %v9578_v63 = vsub.f32 0.0, %v9366_v22  ;;  %v9369_v58 = vadd.f32 %v10842_v50, %v15777_v57  ;;  %v9360_v34 = vpop.f32.mrb[15].mxu0 }
 0xbad   : > { %v11573_v18 = vpop.eup %11572  ;;  %9958 = vst [vmem:[%s15822_s16 + $0x38] sm:$0xff] %v9894_v59  ;;  %v9892_v44 = vsel %vm9886_vm0, %v11571_v4, %v8144_v11  ;;  %v9576_v43 = vsub.f32 0.0, %v9358_v40  ;;  %v9361_v32 = vadd.f32 %v15777_v57, %v9360_v34 }
 0xbae   : > { %v11575_v5 = vpop.eup %11574  ;;  %9956 = vst [vmem:[%s15822_s16 + $0x28] sm:$0xff] %v9892_v44  ;;  %v9766_v10 = vadd.f32 1.0, %v11573_v18  ;;  %v9579_v53 = vsub.f32 0.0, %v9369_v58  ;;  %v9656_v25 = vmul.f32 1.442695, %v9578_v63  ;;  %v16530_v58 = vld [vmem:[#allocation17_spill] sm:$0xff] }
 0xbaf   : > { %v11577_v45 = vpop.eup %11576  ;;  %v9764_v47 = vadd.f32 1.0, %v11575_v5  ;;  %v9577_v60 = vsub.f32 0.0, %v9361_v32  ;;  %v9652_v13 = vmul.f32 1.442695, %v9576_v43  ;;  %v7941_v34 = vadd.f32 %v16530_v58, %v15797_v1  ;;  %v16531_v5 = vld [vmem:[#allocation15_spill] sm:$0xff] }
 0xbb0   : > { %v11579_v51 = vpop.eup %11578  ;;  %11580 = vrcp.f32 %v9766_v10  ;;  %v9767_v12 = vadd.f32 1.0, %v11577_v45  ;;  %v9658_v17 = vmul.f32 1.442695, %v9579_v53  ;;  %v7933_v10 = vadd.f32 %v16531_v5, %v15797_v1  ;;  %v16532_v43 = vld [vmem:[#allocation19_spill] sm:$0xff]  ;;  %v16533_v45 = vld [vmem:[#allocation16_spill] sm:$0xff] }
 0xbb1   : > { %11582 = vrcp.f32 %v9764_v47  ;;  %v9765_v56 = vadd.f32 1.0, %v11579_v51  ;;  %v9654_v38 = vmul.f32 1.442695, %v9577_v60  ;;  %v7944_v32 = vadd.f32 %v16532_v43, %v15797_v1 }
 0xbb2   : > { %11584 = vrcp.f32 %v9767_v12  ;;  %v7936_v47 = vadd.f32 %v16533_v45, %v15797_v1  ;;  %v8153_v53 = vmax.f32 %v7941_v34, 0.0 }
 0xbb3   : > { %11586 = vrcp.f32 %v9765_v56 }
 0xbb4   : > { %11588 = vpow2.f32 %v9656_v25  ;;  %v8151_v25 = vmax.f32 %v7933_v10, 0.0  ;;  %v8152_v37 = vmax.f32 %v7936_v47, 0.0 }
 0xbb5   : > { %11590 = vpow2.f32 %v9652_v13 }
 0xbb6   : > { %11592 = vpow2.f32 %v9658_v17  ;;  %v8154_v17 = vmax.f32 %v7944_v32, 0.0 }
 0xbb7   : > { %11594 = vpow2.f32 %v9654_v38 }
 0xbb9   : > { %v10845_v33 = vpop.f32.mrb[16].mxu0 }
 0xbba   : > { %v11581_v49 = vpop.eup %11580  ;;  %v9382_v62 = vadd.f32 %v10845_v33, %v15777_v57  ;;  %v9373_v41 = vpop.f32.mrb[17].mxu0 }
 0xbbb   : > { %v11583_v20 = vpop.eup %11582  ;;  %v9897_v52 = vsel %vm9886_vm0, %v11581_v49, %v8149_v26  ;;  %v9374_v15 = vadd.f32 %v15777_v57, %v9373_v41  ;;  %v10846_v8 = vpop.f32.mrb[18].mxu0 }
 0xbbc   : > { %v11585_v0 = vpop.eup %11584  ;;  %9961 = vst [vmem:[%s15822_s16 + $0x50] sm:$0xff] %v9897_v52  ;;  %v9895_v30 = vsel %vm9886_vm0, %v11583_v20, %v8147_v35  ;;  %v9582_v16 = vsub.f32 0.0, %v9382_v62  ;;  %v9385_v42 = vadd.f32 %v10846_v8, %v15777_v57  ;;  %v9376_v21 = vpop.f32.mrb[19].mxu0 }
 0xbbd   : > { %v11587_v9 = vpop.eup %11586  ;;  %9959 = vst [vmem:[%s15822_s16 + $0x40] sm:$0xff] %v9895_v30  ;;  %v9898_v27 = vsel %vm9886_vm0, %v11585_v0, %v8150_v39  ;;  %v9580_v28 = vsub.f32 0.0, %v9374_v15  ;;  %v9377_v29 = vadd.f32 %v15777_v57, %v9376_v21 }
 0xbbe   : > { %v11589_v19 = vpop.eup %11588  ;;  %9962 = vst [vmem:[%s15822_s16 + $0x58] sm:$0xff] %v9898_v27  ;;  %v9896_v24 = vsel %vm9886_vm0, %v11587_v9, %v8148_v48  ;;  %v9583_v11 = vsub.f32 0.0, %v9385_v42  ;;  %v9664_v40 = vmul.f32 1.442695, %v9582_v16 }
 0xbbf   : > { %v11591_v3 = vpop.eup %11590  ;;  %9960 = vst [vmem:[%s15822_s16 + $0x48] sm:$0xff] %v9896_v24  ;;  %v9770_v61 = vadd.f32 1.0, %v11589_v19  ;;  %v9581_v46 = vsub.f32 0.0, %v9377_v29  ;;  %v9660_v18 = vmul.f32 1.442695, %v9580_v28  ;;  %v16534_v19 = vld [vmem:[#allocation26_spill] sm:$0xff] }
 0xbc0   : > { %v11593_v23 = vpop.eup %11592  ;;  %v9768_v22 = vadd.f32 1.0, %v11591_v3  ;;  %v9666_v44 = vmul.f32 1.442695, %v9583_v11  ;;  %v7957_v24 = vadd.f32 %v16534_v19, %v15797_v1  ;;  %v16535_v28 = vld [vmem:[#allocation20_spill] sm:$0xff]  ;;  %v16536_v3 = vld [vmem:[#allocation25_spill] sm:$0xff]  ;;  %v16537_v11 = vld [vmem:[#allocation31_spill] sm:$0xff] }
 0xbc1   : > { %v11595_v4 = vpop.eup %11594  ;;  %11596 = vrcp.f32 %v9770_v61  ;;  %v9771_v59 = vadd.f32 1.0, %v11593_v23  ;;  %v9662_v63 = vmul.f32 1.442695, %v9581_v46  ;;  %v7949_v29 = vadd.f32 %v16535_v28, %v15797_v1 }
 0xbc2   : > { %11598 = vrcp.f32 %v9768_v22  ;;  %v9769_v50 = vadd.f32 1.0, %v11595_v4  ;;  %v7952_v61 = vadd.f32 %v16536_v3, %v15797_v1  ;;  %v7960_v23 = vadd.f32 %v16537_v11, %v15797_v1 }
 0xbc3   : > { %11600 = vrcp.f32 %v9771_v59  ;;  %v8157_v4 = vmax.f32 %v7957_v24, 0.0 }
 0xbc4   : > { %11602 = vrcp.f32 %v9769_v50  ;;  %v8158_v10 = vmax.f32 %v7960_v23, 0.0 }
 0xbc5   : > { %11604 = vpow2.f32 %v9664_v40 }
 0xbc6   : > { %11606 = vpow2.f32 %v9660_v18  ;;  %v8155_v18 = vmax.f32 %v7949_v29, 0.0 }
 0xbc7   : > { %11608 = vpow2.f32 %v9666_v44  ;;  %v8156_v44 = vmax.f32 %v7952_v61, 0.0 }
 0xbc8   : > { %11610 = vpow2.f32 %v9662_v63 }
 0xbc9   : > { %v10849_v51 = vpop.f32.mrb[20].mxu0 }
 0xbca   : > { %v9398_v60 = vadd.f32 %v10849_v51, %v15777_v57  ;;  %v9389_v56 = vpop.f32.mrb[21].mxu0 }
 0xbcb   : > { %v11597_v12 = vpop.eup %11596  ;;  %v9390_v36 = vadd.f32 %v15777_v57, %v9389_v56  ;;  %v10850_v31 = vpop.f32.mrb[22].mxu0 }
 0xbcc   : > { %v11599_v13 = vpop.eup %11598  ;;  %v9901_v38 = vsel %vm9886_vm0, %v11597_v12, %v8153_v53  ;;  %v9586_v14 = vsub.f32 0.0, %v9398_v60  ;;  %v9401_v7 = vadd.f32 %v10850_v31, %v15777_v57  ;;  %v9392_v2 = vpop.f32.mrb[23].mxu0 }
 0xbcd   : > { %v11601_v55 = vpop.eup %11600  ;;  %9965 = vst [vmem:[%s15822_s16 + $0x70] sm:$0xff] %v9901_v38  ;;  %v9899_v54 = vsel %vm9886_vm0, %v11599_v13, %v8151_v25  ;;  %v9584_v35 = vsub.f32 0.0, %v9390_v36  ;;  %v9393_v33 = vadd.f32 %v15777_v57, %v9392_v2 }
 0xbce   : > { %v11603_v26 = vpop.eup %11602  ;;  %9963 = vst [vmem:[%s15822_s16 + $0x60] sm:$0xff] %v9899_v54  ;;  %v9902_v49 = vsel %vm9886_vm0, %v11601_v55, %v8154_v17  ;;  %v9672_v52 = vmul.f32 1.442695, %v9586_v14  ;;  %v9587_v62 = vsub.f32 0.0, %v9401_v7 }
 0xbcf   : > { %v11605_v20 = vpop.eup %11604  ;;  %9966 = vst [vmem:[%s15822_s16 + $0x78] sm:$0xff] %v9902_v49  ;;  %v9900_v39 = vsel %vm9886_vm0, %v11603_v26, %v8152_v37  ;;  %v9585_v48 = vsub.f32 0.0, %v9393_v33  ;;  %v9668_v27 = vmul.f32 1.442695, %v9584_v35  ;;  %v16538_v26 = vld [vmem:[#allocation38_spill] sm:$0xff] }
 0xbd0   : > { %v11607_v41 = vpop.eup %11606  ;;  %9964 = vst [vmem:[%s15822_s16 + $0x68] sm:$0xff] %v9900_v39  ;;  %v9774_v0 = vadd.f32 1.0, %v11605_v20  ;;  %11612 = vpow2.f32 %v9672_v52  ;;  %v9674_v42 = vmul.f32 1.442695, %v9587_v62  ;;  %v7973_v49 = vadd.f32 %v16538_v26, %v15797_v1  ;;  %v16539_v52 = vld [vmem:[#allocation32_spill] sm:$0xff] }
 0xbd1   : > { %v11609_v30 = vpop.eup %11608  ;;  %v9772_v15 = vadd.f32 1.0, %v11607_v41  ;;  %v9670_v21 = vmul.f32 1.442695, %v9585_v48  ;;  %v7965_v62 = vadd.f32 %v16539_v52, %v15797_v1  ;;  %v16540_v41 = vld [vmem:[#allocation37_spill] sm:$0xff]  ;;  %v16541_v48 = vld [vmem:[#allocation43_spill] sm:$0xff] }
 0xbd2   : > { %v11611_v8 = vpop.eup %11610  ;;  %11614 = vrcp.f32 %v9774_v0  ;;  %v9775_v9 = vadd.f32 1.0, %v11609_v30  ;;  %v8161_v20 = vmax.f32 %v7973_v49, 0.0  ;;  %v7968_v0 = vadd.f32 %v16540_v41, %v15797_v1 }
 0xbd3   : > { %11616 = vrcp.f32 %v9772_v15  ;;  %v9773_v16 = vadd.f32 1.0, %v11611_v8  ;;  %v7976_v30 = vadd.f32 %v16541_v48, %v15797_v1 }
 0xbd4   : > { %11618 = vrcp.f32 %v9775_v9  ;;  %v8160_v19 = vmax.f32 %v7968_v0, 0.0 }
 0xbd5   : > { %11620 = vrcp.f32 %v9773_v16  ;;  %v8162_v61 = vmax.f32 %v7976_v30, 0.0 }
 0xbd6   : > { %11622 = vpow2.f32 %v9668_v27 }
 0xbd7   : > { %11624 = vpow2.f32 %v9674_v42 }
 0xbd8   : > { %11626 = vpow2.f32 %v9670_v21  ;;  %v8159_v21 = vmax.f32 %v7965_v62, 0.0 }
 0xbd9   : > { %v10853_v22 = vpop.f32.mrb[24].mxu0 }
 0xbda   : > { %v11613_v46 = vpop.eup %11612  ;;  %v9414_v59 = vadd.f32 %v10853_v22, %v15777_v57  ;;  %v9405_v40 = vpop.f32.mrb[25].mxu0 }
 0xbdb   : > { %v9778_v63 = vadd.f32 1.0, %v11613_v46  ;;  %v9406_v58 = vadd.f32 %v15777_v57, %v9405_v40  ;;  %v10854_v34 = vpop.f32.mrb[26].mxu0 }
 0xbdc   : > { %v11615_v50 = vpop.eup %11614  ;;  %v9590_v32 = vsub.f32 0.0, %v9414_v59  ;;  %v9417_v45 = vadd.f32 %v10854_v34, %v15777_v57  ;;  %v9408_v47 = vpop.f32.mrb[27].mxu0 }
 0xbdd   : > { %v11617_v5 = vpop.eup %11616  ;;  %v9905_v43 = vsel %vm9886_vm0, %v11615_v50, %v8157_v4  ;;  %11628 = vrcp.f32 %v9778_v63  ;;  %v9588_v12 = vsub.f32 0.0, %v9406_v58  ;;  %v9409_v25 = vadd.f32 %v15777_v57, %v9408_v47 }
 0xbde   : > { %v11619_v53 = vpop.eup %11618  ;;  %9969 = vst [vmem:[%s15822_s16 + $0x90] sm:$0xff] %v9905_v43  ;;  %v9903_v51 = vsel %vm9886_vm0, %v11617_v5, %v8155_v18  ;;  %v9680_v13 = vmul.f32 1.442695, %v9590_v32  ;;  %v9591_v17 = vsub.f32 0.0, %v9417_v45 }
 0xbdf   : > { %v11621_v60 = vpop.eup %11620  ;;  %9967 = vst [vmem:[%s15822_s16 + $0x80] sm:$0xff] %v9903_v51  ;;  %v9906_v56 = vsel %vm9886_vm0, %v11619_v53, %v8158_v10  ;;  %v9676_v31 = vmul.f32 1.442695, %v9588_v12  ;;  %v9589_v55 = vsub.f32 0.0, %v9409_v25  ;;  %v16542_v12 = vld [vmem:[#allocation50_spill] sm:$0xff] }
 0xbe0   : > { %v11623_v38 = vpop.eup %11622  ;;  %9970 = vst [vmem:[%s15822_s16 + $0x98] sm:$0xff] %v9906_v56  ;;  %v9904_v36 = vsel %vm9886_vm0, %v11621_v60, %v8156_v44  ;;  %11630 = vpow2.f32 %v9680_v13  ;;  %v9682_v2 = vmul.f32 1.442695, %v9591_v17  ;;  %v7989_v25 = vadd.f32 %v16542_v12, %v15797_v1  ;;  %v16543_v60 = vld [vmem:[#allocation44_spill] sm:$0xff] }
 0xbe1   : > { %v11625_v37 = vpop.eup %11624  ;;  %9968 = vst [vmem:[%s15822_s16 + $0x88] sm:$0xff] %v9904_v36  ;;  %v9776_v54 = vadd.f32 1.0, %v11623_v38  ;;  %11632 = vpow2.f32 %v9676_v31  ;;  %v9678_v33 = vmul.f32 1.442695, %v9589_v55  ;;  %v7981_v56 = vadd.f32 %v16543_v60, %v15797_v1  ;;  %v16544_v36 = vld [vmem:[#allocation55_spill] sm:$0xff] }
 0xbe2   : > { %v11627_v14 = vpop.eup %11626  ;;  %v9779_v7 = vadd.f32 1.0, %v11625_v37  ;;  %v8165_v13 = vmax.f32 %v7989_v25, 0.0  ;;  %v7992_v31 = vadd.f32 %v16544_v36, %v15797_v1  ;;  %v16545_v37 = vld [vmem:[#allocation49_spill] sm:$0xff] }
 0xbe3   : > { %11634 = vrcp.f32 %v9776_v54  ;;  %v9777_v35 = vadd.f32 1.0, %v11627_v14  ;;  %v8163_v38 = vmax.f32 %v7981_v56, 0.0  ;;  %v7984_v54 = vadd.f32 %v16545_v37, %v15797_v1 }
 0xbe4   : > { %11636 = vrcp.f32 %v9779_v7 }
 0xbe5   : > { %11638 = vrcp.f32 %v9777_v35  ;;  %v8164_v0 = vmax.f32 %v7984_v54, 0.0 }
 0xbe6   : > { %11640 = vpow2.f32 %v9682_v2 }
 0xbe7   : > { %11642 = vpow2.f32 %v9678_v33  ;;  %v11629_v39 = vpop.eup %11628 }
 0xbe8   : > { %v9909_v15 = vsel %vm9886_vm0, %v11629_v39, %v8161_v20  ;;  %v8166_v20 = vmax.f32 %v7992_v31, 0.0 }
 0xbe9   : > { %9973 = vst [vmem:[%s15822_s16 + $0xb0] sm:$0xff] %v9909_v15  ;;  %v10857_v8 = vpop.f32.mrb[28].mxu0 }
 0xbea   : > { %v11631_v9 = vpop.eup %11630  ;;  %v9430_v27 = vadd.f32 %v10857_v8, %v15777_v57  ;;  %v9421_v16 = vpop.f32.mrb[29].mxu0 }
 0xbeb   : > { %v11633_v42 = vpop.eup %11632  ;;  %v9782_v24 = vadd.f32 1.0, %v11631_v9  ;;  %v9422_v28 = vadd.f32 %v15777_v57, %v9421_v16  ;;  %v10858_v29 = vpop.f32.mrb[30].mxu0 }
 0xbec   : > { %v9780_v11 = vadd.f32 1.0, %v11633_v42  ;;  %v9594_v23 = vsub.f32 0.0, %v9430_v27  ;;  %v9433_v22 = vadd.f32 %v10858_v29, %v15777_v57  ;;  %v9424_v46 = vpop.f32.mrb[31].mxu0 }
 0xbed   : > { %v11635_v3 = vpop.eup %11634  ;;  %11644 = vrcp.f32 %v9782_v24  ;;  %v9592_v40 = vsub.f32 0.0, %v9422_v28  ;;  %v9425_v50 = vadd.f32 %v15777_v57, %v9424_v46 }
 0xbee   : > { %v11637_v4 = vpop.eup %11636  ;;  %v9907_v59 = vsel %vm9886_vm0, %v11635_v3, %v8159_v21  ;;  %11646 = vrcp.f32 %v9780_v11  ;;  %v9688_v63 = vmul.f32 1.442695, %v9594_v23  ;;  %v9595_v58 = vsub.f32 0.0, %v9433_v22 }
 0xbef   : > { %v11639_v18 = vpop.eup %11638  ;;  %9971 = vst [vmem:[%s15822_s16 + $0xa0] sm:$0xff] %v9907_v59  ;;  %v9910_v44 = vsel %vm9886_vm0, %v11637_v4, %v8162_v61  ;;  %v9684_v10 = vmul.f32 1.442695, %v9592_v40  ;;  %v9593_v43 = vsub.f32 0.0, %v9425_v50  ;;  %v16546_v4 = vld [vmem:[#allocation62_spill] sm:$0xff]  ;;  %v16547_v40 = vld [vmem:[#allocation56_spill] sm:$0xff] }
 0xbf0   : > { %v11641_v34 = vpop.eup %11640  ;;  %9974 = vst [vmem:[%s15822_s16 + $0xb8] sm:$0xff] %v9910_v44  ;;  %v9908_v5 = vsel %vm9886_vm0, %v11639_v18, %v8160_v19  ;;  %11648 = vpow2.f32 %v9688_v63  ;;  %v9690_v47 = vmul.f32 1.442695, %v9595_v58  ;;  %v8005_v59 = vadd.f32 %v16546_v4, %v15797_v1  ;;  %v16548_v44 = vld [vmem:[#allocation66_spill] sm:$0xff] }
 0xbf1   : > { %v11643_v32 = vpop.eup %11642  ;;  %9972 = vst [vmem:[%s15822_s16 + $0xa8] sm:$0xff] %v9908_v5  ;;  %v9783_v45 = vadd.f32 1.0, %v11641_v34  ;;  %11650 = vpow2.f32 %v9684_v10  ;;  %v9686_v51 = vmul.f32 1.442695, %v9593_v43  ;;  %v7997_v50 = vadd.f32 %v16547_v40, %v15797_v1  ;;  %v16549_v5 = vld [vmem:[#allocation61_spill] sm:$0xff] }
 0xbf2   : > { %v9781_v53 = vadd.f32 1.0, %v11643_v32  ;;  %v8169_v18 = vmax.f32 %v8005_v59, 0.0  ;;  %v8008_v63 = vadd.f32 %v16548_v44, %v15797_v1  ;;  %v8000_v10 = vadd.f32 %v16549_v5, %v15797_v1 }
 0xbf3   : > { %11652 = vrcp.f32 %v9783_v45  ;;  %v8167_v34 = vmax.f32 %v7997_v50, 0.0 }
 0xbf4   : > { %11654 = vrcp.f32 %v9781_v53  ;;  %v8168_v56 = vmax.f32 %v8000_v10, 0.0 }
 0xbf5   : > { %11656 = vpow2.f32 %v9690_v47 }
 0xbf6   : > { %11658 = vpow2.f32 %v9686_v51  ;;  %v8170_v51 = vmax.f32 %v8008_v63, 0.0 }
 0xbf7   : > { %v11645_v17 = vpop.eup %11644 }
 0xbf8   : > { %v11647_v55 = vpop.eup %11646  ;;  %v9913_v14 = vsel %vm9886_vm0, %v11645_v17, %v8165_v13 }
 0xbf9   : > { %9977 = vst [vmem:[%s15822_s16 + $0xd0] sm:$0xff] %v9913_v14  ;;  %v9911_v7 = vsel %vm9886_vm0, %v11647_v55, %v8163_v38  ;;  %v10861_v2 = vpop.f32.mrb[32].mxu0 }
 0xbfa   : > { %v11649_v26 = vpop.eup %11648  ;;  %9975 = vst [vmem:[%s15822_s16 + $0xc0] sm:$0xff] %v9911_v7  ;;  %v9446_v49 = vadd.f32 %v10861_v2, %v15777_v57  ;;  %v9437_v35 = vpop.f32.mrb[33].mxu0 }
 0xbfb   : > { %v11651_v33 = vpop.eup %11650  ;;  %v9786_v39 = vadd.f32 1.0, %v11649_v26  ;;  %v9438_v52 = vadd.f32 %v15777_v57, %v9437_v35  ;;  %v10862_v62 = vpop.f32.mrb[34].mxu0 }
 0xbfc   : > { %v9784_v48 = vadd.f32 1.0, %v11651_v33  ;;  %v9598_v30 = vsub.f32 0.0, %v9446_v49  ;;  %v9449_v15 = vadd.f32 %v10862_v62, %v15777_v57  ;;  %v9440_v8 = vpop.f32.mrb[35].mxu0 }
 0xbfd   : > { %v11653_v41 = vpop.eup %11652  ;;  %11660 = vrcp.f32 %v9786_v39  ;;  %v9596_v16 = vsub.f32 0.0, %v9438_v52  ;;  %v9441_v42 = vadd.f32 %v15777_v57, %v9440_v8 }
 0xbfe   : > { %v11655_v9 = vpop.eup %11654  ;;  %v9914_v27 = vsel %vm9886_vm0, %v11653_v41, %v8166_v20  ;;  %11662 = vrcp.f32 %v9784_v48  ;;  %v9696_v24 = vmul.f32 1.442695, %v9598_v30  ;;  %v9599_v28 = vsub.f32 0.0, %v9449_v15  ;;  %v16550_v30 = vld [vmem:[#allocation71_spill] sm:$0xff] }
 0xbff   : > { %v11657_v21 = vpop.eup %11656  ;;  %9978 = vst [vmem:[%s15822_s16 + $0xd8] sm:$0xff] %v9914_v27  ;;  %v9912_v19 = vsel %vm9886_vm0, %v11655_v9, %v8164_v0  ;;  %v9692_v61 = vmul.f32 1.442695, %v9596_v16  ;;  %v9597_v11 = vsub.f32 0.0, %v9441_v42  ;;  %v8021_v15 = vadd.f32 %v16550_v30, %v15797_v1  ;;  %v16552_v16 = vld [vmem:[#allocation72_spill] sm:$0xff] }
 0xc00   : > { %v11659_v29 = vpop.eup %11658  ;;  %9976 = vst [vmem:[%s15822_s16 + $0xc8] sm:$0xff] %v9912_v19  ;;  %v9787_v3 = vadd.f32 1.0, %v11657_v21  ;;  %11664 = vpow2.f32 %v9696_v24  ;;  %v9698_v22 = vmul.f32 1.442695, %v9599_v28  ;;  %v8024_v42 = vadd.f32 %v16552_v16, %v15797_v1  ;;  %v16553_v19 = vld [vmem:[#allocation70_spill] sm:$0xff] }
 0xc01   : > { %v9785_v23 = vadd.f32 1.0, %v11659_v29  ;;  %v9694_v46 = vmul.f32 1.442695, %v9597_v11  ;;  %v8173_v27 = vmax.f32 %v8021_v15, 0.0  ;;  %v8016_v24 = vadd.f32 %v16553_v19, %v15797_v1 }
 0xc02   : > { %11666 = vrcp.f32 %v9787_v3  ;;  %v8174_v11 = vmax.f32 %v8024_v42, 0.0 }
 0xc03   : > { %11668 = vrcp.f32 %v9785_v23  ;;  %v16022_v23 = vld [vmem:[%s16211_s11] ss:$0 sm:$0xff]  ;;  %v8172_v59 = vmax.f32 %v8016_v24, 0.0 }
 0xc04   : > { %11670 = vpow2.f32 %v9692_v61 }
 0xc05   : > { %11672 = vpow2.f32 %v9698_v22 }
 0xc06   : > { %11674 = vpow2.f32 %v9694_v46 }
 0xc07   : > { %v11661_v58 = vpop.eup %11660 }
 0xc08   : > { %v11663_v43 = vpop.eup %11662  ;;  %v9917_v32 = vsel %vm9886_vm0, %v11661_v58, %v8169_v18 }
 0xc09   : > { %9981 = vst [vmem:[%s15822_s16 + $0xf0] sm:$0xff] %v9917_v32  ;;  %v9915_v45 = vsel %vm9886_vm0, %v11663_v43, %v8167_v34  ;;  %v10865_v47 = vpop.f32.mrb[36].mxu0 }
 0xc0a   : > { %v11665_v53 = vpop.eup %11664  ;;  %9979 = vst [vmem:[%s15822_s16 + $0xe0] sm:$0xff] %v9915_v45  ;;  %v9462_v12 = vadd.f32 %v10865_v47, %v15777_v57  ;;  %v9453_v25 = vpop.f32.mrb[37].mxu0 }
 0xc0b   : > { %v9790_v13 = vadd.f32 1.0, %v11665_v53  ;;  %v9454_v17 = vadd.f32 %v15777_v57, %v9453_v25  ;;  %v10866_v38 = vpop.f32.mrb[38].mxu0 }
 0xc0c   : > { %v11667_v60 = vpop.eup %11666  ;;  %v9602_v55 = vsub.f32 0.0, %v9462_v12  ;;  %v9465_v37 = vadd.f32 %v10866_v38, %v15777_v57  ;;  %v9456_v54 = vpop.f32.mrb[39].mxu0 }
 0xc0d   : > { %v11669_v36 = vpop.eup %11668  ;;  %v9918_v31 = vsel %vm9886_vm0, %v11667_v60, %v8170_v51  ;;  %11676 = vrcp.f32 %v9790_v13  ;;  %v9600_v2 = vsub.f32 0.0, %v9454_v17  ;;  %v9457_v26 = vadd.f32 %v15777_v57, %v9456_v54  ;;  %v16551_v57 = vld [vmem:[#allocation67_spill] sm:$0xff] }
 0xc0e   : > { %v11671_v14 = vpop.eup %11670  ;;  %9982 = vst [vmem:[%s15822_s16 + $0xf8] sm:$0xff] %v9918_v31  ;;  %v9916_v7 = vsel %vm9886_vm0, %v11669_v36, %v8168_v56  ;;  %v9603_v33 = vsub.f32 0.0, %v9465_v37  ;;  %v9704_v52 = vmul.f32 1.442695, %v9602_v55  ;;  %v8013_v9 = vadd.f32 %v16551_v57, %v15797_v1  ;;  %v16554_v37 = vld [vmem:[#allocation75_spill] sm:$0xff] }
 0xc0f   : > { %v11673_v49 = vpop.eup %11672  ;;  %9980 = vst [vmem:[%s15822_s16 + $0xe8] sm:$0xff] %v9916_v7  ;;  %v9788_v35 = vadd.f32 1.0, %v11671_v14  ;;  %v9601_v62 = vsub.f32 0.0, %v9457_v26  ;;  %v9700_v0 = vmul.f32 1.442695, %v9600_v2  ;;  %v8037_v54 = vadd.f32 %v16554_v37, %v15797_v1  ;;  %v16555_v14 = vld [vmem:[#allocation73_spill] sm:$0xff] }
 0xc10   : > { %v11675_v20 = vpop.eup %11674  ;;  %v9791_v39 = vadd.f32 1.0, %v11673_v49  ;;  %v9706_v48 = vmul.f32 1.442695, %v9603_v33  ;;  %v8171_v29 = vmax.f32 %v8013_v9, 0.0  ;;  %v8029_v7 = vadd.f32 %v16555_v14, %v15797_v1  ;;  %v16556_v2 = vld [vmem:[#allocation76_spill] sm:$0xff]  ;;  %v16557_v49 = vld [vmem:[#allocation74_spill] sm:$0xff] }
 0xc11   : > { %11678 = vrcp.f32 %v9788_v35  ;;  %v9789_v41 = vadd.f32 1.0, %v11675_v20  ;;  %v9702_v8 = vmul.f32 1.442695, %v9601_v62  ;;  %v8040_v26 = vadd.f32 %v16556_v2, %v15797_v1 }
 0xc12   : > { %11680 = vrcp.f32 %v9791_v39  ;;  %v8032_v35 = vadd.f32 %v16557_v49, %v15797_v1  ;;  %v8177_v33 = vmax.f32 %v8037_v54, 0.0 }
 0xc13   : > { %11682 = vrcp.f32 %v9789_v41 }
 0xc14   : > { %11684 = vpow2.f32 %v9704_v52  ;;  %v8175_v52 = vmax.f32 %v8029_v7, 0.0  ;;  %v8176_v9 = vmax.f32 %v8032_v35, 0.0 }
 0xc15   : > { %11686 = vpow2.f32 %v9700_v0 }
 0xc16   : > { %11688 = vpow2.f32 %v9706_v48  ;;  %v8178_v48 = vmax.f32 %v8040_v26, 0.0 }
 0xc17   : > { %11690 = vpow2.f32 %v9702_v8  ;;  %v11677_v21 = vpop.eup %11676 }
 0xc18   : > { %v9921_v28 = vsel %vm9886_vm0, %v11677_v21, %v8173_v27 }
 0xc19   : > { %9985 = vst [vmem:[%s15822_s16 + $0x110] sm:$0xff] %v9921_v28  ;;  %v10869_v3 = vpop.f32.mrb[40].mxu0 }
 0xc1a   : > { %v9478_v22 = vadd.f32 %v16022_v23, %v10869_v3  ;;  %v9469_v46 = vpop.f32.mrb[41].mxu0 }
 0xc1b   : > { %v11679_v61 = vpop.eup %11678  ;;  %v9470_v50 = vadd.f32 %v16022_v23, %v9469_v46  ;;  %v10870_v18 = vpop.f32.mrb[42].mxu0 }
 0xc1c   : > { %v11681_v4 = vpop.eup %11680  ;;  %v9919_v40 = vsel %vm9886_vm0, %v11679_v61, %v8171_v29  ;;  %v9606_v58 = vsub.f32 0.0, %v9478_v22  ;;  %v9481_v34 = vadd.f32 %v16022_v23, %v10870_v18  ;;  %v9472_v5 = vpop.f32.mrb[43].mxu0 }
 0xc1d   : > { %v11683_v44 = vpop.eup %11682  ;;  %9983 = vst [vmem:[%s15822_s16 + $0x100] sm:$0xff] %v9919_v40  ;;  %v9922_v63 = vsel %vm9886_vm0, %v11681_v4, %v8174_v11  ;;  %v9604_v32 = vsub.f32 0.0, %v9470_v50  ;;  %v9473_v45 = vadd.f32 %v16022_v23, %v9472_v5 }
 0xc1e   : > { %v11685_v10 = vpop.eup %11684  ;;  %9986 = vst [vmem:[%s15822_s16 + $0x118] sm:$0xff] %v9922_v63  ;;  %v9920_v43 = vsel %vm9886_vm0, %v11683_v44, %v8172_v59  ;;  %v9607_v51 = vsub.f32 0.0, %v9481_v34  ;;  %v9712_v17 = vmul.f32 1.442695, %v9606_v58 }
 0xc1f   : > { %v11687_v47 = vpop.eup %11686  ;;  %9984 = vst [vmem:[%s15822_s16 + $0x108] sm:$0xff] %v9920_v43  ;;  %v9794_v53 = vadd.f32 1.0, %v11685_v10  ;;  %v9605_v60 = vsub.f32 0.0, %v9473_v45  ;;  %v9708_v36 = vmul.f32 1.442695, %v9604_v32  ;;  %v16558_v10 = vld [vmem:[#allocation79_spill] sm:$0xff] }
 0xc20   : > { %v11689_v12 = vpop.eup %11688  ;;  %v9792_v25 = vadd.f32 1.0, %v11687_v47  ;;  %v9714_v31 = vmul.f32 1.442695, %v9607_v51  ;;  %v8053_v43 = vadd.f32 %v16558_v10, %v15797_v1  ;;  %v16559_v32 = vld [vmem:[#allocation77_spill] sm:$0xff]  ;;  %v16560_v47 = vld [vmem:[#allocation78_spill] sm:$0xff]  ;;  %v16561_v51 = vld [vmem:[#allocation80_spill] sm:$0xff] }
 0xc21   : > { %v11691_v56 = vpop.eup %11690  ;;  %11692 = vrcp.f32 %v9794_v53  ;;  %v9795_v13 = vadd.f32 1.0, %v11689_v12  ;;  %v9710_v55 = vmul.f32 1.442695, %v9605_v60  ;;  %v8045_v45 = vadd.f32 %v16559_v32, %v15797_v1 }
 0xc22   : > { %11694 = vrcp.f32 %v9792_v25  ;;  %v9793_v38 = vadd.f32 1.0, %v11691_v56  ;;  %v8048_v53 = vadd.f32 %v16560_v47, %v15797_v1  ;;  %v8056_v12 = vadd.f32 %v16561_v51, %v15797_v1 }
 0xc23   : > { %11696 = vrcp.f32 %v9795_v13  ;;  %v8181_v56 = vmax.f32 %v8053_v43, 0.0 }
 0xc24   : > { %11698 = vrcp.f32 %v9793_v38  ;;  %v8182_v7 = vmax.f32 %v8056_v12, 0.0 }
 0xc25   : > { %11700 = vpow2.f32 %v9712_v17 }
 0xc26   : > { %11702 = vpow2.f32 %v9708_v36  ;;  %v8179_v36 = vmax.f32 %v8045_v45, 0.0 }
 0xc27   : > { %11704 = vpow2.f32 %v9714_v31  ;;  %v8180_v31 = vmax.f32 %v8048_v53, 0.0 }
 0xc28   : > { %11706 = vpow2.f32 %v9710_v55 }
 0xc29   : > { %v10873_v20 = vpop.f32.mrb[44].mxu0 }
 0xc2a   : > { %v9494_v62 = vadd.f32 %v16022_v23, %v10873_v20  ;;  %v9485_v41 = vpop.f32.mrb[45].mxu0 }
 0xc2b   : > { %v11693_v39 = vpop.eup %11692  ;;  %v9486_v15 = vadd.f32 %v16022_v23, %v9485_v41  ;;  %v10874_v8 = vpop.f32.mrb[46].mxu0 }
 0xc2c   : > { %v11695_v0 = vpop.eup %11694  ;;  %v9925_v30 = vsel %vm9886_vm0, %v11693_v39, %v8177_v33  ;;  %v9610_v16 = vsub.f32 0.0, %v9494_v62  ;;  %v9497_v42 = vadd.f32 %v16022_v23, %v10874_v8  ;;  %v9488_v21 = vpop.f32.mrb[47].mxu0 }
 0xc2d   : > { %v11697_v57 = vpop.eup %11696  ;;  %9989 = vst [vmem:[%s15822_s16 + $0x130] sm:$0xff] %v9925_v30  ;;  %v9923_v27 = vsel %vm9886_vm0, %v11695_v0, %v8175_v52  ;;  %v9608_v28 = vsub.f32 0.0, %v9486_v15  ;;  %v9489_v29 = vadd.f32 %v16022_v23, %v9488_v21 }
 0xc2e   : > { %v11699_v19 = vpop.eup %11698  ;;  %9987 = vst [vmem:[%s15822_s16 + $0x120] sm:$0xff] %v9923_v27  ;;  %v9926_v24 = vsel %vm9886_vm0, %v11697_v57, %v8178_v48  ;;  %v9720_v11 = vmul.f32 1.442695, %v9610_v16  ;;  %v9611_v22 = vsub.f32 0.0, %v9497_v42 }
 0xc2f   : > { %v11701_v3 = vpop.eup %11700  ;;  %9990 = vst [vmem:[%s15822_s16 + $0x138] sm:$0xff] %v9926_v24  ;;  %v9924_v61 = vsel %vm9886_vm0, %v11699_v19, %v8176_v9  ;;  %v9609_v59 = vsub.f32 0.0, %v9489_v29  ;;  %v9716_v63 = vmul.f32 1.442695, %v9608_v28  ;;  %v16562_v19 = vld [vmem:[#allocation83_spill] sm:$0xff] }
 0xc30   : > { %v11703_v46 = vpop.eup %11702  ;;  %9988 = vst [vmem:[%s15822_s16 + $0x128] sm:$0xff] %v9924_v61  ;;  %v9798_v4 = vadd.f32 1.0, %v11701_v3  ;;  %11708 = vpow2.f32 %v9720_v11  ;;  %v9722_v34 = vmul.f32 1.442695, %v9611_v22  ;;  %v8069_v24 = vadd.f32 %v16562_v19, %v15797_v1  ;;  %v16563_v11 = vld [vmem:[#allocation81_spill] sm:$0xff] }
 0xc31   : > { %v11705_v40 = vpop.eup %11704  ;;  %v9796_v50 = vadd.f32 1.0, %v11703_v46  ;;  %v9718_v5 = vmul.f32 1.442695, %v9609_v59  ;;  %v8061_v22 = vadd.f32 %v16563_v11, %v15797_v1  ;;  %v16564_v46 = vld [vmem:[#allocation82_spill] sm:$0xff]  ;;  %v16565_v59 = vld [vmem:[#allocation84_spill] sm:$0xff] }
 0xc32   : > { %v11707_v18 = vpop.eup %11706  ;;  %11710 = vrcp.f32 %v9798_v4  ;;  %v9799_v44 = vadd.f32 1.0, %v11705_v40  ;;  %v8185_v3 = vmax.f32 %v8069_v24, 0.0  ;;  %v8064_v4 = vadd.f32 %v16564_v46, %v15797_v1 }
 0xc33   : > { %11712 = vrcp.f32 %v9796_v50  ;;  %v9797_v58 = vadd.f32 1.0, %v11707_v18  ;;  %v8072_v40 = vadd.f32 %v16565_v59, %v15797_v1 }
 0xc34   : > { %11714 = vrcp.f32 %v9799_v44  ;;  %v8184_v10 = vmax.f32 %v8064_v4, 0.0 }
 0xc35   : > { %11716 = vrcp.f32 %v9797_v58  ;;  %v8186_v53 = vmax.f32 %v8072_v40, 0.0 }
 0xc36   : > { %11718 = vpow2.f32 %v9716_v63 }
 0xc37   : > { %11720 = vpow2.f32 %v9722_v34 }
 0xc38   : > { %11722 = vpow2.f32 %v9718_v5  ;;  %v8183_v5 = vmax.f32 %v8061_v22, 0.0 }
 0xc39   : > { %v10877_v25 = vpop.f32.mrb[48].mxu0 }
 0xc3a   : > { %v11709_v60 = vpop.eup %11708  ;;  %v9510_v13 = vadd.f32 %v16022_v23, %v10877_v25  ;;  %v9501_v17 = vpop.f32.mrb[49].mxu0 }
 0xc3b   : > { %v9802_v55 = vadd.f32 1.0, %v11709_v60  ;;  %v9502_v37 = vadd.f32 %v16022_v23, %v9501_v17  ;;  %v10878_v54 = vpop.f32.mrb[50].mxu0 }
 0xc3c   : > { %v11711_v38 = vpop.eup %11710  ;;  %v9614_v26 = vsub.f32 0.0, %v9510_v13  ;;  %v9513_v49 = vadd.f32 %v16022_v23, %v10878_v54  ;;  %v9504_v35 = vpop.f32.mrb[51].mxu0 }
 0xc3d   : > { %v11713_v14 = vpop.eup %11712  ;;  %v9929_v2 = vsel %vm9886_vm0, %v11711_v38, %v8181_v56  ;;  %11724 = vrcp.f32 %v9802_v55  ;;  %v9612_v39 = vsub.f32 0.0, %v9502_v37  ;;  %v9505_v52 = vadd.f32 %v16022_v23, %v9504_v35 }
 0xc3e   : > { %v11715_v33 = vpop.eup %11714  ;;  %9993 = vst [vmem:[%s15822_s16 + $0x150] sm:$0xff] %v9929_v2  ;;  %v9927_v20 = vsel %vm9886_vm0, %v11713_v14, %v8179_v36  ;;  %v9728_v0 = vmul.f32 1.442695, %v9614_v26  ;;  %v9615_v48 = vsub.f32 0.0, %v9513_v49 }
 0xc3f   : > { %v11717_v62 = vpop.eup %11716  ;;  %9991 = vst [vmem:[%s15822_s16 + $0x140] sm:$0xff] %v9927_v20  ;;  %v9930_v41 = vsel %vm9886_vm0, %v11715_v33, %v8182_v7  ;;  %v9724_v8 = vmul.f32 1.442695, %v9612_v39  ;;  %v9613_v57 = vsub.f32 0.0, %v9505_v52  ;;  %v16566_v39 = vld [vmem:[#allocation87_spill] sm:$0xff] }
 0xc40   : > { %v11719_v30 = vpop.eup %11718  ;;  %9994 = vst [vmem:[%s15822_s16 + $0x158] sm:$0xff] %v9930_v41  ;;  %v9928_v15 = vsel %vm9886_vm0, %v11717_v62, %v8180_v31  ;;  %11726 = vpow2.f32 %v9728_v0  ;;  %v9730_v21 = vmul.f32 1.442695, %v9615_v48  ;;  %v8085_v52 = vadd.f32 %v16566_v39, %v15797_v1  ;;  %v16567_v62 = vld [vmem:[#allocation85_spill] sm:$0xff] }
 0xc41   : > { %v11721_v9 = vpop.eup %11720  ;;  %9992 = vst [vmem:[%s15822_s16 + $0x148] sm:$0xff] %v9928_v15  ;;  %v9800_v27 = vadd.f32 1.0, %v11719_v30  ;;  %11728 = vpow2.f32 %v9724_v8  ;;  %v9726_v29 = vmul.f32 1.442695, %v9613_v57  ;;  %v8077_v41 = vadd.f32 %v16567_v62, %v15797_v1  ;;  %v16568_v15 = vld [vmem:[#allocation88_spill] sm:$0xff] }
 0xc42   : > { %v11723_v16 = vpop.eup %11722  ;;  %v9803_v42 = vadd.f32 1.0, %v11721_v9  ;;  %v8189_v0 = vmax.f32 %v8085_v52, 0.0  ;;  %v8088_v8 = vadd.f32 %v16568_v15, %v15797_v1  ;;  %v16569_v9 = vld [vmem:[#allocation86_spill] sm:$0xff] }
 0xc43   : > { %11730 = vrcp.f32 %v9800_v27  ;;  %v9801_v28 = vadd.f32 1.0, %v11723_v16  ;;  %v8187_v30 = vmax.f32 %v8077_v41, 0.0  ;;  %v8080_v27 = vadd.f32 %v16569_v9, %v15797_v1 }
 0xc44   : > { %11732 = vrcp.f32 %v9803_v42 }
 0xc45   : > { %11734 = vrcp.f32 %v9801_v28  ;;  %v8188_v4 = vmax.f32 %v8080_v27, 0.0 }
 0xc46   : > { %11736 = vpow2.f32 %v9730_v21 }
 0xc47   : > { %11738 = vpow2.f32 %v9726_v29  ;;  %v11725_v61 = vpop.eup %11724 }
 0xc48   : > { %v9933_v50 = vsel %vm9886_vm0, %v11725_v61, %v8185_v3  ;;  %v8190_v3 = vmax.f32 %v8088_v8, 0.0 }
 0xc49   : > { %9997 = vst [vmem:[%s15822_s16 + $0x170] sm:$0xff] %v9933_v50  ;;  %v10881_v18 = vpop.f32.mrb[52].mxu0 }
 0xc4a   : > { %v11727_v44 = vpop.eup %11726  ;;  %v9526_v63 = vadd.f32 %v16022_v23, %v10881_v18  ;;  %v9517_v58 = vpop.f32.mrb[53].mxu0 }
 0xc4b   : > { %v11729_v34 = vpop.eup %11728  ;;  %v9806_v43 = vadd.f32 1.0, %v11727_v44  ;;  %v9518_v32 = vadd.f32 %v16022_v23, %v9517_v58  ;;  %v10882_v45 = vpop.f32.mrb[54].mxu0 }
 0xc4c   : > { %v9804_v51 = vadd.f32 1.0, %v11729_v34  ;;  %v9618_v12 = vsub.f32 0.0, %v9526_v63  ;;  %v9529_v25 = vadd.f32 %v16022_v23, %v10882_v45  ;;  %v9520_v60 = vpop.f32.mrb[55].mxu0 }
 0xc4d   : > { %v11731_v47 = vpop.eup %11730  ;;  %11740 = vrcp.f32 %v9806_v43  ;;  %v9616_v17 = vsub.f32 0.0, %v9518_v32  ;;  %v9521_v38 = vadd.f32 %v16022_v23, %v9520_v60 }
 0xc4e   : > { %v11733_v56 = vpop.eup %11732  ;;  %v9931_v13 = vsel %vm9886_vm0, %v11731_v47, %v8183_v5  ;;  %11742 = vrcp.f32 %v9804_v51  ;;  %v9736_v55 = vmul.f32 1.442695, %v9618_v12  ;;  %v9619_v37 = vsub.f32 0.0, %v9529_v25 }
 0xc4f   : > { %v11735_v36 = vpop.eup %11734  ;;  %9995 = vst [vmem:[%s15822_s16 + $0x160] sm:$0xff] %v9931_v13  ;;  %v9934_v31 = vsel %vm9886_vm0, %v11733_v56, %v8186_v53  ;;  %v9732_v7 = vmul.f32 1.442695, %v9616_v17  ;;  %v9617_v2 = vsub.f32 0.0, %v9521_v38  ;;  %v16570_v56 = vld [vmem:[#allocation93_spill] sm:$0xff] }
 0xc50   : > { %v11737_v54 = vpop.eup %11736  ;;  %9998 = vst [vmem:[%s15822_s16 + $0x178] sm:$0xff] %v9934_v31  ;;  %v9932_v14 = vsel %vm9886_vm0, %v11735_v36, %v8184_v10  ;;  %11744 = vpow2.f32 %v9736_v55  ;;  %v9738_v35 = vmul.f32 1.442695, %v9619_v37  ;;  %v8101_v13 = vadd.f32 %v16570_v56, %v15797_v1  ;;  %v16571_v17 = vld [vmem:[#allocation89_spill] sm:$0xff]  ;;  %v16572_v31 = vld [vmem:[#allocation98_spill] sm:$0xff] }
 0xc51   : > { %v11739_v26 = vpop.eup %11738  ;;  %9996 = vst [vmem:[%s15822_s16 + $0x168] sm:$0xff] %v9932_v14  ;;  %v9807_v49 = vadd.f32 1.0, %v11737_v54  ;;  %11746 = vpow2.f32 %v9732_v7  ;;  %v9734_v20 = vmul.f32 1.442695, %v9617_v2  ;;  %v8093_v38 = vadd.f32 %v16571_v17, %v15797_v1  ;;  %v16573_v14 = vld [vmem:[#allocation92_spill] sm:$0xff] }
 0xc52   : > { %v9805_v33 = vadd.f32 1.0, %v11739_v26  ;;  %v8193_v36 = vmax.f32 %v8101_v13, 0.0  ;;  %v8104_v55 = vadd.f32 %v16572_v31, %v15797_v1  ;;  %v8096_v7 = vadd.f32 %v16573_v14, %v15797_v1 }
 0xc53   : > { %11748 = vrcp.f32 %v9807_v49  ;;  %v8191_v54 = vmax.f32 %v8093_v38, 0.0 }
 0xc54   : > { %11750 = vrcp.f32 %v9805_v33  ;;  %v8194_v33 = vmax.f32 %v8104_v55, 0.0  ;;  %v8192_v39 = vmax.f32 %v8096_v7, 0.0  ;;  %v16578_v7 = vld [vmem:[#allocation36_spill] sm:$0xff] }
 0xc55   : > { %11752 = vpow2.f32 %v9738_v35 }
 0xc56   : > { %11754 = vpow2.f32 %v9734_v20 }
 0xc57   : > { %v11741_v48 = vpop.eup %11740 }
 0xc58   : > { %v11743_v57 = vpop.eup %11742  ;;  %v9937_v16 = vsel %vm9886_vm0, %v11741_v48, %v8189_v0 }
 0xc59   : > { %10001 = vst [vmem:[%s15822_s16 + $0x190] sm:$0xff] %v9937_v16  ;;  %v9935_v42 = vsel %vm9886_vm0, %v11743_v57, %v8187_v30  ;;  %v10885_v21 = vpop.f32.mrb[56].mxu0 }
 0xc5a   : > { %v11745_v19 = vpop.eup %11744  ;;  %9999 = vst [vmem:[%s15822_s16 + $0x180] sm:$0xff] %v9935_v42  ;;  %v9542_v24 = vadd.f32 %v16022_v23, %v10885_v21  ;;  %v9533_v28 = vpop.f32.mrb[57].mxu0 }
 0xc5b   : > { %v11747_v29 = vpop.eup %11746  ;;  %v9810_v61 = vadd.f32 1.0, %v11745_v19  ;;  %v9534_v11 = vadd.f32 %v16022_v23, %v9533_v28  ;;  %v10886_v22 = vpop.f32.mrb[58].mxu0 }
 0xc5c   : > { %v9808_v59 = vadd.f32 1.0, %v11747_v29  ;;  %v9622_v40 = vsub.f32 0.0, %v9542_v24  ;;  %v9545_v50 = vadd.f32 %v16022_v23, %v10886_v22  ;;  %v9536_v18 = vpop.f32.mrb[59].mxu0 }
 0xc5d   : > { %v11749_v46 = vpop.eup %11748  ;;  %11756 = vrcp.f32 %v9810_v61  ;;  %v9620_v58 = vsub.f32 0.0, %v9534_v11  ;;  %v9537_v34 = vadd.f32 %v16022_v23, %v9536_v18 }
 0xc5e   : > { %v11751_v44 = vpop.eup %11750  ;;  %v9938_v63 = vsel %vm9886_vm0, %v11749_v46, %v8190_v3  ;;  %11758 = vrcp.f32 %v9808_v59  ;;  %v9744_v43 = vmul.f32 1.442695, %v9622_v40  ;;  %v9623_v32 = vsub.f32 0.0, %v9545_v50  ;;  %v16574_v59 = vld [vmem:[#allocation18_spill] sm:$0xff] }
 0xc5f   : > { %v11753_v5 = vpop.eup %11752  ;;  %10002 = vst [vmem:[%s15822_s16 + $0x198] sm:$0xff] %v9938_v63  ;;  %v9936_v10 = vsel %vm9886_vm0, %v11751_v44, %v8188_v4  ;;  %v9740_v53 = vmul.f32 1.442695, %v9620_v58  ;;  %v9621_v51 = vsub.f32 0.0, %v9537_v34  ;;  %v8117_v40 = vadd.f32 %v16574_v59, %v15797_v1  ;;  %v16575_v44 = vld [vmem:[#allocation99_spill] sm:$0xff]  ;;  %v16576_v58 = vld [vmem:[#allocation24_spill] sm:$0xff] }
 0xc60   : > { %v11755_v45 = vpop.eup %11754  ;;  %10000 = vst [vmem:[%s15822_s16 + $0x188] sm:$0xff] %v9936_v10  ;;  %v9811_v47 = vadd.f32 1.0, %v11753_v5  ;;  %11760 = vpow2.f32 %v9744_v43  ;;  %v9746_v25 = vmul.f32 1.442695, %v9623_v32  ;;  %v8109_v63 = vadd.f32 %v16575_v44, %v15797_v1  ;;  %v16577_v10 = vld [vmem:[#allocation100_spill] sm:$0xff] }
 0xc61   : > { %v9809_v12 = vadd.f32 1.0, %v11755_v45  ;;  %v9742_v60 = vmul.f32 1.442695, %v9621_v51  ;;  %v8120_v34 = vadd.f32 %v16576_v58, %v15797_v1  ;;  %v8112_v43 = vadd.f32 %v16577_v10, %v15797_v1 }
 0xc62   : > { %11762 = vrcp.f32 %v9811_v47  ;;  %v8195_v45 = vmax.f32 %v8109_v63, 0.0 }
 0xc63   : > { %11764 = vrcp.f32 %v9809_v12  ;;  %v8196_v12 = vmax.f32 %v8112_v43, 0.0 }
 0xc64   : > { %11766 = vpow2.f32 %v9740_v53  ;;  %v8198_v53 = vmax.f32 %v8120_v34, 0.0 }
 0xc65   : > { %11768 = vpow2.f32 %v9746_v25 }
 0xc66   : > { %11770 = vpow2.f32 %v9742_v60 }
 0xc67   : > { %v11757_v37 = vpop.eup %11756 }
 0xc68   : > { %v11759_v2 = vpop.eup %11758  ;;  %v9941_v26 = vsel %vm9886_vm0, %v11757_v37, %v8193_v36 }
 0xc69   : > { %10005 = vst [vmem:[%s15822_s16 + $0x1b0] sm:$0xff] %v9941_v26  ;;  %v9939_v49 = vsel %vm9886_vm0, %v11759_v2, %v8191_v54  ;;  %v8133_v2 = vadd.f32 %v16578_v7, %v15797_v1  ;;  %v16579_v26 = vld [vmem:[#allocation21_spill] sm:$0xff] }
 0xc6a   : > { %v11761_v35 = vpop.eup %11760  ;;  %10003 = vst [vmem:[%s15822_s16 + $0x1a0] sm:$0xff] %v9939_v49  ;;  %v8125_v49 = vadd.f32 %v16579_v26, %v15797_v1 }
 0xc6b   : > { %v9814_v52 = vadd.f32 1.0, %v11761_v35  ;;  %v10889_v62 = vpop.f32.mrb[60].mxu0  ;;  %v16580_v35 = vld [vmem:[#allocation103_spill] sm:$0xff] }
 0xc6c   : > { %v11763_v20 = vpop.eup %11762  ;;  %v9558_v48 = vadd.f32 %v16022_v23, %v10889_v62  ;;  %v9549_v30 = vpop.f32.mrb[61].mxu0 }
 0xc6d   : > { %v11765_v41 = vpop.eup %11764  ;;  %v9942_v0 = vsel %vm9886_vm0, %v11763_v20, %v8194_v33  ;;  %11772 = vrcp.f32 %v9814_v52  ;;  %v9550_v57 = vadd.f32 %v16022_v23, %v9549_v30  ;;  %v10890_v9 = vpop.f32.mrb[62].mxu0  ;;  %v8136_v33 = vadd.f32 %v16580_v35, %v15797_v1  ;;  %v16581_v20 = vld [vmem:[#allocation101_spill] sm:$0xff] }
 0xc6e   : > { %v11767_v15 = vpop.eup %11766  ;;  %10006 = vst [vmem:[%s15822_s16 + $0x1b8] sm:$0xff] %v9942_v0  ;;  %v9940_v8 = vsel %vm9886_vm0, %v11765_v41, %v8192_v39  ;;  %v9626_v42 = vsub.f32 0.0, %v9558_v48  ;;  %v9561_v21 = vadd.f32 %v16022_v23, %v10890_v9  ;;  %v9552_v19 = vpop.f32.mrb[63].mxu0  ;;  %v8128_v39 = vadd.f32 %v16581_v20, %v15797_v1 }
 0xc6f   : > { %v11769_v27 = vpop.eup %11768  ;;  %10004 = vst [vmem:[%s15822_s16 + $0x1a8] sm:$0xff] %v9940_v8  ;;  %v9812_v16 = vadd.f32 1.0, %v11767_v15  ;;  %v9624_v29 = vsub.f32 0.0, %v9550_v57  ;;  %v9553_v3 = vadd.f32 %v16022_v23, %v9552_v19  ;;  %v8197_v23 = vmax.f32 %v8117_v40, 0.0 }
 0xc70   : > { %v11771_v24 = vpop.eup %11770  ;;  %v9815_v28 = vadd.f32 1.0, %v11769_v27  ;;  %v9752_v11 = vmul.f32 1.442695, %v9626_v42  ;;  %v9627_v22 = vsub.f32 0.0, %v9561_v21  ;;  %v8201_v52 = vmax.f32 %v8133_v2, 0.0 }
 0xc71   : > { %11774 = vrcp.f32 %v9812_v16  ;;  %v9813_v61 = vadd.f32 1.0, %v11771_v24  ;;  %v9748_v46 = vmul.f32 1.442695, %v9624_v29  ;;  %v9625_v4 = vsub.f32 0.0, %v9553_v3 }
 0xc72   : > { %11776 = vrcp.f32 %v9815_v28  ;;  %v9754_v50 = vmul.f32 1.442695, %v9627_v22  ;;  %v8199_v41 = vmax.f32 %v8125_v49, 0.0  ;;  %v8202_v48 = vmax.f32 %v8136_v33, 0.0 }
 0xc73   : > { %11778 = vrcp.f32 %v9813_v61  ;;  %v9750_v18 = vmul.f32 1.442695, %v9625_v4  ;;  %v8200_v8 = vmax.f32 %v8128_v39, 0.0 }
 0xc74   : > { %11780 = vpow2.f32 %v9752_v11 }
 0xc75   : > { %11782 = vpow2.f32 %v9748_v46 }
 0xc76   : > { %11784 = vpow2.f32 %v9754_v50 }
 0xc77   : > { %11786 = vpow2.f32 %v9750_v18  ;;  %v11773_v5 = vpop.eup %11772 }
 0xc78   : > { %v9945_v32 = vsel %vm9886_vm0, %v11773_v5, %v8197_v23 }
 0xc79   : > { %10009 = vst [vmem:[%s15822_s16 + $0x1d0] sm:$0xff] %v9945_v32 }
 0xc7b   : > { %v11775_v47 = vpop.eup %11774 }
 0xc7c   : > { %v11777_v51 = vpop.eup %11776  ;;  %v9943_v25 = vsel %vm9886_vm0, %v11775_v47, %v8195_v45 }
 0xc7d   : > { %v11779_v60 = vpop.eup %11778  ;;  %10007 = vst [vmem:[%s15822_s16 + $0x1c0] sm:$0xff] %v9943_v25  ;;  %v9946_v56 = vsel %vm9886_vm0, %v11777_v51, %v8198_v53 }
 0xc7e   : > { %v11781_v13 = vpop.eup %11780  ;;  %10010 = vst [vmem:[%s15822_s16 + $0x1d8] sm:$0xff] %v9946_v56  ;;  %v9944_v17 = vsel %vm9886_vm0, %v11779_v60, %v8196_v12 }
 0xc7f   : > { %v11783_v38 = vpop.eup %11782  ;;  %10008 = vst [vmem:[%s15822_s16 + $0x1c8] sm:$0xff] %v9944_v17  ;;  %v9818_v36 = vadd.f32 1.0, %v11781_v13 }
 0xc80   : > { %v11785_v31 = vpop.eup %11784  ;;  %v9816_v55 = vadd.f32 1.0, %v11783_v38 }
 0xc81   : > { %v11787_v37 = vpop.eup %11786  ;;  %11788 = vrcp.f32 %v9818_v36  ;;  %v9819_v54 = vadd.f32 1.0, %v11785_v31 }
 0xc82   : > { %11790 = vrcp.f32 %v9816_v55  ;;  %v9817_v14 = vadd.f32 1.0, %v11787_v37 }
 0xc83   : > { %11792 = vrcp.f32 %v9819_v54 }
 0xc84   : > { %11794 = vrcp.f32 %v9817_v14 }
 0xc8b   : > { %v11789_v62 = vpop.eup %11788 }
 0xc8c   : > { %v11791_v0 = vpop.eup %11790  ;;  %v9949_v30 = vsel %vm9886_vm0, %v11789_v62, %v8201_v52 }
 0xc8d   : > { %v11793_v15 = vpop.eup %11792  ;;  %10013 = vst [vmem:[%s15822_s16 + $0x1f0] sm:$0xff] %v9949_v30  ;;  %v9947_v57 = vsel %vm9886_vm0, %v11791_v0, %v8199_v41 }
 0xc8e   : > { %v11795_v9 = vpop.eup %11794  ;;  %10011 = vst [vmem:[%s15822_s16 + $0x1e0] sm:$0xff] %v9947_v57  ;;  %v9950_v1 = vsel %vm9886_vm0, %v11793_v15, %v8202_v48 }
 0xc8f   : > { %10014 = vst [vmem:[%s15822_s16 + $0x1f8] sm:$0xff] %v9950_v1  ;;  %v9948_v27 = vsel %vm9886_vm0, %v11795_v9, %v8200_v8 }
 0xc90   : > { %10012 = vst [vmem:[%s15822_s16 + $0x1e8] sm:$0xff] %v9948_v27 }
 0xc91 PF: > { %s22_s21 = sadd.s32 1, %s11868_s21  }
 0xc92   : > { %p19_p4 = scmp.ge.s32.totalorder %s22_s21, 4  }
 0xc94   :  { %21 = sbr.rel (!%p19_p4) target bundleno = 1 (0x1), region = 111 }

</bundles_post_ra>
